<compile_context>
chip_gen: v6e
topology: v6e:2x2x1
jax: 0.10.0
libtpu: 0.0.40
codegen_flags: <defaults>
</compile_context>

<pallas_src>
from functools import partial

import numpy as np
import jax
import jax.numpy as jnp
from jax.experimental import pallas as pl
from jax.experimental.pallas import tpu as pltpu


# ------------------------- fused Pallas kernel ------------------------------

def _fused_autoencoder_kernel(x_ref,
                              w1, b1, w2, b2, w3, b3,
                              w4, b4, w5, b5, w6, b6,
                              o_ref):
    """Six fused (dense-conv) matmul + bias + activation layers, all in VMEM."""

    def layer(h, w_ref, b_ref, act):
        acc = jnp.dot(h.astype(w_ref.dtype), w_ref[...],
                      preferred_element_type=jnp.float32)
        acc = acc + b_ref[...]
        if act == "relu":
            return jnp.maximum(acc, 0.0)
        return jax.nn.sigmoid(acc)     # EUP transcendental, no explicit divide

    h = x_ref[...]                    # (tm, 16*16* 3) f32
    h = layer(h, w1, b1, "relu")      # (tm,  8* 8*16)
    h = layer(h, w2, b2, "relu")      # (tm,  4* 4*32)
    h = layer(h, w3, b3, "relu")      # (tm,  2* 2*64)
    h = layer(h, w4, b4, "relu")      # (tm,  4* 4*32)
    h = layer(h, w5, b5, "relu")      # (tm,  8* 8*16)
    h = layer(h, w6, b6, "sigmoid")   # (tm, 16*16* 3)
    o_ref[...] = h


def fused_autoencoder(x2d, packed, tm):
    """x2d: (N, H*W*Cin) f32 flattened NHWC, N a multiple of tm.
    packed: 6x (dense bf16 W, f32 bias).  Weights stay VMEM-resident across the
    row-tile grid (constant index_map); only x/out tiles stream."""
    n, d_in = x2d.shape
    d_out = packed[-1][0].shape[1]
    assert n % tm == 0

    args = [x2d]
    in_specs = [pl.BlockSpec((tm, d_in), lambda i: (i, 0))]
    for w, b in packed:
        args.append(w)
        in_specs.append(pl.BlockSpec(w.shape, lambda i: (0, 0)))   # resident
        args.append(b)
        in_specs.append(pl.BlockSpec(b.shape, lambda i: (0, 0)))   # resident

    return pl.pallas_call(
        _fused_autoencoder_kernel,
        out_shape=jax.ShapeDtypeStruct((n, d_out), jnp.float32),
        grid=(n // tm,),
        in_specs=in_specs,
        out_specs=pl.BlockSpec((tm, d_out), lambda i: (i, 0)),
        compiler_params=pltpu.CompilerParams(
            dimension_semantics=("parallel",),          # v7x: both TCs take tiles
            vmem_limit_bytes=32 * 1024 * 1024),
    )(*args)


# ---------------- init-time weight packing (conv -> dense matrix) -----------

def _conv2d_dense(w, b, h, w_in, stride, pad):
    """Fold PyTorch Conv2d weights (Cout,Cin,kh,kw) into a dense matrix acting on
    flattened-NHWC activations: (H*W*Cin, Ho*Wo*Cout). Exact (linear) lowering."""
    w = np.asarray(w, np.float32)
    b = np.asarray(b, np.float32)
    cout, cin, kh, kw = w.shape
    ho = (h + 2 * pad - kh) // stride + 1
    wo = (w_in + 2 * pad - kw) // stride + 1
    m = np.zeros((h, w_in, cin, ho, wo, cout), np.float32)
    for i in range(kh):
        for j in range(kw):
            tap = w[:, :, i, j].T                       # (Cin, Cout)
            for oh in range(ho):
                ih = stride * oh + i - pad
                if not 0 <= ih < h:
                    continue
                for ow in range(wo):
                    iw = stride * ow + j - pad
                    if not 0 <= iw < w_in:
                        continue
                    m[ih, iw, :, oh, ow, :] += tap
    b_big = np.tile(b[None, :], (ho * wo, 1)).reshape(1, ho * wo * cout)
    return m.reshape(h * w_in * cin, ho * wo * cout), b_big, ho, wo


def _convT2d_dense(w, b, h, w_in, stride, pad, out_pad):
    """Fold PyTorch ConvTranspose2d weights (Cin,Cout,kh,kw) into a dense matrix
    acting on flattened-NHWC activations: (H*W*Cin, Ho*Wo*Cout)."""
    w = np.asarray(w, np.float32)
    b = np.asarray(b, np.float32)
    cin, cout, kh, kw = w.shape
    ho = (h - 1) * stride - 2 * pad + kh + out_pad
    wo = (w_in - 1) * stride - 2 * pad + kw + out_pad
    m = np.zeros((h, w_in, cin, ho, wo, cout), np.float32)
    for i in range(kh):
        for j in range(kw):
            tap = w[:, :, i, j]                         # (Cin, Cout)
            for ih in range(h):
                oh = stride * ih + i - pad
                if not 0 <= oh < ho:
                    continue
                for iw in range(w_in):
                    ow = stride * iw + j - pad
                    if not 0 <= ow < wo:
                        continue
                    m[ih, iw, :, oh, ow, :] += tap
    b_big = np.tile(b[None, :], (ho * wo, 1)).reshape(1, ho * wo * cout)
    return m.reshape(h * w_in * cin, ho * wo * cout), b_big, ho, wo


def pack_params(params, h, w):
    """params: PyTorch-layout (weight, bias) for e1,e2,e3,d1,d2,d3."""
    e1, e2, e3, d1, d2, d3 = params
    packed = []
    cur_h, cur_w = h, w
    for (wt, bs) in (e1, e2, e3):
        m, bb, cur_h, cur_w = _conv2d_dense(wt, bs, cur_h, cur_w, 2, 1)
        packed.append((jnp.asarray(m, jnp.bfloat16), jnp.asarray(bb, jnp.float32)))
    for (wt, bs) in (d1, d2, d3):
        m, bb, cur_h, cur_w = _convT2d_dense(wt, bs, cur_h, cur_w, 2, 1, 1)
        packed.append((jnp.asarray(m, jnp.bfloat16), jnp.asarray(bb, jnp.float32)))
    return tuple(packed)


# ------------------------------ model glue ----------------------------------

def _choose_tm(n):
    # Multiple of 16 (bf16 sublane packing = 16 rows/vreg); cap at 256 to match
    # the 256x256 MXU on v6e/v7x while keeping VMEM activation tiles small.
    n16 = ((n + 15) // 16) * 16
    return min(256, n16)


@partial(jax.jit, static_argnames=("tm",))
def autoencoder_forward(x_nchw, packed, tm=None):
    n, c, h, w = x_nchw.shape
    if tm is None:
        tm = _choose_tm(n)
    x2d = jnp.transpose(x_nchw, (0, 2, 3, 1)).reshape(n, h * w * c)
    n_pad = (-n) % tm                                   # align rows to the M tile
    if n_pad:
        x2d = jnp.pad(x2d, ((0, n_pad), (0, 0)))
    y2d = fused_autoencoder(x2d, packed, tm)[:n]
    return jnp.transpose(y2d.reshape(n, h, w, c), (0, 3, 1, 2))


# ----------------------- pure-JAX reference (XLA convs) ---------------------

def _ref_conv2d(x, w, b, stride, pad):
    y = jax.lax.conv_general_dilated(
        x, w, window_strides=(stride, stride),
        padding=[(pad, pad), (pad, pad)],
        dimension_numbers=("NCHW", "OIHW", "NCHW"))
    return y + b.reshape(1, -1, 1, 1)


def _ref_convT2d(x, w, b, stride, pad, out_pad):
    kh, kw = w.shape[2], w.shape[3]
    w_conv = jnp.flip(w, (2, 3)).transpose(1, 0, 2, 3)  # (Cout, Cin, kh, kw)
    y = jax.lax.conv_general_dilated(
        x, w_conv, window_strides=(1, 1),
        padding=[(kh - 1 - pad, kh - 1 - pad + out_pad),
                 (kw - 1 - pad, kw - 1 - pad + out_pad)],
        lhs_dilation=(stride, stride),
        dimension_numbers=("NCHW", "OIHW", "NCHW"))
    return y + b.reshape(1, -1, 1, 1)


def reference_forward(x, params):
    e1, e2, e3, d1, d2, d3 = params
    h = jax.nn.relu(_ref_conv2d(x, *e1, 2, 1))
    h = jax.nn.relu(_ref_conv2d(h, *e2, 2, 1))
    h = jax.nn.relu(_ref_conv2d(h, *e3, 2, 1))
    h = jax.nn.relu(_ref_convT2d(h, *d1, 2, 1, 1))
    h = jax.nn.relu(_ref_convT2d(h, *d2, 2, 1, 1))
    return jax.nn.sigmoid(_ref_convT2d(h, *d3, 2, 1, 1))


# ------------------------------- init ---------------------------------------

def _init_conv(key, cout, cin, ksz):
    kw_, kb = jax.random.split(key)
    bound = 1.0 / float(cin * ksz * ksz) ** 0.5
    w = jax.random.uniform(kw_, (cout, cin, ksz, ksz), jnp.float32, -bound, bound)
    b = jax.random.uniform(kb, (cout,), jnp.float32, -bound, bound)
    return w, b


def _init_convT(key, cin, cout, ksz):
    kw_, kb = jax.random.split(key)
    bound = 1.0 / float(cout * ksz * ksz) ** 0.5
    w = jax.random.uniform(kw_, (cin, cout, ksz, ksz), jnp.float32, -bound, bound)
    b = jax.random.uniform(kb, (cout,), jnp.float32, -bound, bound)
    return w, b


if __name__ == "__main__":
    key = jax.random.PRNGKey(0)
    kx, kx2, k1, k2, k3, k4, k5, k6 = jax.random.split(key, 8)

    params = (
        _init_conv(k1, 16, 3, 3),     # Conv2d(3, 16, 3, s=2, p=1)
        _init_conv(k2, 32, 16, 3),    # Conv2d(16, 32, 3, s=2, p=1)
        _init_conv(k3, 64, 32, 3),    # Conv2d(32, 64, 3, s=2, p=1)
        _init_convT(k4, 64, 32, 3),   # ConvTranspose2d(64, 32, 3, s=2, p=1, op=1)
        _init_convT(k5, 32, 16, 3),   # ConvTranspose2d(32, 16, 3, s=2, p=1, op=1)
        _init_convT(k6, 16, 3, 3),    # ConvTranspose2d(16, 3, 3, s=2, p=1, op=1)
    )

    packed = pack_params(params, 16, 16)   # one-time weight packing (host side)
    ref_fn = jax.jit(reference_forward)

    # --- test 1: tiny batch (single row tile, degenerate grid) ---------------
    x = jax.random.uniform(kx, (2, 3, 16, 16), jnp.float32)
    y = autoencoder_forward(x, packed)
    jax.block_until_ready(y)
    assert y.shape == (2, 3, 16, 16), y.shape
    assert bool(jnp.all((y >= 0.0) & (y <= 1.0)))       # sigmoid output range

    y_ref = ref_fn(x, params)
    jax.block_until_ready(y_ref)
    max_err = float(jnp.max(jnp.abs(y - y_ref)))
    assert max_err < 3e-2, max_err

    # --- test 2: batched path — multi-step grid with VMEM-resident weights ---
    xb = jax.random.uniform(kx2, (64, 3, 16, 16), jnp.float32)
    yb = autoencoder_forward(xb, packed, tm=16)         # grid=(4,), weights resident
    jax.block_until_ready(yb)
    yb_ref = ref_fn(xb, params)
    jax.block_until_ready(yb_ref)
    max_err_b = float(jnp.max(jnp.abs(yb - yb_ref)))
    assert yb.shape == (64, 3, 16, 16), yb.shape
    assert max_err_b < 3e-2, max_err_b

    print("KERNEL_OK")
</pallas_src>

<mosaic_0001>
module attributes {stable_mosaic.version = 11 : i64} {
  func.func @_fused_autoencoder_kernel(%arg0: i32, %arg1: memref<16x768xf32, #tpu.memory_space<vmem>>, %arg2: memref<768x1024xbf16, #tpu.memory_space<vmem>>, %arg3: memref<1x1024xf32, #tpu.memory_space<vmem>>, %arg4: memref<1024x512xbf16, #tpu.memory_space<vmem>>, %arg5: memref<1x512xf32, #tpu.memory_space<vmem>>, %arg6: memref<512x256xbf16, #tpu.memory_space<vmem>>, %arg7: memref<1x256xf32, #tpu.memory_space<vmem>>, %arg8: memref<256x512xbf16, #tpu.memory_space<vmem>>, %arg9: memref<1x512xf32, #tpu.memory_space<vmem>>, %arg10: memref<512x1024xbf16, #tpu.memory_space<vmem>>, %arg11: memref<1x1024xf32, #tpu.memory_space<vmem>>, %arg12: memref<1024x768xbf16, #tpu.memory_space<vmem>>, %arg13: memref<1x768xf32, #tpu.memory_space<vmem>>, %arg14: memref<16x768xf32, #tpu.memory_space<vmem>>) attributes {dimension_semantics = [#tpu.dimension_semantics<parallel>], iteration_bounds = array<i64: 1>, scalar_prefetch = 0 : i64, scratch_operands = 0 : i64, tpu.core_type = #tpu.core_type<tc>, window_params = [{transform_indices = @transform_0, window_bounds = array<i64: 16, 768>}, {pipeline_mode = #tpu.pipeline_mode<synchronous>, transform_indices = @transform_1, window_bounds = array<i64: 768, 1024>}, {pipeline_mode = #tpu.pipeline_mode<synchronous>, transform_indices = @transform_2, window_bounds = array<i64: 1, 1024>}, {pipeline_mode = #tpu.pipeline_mode<synchronous>, transform_indices = @transform_3, window_bounds = array<i64: 1024, 512>}, {pipeline_mode = #tpu.pipeline_mode<synchronous>, transform_indices = @transform_4, window_bounds = array<i64: 1, 512>}, {pipeline_mode = #tpu.pipeline_mode<synchronous>, transform_indices = @transform_5, window_bounds = array<i64: 512, 256>}, {pipeline_mode = #tpu.pipeline_mode<synchronous>, transform_indices = @transform_6, window_bounds = array<i64: 1, 256>}, {pipeline_mode = #tpu.pipeline_mode<synchronous>, transform_indices = @transform_7, window_bounds = array<i64: 256, 512>}, {pipeline_mode = #tpu.pipeline_mode<synchronous>, transform_indices = @transform_8, window_bounds = array<i64: 1, 512>}, {pipeline_mode = #tpu.pipeline_mode<synchronous>, transform_indices = @transform_9, window_bounds = array<i64: 512, 1024>}, {pipeline_mode = #tpu.pipeline_mode<synchronous>, transform_indices = @transform_10, window_bounds = array<i64: 1, 1024>}, {pipeline_mode = #tpu.pipeline_mode<synchronous>, transform_indices = @transform_11, window_bounds = array<i64: 1024, 768>}, {pipeline_mode = #tpu.pipeline_mode<synchronous>, transform_indices = @transform_12, window_bounds = array<i64: 1, 768>}, {transform_indices = @transform_13, window_bounds = array<i64: 16, 768>}]} {
    %c0 = arith.constant 0 : index
    %c0_0 = arith.constant 0 : index
    %0 = vector.load %arg1[%c0, %c0_0] : memref<16x768xf32, #tpu.memory_space<vmem>>, vector<16x768xf32>
    %1 = arith.truncf %0 : vector<16x768xf32> to vector<16x768xbf16>
    %c0_1 = arith.constant 0 : index
    %c0_2 = arith.constant 0 : index
    %2 = vector.load %arg2[%c0_1, %c0_2] : memref<768x1024xbf16, #tpu.memory_space<vmem>>, vector<768x1024xbf16>
    %cst = arith.constant dense<0.000000e+00> : vector<16x1024xf32>
    %3 = tpu.matmul %1, %2, %cst {dimension_numbers = #tpu.dot_dimension_numbers<[1], [0], [0], [1], [0, 0, 1, 1], [], []>} : vector<16x768xbf16>, vector<768x1024xbf16>, vector<16x1024xf32> -> vector<16x1024xf32>
    %c0_3 = arith.constant 0 : index
    %c0_4 = arith.constant 0 : index
    %4 = vector.load %arg3[%c0_3, %c0_4] : memref<1x1024xf32, #tpu.memory_space<vmem>>, vector<1x1024xf32>
    %5 = vector.broadcast %4 : vector<1x1024xf32> to vector<16x1024xf32>
    %6 = arith.addf %3, %5 : vector<16x1024xf32>
    %cst_5 = arith.constant 0.000000e+00 : f32
    %7 = vector.broadcast %cst_5 : f32 to vector<16x1024xf32>
    %8 = arith.maximumf %6, %7 : vector<16x1024xf32>
    %9 = arith.truncf %8 : vector<16x1024xf32> to vector<16x1024xbf16>
    %c0_6 = arith.constant 0 : index
    %c0_7 = arith.constant 0 : index
    %10 = vector.load %arg4[%c0_6, %c0_7] : memref<1024x512xbf16, #tpu.memory_space<vmem>>, vector<1024x512xbf16>
    %cst_8 = arith.constant dense<0.000000e+00> : vector<16x512xf32>
    %11 = tpu.matmul %9, %10, %cst_8 {dimension_numbers = #tpu.dot_dimension_numbers<[1], [0], [0], [1], [0, 0, 1, 1], [], []>} : vector<16x1024xbf16>, vector<1024x512xbf16>, vector<16x512xf32> -> vector<16x512xf32>
    %c0_9 = arith.constant 0 : index
    %c0_10 = arith.constant 0 : index
    %12 = vector.load %arg5[%c0_9, %c0_10] : memref<1x512xf32, #tpu.memory_space<vmem>>, vector<1x512xf32>
    %13 = vector.broadcast %12 : vector<1x512xf32> to vector<16x512xf32>
    %14 = arith.addf %11, %13 : vector<16x512xf32>
    %cst_11 = arith.constant 0.000000e+00 : f32
    %15 = vector.broadcast %cst_11 : f32 to vector<16x512xf32>
    %16 = arith.maximumf %14, %15 : vector<16x512xf32>
    %17 = arith.truncf %16 : vector<16x512xf32> to vector<16x512xbf16>
    %c0_12 = arith.constant 0 : index
    %c0_13 = arith.constant 0 : index
    %18 = vector.load %arg6[%c0_12, %c0_13] : memref<512x256xbf16, #tpu.memory_space<vmem>>, vector<512x256xbf16>
    %cst_14 = arith.constant dense<0.000000e+00> : vector<16x256xf32>
    %19 = tpu.matmul %17, %18, %cst_14 {dimension_numbers = #tpu.dot_dimension_numbers<[1], [0], [0], [1], [0, 0, 1, 1], [], []>} : vector<16x512xbf16>, vector<512x256xbf16>, vector<16x256xf32> -> vector<16x256xf32>
    %c0_15 = arith.constant 0 : index
    %c0_16 = arith.constant 0 : index
    %20 = vector.load %arg7[%c0_15, %c0_16] : memref<1x256xf32, #tpu.memory_space<vmem>>, vector<1x256xf32>
    %21 = vector.broadcast %20 : vector<1x256xf32> to vector<16x256xf32>
    %22 = arith.addf %19, %21 : vector<16x256xf32>
    %cst_17 = arith.constant 0.000000e+00 : f32
    %23 = vector.broadcast %cst_17 : f32 to vector<16x256xf32>
    %24 = arith.maximumf %22, %23 : vector<16x256xf32>
    %25 = arith.truncf %24 : vector<16x256xf32> to vector<16x256xbf16>
    %c0_18 = arith.constant 0 : index
    %c0_19 = arith.constant 0 : index
    %26 = vector.load %arg8[%c0_18, %c0_19] : memref<256x512xbf16, #tpu.memory_space<vmem>>, vector<256x512xbf16>
    %cst_20 = arith.constant dense<0.000000e+00> : vector<16x512xf32>
    %27 = tpu.matmul %25, %26, %cst_20 {dimension_numbers = #tpu.dot_dimension_numbers<[1], [0], [0], [1], [0, 0, 1, 1], [], []>} : vector<16x256xbf16>, vector<256x512xbf16>, vector<16x512xf32> -> vector<16x512xf32>
    %c0_21 = arith.constant 0 : index
    %c0_22 = arith.constant 0 : index
    %28 = vector.load %arg9[%c0_21, %c0_22] : memref<1x512xf32, #tpu.memory_space<vmem>>, vector<1x512xf32>
    %29 = vector.broadcast %28 : vector<1x512xf32> to vector<16x512xf32>
    %30 = arith.addf %27, %29 : vector<16x512xf32>
    %cst_23 = arith.constant 0.000000e+00 : f32
    %31 = vector.broadcast %cst_23 : f32 to vector<16x512xf32>
    %32 = arith.maximumf %30, %31 : vector<16x512xf32>
    %33 = arith.truncf %32 : vector<16x512xf32> to vector<16x512xbf16>
    %c0_24 = arith.constant 0 : index
    %c0_25 = arith.constant 0 : index
    %34 = vector.load %arg10[%c0_24, %c0_25] : memref<512x1024xbf16, #tpu.memory_space<vmem>>, vector<512x1024xbf16>
    %cst_26 = arith.constant dense<0.000000e+00> : vector<16x1024xf32>
    %35 = tpu.matmul %33, %34, %cst_26 {dimension_numbers = #tpu.dot_dimension_numbers<[1], [0], [0], [1], [0, 0, 1, 1], [], []>} : vector<16x512xbf16>, vector<512x1024xbf16>, vector<16x1024xf32> -> vector<16x1024xf32>
    %c0_27 = arith.constant 0 : index
    %c0_28 = arith.constant 0 : index
    %36 = vector.load %arg11[%c0_27, %c0_28] : memref<1x1024xf32, #tpu.memory_space<vmem>>, vector<1x1024xf32>
    %37 = vector.broadcast %36 : vector<1x1024xf32> to vector<16x1024xf32>
    %38 = arith.addf %35, %37 : vector<16x1024xf32>
    %cst_29 = arith.constant 0.000000e+00 : f32
    %39 = vector.broadcast %cst_29 : f32 to vector<16x1024xf32>
    %40 = arith.maximumf %38, %39 : vector<16x1024xf32>
    %41 = arith.truncf %40 : vector<16x1024xf32> to vector<16x1024xbf16>
    %c0_30 = arith.constant 0 : index
    %c0_31 = arith.constant 0 : index
    %42 = vector.load %arg12[%c0_30, %c0_31] : memref<1024x768xbf16, #tpu.memory_space<vmem>>, vector<1024x768xbf16>
    %cst_32 = arith.constant dense<0.000000e+00> : vector<16x768xf32>
    %43 = tpu.matmul %41, %42, %cst_32 {dimension_numbers = #tpu.dot_dimension_numbers<[1], [0], [0], [1], [0, 0, 1, 1], [], []>} : vector<16x1024xbf16>, vector<1024x768xbf16>, vector<16x768xf32> -> vector<16x768xf32>
    %c0_33 = arith.constant 0 : index
    %c0_34 = arith.constant 0 : index
    %44 = vector.load %arg13[%c0_33, %c0_34] : memref<1x768xf32, #tpu.memory_space<vmem>>, vector<1x768xf32>
    %45 = vector.broadcast %44 : vector<1x768xf32> to vector<16x768xf32>
    %46 = arith.addf %43, %45 : vector<16x768xf32>
    %47 = arith.negf %46 : vector<16x768xf32>
    %48 = math.exp %47 : vector<16x768xf32>
    %cst_35 = arith.constant 1.000000e+00 : f32
    %49 = vector.broadcast %cst_35 : f32 to vector<16x768xf32>
    %50 = arith.addf %49, %48 : vector<16x768xf32>
    %51 = arith.divf %49, %50 : vector<16x768xf32>
    %c0_36 = arith.constant 0 : index
    %c0_37 = arith.constant 0 : index
    %52 = vector.load %arg14[%c0_36, %c0_37] : memref<16x768xf32, #tpu.memory_space<vmem>>, vector<16x768xf32>
    tpu.vector_store %arg14[%c0_36, %c0_37], %51 {strides = array<i32>} : memref<16x768xf32, #tpu.memory_space<vmem>>, vector<16x768xf32>,
    return
  }
  func.func @transform_0(%arg0: i32) -> (i32, i32) {
    %c0_i32 = arith.constant 0 : i32
    %c0_i32_0 = arith.constant 0 : i32
    return %arg0, %c0_i32 : i32, i32
  }
  func.func @transform_1(%arg0: i32) -> (i32, i32) {
    %c0_i32 = arith.constant 0 : i32
    %c0_i32_0 = arith.constant 0 : i32
    %c0_i32_1 = arith.constant 0 : i32
    return %c0_i32, %c0_i32_0 : i32, i32
  }
  func.func @transform_2(%arg0: i32) -> (i32, i32) {
    %c0_i32 = arith.constant 0 : i32
    %c0_i32_0 = arith.constant 0 : i32
    %c0_i32_1 = arith.constant 0 : i32
    return %c0_i32, %c0_i32_0 : i32, i32
  }
  func.func @transform_3(%arg0: i32) -> (i32, i32) {
    %c0_i32 = arith.constant 0 : i32
    %c0_i32_0 = arith.constant 0 : i32
    %c0_i32_1 = arith.constant 0 : i32
    return %c0_i32, %c0_i32_0 : i32, i32
  }
  func.func @transform_4(%arg0: i32) -> (i32, i32) {
    %c0_i32 = arith.constant 0 : i32
    %c0_i32_0 = arith.constant 0 : i32
    %c0_i32_1 = arith.constant 0 : i32
    return %c0_i32, %c0_i32_0 : i32, i32
  }
  func.func @transform_5(%arg0: i32) -> (i32, i32) {
    %c0_i32 = arith.constant 0 : i32
    %c0_i32_0 = arith.constant 0 : i32
    %c0_i32_1 = arith.constant 0 : i32
    return %c0_i32, %c0_i32_0 : i32, i32
  }
  func.func @transform_6(%arg0: i32) -> (i32, i32) {
    %c0_i32 = arith.constant 0 : i32
    %c0_i32_0 = arith.constant 0 : i32
    %c0_i32_1 = arith.constant 0 : i32
    return %c0_i32, %c0_i32_0 : i32, i32
  }
  func.func @transform_7(%arg0: i32) -> (i32, i32) {
    %c0_i32 = arith.constant 0 : i32
    %c0_i32_0 = arith.constant 0 : i32
    %c0_i32_1 = arith.constant 0 : i32
    return %c0_i32, %c0_i32_0 : i32, i32
  }
  func.func @transform_8(%arg0: i32) -> (i32, i32) {
    %c0_i32 = arith.constant 0 : i32
    %c0_i32_0 = arith.constant 0 : i32
    %c0_i32_1 = arith.constant 0 : i32
    return %c0_i32, %c0_i32_0 : i32, i32
  }
  func.func @transform_9(%arg0: i32) -> (i32, i32) {
    %c0_i32 = arith.constant 0 : i32
    %c0_i32_0 = arith.constant 0 : i32
    %c0_i32_1 = arith.constant 0 : i32
    return %c0_i32, %c0_i32_0 : i32, i32
  }
  func.func @transform_10(%arg0: i32) -> (i32, i32) {
    %c0_i32 = arith.constant 0 : i32
    %c0_i32_0 = arith.constant 0 : i32
    %c0_i32_1 = arith.constant 0 : i32
    return %c0_i32, %c0_i32_0 : i32, i32
  }
  func.func @transform_11(%arg0: i32) -> (i32, i32) {
    %c0_i32 = arith.constant 0 : i32
    %c0_i32_0 = arith.constant 0 : i32
    %c0_i32_1 = arith.constant 0 : i32
    return %c0_i32, %c0_i32_0 : i32, i32
  }
  func.func @transform_12(%arg0: i32) -> (i32, i32) {
    %c0_i32 = arith.constant 0 : i32
    %c0_i32_0 = arith.constant 0 : i32
    %c0_i32_1 = arith.constant 0 : i32
    return %c0_i32, %c0_i32_0 : i32, i32
  }
  func.func @transform_13(%arg0: i32) -> (i32, i32) {
    %c0_i32 = arith.constant 0 : i32
    %c0_i32_0 = arith.constant 0 : i32
    return %arg0, %c0_i32 : i32, i32
  }
}

</mosaic_0001>

<bundles_post_ra>
// kernel: autoencoder_forward.1
= control target key start
LH: loop header
LB: loop body
LE: loop exit
PB: predicated region body
PF: predicated region fallthrough
CT: control target
= control target key end

     0   :  { %18 = vsyncpa [#allocation3], 0  ;;  %s14273_s0 = inlined_call_operand.vmem [shape: f32[16,768], index: 0, kind: input, shape index: {}]   ;;  %s14274_s1 = inlined_call_operand.hbm [shape: bf16[768,1024], index: 1, kind: input, shape index: {}]   ;;  %s14275_s2 = inlined_call_operand.hbm [shape: f32[1,1024], index: 2, kind: input, shape index: {}]   ;;  %s14276_s3 = inlined_call_operand.hbm [shape: bf16[1024,512], index: 3, kind: input, shape index: {}]   ;;  %s14277_s4 = inlined_call_operand.hbm [shape: f32[1,512], index: 4, kind: input, shape index: {}]   ;;  %s14278_s5 = inlined_call_operand.hbm [shape: bf16[512,256], index: 5, kind: input, shape index: {}]   ;;  %s14279_s6 = inlined_call_operand.hbm [shape: f32[1,256], index: 6, kind: input, shape index: {}]   ;;  %s14280_s7 = inlined_call_operand.hbm [shape: bf16[256,512], index: 7, kind: input, shape index: {}]   ;;  %s14281_s8 = inlined_call_operand.hbm [shape: f32[1,512], index: 8, kind: input, shape index: {}]   ;;  %s14282_s9 = inlined_call_operand.hbm [shape: bf16[512,1024], index: 9, kind: input, shape index: {}]   ;;  %s14283_s10 = inlined_call_operand.hbm [shape: f32[1,1024], index: 10, kind: input, shape index: {}]   ;;  %s14284_s11 = inlined_call_operand.hbm [shape: bf16[1024,768], index: 11, kind: input, shape index: {}]   ;;  %s14285_s12 = inlined_call_operand.hbm [shape: f32[1,768], index: 12, kind: input, shape index: {}]   ;;  %s14286_s13 = inlined_call_operand.vmem [shape: f32[16,768], index: 13, kind: output, shape index: {}]  }
   0x1   :  { %19 = vsyncpa [#allocation5], 0 }
   0x2   :  { %20 = vsyncpa [#allocation8], 0 }
   0x3   :  { %21 = vsyncpa [#allocation11], 0 }
   0x4   :  { %22 = vsyncpa [#allocation14], 0 }
   0x5   :  { %23 = vsyncpa [#allocation17], 0 }
   0x6   :  { %24 = vsyncpa [#allocation20], 0  ;;  %s13794_s25 = smov [#allocation4]   ;;  %s13795_s27 = smov [#allocation7]  }
   0x7   :  { %s45_s26 = sshll.u32 %s13794_s25, 4  ;;  %s67_s28 = sshll.u32 %s13795_s27, 4  ;;  %s46_s26 = int_to_ptr.vmem [resolvable:$true] %s45_s26  ;;  %s68_s28 = int_to_ptr.vmem [resolvable:$true] %s67_s28 }
   0x8   :  { %s13548_s29 = scalar_lea.vmem %s46_s26, 128  ;;  %p13553_p1 = scmp.lt.s32.totalorder %s46_s26, %s46_s26 }
   0x9   :  { %p13549_p0 = scmp.ne.s32.totalorder %s46_s26, %s13548_s29  ;;  %p13554_p2 = scmp.lt.s32.totalorder %s13548_s29, %s13548_s29 }
   0xb   :  { %p13555_p3 = por %p13554_p2, %p13553_p1 }
   0xd   :  { %p13556_p4 = pnand %p13555_p3, %p13549_p0 }
   0xf   :  { %13559 = shalt.err (!%p13556_p4)
}
  0x10   :  { %48 = dma.hbm_to_vmem [thread:$0]  %s14275_s2, 128, %s46_s26, [#allocation5]  }
  0x11   :  { %s13568_s15 = scalar_lea.vmem %s68_s28, 64  ;;  %p13573_p6 = scmp.lt.s32.totalorder %s68_s28, %s68_s28 }
  0x12   :  { %p13569_p5 = scmp.ne.s32.totalorder %s68_s28, %s13568_s15  ;;  %p13574_p7 = scmp.lt.s32.totalorder %s13568_s15, %s13568_s15 }
  0x14   :  { %p13575_p8 = por %p13574_p7, %p13573_p6 }
  0x16   :  { %p13576_p9 = pnand %p13575_p8, %p13569_p5 }
  0x18   :  { %13579 = shalt.err (!%p13576_p9)
}
  0x19   :  { %70 = dma.hbm_to_vmem [thread:$0]  %s14277_s4, 64, %s68_s28, [#allocation8]  }
  0x1a   :  { %s13796_s18 = smov [#allocation10]   ;;  %s13797_s20 = smov [#allocation13]  }
  0x1b   :  { %s89_s19 = sshll.u32 %s13796_s18, 4  ;;  %s111_s21 = sshll.u32 %s13797_s20, 4  ;;  %s90_s19 = int_to_ptr.vmem [resolvable:$true] %s89_s19  ;;  %s112_s21 = int_to_ptr.vmem [resolvable:$true] %s111_s21 }
  0x1c   :  { %s13588_s22 = scalar_lea.vmem %s90_s19, 32  ;;  %p13593_p11 = scmp.lt.s32.totalorder %s90_s19, %s90_s19 }
  0x1d   :  { %p13589_p10 = scmp.ne.s32.totalorder %s90_s19, %s13588_s22  ;;  %p13594_p12 = scmp.lt.s32.totalorder %s13588_s22, %s13588_s22 }
  0x1f   :  { %p13595_p13 = por %p13594_p12, %p13593_p11 }
  0x21   :  { %p13596_p0 = pnand %p13595_p13, %p13589_p10 }
  0x23   :  { %13599 = shalt.err (!%p13596_p0)
}
  0x24   :  { %92 = dma.hbm_to_vmem [thread:$0]  %s14279_s6, 32, %s90_s19, [#allocation11]  }
  0x25   :  { %s13608_s24 = scalar_lea.vmem %s112_s21, 64  ;;  %p13613_p2 = scmp.lt.s32.totalorder %s112_s21, %s112_s21 }
  0x26   :  { %p13609_p1 = scmp.ne.s32.totalorder %s112_s21, %s13608_s24  ;;  %p13614_p3 = scmp.lt.s32.totalorder %s13608_s24, %s13608_s24 }
  0x28   :  { %p13615_p4 = por %p13614_p3, %p13613_p2 }
  0x2a   :  { %p13616_p5 = pnand %p13615_p4, %p13609_p1 }
  0x2c   :  { %13619 = shalt.err (!%p13616_p5)
}
  0x2d   :  { %114 = dma.hbm_to_vmem [thread:$0]  %s14281_s8, 64, %s112_s21, [#allocation14]  }
  0x2e   :  { %s13798_s26 = smov [#allocation16]   ;;  %s13799_s28 = smov [#allocation2]  }
  0x2f   :  { %s133_s27 = sshll.u32 %s13798_s26, 4  ;;  %s32_s29 = sshll.u32 %s13799_s28, 4  ;;  %s134_s27 = int_to_ptr.vmem [resolvable:$true] %s133_s27  ;;  %s33_s29 = int_to_ptr.vmem [resolvable:$true] %s32_s29 }
  0x30   :  { %s13628_s30 = scalar_lea.vmem %s134_s27, 128  ;;  %p13633_p7 = scmp.lt.s32.totalorder %s134_s27, %s134_s27 }
  0x31   :  { %p13629_p6 = scmp.ne.s32.totalorder %s134_s27, %s13628_s30  ;;  %p13634_p8 = scmp.lt.s32.totalorder %s13628_s30, %s13628_s30 }
  0x33   :  { %p13635_p9 = por %p13634_p8, %p13633_p7 }
  0x35   :  { %p13636_p10 = pnand %p13635_p9, %p13629_p6 }
  0x37   :  { %13639 = shalt.err (!%p13636_p10)
}
  0x38   :  { %136 = dma.hbm_to_vmem [thread:$0]  %s14283_s10, 128, %s134_s27, [#allocation17]  }
  0x39   :  { %s13648_s15 = scalar_lea.vmem %s33_s29, 49152  ;;  %p13653_p12 = scmp.lt.s32.totalorder %s33_s29, %s33_s29 }
  0x3a   :  { %p13649_p11 = scmp.ne.s32.totalorder %s33_s29, %s13648_s15  ;;  %p13654_p13 = scmp.lt.s32.totalorder %s13648_s15, %s13648_s15 }
  0x3c   :  { %p13655_p0 = por %p13654_p13, %p13653_p12 }
  0x3e   :  { %p13656_p1 = pnand %p13655_p0, %p13649_p11 }
  0x40   :  { %13659 = shalt.err (!%p13656_p1)
}
  0x41   :  { %s13800_s8 = smov 512   ;;  %s13801_s16 = smov 32  }
  0x42   :  { %38 = dma.hbm_to_vmem [thread:$0]  %s14274_s1, 49152, %s33_s29, [#allocation3], %s13800_s8, %s13800_s8, %s13801_s16  }
  0x43   :  { %s13802_s19 = smov [#allocation6]  }
  0x44   :  { %s54_s20 = sshll.u32 %s13802_s19, 4  ;;  %s55_s20 = int_to_ptr.vmem [resolvable:$true] %s54_s20 }
  0x45   :  { %s13668_s10 = scalar_lea.vmem %s55_s20, 32768  ;;  %p13673_p3 = scmp.lt.s32.totalorder %s55_s20, %s55_s20 }
  0x46   :  { %p13669_p2 = scmp.ne.s32.totalorder %s55_s20, %s13668_s10  ;;  %p13674_p4 = scmp.lt.s32.totalorder %s13668_s10, %s13668_s10 }
  0x48   :  { %p13675_p5 = por %p13674_p4, %p13673_p3 }
  0x4a   :  { %p13676_p6 = pnand %p13675_p5, %p13669_p2 }
  0x4c   :  { %13679 = shalt.err (!%p13676_p6)
}
  0x4d   :  { %s13803_s21 = smov 256   ;;  %s13804_s22 = smov 16  }
  0x4e   :  { %60 = dma.hbm_to_vmem [thread:$0]  %s14276_s3, 32768, %s55_s20, [#allocation5], %s13803_s21, %s13803_s21, %s13804_s22  }
  0x4f   :  { %s13805_s1 = smov [#allocation9]  }
  0x50   :  { %s76_s24 = sshll.u32 %s13805_s1, 4  ;;  %s77_s24 = int_to_ptr.vmem [resolvable:$true] %s76_s24 }
  0x51   :  { %s13688_s4 = scalar_lea.vmem %s77_s24, 8192  ;;  %p13693_p8 = scmp.lt.s32.totalorder %s77_s24, %s77_s24 }
  0x52   :  { %p13689_p7 = scmp.ne.s32.totalorder %s77_s24, %s13688_s4  ;;  %p13694_p9 = scmp.lt.s32.totalorder %s13688_s4, %s13688_s4 }
  0x54   :  { %p13695_p10 = por %p13694_p9, %p13693_p8 }
  0x56   :  { %p13696_p11 = pnand %p13695_p10, %p13689_p7 }
  0x58   :  { %13699 = shalt.err (!%p13696_p11)
}
  0x59   :  { %s13806_s25 = smov 128   ;;  %s13807_s26 = smov 8  }
  0x5a   :  { %82 = dma.hbm_to_vmem [thread:$0]  %s14278_s5, 8192, %s77_s24, [#allocation8], %s13806_s25, %s13806_s25, %s13807_s26  }
  0x5b   :  { %s13808_s29 = smov [#allocation12]   ;;  %s13809_s6 = smov [#allocation15]  }
  0x5c   :  { %s98_s30 = sshll.u32 %s13808_s29, 4  ;;  %s120_s3 = sshll.u32 %s13809_s6, 4  ;;  %s99_s30 = int_to_ptr.vmem [resolvable:$true] %s98_s30  ;;  %s121_s3 = int_to_ptr.vmem [resolvable:$true] %s120_s3 }
  0x5d   :  { %s13708_s14 = scalar_lea.vmem %s99_s30, 8192  ;;  %p13713_p13 = scmp.lt.s32.totalorder %s99_s30, %s99_s30 }
  0x5e   :  { %p13709_p12 = scmp.ne.s32.totalorder %s99_s30, %s13708_s14  ;;  %p13714_p0 = scmp.lt.s32.totalorder %s13708_s14, %s13708_s14 }
  0x60   :  { %p13715_p1 = por %p13714_p0, %p13713_p13 }
  0x62   :  { %p13716_p2 = pnand %p13715_p1, %p13709_p12 }
  0x64   :  { %13719 = shalt.err (!%p13716_p2)
}
  0x65   :  { %104 = dma.hbm_to_vmem [thread:$0]  %s14280_s7, 8192, %s99_s30, [#allocation11], %s13803_s21, %s13803_s21, %s13804_s22  }
  0x66   :  { %s13728_s5 = scalar_lea.vmem %s121_s3, 32768  ;;  %p13733_p4 = scmp.lt.s32.totalorder %s121_s3, %s121_s3 }
  0x67   :  { %p13729_p3 = scmp.ne.s32.totalorder %s121_s3, %s13728_s5  ;;  %p13734_p5 = scmp.lt.s32.totalorder %s13728_s5, %s13728_s5 }
  0x69   :  { %p13735_p6 = por %p13734_p5, %p13733_p4 }
  0x6b   :  { %p13736_p7 = pnand %p13735_p6, %p13729_p3 }
  0x6d   :  { %13739 = shalt.err (!%p13736_p7)
}
  0x6e   :  { %126 = dma.hbm_to_vmem [thread:$0]  %s14282_s9, 32768, %s121_s3, [#allocation14], %s13800_s8, %s13800_s8, %s13801_s16  }
  0x6f   :  { %s13810_s20 = smov [#allocation18]  }
  0x70   :  { %s142_s10 = sshll.u32 %s13810_s20, 4  ;;  %s143_s10 = int_to_ptr.vmem [resolvable:$true] %s142_s10 }
  0x71   :  { %s13748_s2 = scalar_lea.vmem %s143_s10, 49152  ;;  %p13753_p9 = scmp.lt.s32.totalorder %s143_s10, %s143_s10 }
  0x72   :  { %p13749_p8 = scmp.ne.s32.totalorder %s143_s10, %s13748_s2  ;;  %p13754_p10 = scmp.lt.s32.totalorder %s13748_s2, %s13748_s2 }
  0x74   :  { %p13755_p11 = por %p13754_p10, %p13753_p9 }
  0x76   :  { %p13756_p12 = pnand %p13755_p11, %p13749_p8 }
  0x78   :  { %13759 = shalt.err (!%p13756_p12)
}
  0x79   :  { %s13811_s7 = smov 384   ;;  %s13812_s21 = smov 24  }
  0x7a   :  { %148 = dma.hbm_to_vmem [thread:$0]  %s14284_s11, 49152, %s143_s10, [#allocation17], %s13811_s7, %s13811_s7, %s13812_s21  }
  0x7b   :  { %s13813_s1 = smov [#allocation19]  }
  0x7c   :  { %s155_s24 = sshll.u32 %s13813_s1, 4  ;;  %s156_s24 = int_to_ptr.vmem [resolvable:$true] %s155_s24 }
  0x7d   :  { %s13768_s9 = scalar_lea.vmem %s156_s24, 96  ;;  %p13773_p0 = scmp.lt.s32.totalorder %s156_s24, %s156_s24 }
  0x7e   :  { %p13769_p13 = scmp.ne.s32.totalorder %s156_s24, %s13768_s9  ;;  %p13774_p1 = scmp.lt.s32.totalorder %s13768_s9, %s13768_s9 }
  0x80   :  { %p13775_p2 = por %p13774_p1, %p13773_p0 }
  0x82   :  { %p13776_p3 = pnand %p13775_p2, %p13769_p13 }
  0x84   :  { %13779 = shalt.err (!%p13776_p3)
}
  0x85   :  { %158 = dma.hbm_to_vmem [thread:$0]  %s14285_s12, 96, %s156_s24, [#allocation20]  }
  0x86   :  { %13780 = dma.done.wait [#allocation3], 49152  }
  0x87   :  { %13781 = vsyncadd [#allocation3], 4294918144 }
  0x88   :  { %13782 = dma.done.wait [#allocation5], 32896  }
  0x89   :  { %13783 = vsyncadd [#allocation5], 4294934400 }
  0x8a   :  { %13784 = dma.done.wait [#allocation8], 8256  }
  0x8b   :  { %13785 = vsyncadd [#allocation8], 4294959040 }
  0x8c   :  { %13786 = dma.done.wait [#allocation11], 8224  }
  0x8d   :  { %13787 = vsyncadd [#allocation11], 4294959072 }
  0x8e   :  { %13788 = dma.done.wait [#allocation14], 32832  }
  0x8f   :  { %13789 = vsyncadd [#allocation14], 4294934464 }
  0x90   :  { %13790 = dma.done.wait [#allocation17], 49280  }
  0x91   :  { %13791 = vsyncadd [#allocation17], 4294918016 }
  0x92   :  { %13792 = dma.done.wait [#allocation20], 96  }
  0x93   :  { %13793 = vsyncadd [#allocation20], 4294967200  ;;  %v269_v0 = vld [vmem:[#allocation2 + $0x1c0] sm:$0xff]  ;;  %v196_v54 = vld [vmem:[%s14273_s0 + $0x8] sm:$0xff] }
  0x94   :  { %v273_v1 = vld [vmem:[#allocation2 + $0x1e0] sm:$0xff]  ;;  %v202_v55 = vld [vmem:[%s14273_s0 + $0x38] sm:$0xff]  ;;  %v204_v60 = vld [vmem:[%s14273_s0 + $0x48] sm:$0xff] }
  0x95   :  { %v397_v2 = vld [vmem:[#allocation2 + $0x5c0] sm:$0xff]  ;;  %v10955_v3 = vcombine.high %v269_v0, %v273_v1  ;;  %v10954_v5 = vcombine.low %v269_v0, %v273_v1  ;;  %v13938_v58 = vpack.c.bf16 %v202_v55, %v196_v54  ;;  %v198_v59 = vld [vmem:[%s14273_s0 + $0x18] sm:$0xff] }
  0x96   :  { %v401_v4 = vld [vmem:[#allocation2 + $0x5e0] sm:$0xff]  ;;  %v13946_v63 = vpack.c.bf16 %v204_v60, %v198_v59 }
  0x97   :  { %v261_v6 = vld [vmem:[#allocation2 + $0x180] sm:$0xff]  ;;  %v11083_v8 = vcombine.high %v397_v2, %v401_v4  ;;  %v11082_v9 = vcombine.low %v397_v2, %v401_v4  ;;  %2559 = vmatprep.subr.bf16.mxu0 %v10955_v3  ;;  %2591 = vmatprep.mubr.bf16.mxu0 %v13938_v58 }
  0x98   :  { %v265_v7 = vld [vmem:[#allocation2 + $0x1a0] sm:$0xff]  ;;  %2560 = vmatpush1.bf16.msra.mxu0 %v10954_v5  ;;  %2634 = vmatprep.mubr.bf16.mxu1 %v13946_v63 }
  0x99   :  { %v10947_v10 = vcombine.high %v261_v6, %v265_v7  ;;  %v389_v11 = vld [vmem:[#allocation2 + $0x580] sm:$0xff]  ;;  %2602 = vmatprep.subr.bf16.mxu1 %v11083_v8  ;;  %v10946_v18 = vcombine.low %v261_v6, %v265_v7 }
  0x9a   :  { %v393_v12 = vld [vmem:[#allocation2 + $0x5a0] sm:$0xff]  ;;  %2603 = vmatpush1.bf16.msra.mxu1 %v11082_v9 }
  0x9b   :  { %v253_v13 = vld [vmem:[#allocation2 + $0x140] sm:$0xff]  ;;  %v11075_v14 = vcombine.high %v389_v11, %v393_v12  ;;  %2561 = vmatprep.subr.bf16.mxu0 %v10947_v10  ;;  %v11074_v19 = vcombine.low %v389_v11, %v393_v12 }
  0x9c   :  { %v257_v15 = vld [vmem:[#allocation2 + $0x160] sm:$0xff]  ;;  %2562 = vmatpush1.bf16.msra.mxu0 %v10946_v18 }
  0x9d   :  { %v381_v16 = vld [vmem:[#allocation2 + $0x540] sm:$0xff]  ;;  %v10939_v20 = vcombine.high %v253_v13, %v257_v15  ;;  %2604 = vmatprep.subr.bf16.mxu1 %v11075_v14  ;;  %v10938_v26 = vcombine.low %v253_v13, %v257_v15 }
  0x9e   :  { %v385_v17 = vld [vmem:[#allocation2 + $0x560] sm:$0xff]  ;;  %2605 = vmatpush1.bf16.msra.mxu1 %v11074_v19 }
  0x9f   :  { %v11067_v21 = vcombine.high %v381_v16, %v385_v17  ;;  %v245_v22 = vld [vmem:[#allocation2 + $0x100] sm:$0xff]  ;;  %2563 = vmatprep.subr.bf16.mxu0 %v10939_v20  ;;  %v11066_v27 = vcombine.low %v381_v16, %v385_v17 }
  0xa0   :  { %v249_v23 = vld [vmem:[#allocation2 + $0x120] sm:$0xff]  ;;  %2564 = vmatpush1.bf16.msra.mxu0 %v10938_v26 }
  0xa1   :  { %v373_v24 = vld [vmem:[#allocation2 + $0x500] sm:$0xff]  ;;  %v10931_v28 = vcombine.high %v245_v22, %v249_v23  ;;  %2606 = vmatprep.subr.bf16.mxu1 %v11067_v21  ;;  %v10930_v34 = vcombine.low %v245_v22, %v249_v23 }
  0xa2   :  { %v377_v25 = vld [vmem:[#allocation2 + $0x520] sm:$0xff]  ;;  %2607 = vmatpush1.bf16.msra.mxu1 %v11066_v27 }
  0xa3   :  { %v11059_v29 = vcombine.high %v373_v24, %v377_v25  ;;  %v237_v30 = vld [vmem:[#allocation2 + $0xc0] sm:$0xff]  ;;  %2565 = vmatprep.subr.bf16.mxu0 %v10931_v28  ;;  %v11058_v35 = vcombine.low %v373_v24, %v377_v25 }
  0xa4   :  { %v241_v31 = vld [vmem:[#allocation2 + $0xe0] sm:$0xff]  ;;  %2566 = vmatpush1.bf16.msra.mxu0 %v10930_v34 }
  0xa5   :  { %v365_v32 = vld [vmem:[#allocation2 + $0x4c0] sm:$0xff]  ;;  %v10923_v36 = vcombine.high %v237_v30, %v241_v31  ;;  %2608 = vmatprep.subr.bf16.mxu1 %v11059_v29  ;;  %v10922_v42 = vcombine.low %v237_v30, %v241_v31 }
  0xa6   :  { %v369_v33 = vld [vmem:[#allocation2 + $0x4e0] sm:$0xff]  ;;  %2609 = vmatpush1.bf16.msra.mxu1 %v11058_v35 }
  0xa7   :  { %v11051_v37 = vcombine.high %v365_v32, %v369_v33  ;;  %v229_v38 = vld [vmem:[#allocation2 + $0x80] sm:$0xff]  ;;  %2567 = vmatprep.subr.bf16.mxu0 %v10923_v36  ;;  %v11050_v43 = vcombine.low %v365_v32, %v369_v33 }
  0xa8   :  { %v233_v39 = vld [vmem:[#allocation2 + $0xa0] sm:$0xff]  ;;  %2568 = vmatpush1.bf16.msra.mxu0 %v10922_v42 }
  0xa9   :  { %v357_v40 = vld [vmem:[#allocation2 + $0x480] sm:$0xff]  ;;  %v10915_v44 = vcombine.high %v229_v38, %v233_v39  ;;  %2610 = vmatprep.subr.bf16.mxu1 %v11051_v37  ;;  %v10914_v50 = vcombine.low %v229_v38, %v233_v39 }
  0xaa   :  { %v361_v41 = vld [vmem:[#allocation2 + $0x4a0] sm:$0xff]  ;;  %2611 = vmatpush1.bf16.msra.mxu1 %v11050_v43 }
  0xab   :  { %v11043_v45 = vcombine.high %v357_v40, %v361_v41  ;;  %v221_v46 = vld [vmem:[#allocation2 + $0x40] sm:$0xff]  ;;  %2569 = vmatprep.subr.bf16.mxu0 %v10915_v44  ;;  %v11042_v51 = vcombine.low %v357_v40, %v361_v41 }
  0xac   :  { %v225_v47 = vld [vmem:[#allocation2 + $0x60] sm:$0xff]  ;;  %2570 = vmatpush1.bf16.msra.mxu0 %v10914_v50 }
  0xad   :  { %v349_v48 = vld [vmem:[#allocation2 + $0x440] sm:$0xff]  ;;  %v10907_v52 = vcombine.high %v221_v46, %v225_v47  ;;  %2612 = vmatprep.subr.bf16.mxu1 %v11043_v45  ;;  %v10906_v0 = vcombine.low %v221_v46, %v225_v47 }
  0xae   :  { %v353_v49 = vld [vmem:[#allocation2 + $0x460] sm:$0xff]  ;;  %2613 = vmatpush1.bf16.msra.mxu1 %v11042_v51 }
  0xaf   :  { %v213_v53 = vld [vmem:[#allocation2] sm:$0xff]  ;;  %v11035_v56 = vcombine.high %v349_v48, %v353_v49  ;;  %2571 = vmatprep.subr.bf16.mxu0 %v10907_v52  ;;  %v11034_v1 = vcombine.low %v349_v48, %v353_v49 }
  0xb0   :  { %v217_v57 = vld [vmem:[#allocation2 + $0x20] sm:$0xff]  ;;  %2572 = vmatpush1.bf16.msra.mxu0 %v10906_v0 }
  0xb1   :  { %v341_v61 = vld [vmem:[#allocation2 + $0x400] sm:$0xff]  ;;  %v10899_v2 = vcombine.high %v213_v53, %v217_v57  ;;  %2614 = vmatprep.subr.bf16.mxu1 %v11035_v56  ;;  %v10898_v8 = vcombine.low %v213_v53, %v217_v57 }
  0xb2   :  { %v345_v62 = vld [vmem:[#allocation2 + $0x420] sm:$0xff]  ;;  %2615 = vmatpush1.bf16.msra.mxu1 %v11034_v1 }
  0xb3   :  { %v11027_v3 = vcombine.high %v341_v61, %v345_v62  ;;  %v333_v4 = vld [vmem:[#allocation2 + $0x3c0] sm:$0xff]  ;;  %2573 = vmatprep.subr.bf16.mxu0 %v10899_v2  ;;  %v11026_v9 = vcombine.low %v341_v61, %v345_v62 }
  0xb4   :  { %v337_v5 = vld [vmem:[#allocation2 + $0x3e0] sm:$0xff]  ;;  %2574 = vmatpush1.bf16.msra.mxu0 %v10898_v8  ;;  %v270_v8 = vld [vmem:[#allocation2 + $0x1c8] sm:$0xff] }
  0xb5   :  { %v461_v6 = vld [vmem:[#allocation2 + $0x7c0] sm:$0xff]  ;;  %v11019_v10 = vcombine.high %v333_v4, %v337_v5  ;;  %2616 = vmatprep.subr.bf16.mxu1 %v11027_v3  ;;  %v11018_v16 = vcombine.low %v333_v4, %v337_v5 }
  0xb6   :  { %v465_v7 = vld [vmem:[#allocation2 + $0x7e0] sm:$0xff]  ;;  %2617 = vmatpush1.bf16.msra.mxu1 %v11026_v9  ;;  %v274_v9 = vld [vmem:[#allocation2 + $0x1e8] sm:$0xff] }
  0xb7   :  { %v11147_v11 = vcombine.high %v461_v6, %v465_v7  ;;  %v325_v12 = vld [vmem:[#allocation2 + $0x380] sm:$0xff]  ;;  %2575 = vmatprep.subr.bf16.mxu0 %v11019_v10  ;;  %v11146_v17 = vcombine.low %v461_v6, %v465_v7 }
  0xb8   :  { %v329_v13 = vld [vmem:[#allocation2 + $0x3a0] sm:$0xff]  ;;  %2576 = vmatpush2.bf16.msra.mxu0 %v11018_v16 }
  0xb9   :  { %v453_v14 = vld [vmem:[#allocation2 + $0x780] sm:$0xff]  ;;  %v11011_v18 = vcombine.high %v325_v12, %v329_v13  ;;  %2618 = vmatprep.subr.bf16.mxu1 %v11147_v11  ;;  %v11010_v24 = vcombine.low %v325_v12, %v329_v13  ;;  %v201_v12 = vld [vmem:[%s14273_s0 + $0x30] sm:$0xff] }
  0xba   :  { %v457_v15 = vld [vmem:[#allocation2 + $0x7a0] sm:$0xff]  ;;  %2619 = vmatpush2.bf16.msra.mxu1 %v11146_v17  ;;  %v10957_v17 = vcombine.high %v270_v8, %v274_v9 }
  0xbb   :  { %v11139_v19 = vcombine.high %v453_v14, %v457_v15  ;;  %v317_v20 = vld [vmem:[#allocation2 + $0x340] sm:$0xff]  ;;  %2577 = vmatprep.subr.bf16.mxu0 %v11011_v18  ;;  %v11138_v25 = vcombine.low %v453_v14, %v457_v15  ;;  %v197_v14 = vld [vmem:[%s14273_s0 + $0x10] sm:$0xff] }
  0xbc   :  { %v321_v21 = vld [vmem:[#allocation2 + $0x360] sm:$0xff]  ;;  %2578 = vmatpush2.bf16.msra.mxu0 %v11010_v24  ;;  %v206_v24 = vld [vmem:[%s14273_s0 + $0x58] sm:$0xff] }
  0xbd   :  { %v445_v22 = vld [vmem:[#allocation2 + $0x740] sm:$0xff]  ;;  %v11003_v26 = vcombine.high %v317_v20, %v321_v21  ;;  %2620 = vmatprep.subr.bf16.mxu1 %v11139_v19  ;;  %v11002_v32 = vcombine.low %v317_v20, %v321_v21  ;;  %v262_v20 = vld [vmem:[#allocation2 + $0x188] sm:$0xff] }
  0xbe   :  { %v449_v23 = vld [vmem:[#allocation2 + $0x760] sm:$0xff]  ;;  %2621 = vmatpush2.bf16.msra.mxu1 %v11138_v25 }
  0xbf   :  { %v11131_v27 = vcombine.high %v445_v22, %v449_v23  ;;  %v309_v28 = vld [vmem:[#allocation2 + $0x300] sm:$0xff]  ;;  %2579 = vmatprep.subr.bf16.mxu0 %v11003_v26  ;;  %v11130_v33 = vcombine.low %v445_v22, %v449_v23  ;;  %v266_v22 = vld [vmem:[#allocation2 + $0x1a8] sm:$0xff] }
  0xc0   :  { %v313_v29 = vld [vmem:[#allocation2 + $0x320] sm:$0xff]  ;;  %2580 = vmatpush2.bf16.msra.mxu0 %v11002_v32  ;;  %v200_v23 = vld [vmem:[%s14273_s0 + $0x28] sm:$0xff] }
  0xc1   :  { %v437_v30 = vld [vmem:[#allocation2 + $0x700] sm:$0xff]  ;;  %v10995_v34 = vcombine.high %v309_v28, %v313_v29  ;;  %2622 = vmatprep.subr.bf16.mxu1 %v11131_v27  ;;  %v10994_v40 = vcombine.low %v309_v28, %v313_v29  ;;  %v10956_v27 = vcombine.low %v270_v8, %v274_v9  ;;  %v10949_v29 = vcombine.high %v262_v20, %v266_v22 }
  0xc2   :  { %v441_v31 = vld [vmem:[#allocation2 + $0x720] sm:$0xff]  ;;  %2623 = vmatpush2.bf16.msra.mxu1 %v11130_v33  ;;  %v13972_v32 = vpack.c.bf16 %v206_v24, %v200_v23  ;;  %v254_v33 = vld [vmem:[#allocation2 + $0x148] sm:$0xff] }
  0xc3   :  { %v11123_v35 = vcombine.high %v437_v30, %v441_v31  ;;  %v301_v36 = vld [vmem:[#allocation2 + $0x2c0] sm:$0xff]  ;;  %2581 = vmatprep.subr.bf16.mxu0 %v10995_v34  ;;  %v11122_v41 = vcombine.low %v437_v30, %v441_v31  ;;  %v258_v34 = vld [vmem:[#allocation2 + $0x168] sm:$0xff] }
  0xc4   :  { %v305_v37 = vld [vmem:[#allocation2 + $0x2e0] sm:$0xff]  ;;  %2582 = vmatpush2.bf16.msra.mxu0 %v10994_v40  ;;  %v10941_v40 = vcombine.high %v254_v33, %v258_v34 }
  0xc5   :  { %v429_v38 = vld [vmem:[#allocation2 + $0x6c0] sm:$0xff]  ;;  %v10987_v42 = vcombine.high %v301_v36, %v305_v37  ;;  %2624 = vmatprep.subr.bf16.mxu1 %v11123_v35  ;;  %v10986_v48 = vcombine.low %v301_v36, %v305_v37  ;;  %v10948_v36 = vcombine.low %v262_v20, %v266_v22  ;;  %v338_v20 = vld [vmem:[#allocation2 + $0x3e8] sm:$0xff] }
  0xc6   :  { %v433_v39 = vld [vmem:[#allocation2 + $0x6e0] sm:$0xff]  ;;  %2625 = vmatpush2.bf16.msra.mxu1 %v11122_v41  ;;  %v246_v41 = vld [vmem:[#allocation2 + $0x108] sm:$0xff] }
  0xc7   :  { %v11115_v43 = vcombine.high %v429_v38, %v433_v39  ;;  %v293_v44 = vld [vmem:[#allocation2 + $0x280] sm:$0xff]  ;;  %2583 = vmatprep.subr.bf16.mxu0 %v10987_v42  ;;  %v11114_v49 = vcombine.low %v429_v38, %v433_v39  ;;  %v250_v42 = vld [vmem:[#allocation2 + $0x128] sm:$0xff] }
  0xc8   :  { %v297_v45 = vld [vmem:[#allocation2 + $0x2a0] sm:$0xff]  ;;  %2584 = vmatpush2.bf16.msra.mxu0 %v10986_v48  ;;  %v238_v48 = vld [vmem:[#allocation2 + $0xc8] sm:$0xff] }
  0xc9   :  { %v421_v46 = vld [vmem:[#allocation2 + $0x680] sm:$0xff]  ;;  %v10979_v50 = vcombine.high %v293_v44, %v297_v45  ;;  %2626 = vmatprep.subr.bf16.mxu1 %v11115_v43  ;;  %v10978_v56 = vcombine.low %v293_v44, %v297_v45  ;;  %v10940_v44 = vcombine.low %v254_v33, %v258_v34 }
  0xca   :  { %v425_v47 = vld [vmem:[#allocation2 + $0x6a0] sm:$0xff]  ;;  %2627 = vmatpush2.bf16.msra.mxu1 %v11114_v49  ;;  %v10933_v49 = vcombine.high %v246_v41, %v250_v42 }
  0xcb   :  { %v11107_v51 = vcombine.high %v421_v46, %v425_v47  ;;  %v285_v52 = vld [vmem:[#allocation2 + $0x240] sm:$0xff]  ;;  %2585 = vmatprep.subr.bf16.mxu0 %v10979_v50  ;;  %v11106_v57 = vcombine.low %v421_v46, %v425_v47  ;;  %v242_v50 = vld [vmem:[#allocation2 + $0xe8] sm:$0xff] }
  0xcc   :  { %v289_v53 = vld [vmem:[#allocation2 + $0x260] sm:$0xff]  ;;  %2586 = vmatpush2.bf16.msra.mxu0 %v10978_v56  ;;  %v230_v56 = vld [vmem:[#allocation2 + $0x88] sm:$0xff] }
  0xcd   :  { %v413_v54 = vld [vmem:[#allocation2 + $0x640] sm:$0xff]  ;;  %v10971_v59 = vcombine.high %v285_v52, %v289_v53  ;;  %2628 = vmatprep.subr.bf16.mxu1 %v11107_v51  ;;  %v10970_v2 = vcombine.low %v285_v52, %v289_v53  ;;  %v10932_v52 = vcombine.low %v246_v41, %v250_v42 }
  0xce   :  { %v417_v55 = vld [vmem:[#allocation2 + $0x660] sm:$0xff]  ;;  %2629 = vmatpush2.bf16.msra.mxu1 %v11106_v57  ;;  %v10925_v57 = vcombine.high %v238_v48, %v242_v50 }
  0xcf   :  { %v11099_v60 = vcombine.high %v413_v54, %v417_v55  ;;  %v277_v61 = vld [vmem:[#allocation2 + $0x200] sm:$0xff]  ;;  %2587 = vmatprep.subr.bf16.mxu0 %v10971_v59  ;;  %v11098_v3 = vcombine.low %v413_v54, %v417_v55  ;;  %v234_v59 = vld [vmem:[#allocation2 + $0xa8] sm:$0xff] }
  0xd0   :  { %v281_v62 = vld [vmem:[#allocation2 + $0x220] sm:$0xff]  ;;  %2588 = vmatpush2.bf16.msra.mxu0 %v10970_v2  ;;  %v222_v2 = vld [vmem:[#allocation2 + $0x48] sm:$0xff] }
  0xd1   :  { %v405_v0 = vld [vmem:[#allocation2 + $0x600] sm:$0xff]  ;;  %v10963_v4 = vcombine.high %v277_v61, %v281_v62  ;;  %2630 = vmatprep.subr.bf16.mxu1 %v11099_v60  ;;  %v10962_v10 = vcombine.low %v277_v61, %v281_v62  ;;  %v10924_v61 = vcombine.low %v238_v48, %v242_v50 }
  0xd2   :  { %v409_v1 = vld [vmem:[#allocation2 + $0x620] sm:$0xff]  ;;  %2631 = vmatpush2.bf16.msra.mxu1 %v11098_v3  ;;  %v10917_v3 = vcombine.high %v230_v56, %v234_v59 }
  0xd3   :  { %v11091_v5 = vcombine.high %v405_v0, %v409_v1  ;;  %v525_v6 = vld [vmem:[#allocation2 + $0x9c0] sm:$0xff]  ;;  %2589 = vmatprep.subr.bf16.mxu0 %v10963_v4  ;;  %v11090_v13 = vcombine.low %v405_v0, %v409_v1  ;;  %v226_v4 = vld [vmem:[#allocation2 + $0x68] sm:$0xff] }
  0xd4   :  { %v529_v7 = vld [vmem:[#allocation2 + $0x9e0] sm:$0xff]  ;;  %2590 = vmatpush2.bf16.msra.mxu0 %v10962_v10  ;;  %v214_v10 = vld [vmem:[#allocation2 + $0x8] sm:$0xff] }
  0xd5   :  { %v195_v11 = vld [vmem:[%s14273_s0] sm:$0xff]  ;;  %v11211_v16 = vcombine.high %v525_v6, %v529_v7  ;;  %2632 = vmatprep.subr.bf16.mxu1 %v11091_v5  ;;  %v11210_v26 = vcombine.low %v525_v6, %v529_v7  ;;  %v10916_v6 = vcombine.low %v230_v56, %v234_v59 }
  0xd6   :  { %v203_v15 = vld [vmem:[%s14273_s0 + $0x40] sm:$0xff]  ;;  %v13962_v21 = vpack.c.bf16 %v201_v12, %v195_v11  ;;  %2633 = vmatpush2.bf16.msra.mxu1 %v11090_v13  ;;  %v10909_v11 = vcombine.high %v222_v2, %v226_v4  ;;  %v218_v12 = vld [vmem:[#allocation2 + $0x28] sm:$0xff] }
  0xd7   :  { %v517_v18 = vld [vmem:[#allocation2 + $0x980] sm:$0xff]  ;;  %v13970_v25 = vpack.c.bf16 %v203_v15, %v197_v14  ;;  %2645 = vmatprep.subr.bf16.mxu0 %v11211_v16  ;;  %2688 = vmatprep.subr.bf16.mxu1 %v10957_v17  ;;  %v10908_v14 = vcombine.low %v222_v2, %v226_v4  ;;  %v10900_v23 = vcombine.low %v214_v10, %v218_v12 }
  0xd8   :  { %v521_v19 = vld [vmem:[#allocation2 + $0x9a0] sm:$0xff]  ;;  %2592 = vmatmul.mubr.bf16.vlgmr.msra.gmra.mxu0 %v13962_v21 }
  0xd9   :  { %v11203_v28 = vcombine.high %v517_v18, %v521_v19  ;;  %v509_v30 = vld [vmem:[#allocation2 + $0x940] sm:$0xff]  ;;  %2635 = vmatmul.mubr.bf16.vlgmr.msra.gmra.mxu1 %v13970_v25  ;;  %2646 = vmatpush1.bf16.msra.mxu0 %v11210_v26  ;;  %v11202_v35 = vcombine.low %v517_v18, %v521_v19  ;;  %v334_v18 = vld [vmem:[#allocation2 + $0x3c8] sm:$0xff]  ;;  %v10901_v19 = vcombine.high %v214_v10, %v218_v12 }
  0xda   :  { %v513_v31 = vld [vmem:[#allocation2 + $0x960] sm:$0xff]  ;;  %2689 = vmatpush1.bf16.msra.mxu1 %v10956_v27  ;;  %2677 = vmatprep.mubr.bf16.mxu0 %v13972_v32  ;;  %v11020_v33 = vcombine.low %v334_v18, %v338_v20 }
  0xdb   :  { %2647 = vmatprep.subr.bf16.mxu0 %v11203_v28  ;;  %v11195_v37 = vcombine.high %v509_v30, %v513_v31  ;;  %v501_v38 = vld [vmem:[#allocation2 + $0x900] sm:$0xff]  ;;  %2690 = vmatprep.subr.bf16.mxu1 %v10949_v29  ;;  %v11194_v43 = vcombine.low %v509_v30, %v513_v31  ;;  %v326_v28 = vld [vmem:[#allocation2 + $0x388] sm:$0xff]  ;;  %v11021_v29 = vcombine.high %v334_v18, %v338_v20 }
  0xdc   :  { %v505_v39 = vld [vmem:[#allocation2 + $0x920] sm:$0xff]  ;;  %2720 = vmatprep.mubr.bf16.mxu1 %v13938_v58  ;;  %v330_v30 = vld [vmem:[#allocation2 + $0x3a8] sm:$0xff] }
  0xdd   :  { %2648 = vmatpush1.bf16.msra.mxu0 %v11202_v35  ;;  %v11187_v45 = vcombine.high %v501_v38, %v505_v39  ;;  %v493_v46 = vld [vmem:[#allocation2 + $0x8c0] sm:$0xff]  ;;  %v11186_v51 = vcombine.low %v501_v38, %v505_v39  ;;  %v11013_v38 = vcombine.high %v326_v28, %v330_v30  ;;  %v322_v39 = vld [vmem:[#allocation2 + $0x368] sm:$0xff]  ;;  %v11012_v41 = vcombine.low %v326_v28, %v330_v30  ;;  %v205_v28 = vld [vmem:[%s14273_s0 + $0x50] sm:$0xff] }
  0xde   :  { %2691 = vmatpush1.bf16.msra.mxu1 %v10948_v36  ;;  %2649 = vmatprep.subr.bf16.mxu0 %v11195_v37  ;;  %v497_v47 = vld [vmem:[#allocation2 + $0x8e0] sm:$0xff]  ;;  %v318_v37 = vld [vmem:[#allocation2 + $0x348] sm:$0xff] }
  0xdf   :  { %2692 = vmatprep.subr.bf16.mxu1 %v10941_v40  ;;  %v11179_v53 = vcombine.high %v493_v46, %v497_v47  ;;  %v485_v54 = vld [vmem:[#allocation2 + $0x880] sm:$0xff]  ;;  %v11178_v60 = vcombine.low %v493_v46, %v497_v47  ;;  %v11005_v46 = vcombine.high %v318_v37, %v322_v39  ;;  %v314_v47 = vld [vmem:[#allocation2 + $0x328] sm:$0xff] }
  0xe0   :  { %v489_v55 = vld [vmem:[#allocation2 + $0x8a0] sm:$0xff] }
  0xe1   :  { %2650 = vmatpush1.bf16.msra.mxu0 %v11194_v43  ;;  %v11171_v62 = vcombine.high %v485_v54, %v489_v55  ;;  %v477_v0 = vld [vmem:[#allocation2 + $0x840] sm:$0xff]  ;;  %v11170_v5 = vcombine.low %v485_v54, %v489_v55  ;;  %v306_v55 = vld [vmem:[#allocation2 + $0x2e8] sm:$0xff] }
  0xe2   :  { %2693 = vmatpush1.bf16.msra.mxu1 %v10940_v44  ;;  %2651 = vmatprep.subr.bf16.mxu0 %v11187_v45  ;;  %v481_v1 = vld [vmem:[#allocation2 + $0x860] sm:$0xff]  ;;  %v310_v45 = vld [vmem:[#allocation2 + $0x308] sm:$0xff] }
  0xe3   :  { %2694 = vmatprep.subr.bf16.mxu1 %v10933_v49  ;;  %v11163_v7 = vcombine.high %v477_v0, %v481_v1  ;;  %v469_v8 = vld [vmem:[#allocation2 + $0x800] sm:$0xff]  ;;  %v11162_v13 = vcombine.low %v477_v0, %v481_v1  ;;  %v11004_v49 = vcombine.low %v318_v37, %v322_v39  ;;  %v10997_v54 = vcombine.high %v310_v45, %v314_v47  ;;  %v298_v1 = vld [vmem:[#allocation2 + $0x2a8] sm:$0xff] }
  0xe4   :  { %v473_v9 = vld [vmem:[#allocation2 + $0x820] sm:$0xff] }
  0xe5   :  { %2652 = vmatpush1.bf16.msra.mxu0 %v11186_v51  ;;  %v11155_v15 = vcombine.high %v469_v8, %v473_v9  ;;  %v589_v16 = vld [vmem:[#allocation2 + $0xbc0] sm:$0xff]  ;;  %v11154_v22 = vcombine.low %v469_v8, %v473_v9  ;;  %v290_v9 = vld [vmem:[#allocation2 + $0x268] sm:$0xff] }
  0xe6   :  { %2695 = vmatpush1.bf16.msra.mxu1 %v10932_v52  ;;  %2653 = vmatprep.subr.bf16.mxu0 %v11179_v53  ;;  %v593_v17 = vld [vmem:[#allocation2 + $0xbe0] sm:$0xff]  ;;  %v302_v53 = vld [vmem:[#allocation2 + $0x2c8] sm:$0xff] }
  0xe7   :  { %2696 = vmatprep.subr.bf16.mxu1 %v10925_v57  ;;  %v11275_v24 = vcombine.high %v589_v16, %v593_v17  ;;  %v581_v26 = vld [vmem:[#allocation2 + $0xb80] sm:$0xff]  ;;  %v11274_v31 = vcombine.low %v589_v16, %v593_v17  ;;  %v10996_v57 = vcombine.low %v310_v45, %v314_v47  ;;  %v10989_v0 = vcombine.high %v302_v53, %v306_v55  ;;  %v282_v17 = vld [vmem:[#allocation2 + $0x228] sm:$0xff] }
  0xe8   :  { %v585_v27 = vld [vmem:[#allocation2 + $0xba0] sm:$0xff]  ;;  %v514_v47 = vld [vmem:[#allocation2 + $0x968] sm:$0xff] }
  0xe9   :  { %2654 = vmatpush1.bf16.msra.mxu0 %v11178_v60  ;;  %v11267_v34 = vcombine.high %v581_v26, %v585_v27  ;;  %v573_v35 = vld [vmem:[#allocation2 + $0xb40] sm:$0xff]  ;;  %v11266_v40 = vcombine.low %v581_v26, %v585_v27 }
  0xea   :  { %2697 = vmatpush1.bf16.msra.mxu1 %v10924_v61  ;;  %2655 = vmatprep.subr.bf16.mxu0 %v11171_v62  ;;  %v577_v36 = vld [vmem:[#allocation2 + $0xb60] sm:$0xff]  ;;  %v294_v62 = vld [vmem:[#allocation2 + $0x288] sm:$0xff] }
  0xeb   :  { %2698 = vmatprep.subr.bf16.mxu1 %v10917_v3  ;;  %v11259_v42 = vcombine.high %v573_v35, %v577_v36  ;;  %v565_v43 = vld [vmem:[#allocation2 + $0xb00] sm:$0xff]  ;;  %v11258_v48 = vcombine.low %v573_v35, %v577_v36  ;;  %v10988_v3 = vcombine.low %v302_v53, %v306_v55  ;;  %v10981_v8 = vcombine.high %v294_v62, %v298_v1  ;;  %v394_v35 = vld [vmem:[#allocation2 + $0x5a8] sm:$0xff] }
  0xec   :  { %v569_v44 = vld [vmem:[#allocation2 + $0xb20] sm:$0xff]  ;;  %v518_v36 = vld [vmem:[#allocation2 + $0x988] sm:$0xff] }
  0xed   :  { %2656 = vmatpush1.bf16.msra.mxu0 %v11170_v5  ;;  %v11251_v50 = vcombine.high %v565_v43, %v569_v44  ;;  %v557_v51 = vld [vmem:[#allocation2 + $0xac0] sm:$0xff]  ;;  %v11250_v56 = vcombine.low %v565_v43, %v569_v44  ;;  %v382_v43 = vld [vmem:[#allocation2 + $0x548] sm:$0xff] }
  0xee   :  { %2699 = vmatpush1.bf16.msra.mxu1 %v10916_v6  ;;  %2657 = vmatprep.subr.bf16.mxu0 %v11163_v7  ;;  %v561_v52 = vld [vmem:[#allocation2 + $0xae0] sm:$0xff]  ;;  %v286_v7 = vld [vmem:[#allocation2 + $0x248] sm:$0xff] }
  0xef   :  { %2700 = vmatprep.subr.bf16.mxu1 %v10909_v11  ;;  %v11243_v59 = vcombine.high %v557_v51, %v561_v52  ;;  %v549_v60 = vld [vmem:[#allocation2 + $0xa80] sm:$0xff]  ;;  %v11242_v2 = vcombine.low %v557_v51, %v561_v52  ;;  %v10980_v11 = vcombine.low %v294_v62, %v298_v1  ;;  %v10973_v16 = vcombine.high %v286_v7, %v290_v9  ;;  %v386_v44 = vld [vmem:[#allocation2 + $0x568] sm:$0xff] }
  0xf0   :  { %v553_v61 = vld [vmem:[#allocation2 + $0xaa0] sm:$0xff]  ;;  %v374_v51 = vld [vmem:[#allocation2 + $0x508] sm:$0xff] }
  0xf1   :  { %2658 = vmatpush1.bf16.msra.mxu0 %v11162_v13  ;;  %v11235_v4 = vcombine.high %v549_v60, %v553_v61  ;;  %v541_v5 = vld [vmem:[#allocation2 + $0xa40] sm:$0xff]  ;;  %v11234_v10 = vcombine.low %v549_v60, %v553_v61  ;;  %v378_v52 = vld [vmem:[#allocation2 + $0x528] sm:$0xff] }
  0xf2   :  { %2701 = vmatpush1.bf16.msra.mxu1 %v10908_v14  ;;  %2659 = vmatprep.subr.bf16.mxu0 %v11155_v15  ;;  %v545_v6 = vld [vmem:[#allocation2 + $0xa60] sm:$0xff]  ;;  %v278_v15 = vld [vmem:[#allocation2 + $0x208] sm:$0xff] }
  0xf3   :  { %2702 = vmatprep.subr.bf16.mxu1 %v10901_v19  ;;  %v11227_v12 = vcombine.high %v541_v5, %v545_v6  ;;  %v533_v13 = vld [vmem:[#allocation2 + $0xa00] sm:$0xff]  ;;  %v11226_v18 = vcombine.low %v541_v5, %v545_v6  ;;  %v10972_v19 = vcombine.low %v286_v7, %v290_v9  ;;  %v10965_v26 = vcombine.high %v278_v15, %v282_v17  ;;  %v502_v53 = vld [vmem:[#allocation2 + $0x908] sm:$0xff] }
  0xf4   :  { %v537_v14 = vld [vmem:[#allocation2 + $0xa20] sm:$0xff]  ;;  %v506_v55 = vld [vmem:[#allocation2 + $0x928] sm:$0xff] }
  0xf5   :  { %2660 = vmatpush1.bf16.msra.mxu0 %v11154_v22  ;;  %v11219_v20 = vcombine.high %v533_v13, %v537_v14  ;;  %v398_v22 = vld [vmem:[#allocation2 + $0x5c8] sm:$0xff]  ;;  %v199_v27 = vld [vmem:[%s14273_s0 + $0x20] sm:$0xff]  ;;  %v11218_v30 = vcombine.low %v533_v13, %v537_v14 }
  0xf6   :  { %2703 = vmatpush1.bf16.msra.mxu1 %v10900_v23  ;;  %2661 = vmatprep.subr.bf16.mxu0 %v11275_v24  ;;  %v402_v23 = vld [vmem:[#allocation2 + $0x5e8] sm:$0xff]  ;;  %v13984_v39 = vpack.c.bf16 %v205_v28, %v199_v27 }
  0xf7   :  { %2704 = vmatprep.subr.bf16.mxu1 %v11021_v29  ;;  %v526_v24 = vld [vmem:[#allocation2 + $0x9c8] sm:$0xff] }
  0xf8   :  { %v530_v29 = vld [vmem:[#allocation2 + $0x9e8] sm:$0xff] }
  0xf9   :  { %2662 = vmatpush2.bf16.msra.mxu0 %v11274_v31  ;;  %v10964_v31 = vcombine.low %v278_v15, %v282_v17  ;;  %v11213_v37 = vcombine.high %v526_v24, %v530_v29  ;;  %v366_v60 = vld [vmem:[#allocation2 + $0x4c8] sm:$0xff] }
  0xfa   :  { %2705 = vmatpush2.bf16.msra.mxu1 %v11020_v33  ;;  %2663 = vmatprep.subr.bf16.mxu0 %v11267_v34  ;;  %v11085_v33 = vcombine.high %v398_v22, %v402_v23  ;;  %v390_v34 = vld [vmem:[#allocation2 + $0x588] sm:$0xff] }
  0xfb   :  { %2706 = vmatprep.subr.bf16.mxu1 %v11013_v38  ;;  %v522_v38 = vld [vmem:[#allocation2 + $0x9a8] sm:$0xff] }
  0xfc   :  { %v11205_v45 = vcombine.high %v518_v36, %v522_v38  ;;  %v370_v61 = vld [vmem:[#allocation2 + $0x4e8] sm:$0xff] }
  0xfd   :  { %2664 = vmatpush2.bf16.msra.mxu0 %v11266_v40  ;;  %v11084_v40 = vcombine.low %v398_v22, %v402_v23  ;;  %v494_v62 = vld [vmem:[#allocation2 + $0x8c8] sm:$0xff] }
  0xfe   :  { %2707 = vmatpush2.bf16.msra.mxu1 %v11012_v41  ;;  %2665 = vmatprep.subr.bf16.mxu0 %v11259_v42  ;;  %v11212_v41 = vcombine.low %v526_v24, %v530_v29  ;;  %v11077_v42 = vcombine.high %v390_v34, %v394_v35  ;;  %v498_v1 = vld [vmem:[#allocation2 + $0x8e8] sm:$0xff] }
  0xff   :  { %2708 = vmatprep.subr.bf16.mxu1 %v11005_v46  ;;  %v510_v46 = vld [vmem:[#allocation2 + $0x948] sm:$0xff] }
 0x100   :  { %v358_v5 = vld [vmem:[#allocation2 + $0x488] sm:$0xff] }
 0x101   :  { %2666 = vmatpush2.bf16.msra.mxu0 %v11258_v48  ;;  %v11076_v48 = vcombine.low %v390_v34, %v394_v35  ;;  %v362_v6 = vld [vmem:[#allocation2 + $0x4a8] sm:$0xff] }
 0x102   :  { %2709 = vmatpush2.bf16.msra.mxu1 %v11004_v49  ;;  %2667 = vmatprep.subr.bf16.mxu0 %v11251_v50  ;;  %v11204_v49 = vcombine.low %v518_v36, %v522_v38  ;;  %v11069_v50 = vcombine.high %v382_v43, %v386_v44  ;;  %v486_v7 = vld [vmem:[#allocation2 + $0x888] sm:$0xff] }
 0x103   :  { %2710 = vmatprep.subr.bf16.mxu1 %v10997_v54  ;;  %v11197_v54 = vcombine.high %v510_v46, %v514_v47  ;;  %v490_v9 = vld [vmem:[#allocation2 + $0x8a8] sm:$0xff] }
 0x104   :  { %v350_v13 = vld [vmem:[#allocation2 + $0x448] sm:$0xff] }
 0x105   :  { %2668 = vmatpush2.bf16.msra.mxu0 %v11250_v56  ;;  %v11068_v56 = vcombine.low %v382_v43, %v386_v44  ;;  %v354_v14 = vld [vmem:[#allocation2 + $0x468] sm:$0xff] }
 0x106   :  { %2711 = vmatpush2.bf16.msra.mxu1 %v10996_v57  ;;  %2669 = vmatprep.subr.bf16.mxu0 %v11243_v59  ;;  %v11196_v57 = vcombine.low %v510_v46, %v514_v47  ;;  %v11061_v59 = vcombine.high %v374_v51, %v378_v52  ;;  %v478_v15 = vld [vmem:[#allocation2 + $0x848] sm:$0xff]  ;;  %v11036_v28 = vcombine.low %v350_v13, %v354_v14 }
 0x107   :  { %2712 = vmatprep.subr.bf16.mxu1 %v10989_v0  ;;  %v11189_v0 = vcombine.high %v502_v53, %v506_v55  ;;  %v482_v17 = vld [vmem:[#allocation2 + $0x868] sm:$0xff] }
 0x108   :  { %v342_v22 = vld [vmem:[#allocation2 + $0x408] sm:$0xff]  ;;  %v11164_v29 = vcombine.low %v478_v15, %v482_v17 }
 0x109   :  { %2670 = vmatpush2.bf16.msra.mxu0 %v11242_v2  ;;  %v11060_v2 = vcombine.low %v374_v51, %v378_v52  ;;  %v346_v23 = vld [vmem:[#allocation2 + $0x428] sm:$0xff] }
 0x10a   :  { %2713 = vmatpush2.bf16.msra.mxu1 %v10988_v3  ;;  %2671 = vmatprep.subr.bf16.mxu0 %v11235_v4  ;;  %v11188_v3 = vcombine.low %v502_v53, %v506_v55  ;;  %v11053_v4 = vcombine.high %v366_v60, %v370_v61  ;;  %v470_v24 = vld [vmem:[#allocation2 + $0x808] sm:$0xff] }
 0x10b   :  { %2714 = vmatprep.subr.bf16.mxu1 %v10981_v8  ;;  %v11181_v8 = vcombine.high %v494_v62, %v498_v1  ;;  %v474_v27 = vld [vmem:[#allocation2 + $0x828] sm:$0xff] }
 0x10c   :  { %v590_v34 = vld [vmem:[#allocation2 + $0xbc8] sm:$0xff]  ;;  %v11157_v35 = vcombine.high %v470_v24, %v474_v27  ;;  %v11156_v38 = vcombine.low %v470_v24, %v474_v27 }
 0x10d   :  { %2672 = vmatpush2.bf16.msra.mxu0 %v11234_v10  ;;  %v11052_v10 = vcombine.low %v366_v60, %v370_v61  ;;  %v594_v36 = vld [vmem:[#allocation2 + $0xbe8] sm:$0xff] }
 0x10e   :  { %2715 = vmatpush2.bf16.msra.mxu1 %v10980_v11  ;;  %2673 = vmatprep.subr.bf16.mxu0 %v11227_v12  ;;  %v11180_v11 = vcombine.low %v494_v62, %v498_v1  ;;  %v11045_v12 = vcombine.high %v358_v5, %v362_v6  ;;  %v582_v43 = vld [vmem:[#allocation2 + $0xb88] sm:$0xff]  ;;  %v11277_v44 = vcombine.high %v590_v34, %v594_v36 }
 0x10f   :  { %2716 = vmatprep.subr.bf16.mxu1 %v10973_v16  ;;  %v11173_v16 = vcombine.high %v486_v7, %v490_v9  ;;  %v11276_v47 = vcombine.low %v590_v34, %v594_v36  ;;  %v574_v51 = vld [vmem:[#allocation2 + $0xb48] sm:$0xff] }
 0x110   :  { %v578_v53 = vld [vmem:[#allocation2 + $0xb68] sm:$0xff] }
 0x111   :  { %2674 = vmatpush2.bf16.msra.mxu0 %v11226_v18  ;;  %v11044_v18 = vcombine.low %v358_v5, %v362_v6  ;;  %v566_v60 = vld [vmem:[#allocation2 + $0xb08] sm:$0xff]  ;;  %v11261_v61 = vcombine.high %v574_v51, %v578_v53  ;;  %v11260_v1 = vcombine.low %v574_v51, %v578_v53  ;;  %v395_v51 = vld [vmem:[#allocation2 + $0x5b0] sm:$0xff] }
 0x112   :  { %2717 = vmatpush2.bf16.msra.mxu1 %v10972_v19  ;;  %2675 = vmatprep.subr.bf16.mxu0 %v11219_v20  ;;  %v11172_v19 = vcombine.low %v486_v7, %v490_v9  ;;  %v11037_v20 = vcombine.high %v350_v13, %v354_v14  ;;  %v570_v62 = vld [vmem:[#allocation2 + $0xb28] sm:$0xff] }
 0x113   :  { %2718 = vmatprep.subr.bf16.mxu1 %v10965_v26  ;;  %v11165_v26 = vcombine.high %v478_v15, %v482_v17  ;;  %v558_v5 = vld [vmem:[#allocation2 + $0xac8] sm:$0xff]  ;;  %v11253_v6 = vcombine.high %v566_v60, %v570_v62  ;;  %v11252_v9 = vcombine.low %v566_v60, %v570_v62  ;;  %v387_v60 = vld [vmem:[#allocation2 + $0x570] sm:$0xff] }
 0x114   :  { %v562_v7 = vld [vmem:[#allocation2 + $0xae8] sm:$0xff] }
 0x115   :  { %2676 = vmatpush2.bf16.msra.mxu0 %v11218_v30  ;;  %v11029_v30 = vcombine.high %v342_v22, %v346_v23  ;;  %v550_v13 = vld [vmem:[#allocation2 + $0xa88] sm:$0xff]  ;;  %v11245_v14 = vcombine.high %v558_v5, %v562_v7  ;;  %v11244_v17 = vcombine.low %v558_v5, %v562_v7  ;;  %v379_v5 = vld [vmem:[#allocation2 + $0x530] sm:$0xff] }
 0x116   :  { %2719 = vmatpush2.bf16.msra.mxu1 %v10964_v31  ;;  %2731 = vmatprep.subr.bf16.mxu0 %v11085_v33  ;;  %v462_v31 = vld [vmem:[#allocation2 + $0x7c8] sm:$0xff] }
 0x117   :  { %2774 = vmatprep.subr.bf16.mxu1 %v11213_v37  ;;  %v466_v33 = vld [vmem:[#allocation2 + $0x7e8] sm:$0xff]  ;;  %v11028_v37 = vcombine.low %v342_v22, %v346_v23 }
 0x118   :  { %2678 = vmatmul.mubr.bf16.vlgmr.msra.gmra.mxu0 %v13984_v39  ;;  %v11148_v46 = vcombine.low %v462_v31, %v466_v33  ;;  %v554_v15 = vld [vmem:[#allocation2 + $0xaa8] sm:$0xff] }
 0x119   :  { %2721 = vmatmul.mubr.bf16.vlgmr.msra.gmra.mxu1 %v13962_v21  ;;  %2732 = vmatpush1.bf16.msra.mxu0 %v11084_v40  ;;  %v11149_v40 = vcombine.high %v462_v31, %v466_v33  ;;  %v542_v22 = vld [vmem:[#allocation2 + $0xa48] sm:$0xff]  ;;  %v11237_v23 = vcombine.high %v550_v13, %v554_v15  ;;  %v11236_v27 = vcombine.low %v550_v13, %v554_v15  ;;  %v371_v13 = vld [vmem:[#allocation2 + $0x4f0] sm:$0xff] }
 0x11a   :  { %2775 = vmatpush1.bf16.msra.mxu1 %v11212_v41  ;;  %2733 = vmatprep.subr.bf16.mxu0 %v11077_v42  ;;  %v454_v41 = vld [vmem:[#allocation2 + $0x788] sm:$0xff] }
 0x11b   :  { %2776 = vmatprep.subr.bf16.mxu1 %v11205_v45  ;;  %2763 = vmatprep.mubr.bf16.mxu0 %v13946_v63  ;;  %v458_v42 = vld [vmem:[#allocation2 + $0x7a8] sm:$0xff] }
 0x11c   :  { %2806 = vmatprep.mubr.bf16.mxu1 %v13972_v32  ;;  %v586_v45 = vld [vmem:[#allocation2 + $0xba8] sm:$0xff] }
 0x11d   :  { %2734 = vmatpush1.bf16.msra.mxu0 %v11076_v48  ;;  %v11141_v48 = vcombine.high %v454_v41, %v458_v42  ;;  %v11269_v52 = vcombine.high %v582_v43, %v586_v45  ;;  %v11268_v55 = vcombine.low %v582_v43, %v586_v45  ;;  %v546_v24 = vld [vmem:[#allocation2 + $0xa68] sm:$0xff]  ;;  %v403_v43 = vld [vmem:[#allocation2 + $0x5f0] sm:$0xff] }
 0x11e   :  { %2777 = vmatpush1.bf16.msra.mxu1 %v11204_v49  ;;  %2735 = vmatprep.subr.bf16.mxu0 %v11069_v50  ;;  %v446_v49 = vld [vmem:[#allocation2 + $0x748] sm:$0xff]  ;;  %v11229_v33 = vcombine.high %v542_v22, %v546_v24  ;;  %v11228_v36 = vcombine.low %v542_v22, %v546_v24  ;;  %v363_v22 = vld [vmem:[#allocation2 + $0x4b0] sm:$0xff] }
 0x11f   :  { %2778 = vmatprep.subr.bf16.mxu1 %v11197_v54  ;;  %v450_v50 = vld [vmem:[#allocation2 + $0x768] sm:$0xff]  ;;  %v11140_v54 = vcombine.low %v454_v41, %v458_v42  ;;  %v399_v41 = vld [vmem:[#allocation2 + $0x5d0] sm:$0xff] }
 0x120   :  { %v534_v31 = vld [vmem:[#allocation2 + $0xa08] sm:$0xff]  ;;  %v11086_v53 = vcombine.low %v399_v41, %v403_v43 }
 0x121   :  { %2736 = vmatpush1.bf16.msra.mxu0 %v11068_v56  ;;  %v11133_v56 = vcombine.high %v446_v49, %v450_v50  ;;  %v538_v34 = vld [vmem:[#allocation2 + $0xa28] sm:$0xff] }
 0x122   :  { %2779 = vmatpush1.bf16.msra.mxu1 %v11196_v57  ;;  %2737 = vmatprep.subr.bf16.mxu0 %v11061_v59  ;;  %v438_v57 = vld [vmem:[#allocation2 + $0x708] sm:$0xff]  ;;  %v11221_v42 = vcombine.high %v534_v31, %v538_v34  ;;  %v11220_v45 = vcombine.low %v534_v31, %v538_v34  ;;  %v355_v31 = vld [vmem:[#allocation2 + $0x470] sm:$0xff] }
 0x123   :  { %2780 = vmatprep.subr.bf16.mxu1 %v11189_v0  ;;  %v442_v59 = vld [vmem:[#allocation2 + $0x728] sm:$0xff]  ;;  %v11132_v0 = vcombine.low %v446_v49, %v450_v50  ;;  %v391_v49 = vld [vmem:[#allocation2 + $0x590] sm:$0xff]  ;;  %v11087_v50 = vcombine.high %v399_v41, %v403_v43 }
 0x124   :  { %v11078_v62 = vcombine.low %v391_v49, %v395_v51  ;;  %v347_v41 = vld [vmem:[#allocation2 + $0x430] sm:$0xff] }
 0x125   :  { %2738 = vmatpush1.bf16.msra.mxu0 %v11060_v2  ;;  %v11125_v2 = vcombine.high %v438_v57, %v442_v59 }
 0x126   :  { %2781 = vmatpush1.bf16.msra.mxu1 %v11188_v3  ;;  %2739 = vmatprep.subr.bf16.mxu0 %v11053_v4  ;;  %v430_v3 = vld [vmem:[#allocation2 + $0x6c8] sm:$0xff] }
 0x127   :  { %2782 = vmatprep.subr.bf16.mxu1 %v11181_v8  ;;  %v434_v4 = vld [vmem:[#allocation2 + $0x6e8] sm:$0xff]  ;;  %v11124_v8 = vcombine.low %v438_v57, %v442_v59  ;;  %v383_v57 = vld [vmem:[#allocation2 + $0x550] sm:$0xff]  ;;  %v11079_v59 = vcombine.high %v391_v49, %v395_v51 }
 0x128   :  { %v11070_v7 = vcombine.low %v383_v57, %v387_v60  ;;  %v467_v49 = vld [vmem:[#allocation2 + $0x7f0] sm:$0xff] }
 0x129   :  { %2740 = vmatpush1.bf16.msra.mxu0 %v11052_v10  ;;  %v11117_v10 = vcombine.high %v430_v3, %v434_v4 }
 0x12a   :  { %2783 = vmatpush1.bf16.msra.mxu1 %v11180_v11  ;;  %2741 = vmatprep.subr.bf16.mxu0 %v11045_v12  ;;  %v422_v11 = vld [vmem:[#allocation2 + $0x688] sm:$0xff] }
 0x12b   :  { %2784 = vmatprep.subr.bf16.mxu1 %v11173_v16  ;;  %v426_v12 = vld [vmem:[#allocation2 + $0x6a8] sm:$0xff]  ;;  %v11116_v16 = vcombine.low %v430_v3, %v434_v4  ;;  %v375_v3 = vld [vmem:[#allocation2 + $0x510] sm:$0xff]  ;;  %v11071_v4 = vcombine.high %v383_v57, %v387_v60 }
 0x12c   :  { %v11062_v15 = vcombine.low %v375_v3, %v379_v5  ;;  %v459_v57 = vld [vmem:[#allocation2 + $0x7b0] sm:$0xff] }
 0x12d   :  { %2742 = vmatpush1.bf16.msra.mxu0 %v11044_v18  ;;  %v11109_v18 = vcombine.high %v422_v11, %v426_v12 }
 0x12e   :  { %2785 = vmatpush1.bf16.msra.mxu1 %v11172_v19  ;;  %2743 = vmatprep.subr.bf16.mxu0 %v11037_v20  ;;  %v414_v19 = vld [vmem:[#allocation2 + $0x648] sm:$0xff] }
 0x12f   :  { %2786 = vmatprep.subr.bf16.mxu1 %v11165_v26  ;;  %v418_v20 = vld [vmem:[#allocation2 + $0x668] sm:$0xff]  ;;  %v11108_v26 = vcombine.low %v422_v11, %v426_v12  ;;  %v367_v11 = vld [vmem:[#allocation2 + $0x4d0] sm:$0xff]  ;;  %v11063_v12 = vcombine.high %v375_v3, %v379_v5 }
 0x130   :  { %v11054_v24 = vcombine.low %v367_v11, %v371_v13  ;;  %v451_v3 = vld [vmem:[#allocation2 + $0x770] sm:$0xff] }
 0x131   :  { %2744 = vmatpush1.bf16.msra.mxu0 %v11036_v28  ;;  %v11101_v28 = vcombine.high %v414_v19, %v418_v20 }
 0x132   :  { %2787 = vmatpush1.bf16.msra.mxu1 %v11164_v29  ;;  %2745 = vmatprep.subr.bf16.mxu0 %v11029_v30  ;;  %v406_v29 = vld [vmem:[#allocation2 + $0x608] sm:$0xff] }
 0x133   :  { %2788 = vmatprep.subr.bf16.mxu1 %v11157_v35  ;;  %v410_v30 = vld [vmem:[#allocation2 + $0x628] sm:$0xff]  ;;  %v11100_v35 = vcombine.low %v414_v19, %v418_v20  ;;  %v359_v19 = vld [vmem:[#allocation2 + $0x490] sm:$0xff]  ;;  %v11055_v20 = vcombine.high %v367_v11, %v371_v13 }
 0x134   :  { %v11046_v34 = vcombine.low %v359_v19, %v363_v22  ;;  %v443_v11 = vld [vmem:[#allocation2 + $0x730] sm:$0xff] }
 0x135   :  { %2746 = vmatpush1.bf16.msra.mxu0 %v11028_v37  ;;  %v11093_v37 = vcombine.high %v406_v29, %v410_v30 }
 0x136   :  { %2789 = vmatpush1.bf16.msra.mxu1 %v11156_v38  ;;  %2747 = vmatprep.subr.bf16.mxu0 %v11149_v40  ;;  %v271_v38 = vld [vmem:[#allocation2 + $0x1d0] sm:$0xff] }
 0x137   :  { %2790 = vmatprep.subr.bf16.mxu1 %v11277_v44  ;;  %v275_v40 = vld [vmem:[#allocation2 + $0x1f0] sm:$0xff]  ;;  %v11092_v44 = vcombine.low %v406_v29, %v410_v30  ;;  %v11047_v30 = vcombine.high %v359_v19, %v363_v22 }
 0x138   :  { %v351_v29 = vld [vmem:[#allocation2 + $0x450] sm:$0xff] }
 0x139   :  { %2748 = vmatpush2.bf16.msra.mxu0 %v11148_v46  ;;  %v10959_v46 = vcombine.high %v271_v38, %v275_v40  ;;  %v11038_v43 = vcombine.low %v351_v29, %v355_v31  ;;  %v435_v19 = vld [vmem:[#allocation2 + $0x6f0] sm:$0xff] }
 0x13a   :  { %2791 = vmatpush2.bf16.msra.mxu1 %v11276_v47  ;;  %2749 = vmatprep.subr.bf16.mxu0 %v11141_v48  ;;  %v263_v47 = vld [vmem:[#allocation2 + $0x190] sm:$0xff] }
 0x13b   :  { %2792 = vmatprep.subr.bf16.mxu1 %v11269_v52  ;;  %v267_v48 = vld [vmem:[#allocation2 + $0x1b0] sm:$0xff]  ;;  %v10958_v52 = vcombine.low %v271_v38, %v275_v40  ;;  %v11039_v40 = vcombine.high %v351_v29, %v355_v31 }
 0x13c   :  { %v343_v38 = vld [vmem:[#allocation2 + $0x410] sm:$0xff] }
 0x13d   :  { %2750 = vmatpush2.bf16.msra.mxu0 %v11140_v54  ;;  %v10951_v54 = vcombine.high %v263_v47, %v267_v48  ;;  %v11030_v51 = vcombine.low %v343_v38, %v347_v41  ;;  %v427_v29 = vld [vmem:[#allocation2 + $0x6b0] sm:$0xff] }
 0x13e   :  { %2793 = vmatpush2.bf16.msra.mxu1 %v11268_v55  ;;  %2751 = vmatprep.subr.bf16.mxu0 %v11133_v56  ;;  %v255_v55 = vld [vmem:[#allocation2 + $0x150] sm:$0xff] }
 0x13f   :  { %2794 = vmatprep.subr.bf16.mxu1 %v11261_v61  ;;  %v259_v56 = vld [vmem:[#allocation2 + $0x170] sm:$0xff]  ;;  %v10950_v61 = vcombine.low %v263_v47, %v267_v48  ;;  %v11031_v48 = vcombine.high %v343_v38, %v347_v41  ;;  %v599_v41 = vlaneseq }
 0x140   :  { %v463_v47 = vld [vmem:[#allocation2 + $0x7d0] sm:$0xff] }
 0x141   :  { %2752 = vmatpush2.bf16.msra.mxu0 %v11132_v0  ;;  %v10943_v0 = vcombine.high %v255_v55, %v259_v56  ;;  %v11150_v60 = vcombine.low %v463_v47, %v467_v49  ;;  %v419_v38 = vld [vmem:[#allocation2 + $0x670] sm:$0xff] }
 0x142   :  { %2795 = vmatpush2.bf16.msra.mxu1 %v11260_v1  ;;  %2753 = vmatprep.subr.bf16.mxu0 %v11125_v2  ;;  %v247_v1 = vld [vmem:[#allocation2 + $0x110] sm:$0xff] }
 0x143   :  { %2796 = vmatprep.subr.bf16.mxu1 %v11253_v6  ;;  %v251_v2 = vld [vmem:[#allocation2 + $0x130] sm:$0xff]  ;;  %v10942_v6 = vcombine.low %v255_v55, %v259_v56  ;;  %v11151_v56 = vcombine.high %v463_v47, %v467_v49 }
 0x144   :  { %v455_v55 = vld [vmem:[#allocation2 + $0x790] sm:$0xff] }
 0x145   :  { %2754 = vmatpush2.bf16.msra.mxu0 %v11124_v8  ;;  %v10935_v8 = vcombine.high %v247_v1, %v251_v2  ;;  %v11142_v5 = vcombine.low %v455_v55, %v459_v57 }
 0x146   :  { %2797 = vmatpush2.bf16.msra.mxu1 %v11252_v9  ;;  %2755 = vmatprep.subr.bf16.mxu0 %v11117_v10  ;;  %v239_v9 = vld [vmem:[#allocation2 + $0xd0] sm:$0xff] }
 0x147   :  { %2798 = vmatprep.subr.bf16.mxu1 %v11245_v14  ;;  %v243_v10 = vld [vmem:[#allocation2 + $0xf0] sm:$0xff]  ;;  %v10934_v14 = vcombine.low %v247_v1, %v251_v2  ;;  %v11143_v2 = vcombine.high %v455_v55, %v459_v57  ;;  %v272_v55 = vld [vmem:[#allocation2 + $0x1d8] sm:$0xff] }
 0x148   :  { %v447_v1 = vld [vmem:[#allocation2 + $0x750] sm:$0xff]  ;;  %v276_v57 = vld [vmem:[#allocation2 + $0x1f8] sm:$0xff] }
 0x149   :  { %2756 = vmatpush2.bf16.msra.mxu0 %v11116_v16  ;;  %v10927_v16 = vcombine.high %v239_v9, %v243_v10  ;;  %v11134_v13 = vcombine.low %v447_v1, %v451_v3 }
 0x14a   :  { %2799 = vmatpush2.bf16.msra.mxu1 %v11244_v17  ;;  %2757 = vmatprep.subr.bf16.mxu0 %v11109_v18  ;;  %v231_v17 = vld [vmem:[#allocation2 + $0x90] sm:$0xff] }
 0x14b   :  { %2800 = vmatprep.subr.bf16.mxu1 %v11237_v23  ;;  %v235_v18 = vld [vmem:[#allocation2 + $0xb0] sm:$0xff]  ;;  %v10926_v23 = vcombine.low %v239_v9, %v243_v10  ;;  %v11135_v10 = vcombine.high %v447_v1, %v451_v3  ;;  %v264_v3 = vld [vmem:[#allocation2 + $0x198] sm:$0xff] }
 0x14c   :  { %v439_v9 = vld [vmem:[#allocation2 + $0x710] sm:$0xff] }
 0x14d   :  { %2758 = vmatpush2.bf16.msra.mxu0 %v11108_v26  ;;  %v10919_v26 = vcombine.high %v231_v17, %v235_v18  ;;  %v11126_v22 = vcombine.low %v439_v9, %v443_v11  ;;  %v519_v1 = vld [vmem:[#allocation2 + $0x990] sm:$0xff] }
 0x14e   :  { %2801 = vmatpush2.bf16.msra.mxu1 %v11236_v27  ;;  %2759 = vmatprep.subr.bf16.mxu0 %v11101_v28  ;;  %v223_v27 = vld [vmem:[#allocation2 + $0x50] sm:$0xff] }
 0x14f   :  { %2802 = vmatprep.subr.bf16.mxu1 %v11229_v33  ;;  %v227_v28 = vld [vmem:[#allocation2 + $0x70] sm:$0xff]  ;;  %v10918_v33 = vcombine.low %v231_v17, %v235_v18  ;;  %v11127_v18 = vcombine.high %v439_v9, %v443_v11 }
 0x150   :  { %v431_v17 = vld [vmem:[#allocation2 + $0x6d0] sm:$0xff] }
 0x151   :  { %2760 = vmatpush2.bf16.msra.mxu0 %v11100_v35  ;;  %v10911_v35 = vcombine.high %v223_v27, %v227_v28  ;;  %v11118_v31 = vcombine.low %v431_v17, %v435_v19  ;;  %v511_v11 = vld [vmem:[#allocation2 + $0x950] sm:$0xff] }
 0x152   :  { %2803 = vmatpush2.bf16.msra.mxu1 %v11228_v36  ;;  %2761 = vmatprep.subr.bf16.mxu0 %v11093_v37  ;;  %v215_v36 = vld [vmem:[#allocation2 + $0x10] sm:$0xff] }
 0x153   :  { %2804 = vmatprep.subr.bf16.mxu1 %v11221_v42  ;;  %v219_v37 = vld [vmem:[#allocation2 + $0x30] sm:$0xff]  ;;  %v10910_v42 = vcombine.low %v223_v27, %v227_v28  ;;  %v11119_v28 = vcombine.high %v431_v17, %v435_v19 }
 0x154   :  { %v423_v27 = vld [vmem:[#allocation2 + $0x690] sm:$0xff] }
 0x155   :  { %2762 = vmatpush2.bf16.msra.mxu0 %v11092_v44  ;;  %v10903_v44 = vcombine.high %v215_v36, %v219_v37 }
 0x156   :  { %2805 = vmatpush2.bf16.msra.mxu1 %v11220_v45  ;;  %2817 = vmatprep.subr.bf16.mxu0 %v10959_v46  ;;  %v335_v45 = vld [vmem:[#allocation2 + $0x3d0] sm:$0xff] }
 0x157   :  { %2860 = vmatprep.subr.bf16.mxu1 %v11087_v50  ;;  %v339_v46 = vld [vmem:[#allocation2 + $0x3f0] sm:$0xff]  ;;  %v10902_v50 = vcombine.low %v215_v36, %v219_v37  ;;  %v11111_v37 = vcombine.high %v423_v27, %v427_v29 }
 0x158   :  { %2764 = vmatmul.mubr.bf16.vlgmr.msra.gmra.mxu0 %v13970_v25  ;;  %v415_v36 = vld [vmem:[#allocation2 + $0x650] sm:$0xff] }
 0x159   :  { %2807 = vmatmul.mubr.bf16.vlgmr.msra.gmra.mxu1 %v13984_v39  ;;  %2818 = vmatpush1.bf16.msra.mxu0 %v10958_v52  ;;  %v11023_v52 = vcombine.high %v335_v45, %v339_v46  ;;  %v11103_v47 = vcombine.high %v415_v36, %v419_v38 }
 0x15a   :  { %2861 = vmatpush1.bf16.msra.mxu1 %v11086_v53  ;;  %2819 = vmatprep.subr.bf16.mxu0 %v10951_v54  ;;  %v327_v53 = vld [vmem:[#allocation2 + $0x390] sm:$0xff] }
 0x15b   :  { %2862 = vmatprep.subr.bf16.mxu1 %v11079_v59  ;;  %2849 = vmatprep.mubr.bf16.mxu0 %v13938_v58  ;;  %v331_v54 = vld [vmem:[#allocation2 + $0x3b0] sm:$0xff]  ;;  %v11022_v59 = vcombine.low %v335_v45, %v339_v46 }
 0x15c   :  { %2892 = vmatprep.mubr.bf16.mxu1 %v13946_v63  ;;  %v283_v45 = vld [vmem:[#allocation2 + $0x230] sm:$0xff] }
 0x15d   :  { %2820 = vmatpush1.bf16.msra.mxu0 %v10950_v61  ;;  %v11015_v61 = vcombine.high %v327_v53, %v331_v54  ;;  %v407_v46 = vld [vmem:[#allocation2 + $0x610] sm:$0xff] }
 0x15e   :  { %2863 = vmatpush1.bf16.msra.mxu1 %v11078_v62  ;;  %2821 = vmatprep.subr.bf16.mxu0 %v10943_v0  ;;  %v319_v62 = vld [vmem:[#allocation2 + $0x350] sm:$0xff] }
 0x15f   :  { %2864 = vmatprep.subr.bf16.mxu1 %v11071_v4  ;;  %v323_v0 = vld [vmem:[#allocation2 + $0x370] sm:$0xff]  ;;  %v11014_v4 = vcombine.low %v327_v53, %v331_v54 }
 0x160   :  { %v527_v53 = vld [vmem:[#allocation2 + $0x9d0] sm:$0xff] }
 0x161   :  { %2822 = vmatpush1.bf16.msra.mxu0 %v10942_v6  ;;  %v11007_v6 = vcombine.high %v319_v62, %v323_v0  ;;  %v531_v54 = vld [vmem:[#allocation2 + $0x9f0] sm:$0xff] }
 0x162   :  { %2865 = vmatpush1.bf16.msra.mxu1 %v11070_v7  ;;  %2823 = vmatprep.subr.bf16.mxu0 %v10935_v8  ;;  %v311_v7 = vld [vmem:[#allocation2 + $0x310] sm:$0xff] }
 0x163   :  { %2866 = vmatprep.subr.bf16.mxu1 %v11063_v12  ;;  %v315_v8 = vld [vmem:[#allocation2 + $0x330] sm:$0xff]  ;;  %v11006_v12 = vcombine.low %v319_v62, %v323_v0  ;;  %v11215_v0 = vcombine.high %v527_v53, %v531_v54 }
 0x165   :  { %2824 = vmatpush1.bf16.msra.mxu0 %v10934_v14  ;;  %v10999_v14 = vcombine.high %v311_v7, %v315_v8 }
 0x166   :  { %2867 = vmatpush1.bf16.msra.mxu1 %v11062_v15  ;;  %2825 = vmatprep.subr.bf16.mxu0 %v10927_v16  ;;  %v303_v15 = vld [vmem:[#allocation2 + $0x2d0] sm:$0xff] }
 0x167   :  { %2868 = vmatprep.subr.bf16.mxu1 %v11055_v20  ;;  %v307_v16 = vld [vmem:[#allocation2 + $0x2f0] sm:$0xff]  ;;  %v10998_v20 = vcombine.low %v311_v7, %v315_v8  ;;  %v11214_v7 = vcombine.low %v527_v53, %v531_v54  ;;  %v10960_v8 = vcombine.low %v272_v55, %v276_v57 }
 0x169   :  { %2826 = vmatpush1.bf16.msra.mxu0 %v10926_v23  ;;  %v10991_v23 = vcombine.high %v303_v15, %v307_v16 }
 0x16a   :  { %2869 = vmatpush1.bf16.msra.mxu1 %v11054_v24  ;;  %2827 = vmatprep.subr.bf16.mxu0 %v10919_v26  ;;  %v295_v24 = vld [vmem:[#allocation2 + $0x290] sm:$0xff] }
 0x16b   :  { %2870 = vmatprep.subr.bf16.mxu1 %v11047_v30  ;;  %v299_v26 = vld [vmem:[#allocation2 + $0x2b0] sm:$0xff]  ;;  %v10990_v30 = vcombine.low %v303_v15, %v307_v16  ;;  %v260_v15 = vld [vmem:[#allocation2 + $0x178] sm:$0xff] }
 0x16d   :  { %2828 = vmatpush1.bf16.msra.mxu0 %v10918_v33  ;;  %v10983_v33 = vcombine.high %v295_v24, %v299_v26 }
 0x16e   :  { %2871 = vmatpush1.bf16.msra.mxu1 %v11046_v34  ;;  %2829 = vmatprep.subr.bf16.mxu0 %v10911_v35  ;;  %v287_v34 = vld [vmem:[#allocation2 + $0x250] sm:$0xff] }
 0x16f   :  { %2872 = vmatprep.subr.bf16.mxu1 %v11039_v40  ;;  %v291_v35 = vld [vmem:[#allocation2 + $0x270] sm:$0xff]  ;;  %v10982_v40 = vcombine.low %v295_v24, %v299_v26 }
 0x170   :  { %v10974_v49 = vcombine.low %v287_v34, %v291_v35 }
 0x171   :  { %2830 = vmatpush1.bf16.msra.mxu0 %v10910_v42  ;;  %v11110_v42 = vcombine.low %v423_v27, %v427_v29  ;;  %v503_v27 = vld [vmem:[#allocation2 + $0x910] sm:$0xff] }
 0x172   :  { %2873 = vmatpush1.bf16.msra.mxu1 %v11038_v43  ;;  %2831 = vmatprep.subr.bf16.mxu0 %v10903_v44  ;;  %v10975_v43 = vcombine.high %v287_v34, %v291_v35  ;;  %v279_v44 = vld [vmem:[#allocation2 + $0x210] sm:$0xff] }
 0x173   :  { %2874 = vmatprep.subr.bf16.mxu1 %v11031_v48  ;;  %v411_v48 = vld [vmem:[#allocation2 + $0x630] sm:$0xff] }
 0x174   :  { %v11094_v62 = vcombine.low %v407_v46, %v411_v48 }
 0x175   :  { %2832 = vmatpush1.bf16.msra.mxu0 %v10902_v50  ;;  %v13994_v50 = vshrl.u32 %v599_v41, 7  ;;  %v495_v41 = vld [vmem:[#allocation2 + $0x8d0] sm:$0xff] }
 0x176   :  { %2875 = vmatpush1.bf16.msra.mxu1 %v11030_v51  ;;  %2833 = vmatprep.subr.bf16.mxu0 %v11023_v52  ;;  %v11102_v51 = vcombine.low %v415_v36, %v419_v38  ;;  %v10967_v52 = vcombine.high %v279_v44, %v283_v45 }
 0x177   :  { %2876 = vmatprep.subr.bf16.mxu1 %v11151_v56  ;;  %v11095_v56 = vcombine.high %v407_v46, %v411_v48  ;;  %v487_v48 = vld [vmem:[#allocation2 + $0x890] sm:$0xff] }
 0x179   :  { %2834 = vmatpush2.bf16.msra.mxu0 %v11022_v59  ;;  %v597_v59 = vld [vmem:[#allocation4] sm:$0xff] }
 0x17a   :  { %2877 = vmatpush2.bf16.msra.mxu1 %v11150_v60  ;;  %2835 = vmatprep.subr.bf16.mxu0 %v11015_v61  ;;  %v10966_v60 = vcombine.low %v279_v44, %v283_v45  ;;  %v13997_v61 = vsub.s32 0, %v13994_v50  ;;  %v244_v44 = vld [vmem:[#allocation2 + $0xf8] sm:$0xff] }
 0x17b   :  { %2878 = vmatprep.subr.bf16.mxu1 %v11143_v2  ;;  %v523_v2 = vld [vmem:[#allocation2 + $0x9b0] sm:$0xff] }
 0x17c   :  { %v11207_v9 = vcombine.high %v519_v1, %v523_v2 }
 0x17d   :  { %2836 = vmatpush2.bf16.msra.mxu0 %v11014_v4  ;;  %v10961_v4 = vcombine.high %v272_v55, %v276_v57  ;;  %v479_v57 = vld [vmem:[#allocation2 + $0x850] sm:$0xff] }
 0x17e   :  { %2879 = vmatpush2.bf16.msra.mxu1 %v11142_v5  ;;  %2837 = vmatprep.subr.bf16.mxu0 %v11007_v6  ;;  %v268_v5 = vld [vmem:[#allocation2 + $0x1b8] sm:$0xff]  ;;  %v602_v6 = vrot.slane %v597_v59, %v13997_v61  ;;  %v483_v59 = vld [vmem:[#allocation2 + $0x870] sm:$0xff] }
 0x17f   :  { %2880 = vmatprep.subr.bf16.mxu1 %v11135_v10  ;;  %v10953_v10 = vcombine.high %v264_v3, %v268_v5 }
 0x181   :  { %2838 = vmatpush2.bf16.msra.mxu0 %v11006_v12  ;;  %v515_v12 = vld [vmem:[#allocation2 + $0x970] sm:$0xff] }
 0x182   :  { %2881 = vmatpush2.bf16.msra.mxu1 %v11134_v13  ;;  %2839 = vmatprep.subr.bf16.mxu0 %v10999_v14  ;;  %v256_v14 = vld [vmem:[#allocation2 + $0x158] sm:$0xff]  ;;  %v11198_v34 = vcombine.low %v511_v11, %v515_v12 }
 0x183   :  { %2882 = vmatprep.subr.bf16.mxu1 %v11127_v18  ;;  %v11206_v18 = vcombine.low %v519_v1, %v523_v2  ;;  %v10945_v26 = vcombine.high %v256_v14, %v260_v15  ;;  %v10944_v36 = vcombine.low %v256_v14, %v260_v15  ;;  %v11167_v2 = vcombine.high %v479_v57, %v483_v59  ;;  %v340_v15 = vld [vmem:[#allocation2 + $0x3f8] sm:$0xff] }
 0x185   :  { %2840 = vmatpush2.bf16.msra.mxu0 %v10998_v20  ;;  %v10952_v20 = vcombine.low %v264_v3, %v268_v5  ;;  %v471_v3 = vld [vmem:[#allocation2 + $0x810] sm:$0xff]  ;;  %v216_v5 = vld [vmem:[#allocation2 + $0x18] sm:$0xff] }
 0x186   :  { %2883 = vmatpush2.bf16.msra.mxu1 %v11126_v22  ;;  %2841 = vmatprep.subr.bf16.mxu0 %v10991_v23  ;;  %v11199_v22 = vcombine.high %v511_v11, %v515_v12  ;;  %v591_v11 = vld [vmem:[#allocation2 + $0xbd0] sm:$0xff] }
 0x187   :  { %2884 = vmatprep.subr.bf16.mxu1 %v11119_v28  ;;  %v507_v28 = vld [vmem:[#allocation2 + $0x930] sm:$0xff] }
 0x188   :  { %v11190_v45 = vcombine.low %v503_v27, %v507_v28  ;;  %v595_v12 = vld [vmem:[#allocation2 + $0xbf0] sm:$0xff] }
 0x189   :  { %2842 = vmatpush2.bf16.msra.mxu0 %v10990_v30  ;;  %v248_v30 = vld [vmem:[#allocation2 + $0x118] sm:$0xff] }
 0x18a   :  { %2885 = vmatpush2.bf16.msra.mxu1 %v11118_v31  ;;  %2843 = vmatprep.subr.bf16.mxu0 %v10983_v33  ;;  %v252_v31 = vld [vmem:[#allocation2 + $0x138] sm:$0xff] }
 0x18b   :  { %2886 = vmatprep.subr.bf16.mxu1 %v11111_v37  ;;  %v11191_v37 = vcombine.high %v503_v27, %v507_v28  ;;  %v332_v28 = vld [vmem:[#allocation2 + $0x3b8] sm:$0xff] }
 0x18d   :  { %2844 = vmatpush2.bf16.msra.mxu0 %v10982_v40  ;;  %v10937_v40 = vcombine.high %v248_v30, %v252_v31 }
 0x18e   :  { %2887 = vmatpush2.bf16.msra.mxu1 %v11110_v42  ;;  %2845 = vmatprep.subr.bf16.mxu0 %v10975_v43  ;;  %v499_v42 = vld [vmem:[#allocation2 + $0x8f0] sm:$0xff]  ;;  %v240_v43 = vld [vmem:[#allocation2 + $0xd8] sm:$0xff] }
 0x18f   :  { %2888 = vmatprep.subr.bf16.mxu1 %v11103_v47  ;;  %v11183_v46 = vcombine.high %v495_v41, %v499_v42  ;;  %v10929_v47 = vcombine.high %v240_v43, %v244_v44  ;;  %v11182_v53 = vcombine.low %v495_v41, %v499_v42  ;;  %v10928_v54 = vcombine.low %v240_v43, %v244_v44  ;;  %v567_v43 = vld [vmem:[#allocation2 + $0xb10] sm:$0xff] }
 0x190   :  { %v571_v44 = vld [vmem:[#allocation2 + $0xb30] sm:$0xff] }
 0x191   :  { %2846 = vmatpush2.bf16.msra.mxu0 %v10974_v49  ;;  %v491_v49 = vld [vmem:[#allocation2 + $0x8b0] sm:$0xff] }
 0x192   :  { %2889 = vmatpush2.bf16.msra.mxu1 %v11102_v51  ;;  %2847 = vmatprep.subr.bf16.mxu0 %v10967_v52  ;;  %v232_v51 = vld [vmem:[#allocation2 + $0x98] sm:$0xff]  ;;  %v11175_v55 = vcombine.high %v487_v48, %v491_v49 }
 0x193   :  { %2890 = vmatprep.subr.bf16.mxu1 %v11095_v56  ;;  %v236_v52 = vld [vmem:[#allocation2 + $0xb8] sm:$0xff] }
 0x194   :  { %v10921_v56 = vcombine.high %v232_v51, %v236_v52  ;;  %v10920_v1 = vcombine.low %v232_v51, %v236_v52  ;;  %v559_v51 = vld [vmem:[#allocation2 + $0xad0] sm:$0xff] }
 0x195   :  { %2848 = vmatpush2.bf16.msra.mxu0 %v10966_v60  ;;  %v224_v60 = vld [vmem:[#allocation2 + $0x58] sm:$0xff]  ;;  %v563_v52 = vld [vmem:[#allocation2 + $0xaf0] sm:$0xff] }
 0x196   :  { %2891 = vmatpush2.bf16.msra.mxu1 %v11094_v62  ;;  %2903 = vmatprep.subr.bf16.mxu0 %v11215_v0  ;;  %v228_v62 = vld [vmem:[#allocation2 + $0x78] sm:$0xff]  ;;  %v11174_v0 = vcombine.low %v487_v48, %v491_v49  ;;  %v11255_v49 = vcombine.high %v567_v43, %v571_v44 }
 0x197   :  { %2946 = vmatprep.subr.bf16.mxu1 %v10961_v4  ;;  %v475_v4 = vld [vmem:[#allocation2 + $0x830] sm:$0xff] }
 0x198   :  { %v2593_v13 = vpop.f32.mrf.mxu0  ;;  %2850 = vmatmul.mubr.bf16.vlgmr.msra.gmra.mxu0 %v13962_v21 }
 0x199   :  { %v2594_v16 = vadd.f32 %v2593_v13, %v602_v6  ;;  %v2636_v17 = vpop.f32.mrf.mxu1  ;;  %2893 = vmatmul.mubr.bf16.vlgmr.msra.gmra.mxu1 %v13970_v25  ;;  %2904 = vmatpush1.bf16.msra.mxu0 %v11214_v7  ;;  %v220_v7 = vld [vmem:[#allocation2 + $0x38] sm:$0xff] }
 0x19a   :  { %2947 = vmatpush1.bf16.msra.mxu1 %v10960_v8  ;;  %v14002_v19 = vpop.f32.mrf.mxu0  ;;  %2905 = vmatprep.subr.bf16.mxu0 %v11207_v9  ;;  %v11166_v8 = vcombine.low %v479_v57, %v483_v59  ;;  %v10912_v9 = vcombine.low %v224_v60, %v228_v62  ;;  %v336_v13 = vld [vmem:[#allocation2 + $0x3d8] sm:$0xff]  ;;  %v10905_v14 = vcombine.high %v216_v5, %v220_v7 }
 0x19b   :  { %v14004_v23 = vadd.f32 %v2636_v17, %v2594_v16  ;;  %v14006_v24 = vpop.f32.mrf.mxu1  ;;  %2948 = vmatprep.subr.bf16.mxu1 %v10953_v10  ;;  %2935 = vmatprep.mubr.bf16.mxu0 %v13972_v32  ;;  %v11159_v10 = vcombine.high %v471_v3, %v475_v4  ;;  %v11158_v16 = vcombine.low %v471_v3, %v475_v4 }
 0x19c   :  { %v2597_v29 = vpop.f32.mrf.mxu0  ;;  %2978 = vmatprep.mubr.bf16.mxu1 %v13938_v58  ;;  %v10936_v58 = vcombine.low %v248_v30, %v252_v31  ;;  %v10904_v17 = vcombine.low %v216_v5, %v220_v7  ;;  %v11025_v27 = vcombine.high %v336_v13, %v340_v15  ;;  %v11024_v30 = vcombine.low %v336_v13, %v340_v15  ;;  %v547_v7 = vld [vmem:[#allocation2 + $0xa70] sm:$0xff] }
 0x19d   :  { %v2598_v33 = vadd.f32 %v2597_v29, %v602_v6  ;;  %2906 = vmatpush1.bf16.msra.mxu0 %v11206_v18  ;;  %v2640_v35 = vpop.f32.mrf.mxu1  ;;  %v10913_v6 = vcombine.high %v224_v60, %v228_v62  ;;  %v11279_v18 = vcombine.high %v591_v11, %v595_v12  ;;  %v11278_v29 = vcombine.low %v591_v11, %v595_v12  ;;  %v551_v60 = vld [vmem:[#allocation2 + $0xa90] sm:$0xff] }
 0x19e   :  { %2949 = vmatpush1.bf16.msra.mxu1 %v10952_v20  ;;  %2907 = vmatprep.subr.bf16.mxu0 %v11199_v22  ;;  %v583_v20 = vld [vmem:[#allocation2 + $0xb90] sm:$0xff]  ;;  %v11247_v59 = vcombine.high %v559_v51, %v563_v52  ;;  %v11246_v3 = vcombine.low %v559_v51, %v563_v52 }
 0x19f   :  { %v14010_v38 = vadd.f32 %v2640_v35, %v2598_v33  ;;  %2950 = vmatprep.subr.bf16.mxu1 %v10945_v26  ;;  %v587_v22 = vld [vmem:[#allocation2 + $0xbb0] sm:$0xff]  ;;  %v328_v26 = vld [vmem:[#allocation2 + $0x398] sm:$0xff] }
 0x1a0   :  { %v11271_v31 = vcombine.high %v583_v20, %v587_v22  ;;  %v575_v33 = vld [vmem:[#allocation2 + $0xb50] sm:$0xff]  ;;  %v320_v35 = vld [vmem:[#allocation2 + $0x358] sm:$0xff]  ;;  %v11016_v41 = vcombine.low %v328_v26, %v332_v28 }
 0x1a1   :  { %2908 = vmatpush1.bf16.msra.mxu0 %v11198_v34  ;;  %v579_v34 = vld [vmem:[#allocation2 + $0xb70] sm:$0xff] }
 0x1a2   :  { %2951 = vmatpush1.bf16.msra.mxu1 %v10944_v36  ;;  %2909 = vmatprep.subr.bf16.mxu0 %v11191_v37  ;;  %v11017_v36 = vcombine.high %v328_v26, %v332_v28  ;;  %v324_v37 = vld [vmem:[#allocation2 + $0x378] sm:$0xff]  ;;  %v11263_v42 = vcombine.high %v575_v33, %v579_v34  ;;  %v555_v62 = vld [vmem:[#allocation2 + $0xab0] sm:$0xff] }
 0x1a3   :  { %2952 = vmatprep.subr.bf16.mxu1 %v10937_v40  ;;  %v11270_v40 = vcombine.low %v583_v20, %v587_v22  ;;  %v11008_v48 = vcombine.low %v320_v35, %v324_v37  ;;  %v11239_v5 = vcombine.high %v551_v60, %v555_v62  ;;  %v11238_v11 = vcombine.low %v551_v60, %v555_v62  ;;  %v539_v15 = vld [vmem:[#allocation2 + $0xa30] sm:$0xff]  ;;  %v404_v28 = vld [vmem:[#allocation2 + $0x5f8] sm:$0xff] }
 0x1a4   :  { %v504_v62 = vld [vmem:[#allocation2 + $0x918] sm:$0xff] }
 0x1a5   :  { %2910 = vmatpush1.bf16.msra.mxu0 %v11190_v45  ;;  %v312_v45 = vld [vmem:[#allocation2 + $0x318] sm:$0xff] }
 0x1a6   :  { %2953 = vmatpush1.bf16.msra.mxu1 %v10936_v58  ;;  %2911 = vmatprep.subr.bf16.mxu0 %v11183_v46  ;;  %v11009_v58 = vcombine.high %v320_v35, %v324_v37  ;;  %v316_v46 = vld [vmem:[#allocation2 + $0x338] sm:$0xff] }
 0x1a7   :  { %2954 = vmatprep.subr.bf16.mxu1 %v10929_v47  ;;  %v11262_v47 = vcombine.low %v575_v33, %v579_v34  ;;  %v11000_v57 = vcombine.low %v312_v45, %v316_v46  ;;  %v396_v37 = vld [vmem:[#allocation2 + $0x5b8] sm:$0xff] }
 0x1a9   :  { %2912 = vmatpush1.bf16.msra.mxu0 %v11182_v53  ;;  %v304_v53 = vld [vmem:[#allocation2 + $0x2d8] sm:$0xff] }
 0x1aa   :  { %2955 = vmatpush1.bf16.msra.mxu1 %v10928_v54  ;;  %2913 = vmatprep.subr.bf16.mxu0 %v11175_v55  ;;  %v11001_v54 = vcombine.high %v312_v45, %v316_v46  ;;  %v308_v55 = vld [vmem:[#allocation2 + $0x2f8] sm:$0xff] }
 0x1ab   :  { %2956 = vmatprep.subr.bf16.mxu1 %v10921_v56  ;;  %v11254_v56 = vcombine.low %v567_v43, %v571_v44  ;;  %v10992_v4 = vcombine.low %v304_v53, %v308_v55  ;;  %v384_v44 = vld [vmem:[#allocation2 + $0x558] sm:$0xff] }
 0x1ac   :  { %v388_v45 = vld [vmem:[#allocation2 + $0x578] sm:$0xff] }
 0x1ad   :  { %2914 = vmatpush1.bf16.msra.mxu0 %v11174_v0  ;;  %v296_v0 = vld [vmem:[#allocation2 + $0x298] sm:$0xff]  ;;  %v11073_v60 = vcombine.high %v384_v44, %v388_v45 }
 0x1ae   :  { %2957 = vmatpush1.bf16.msra.mxu1 %v10920_v1  ;;  %2915 = vmatprep.subr.bf16.mxu0 %v11167_v2  ;;  %v10993_v1 = vcombine.high %v304_v53, %v308_v55  ;;  %v300_v2 = vld [vmem:[#allocation2 + $0x2b8] sm:$0xff] }
 0x1af   :  { %2958 = vmatprep.subr.bf16.mxu1 %v10913_v6  ;;  %v543_v6 = vld [vmem:[#allocation2 + $0xa50] sm:$0xff]  ;;  %v10984_v12 = vcombine.low %v296_v0, %v300_v2  ;;  %v376_v55 = vld [vmem:[#allocation2 + $0x518] sm:$0xff] }
 0x1b0   :  { %v11231_v13 = vcombine.high %v543_v6, %v547_v7  ;;  %v11230_v20 = vcombine.low %v543_v6, %v547_v7  ;;  %v496_v7 = vld [vmem:[#allocation2 + $0x8d8] sm:$0xff] }
 0x1b1   :  { %2916 = vmatpush1.bf16.msra.mxu0 %v11166_v8  ;;  %v288_v8 = vld [vmem:[#allocation2 + $0x258] sm:$0xff] }
 0x1b2   :  { %2959 = vmatpush1.bf16.msra.mxu1 %v10912_v9  ;;  %2917 = vmatprep.subr.bf16.mxu0 %v11159_v10  ;;  %v10985_v9 = vcombine.high %v296_v0, %v300_v2  ;;  %v292_v10 = vld [vmem:[#allocation2 + $0x278] sm:$0xff] }
 0x1b3   :  { %2960 = vmatprep.subr.bf16.mxu1 %v10905_v14  ;;  %v535_v14 = vld [vmem:[#allocation2 + $0xa10] sm:$0xff]  ;;  %v10976_v22 = vcombine.low %v288_v8, %v292_v10  ;;  %v508_v0 = vld [vmem:[#allocation2 + $0x938] sm:$0xff] }
 0x1b4   :  { %v11223_v26 = vcombine.high %v535_v14, %v539_v15  ;;  %v11222_v33 = vcombine.low %v535_v14, %v539_v15  ;;  %v364_v15 = vld [vmem:[#allocation2 + $0x4b8] sm:$0xff] }
 0x1b5   :  { %2918 = vmatpush1.bf16.msra.mxu0 %v11158_v16  ;;  %v280_v16 = vld [vmem:[#allocation2 + $0x218] sm:$0xff] }
 0x1b6   :  { %2961 = vmatpush1.bf16.msra.mxu1 %v10904_v17  ;;  %2919 = vmatprep.subr.bf16.mxu0 %v11279_v18  ;;  %v10977_v17 = vcombine.high %v288_v8, %v292_v10  ;;  %v284_v18 = vld [vmem:[#allocation2 + $0x238] sm:$0xff] }
 0x1b7   :  { %2962 = vmatprep.subr.bf16.mxu1 %v11025_v27  ;;  %v400_v27 = vld [vmem:[#allocation2 + $0x5d8] sm:$0xff]  ;;  %v10968_v34 = vcombine.low %v280_v16, %v284_v18 }
 0x1b8   :  { %v11089_v35 = vcombine.high %v400_v27, %v404_v28  ;;  %v11088_v43 = vcombine.low %v400_v27, %v404_v28  ;;  %v500_v8 = vld [vmem:[#allocation2 + $0x8f8] sm:$0xff] }
 0x1b9   :  { %2920 = vmatpush2.bf16.msra.mxu0 %v11278_v29  ;;  %v528_v29 = vld [vmem:[#allocation2 + $0x9d8] sm:$0xff]  ;;  %v11185_v14 = vcombine.high %v496_v7, %v500_v8 }
 0x1ba   :  { %2963 = vmatpush2.bf16.msra.mxu1 %v11024_v30  ;;  %2921 = vmatprep.subr.bf16.mxu0 %v11271_v31  ;;  %v10969_v30 = vcombine.high %v280_v16, %v284_v18  ;;  %v532_v31 = vld [vmem:[#allocation2 + $0x9f8] sm:$0xff] }
 0x1bb   :  { %2964 = vmatprep.subr.bf16.mxu1 %v11017_v36  ;;  %v392_v36 = vld [vmem:[#allocation2 + $0x598] sm:$0xff]  ;;  %v11216_v46 = vcombine.low %v528_v29, %v532_v31 }
 0x1bc   :  { %v488_v16 = vld [vmem:[#allocation2 + $0x898] sm:$0xff] }
 0x1bd   :  { %2922 = vmatpush2.bf16.msra.mxu0 %v11270_v40  ;;  %v520_v40 = vld [vmem:[#allocation2 + $0x998] sm:$0xff] }
 0x1be   :  { %2965 = vmatpush2.bf16.msra.mxu1 %v11016_v41  ;;  %2923 = vmatprep.subr.bf16.mxu0 %v11263_v42  ;;  %v11217_v41 = vcombine.high %v528_v29, %v532_v31  ;;  %v524_v42 = vld [vmem:[#allocation2 + $0x9b8] sm:$0xff] }
 0x1bf   :  { %2966 = vmatprep.subr.bf16.mxu1 %v11009_v58  ;;  %v14012_v58 = vpop.f32.mrf.mxu0  ;;  %v11209_v51 = vcombine.high %v520_v40, %v524_v42  ;;  %v480_v28 = vld [vmem:[#allocation2 + $0x858] sm:$0xff] }
 0x1c0   :  { %v484_v29 = vld [vmem:[#allocation2 + $0x878] sm:$0xff] }
 0x1c1   :  { %2924 = vmatpush2.bf16.msra.mxu0 %v11262_v47  ;;  %v11081_v47 = vcombine.high %v392_v36, %v396_v37 }
 0x1c2   :  { %2967 = vmatpush2.bf16.msra.mxu1 %v11008_v48  ;;  %2925 = vmatprep.subr.bf16.mxu0 %v11255_v49  ;;  %v512_v48 = vld [vmem:[#allocation2 + $0x958] sm:$0xff] }
 0x1c3   :  { %2968 = vmatprep.subr.bf16.mxu1 %v11001_v54  ;;  %v516_v49 = vld [vmem:[#allocation2 + $0x978] sm:$0xff]  ;;  %v11080_v54 = vcombine.low %v392_v36, %v396_v37 }
 0x1c4   :  { %v472_v37 = vld [vmem:[#allocation2 + $0x818] sm:$0xff] }
 0x1c5   :  { %2926 = vmatpush2.bf16.msra.mxu0 %v11254_v56  ;;  %v380_v56 = vld [vmem:[#allocation2 + $0x538] sm:$0xff] }
 0x1c6   :  { %2969 = vmatpush2.bf16.msra.mxu1 %v11000_v57  ;;  %2927 = vmatprep.subr.bf16.mxu0 %v11247_v59  ;;  %v11208_v59 = vcombine.low %v520_v40, %v524_v42  ;;  %v11065_v6 = vcombine.high %v376_v55, %v380_v56  ;;  %v476_v40 = vld [vmem:[#allocation2 + $0x838] sm:$0xff] }
 0x1c7   :  { %2970 = vmatprep.subr.bf16.mxu1 %v10993_v1  ;;  %v11201_v1 = vcombine.high %v512_v48, %v516_v49 }
 0x1c9   :  { %2928 = vmatpush2.bf16.msra.mxu0 %v11246_v3  ;;  %v368_v3 = vld [vmem:[#allocation2 + $0x4d8] sm:$0xff] }
 0x1ca   :  { %2971 = vmatpush2.bf16.msra.mxu1 %v10992_v4  ;;  %2929 = vmatprep.subr.bf16.mxu0 %v11239_v5  ;;  %v372_v4 = vld [vmem:[#allocation2 + $0x4f8] sm:$0xff]  ;;  %v11200_v5 = vcombine.low %v512_v48, %v516_v49  ;;  %v11161_v49 = vcombine.high %v472_v37, %v476_v40 }
 0x1cb   :  { %2972 = vmatprep.subr.bf16.mxu1 %v10985_v9  ;;  %v11056_v18 = vcombine.low %v368_v3, %v372_v4  ;;  %v596_v48 = vld [vmem:[#allocation2 + $0xbf8] sm:$0xff] }
 0x1cd   :  { %2930 = vmatpush2.bf16.msra.mxu0 %v11238_v11  ;;  %v11193_v11 = vcombine.high %v504_v62, %v508_v0 }
 0x1ce   :  { %2973 = vmatpush2.bf16.msra.mxu1 %v10984_v12  ;;  %2931 = vmatprep.subr.bf16.mxu0 %v11231_v13  ;;  %v11057_v12 = vcombine.high %v368_v3, %v372_v4  ;;  %v360_v13 = vld [vmem:[#allocation2 + $0x498] sm:$0xff] }
 0x1cf   :  { %2974 = vmatprep.subr.bf16.mxu1 %v10977_v17  ;;  %v492_v17 = vld [vmem:[#allocation2 + $0x8b8] sm:$0xff]  ;;  %v11049_v27 = vcombine.high %v360_v13, %v364_v15  ;;  %v11048_v31 = vcombine.low %v360_v13, %v364_v15 }
 0x1d0   :  { %v580_v3 = vld [vmem:[#allocation2 + $0xb78] sm:$0xff] }
 0x1d1   :  { %2932 = vmatpush2.bf16.msra.mxu0 %v11230_v20  ;;  %v352_v20 = vld [vmem:[#allocation2 + $0x458] sm:$0xff] }
 0x1d2   :  { %2975 = vmatpush2.bf16.msra.mxu1 %v10976_v22  ;;  %2933 = vmatprep.subr.bf16.mxu0 %v11223_v26  ;;  %v356_v22 = vld [vmem:[#allocation2 + $0x478] sm:$0xff]  ;;  %v11184_v26 = vcombine.low %v496_v7, %v500_v8 }
 0x1d3   :  { %2976 = vmatprep.subr.bf16.mxu1 %v10969_v30  ;;  %v11177_v30 = vcombine.high %v488_v16, %v492_v17  ;;  %v11041_v36 = vcombine.high %v352_v20, %v356_v22  ;;  %v11040_v42 = vcombine.low %v352_v20, %v356_v22  ;;  %v444_v7 = vld [vmem:[#allocation2 + $0x738] sm:$0xff] }
 0x1d4   :  { %v436_v13 = vld [vmem:[#allocation2 + $0x6f8] sm:$0xff] }
 0x1d5   :  { %2934 = vmatpush2.bf16.msra.mxu0 %v11222_v33  ;;  %v344_v33 = vld [vmem:[#allocation2 + $0x418] sm:$0xff] }
 0x1d6   :  { %2977 = vmatpush2.bf16.msra.mxu1 %v10968_v34  ;;  %2989 = vmatprep.subr.bf16.mxu0 %v11089_v35  ;;  %v348_v34 = vld [vmem:[#allocation2 + $0x438] sm:$0xff]  ;;  %v11176_v35 = vcombine.low %v488_v16, %v492_v17 }
 0x1d7   :  { %3032 = vmatprep.subr.bf16.mxu1 %v11217_v41  ;;  %v11169_v41 = vcombine.high %v480_v28, %v484_v29  ;;  %v560_v16 = vld [vmem:[#allocation2 + $0xad8] sm:$0xff] }
 0x1d8   :  { %v2679_v52 = vpop.f32.mrf.mxu0  ;;  %2936 = vmatmul.mubr.bf16.vlgmr.msra.gmra.mxu0 %v13984_v39  ;;  %v564_v17 = vld [vmem:[#allocation2 + $0xaf8] sm:$0xff] }
 0x1d9   :  { %v2680_v53 = vadd.f32 %v2679_v52, %v14004_v23  ;;  %2979 = vmatmul.mubr.bf16.vlgmr.msra.gmra.mxu1 %v13962_v21  ;;  %2990 = vmatpush1.bf16.msra.mxu0 %v11088_v43  ;;  %v11072_v23 = vcombine.low %v384_v44, %v388_v45  ;;  %v464_v43 = vld [vmem:[#allocation2 + $0x7d8] sm:$0xff]  ;;  %v11168_v45 = vcombine.low %v480_v28, %v484_v29 }
 0x1da   :  { %3033 = vmatpush1.bf16.msra.mxu1 %v11216_v46  ;;  %v14017_v57 = vpop.f32.mrf.mxu0  ;;  %2991 = vmatprep.subr.bf16.mxu0 %v11081_v47  ;;  %v468_v44 = vld [vmem:[#allocation2 + $0x7f8] sm:$0xff]  ;;  %v11033_v46 = vcombine.high %v344_v33, %v348_v34 }
 0x1db   :  { %3034 = vmatprep.subr.bf16.mxu1 %v11209_v51  ;;  %3021 = vmatprep.mubr.bf16.mxu0 %v13946_v63  ;;  %v3075_v9 = vmax.f32 %v2680_v53, 0.0  ;;  %v592_v47 = vld [vmem:[#allocation2 + $0xbd8] sm:$0xff]  ;;  %v11032_v51 = vcombine.low %v344_v33, %v348_v34  ;;  %v14025_v33 = vsub.s32 1, %v13994_v50 }
 0x1dc   :  { %v2683_v2 = vpop.f32.mrf.mxu0  ;;  %3064 = vmatprep.mubr.bf16.mxu1 %v13972_v32  ;;  %v11064_v32 = vcombine.low %v376_v55, %v380_v56  ;;  %v456_v52 = vld [vmem:[#allocation2 + $0x798] sm:$0xff]  ;;  %v11153_v55 = vcombine.high %v464_v43, %v468_v44 }
 0x1dd   :  { %v2684_v21 = vadd.f32 %v2683_v2, %v14010_v38  ;;  %2992 = vmatpush1.bf16.msra.mxu0 %v11080_v54  ;;  %v11192_v38 = vcombine.low %v504_v62, %v508_v0  ;;  %v460_v53 = vld [vmem:[#allocation2 + $0x7b8] sm:$0xff]  ;;  %v11160_v54 = vcombine.low %v472_v37, %v476_v40  ;;  %v11152_v62 = vcombine.low %v464_v43, %v468_v44  ;;  %v14027_v44 = vld [vmem:[#allocation4] sm:$0xff] }
 0x1de   :  { %3035 = vmatpush1.bf16.msra.mxu1 %v11208_v59  ;;  %2993 = vmatprep.subr.bf16.mxu0 %v11073_v60  ;;  %v584_v56 = vld [vmem:[#allocation2 + $0xb98] sm:$0xff]  ;;  %v11281_v60 = vcombine.high %v592_v47, %v596_v48  ;;  %v11280_v2 = vcombine.low %v592_v47, %v596_v48  ;;  %v11248_v37 = vcombine.low %v560_v16, %v564_v17 }
 0x1df   :  { %v3083_v10 = vmax.f32 %v2684_v21, 0.0  ;;  %3036 = vmatprep.subr.bf16.mxu1 %v11201_v1  ;;  %v588_v59 = vld [vmem:[#allocation2 + $0xbb8] sm:$0xff]  ;;  %v11145_v21 = vcombine.high %v456_v52, %v460_v53 }
 0x1e0   :  { %v448_v0 = vld [vmem:[#allocation2 + $0x758] sm:$0xff]  ;;  %v11273_v4 = vcombine.high %v584_v56, %v588_v59  ;;  %v11272_v8 = vcombine.low %v584_v56, %v588_v59 }
 0x1e1   :  { %v14022_v63 = vpack.c.bf16 %v3083_v10, %v3075_v9  ;;  %2994 = vmatpush1.bf16.msra.mxu0 %v11072_v23  ;;  %v452_v1 = vld [vmem:[#allocation2 + $0x778] sm:$0xff] }
 0x1e2   :  { %3037 = vmatpush1.bf16.msra.mxu1 %v11200_v5  ;;  %2995 = vmatprep.subr.bf16.mxu0 %v11065_v6  ;;  %v576_v23 = vld [vmem:[#allocation2 + $0xb58] sm:$0xff]  ;;  %v11144_v5 = vcombine.low %v456_v52, %v460_v53  ;;  %v11137_v9 = vcombine.high %v448_v0, %v452_v1 }
 0x1e3   :  { %3038 = vmatprep.subr.bf16.mxu1 %v11193_v11  ;;  %v440_v6 = vld [vmem:[#allocation2 + $0x718] sm:$0xff] }
 0x1e4   :  { %v568_v10 = vld [vmem:[#allocation2 + $0xb18] sm:$0xff]  ;;  %v11129_v15 = vcombine.high %v440_v6, %v444_v7  ;;  %v11128_v20 = vcombine.low %v440_v6, %v444_v7  ;;  %v14037_v6 = vsub.s32 3, %v13994_v50 }
 0x1e5   :  { %2996 = vmatpush1.bf16.msra.mxu0 %v11064_v32  ;;  %v572_v11 = vld [vmem:[#allocation2 + $0xb38] sm:$0xff]  ;;  %v11265_v32 = vcombine.high %v576_v23, %v580_v3 }
 0x1e6   :  { %3039 = vmatpush1.bf16.msra.mxu1 %v11192_v38  ;;  %2997 = vmatprep.subr.bf16.mxu0 %v11057_v12  ;;  %v11136_v38 = vcombine.low %v448_v0, %v452_v1  ;;  %v432_v12 = vld [vmem:[#allocation2 + $0x6d8] sm:$0xff] }
 0x1e7   :  { %3040 = vmatprep.subr.bf16.mxu1 %v11185_v14  ;;  %v11264_v14 = vcombine.low %v576_v23, %v580_v3  ;;  %v424_v22 = vld [vmem:[#allocation2 + $0x698] sm:$0xff]  ;;  %v11121_v28 = vcombine.high %v432_v12, %v436_v13  ;;  %v11120_v34 = vcombine.low %v432_v12, %v436_v13 }
 0x1e8   :  { %v552_v29 = vld [vmem:[#allocation2 + $0xa98] sm:$0xff] }
 0x1e9   :  { %2998 = vmatpush1.bf16.msra.mxu0 %v11056_v18  ;;  %v11257_v18 = vcombine.high %v568_v10, %v572_v11  ;;  %v408_v48 = vld [vmem:[#allocation2 + $0x618] sm:$0xff] }
 0x1ea   :  { %3041 = vmatpush1.bf16.msra.mxu1 %v11184_v26  ;;  %2999 = vmatprep.subr.bf16.mxu0 %v11049_v27  ;;  %v428_v26 = vld [vmem:[#allocation2 + $0x6b8] sm:$0xff]  ;;  %v11256_v27 = vcombine.low %v568_v10, %v572_v11 }
 0x1eb   :  { %3042 = vmatprep.subr.bf16.mxu1 %v11177_v30  ;;  %v556_v30 = vld [vmem:[#allocation2 + $0xab8] sm:$0xff]  ;;  %v11113_v40 = vcombine.high %v424_v22, %v428_v26  ;;  %v11112_v47 = vcombine.low %v424_v22, %v428_v26 }
 0x1ec   :  { %v11241_v43 = vcombine.high %v552_v29, %v556_v30  ;;  %v11240_v52 = vcombine.low %v552_v29, %v556_v30  ;;  %v12343_v7 = vld [vmem:[#allocation6 + $0x2e4] ss:$16 sps:$4 sm:$0xff]   ;;  %v12338_v11 = vld [vmem:[#allocation6 + $0xe0] ss:$16 sps:$4 sm:$0xff]  }
 0x1ed   :  { %3000 = vmatpush1.bf16.msra.mxu0 %v11048_v31  ;;  %v11249_v31 = vcombine.high %v560_v16, %v564_v17  ;;  %v12346_v12 = vld [vmem:[#allocation6 + $0xc4] ss:$16 sps:$4 sm:$0xff]  }
 0x1ee   :  { %3043 = vmatpush1.bf16.msra.mxu1 %v11176_v35  ;;  %3001 = vmatprep.subr.bf16.mxu0 %v11041_v36  ;;  %v416_v35 = vld [vmem:[#allocation2 + $0x658] sm:$0xff] }
 0x1ef   :  { %3044 = vmatprep.subr.bf16.mxu1 %v11169_v41  ;;  %v420_v36 = vld [vmem:[#allocation2 + $0x678] sm:$0xff] }
 0x1f0   :  { %v544_v41 = vld [vmem:[#allocation2 + $0xa58] sm:$0xff]  ;;  %v11105_v53 = vcombine.high %v416_v35, %v420_v36  ;;  %v11104_v0 = vcombine.low %v416_v35, %v420_v36 }
 0x1f1   :  { %3002 = vmatpush1.bf16.msra.mxu0 %v11040_v42  ;;  %v548_v42 = vld [vmem:[#allocation2 + $0xa78] sm:$0xff] }
 0x1f2   :  { %3045 = vmatpush1.bf16.msra.mxu1 %v11168_v45  ;;  %3003 = vmatprep.subr.bf16.mxu0 %v11033_v46  ;;  %v606_v45 = vrot.slane %v14027_v44, %v14025_v33  ;;  %v2642_v46 = vpop.f32.mrf.mxu1  ;;  %v11233_v59 = vcombine.high %v544_v41, %v548_v42  ;;  %v12349_v13 = vld [vmem:[#allocation6 + $0x2c4] ss:$16 sps:$4 sm:$0xff]  }
 0x1f3   :  { %3046 = vmatprep.subr.bf16.mxu1 %v11161_v49  ;;  %v412_v49 = vld [vmem:[#allocation2 + $0x638] sm:$0xff] }
 0x1f4   :  { %v14032_v56 = vpop.f32.mrf.mxu1  ;;  %v12358_v35 = vld [vmem:[#allocation6 + $0x84] ss:$16 sps:$4 sm:$0xff]  }
 0x1f5   :  { %3004 = vmatpush1.bf16.msra.mxu0 %v11032_v51  ;;  %v2600_v51 = vadd.f32 %v14012_v58, %v606_v45  ;;  %v11097_v58 = vcombine.high %v408_v48, %v412_v49 }
 0x1f6   :  { %3047 = vmatpush1.bf16.msra.mxu1 %v11160_v54  ;;  %3005 = vmatprep.subr.bf16.mxu0 %v11153_v55  ;;  %v536_v54 = vld [vmem:[#allocation2 + $0xa18] sm:$0xff] }
 0x1f7   :  { %3048 = vmatprep.subr.bf16.mxu1 %v11281_v60  ;;  %v540_v55 = vld [vmem:[#allocation2 + $0xa38] sm:$0xff]  ;;  %v2596_v60 = vadd.f32 %v14002_v19, %v606_v45  ;;  %v2643_v1 = vadd.f32 %v2642_v46, %v2600_v51  ;;  %v11096_v19 = vcombine.low %v408_v48, %v412_v49 }
 0x1f8   :  { %v11225_v23 = vcombine.high %v536_v54, %v540_v55  ;;  %v12359_v46 = vld [vmem:[#allocation6 + $0x280] ss:$16 sps:$4 sm:$0xff]   ;;  %v12367_v49 = vld [vmem:[#allocation6 + $0x264] ss:$16 sps:$4 sm:$0xff]  }
 0x1f9   :  { %3006 = vmatpush2.bf16.msra.mxu0 %v11152_v62  ;;  %v2685_v62 = vpop.f32.mrf.mxu0  ;;  %v2639_v3 = vadd.f32 %v14006_v24, %v2596_v60  ;;  %v614_v24 = vrot.slane %v14027_v44, %v14037_v6  ;;  %v12368_v60 = vld [vmem:[#allocation6 + $0x40] ss:$16 sps:$4 sm:$0xff]  }
 0x1fa   :  { %3049 = vmatpush2.bf16.msra.mxu1 %v11280_v2  ;;  %3007 = vmatprep.subr.bf16.mxu0 %v11145_v21  ;;  %v11232_v2 = vcombine.low %v544_v41, %v548_v42  ;;  %v2724_v21 = vpop.f32.mrf.mxu1 }
 0x1fb   :  { %3050 = vmatprep.subr.bf16.mxu1 %v11273_v4  ;;  %v2686_v4 = vadd.f32 %v2685_v62, %v2643_v1  ;;  %v2725_v22 = vadd.f32 %v2724_v21, %v614_v24  ;;  %v12373_v62 = vld [vmem:[#allocation6 + $0x244] ss:$16 sps:$4 sm:$0xff]   ;;  %v12377_v21 = vld [vmem:[#allocation6 + $0x220] ss:$16 sps:$4 sm:$0xff]  }
 0x1fc   :  { %v14040_v10 = vpop.f32.mrf.mxu1  ;;  %v12376_v1 = vld [vmem:[#allocation6 + $0x24] ss:$16 sps:$4 sm:$0xff]  }
 0x1fd   :  { %3008 = vmatpush2.bf16.msra.mxu0 %v11144_v5  ;;  %v12340_v5 = vld [vmem:[#allocation6 + $0xe4] ss:$16 sps:$4 sm:$0xff]  }
 0x1fe   :  { %3051 = vmatpush2.bf16.msra.mxu1 %v11272_v8  ;;  %3009 = vmatprep.subr.bf16.mxu0 %v11137_v9  ;;  %v2682_v8 = vadd.f32 %v14017_v57, %v2639_v3  ;;  %v11224_v9 = vcombine.low %v536_v54, %v540_v55  ;;  %v12344_v57 = vld [vmem:[#allocation6 + $0xc0] ss:$16 sps:$4 sm:$0xff]  }
 0x1ff   :  { %3052 = vmatprep.subr.bf16.mxu1 %v11265_v32  ;;  %v3084_v32 = vmax.f32 %v2686_v4, 0.0  ;;  %v12365_v55 = vld [vmem:[#allocation6 + $0x260] ss:$16 sps:$4 sm:$0xff]   ;;  %v12385_v4 = vld [vmem:[#allocation6 + $0x204] ss:$16 sps:$4 sm:$0xff]  }
 0x200   :  { %v12380_v3 = vld [vmem:[#allocation6] ss:$16 sps:$4 sm:$0xff]  }
 0x201   :  { %3010 = vmatpush2.bf16.msra.mxu0 %v11136_v38  ;;  %v12341_v38 = vld [vmem:[#allocation6 + $0x2e0] ss:$16 sps:$4 sm:$0xff]  }
 0x202   :  { %3053 = vmatpush2.bf16.msra.mxu1 %v11264_v14  ;;  %3011 = vmatprep.subr.bf16.mxu0 %v11129_v15  ;;  %v3076_v14 = vmax.f32 %v2682_v8, 0.0  ;;  %v2728_v15 = vpop.f32.mrf.mxu1  ;;  %v12391_v8 = vld [vmem:[#allocation6 + $0x3e4] ss:$16 sps:$4 sm:$0xff]  }
 0x203   :  { %3054 = vmatprep.subr.bf16.mxu1 %v11257_v18  ;;  %v12347_v18 = vld [vmem:[#allocation6 + $0x2c0] ss:$16 sps:$4 sm:$0xff]   ;;  %v2729_v36 = vadd.f32 %v2728_v15, %v614_v24 }
 0x204   :  { %v14044_v16 = vpack.c.bf16 %v3084_v32, %v3076_v14  ;;  %v12392_v32 = vld [vmem:[#allocation6 + $0x1c0] ss:$16 sps:$4 sm:$0xff]   ;;  %v12403_v14 = vld [vmem:[#allocation6 + $0x3a4] ss:$16 sps:$4 sm:$0xff]  }
 0x205   :  { %3012 = vmatpush2.bf16.msra.mxu0 %v11128_v20  ;;  %v12352_v20 = vld [vmem:[#allocation6 + $0xa4] ss:$16 sps:$4 sm:$0xff]   ;;  %v12395_v24 = vld [vmem:[#allocation6 + $0x3c0] ss:$16 sps:$4 sm:$0xff]  }
 0x206   :  { %3055 = vmatpush2.bf16.msra.mxu1 %v11256_v27  ;;  %3013 = vmatprep.subr.bf16.mxu0 %v11121_v28  ;;  %v12355_v27 = vld [vmem:[#allocation6 + $0x2a4] ss:$16 sps:$4 sm:$0xff]   ;;  %v12401_v15 = vld [vmem:[#allocation6 + $0x3a0] ss:$16 sps:$4 sm:$0xff]  }
 0x207   :  { %3056 = vmatprep.subr.bf16.mxu1 %v11249_v31  ;;  %v12350_v31 = vld [vmem:[#allocation6 + $0xa0] ss:$16 sps:$4 sm:$0xff]  }
 0x209   :  { %3014 = vmatpush2.bf16.msra.mxu0 %v11120_v34 }
 0x20a   :  { %3057 = vmatpush2.bf16.msra.mxu1 %v11248_v37  ;;  %3015 = vmatprep.subr.bf16.mxu0 %v11113_v40 }
 0x20b   :  { %3058 = vmatprep.subr.bf16.mxu1 %v11241_v43  ;;  %v12356_v43 = vld [vmem:[#allocation6 + $0x80] ss:$16 sps:$4 sm:$0xff]  }
 0x20d   :  { %3016 = vmatpush2.bf16.msra.mxu0 %v11112_v47  ;;  %v12364_v47 = vld [vmem:[#allocation6 + $0x64] ss:$16 sps:$4 sm:$0xff]  }
 0x20e   :  { %3059 = vmatpush2.bf16.msra.mxu1 %v11240_v52  ;;  %3017 = vmatprep.subr.bf16.mxu0 %v11105_v53  ;;  %v12362_v53 = vld [vmem:[#allocation6 + $0x60] ss:$16 sps:$4 sm:$0xff]  }
 0x20f   :  { %3060 = vmatprep.subr.bf16.mxu1 %v11233_v59  ;;  %v12370_v59 = vld [vmem:[#allocation6 + $0x44] ss:$16 sps:$4 sm:$0xff]  }
 0x211   :  { %3018 = vmatpush2.bf16.msra.mxu0 %v11104_v0  ;;  %v12371_v0 = vld [vmem:[#allocation6 + $0x240] ss:$16 sps:$4 sm:$0xff]  }
 0x212   :  { %3061 = vmatpush2.bf16.msra.mxu1 %v11232_v2  ;;  %3019 = vmatprep.subr.bf16.mxu0 %v11097_v58  ;;  %v12374_v2 = vld [vmem:[#allocation6 + $0x20] ss:$16 sps:$4 sm:$0xff]   ;;  %v12379_v58 = vld [vmem:[#allocation6 + $0x224] ss:$16 sps:$4 sm:$0xff]  }
 0x213   :  { %3062 = vmatprep.subr.bf16.mxu1 %v11225_v23  ;;  %v12382_v23 = vld [vmem:[#allocation6 + $0x4] ss:$16 sps:$4 sm:$0xff]  }
 0x215   :  { %3020 = vmatpush2.bf16.msra.mxu0 %v11096_v19  ;;  %v12388_v19 = vld [vmem:[#allocation6 + $0x1e4] ss:$16 sps:$4 sm:$0xff]  }
 0x216   :  { %3063 = vmatpush2.bf16.msra.mxu1 %v11224_v9  ;;  %4657 = vmatprep.subr.bf16.mxu0 %v12340_v5  ;;  %v12383_v5 = vld [vmem:[#allocation6 + $0x200] ss:$16 sps:$4 sm:$0xff]  }
 0x217   :  { %4700 = vmatprep.subr.bf16.mxu1 %v12343_v7  ;;  %v12386_v7 = vld [vmem:[#allocation6 + $0x1e0] ss:$16 sps:$4 sm:$0xff]  }
 0x218   :  { %v14046_v17 = vpop.f32.mrf.mxu0  ;;  %3022 = vmatmul.mubr.bf16.vlgmr.msra.gmra.mxu0 %v13970_v25  ;;  %v12353_v25 = vld [vmem:[#allocation6 + $0x2a0] ss:$16 sps:$4 sm:$0xff]  }
 0x219   :  { %v14049_v26 = vpop.f32.mrf.mxu1  ;;  %3065 = vmatmul.mubr.bf16.vlgmr.msra.gmra.mxu1 %v13984_v39  ;;  %4658 = vmatpush1.bf16.msra.mxu0 %v12338_v11  ;;  %v12361_v39 = vld [vmem:[#allocation6 + $0x284] ss:$16 sps:$4 sm:$0xff]   ;;  %v12389_v9 = vld [vmem:[#allocation6 + $0x3e0] ss:$16 sps:$4 sm:$0xff]  }
 0x21a   :  { %4689 = vmatprep.mubr.bf16.mxu0 %v14044_v16  ;;  %4701 = vmatpush1.bf16.msra.mxu1 %v12341_v38  ;;  %v2767_v28 = vpop.f32.mrf.mxu0  ;;  %v12394_v11 = vld [vmem:[#allocation6 + $0x1c4] ss:$16 sps:$4 sm:$0xff]  }
 0x21b   :  { %v2768_v29 = vadd.f32 %v2767_v28, %v2725_v22  ;;  %v2810_v30 = vpop.f32.mrf.mxu1  ;;  %4659 = vmatprep.subr.bf16.mxu0 %v12346_v12  ;;  %4702 = vmatprep.subr.bf16.mxu1 %v12349_v13  ;;  %v12397_v38 = vld [vmem:[#allocation6 + $0x3c4] ss:$16 sps:$4 sm:$0xff]   ;;  %v12398_v13 = vld [vmem:[#allocation6 + $0x1a0] ss:$16 sps:$4 sm:$0xff]  }
 0x21c   :  { %v14053_v34 = vpop.f32.mrf.mxu0  ;;  %v12400_v12 = vld [vmem:[#allocation6 + $0x1a4] ss:$16 sps:$4 sm:$0xff]   ;;  %v12407_v22 = vld [vmem:[#allocation6 + $0x380] ss:$16 sps:$4 sm:$0xff]  }
 0x21d   :  { %v14055_v37 = vpop.f32.mrf.mxu1  ;;  %4660 = vmatpush1.bf16.msra.mxu0 %v12344_v57  ;;  %v2811_v41 = vadd.f32 %v2810_v30, %v2768_v29  ;;  %v12406_v57 = vld [vmem:[#allocation6 + $0x184] ss:$16 sps:$4 sm:$0xff]  }
 0x21e   :  { %4703 = vmatpush1.bf16.msra.mxu1 %v12347_v18  ;;  %v2771_v40 = vpop.f32.mrf.mxu0  ;;  %4661 = vmatprep.subr.bf16.mxu0 %v12352_v20  ;;  %v12404_v18 = vld [vmem:[#allocation6 + $0x180] ss:$16 sps:$4 sm:$0xff]   ;;  %v12409_v20 = vld [vmem:[#allocation6 + $0x384] ss:$16 sps:$4 sm:$0xff]  }
 0x21f   :  { %v2772_v42 = vadd.f32 %v2771_v40, %v2729_v36  ;;  %4704 = vmatprep.subr.bf16.mxu1 %v12355_v27  ;;  %v2814_v45 = vpop.f32.mrf.mxu1  ;;  %v3078_v51 = vmax.f32 %v2811_v41, 0.0  ;;  %v14061_v27 = vsub.s32 2, %v13994_v50  ;;  %v12412_v28 = vld [vmem:[#allocation6 + $0x164] ss:$16 sps:$4 sm:$0xff]   ;;  %v12416_v40 = vld [vmem:[#allocation6 + $0x140] ss:$16 sps:$4 sm:$0xff]  }
 0x220   :  { %v12415_v29 = vld [vmem:[#allocation6 + $0x364] ss:$16 sps:$4 sm:$0xff]   ;;  %v12419_v41 = vld [vmem:[#allocation6 + $0x340] ss:$16 sps:$4 sm:$0xff]  }
 0x221   :  { %v2815_v48 = vadd.f32 %v2814_v45, %v2772_v42  ;;  %4662 = vmatpush1.bf16.msra.mxu0 %v12350_v31  ;;  %v610_v30 = vrot.slane %v14027_v44, %v14061_v27  ;;  %v12410_v31 = vld [vmem:[#allocation6 + $0x160] ss:$16 sps:$4 sm:$0xff]   ;;  %v12421_v36 = vld [vmem:[#allocation6 + $0x344] ss:$16 sps:$4 sm:$0xff]  }
 0x222   :  { %4705 = vmatpush1.bf16.msra.mxu1 %v12353_v25  ;;  %4663 = vmatprep.subr.bf16.mxu0 %v12358_v35  ;;  %v12413_v25 = vld [vmem:[#allocation6 + $0x360] ss:$16 sps:$4 sm:$0xff]   ;;  %v12418_v35 = vld [vmem:[#allocation6 + $0x144] ss:$16 sps:$4 sm:$0xff]  }
 0x223   :  { %v3086_v52 = vmax.f32 %v2815_v48, 0.0  ;;  %4706 = vmatprep.subr.bf16.mxu1 %v12361_v39  ;;  %v2727_v39 = vadd.f32 %v14040_v10, %v610_v30  ;;  %v12424_v42 = vld [vmem:[#allocation6 + $0x124] ss:$16 sps:$4 sm:$0xff]   ;;  %v12422_v48 = vld [vmem:[#allocation6 + $0x120] ss:$16 sps:$4 sm:$0xff]  }
 0x224   :  { %v12430_v10 = vld [vmem:[#allocation6 + $0x104] ss:$16 sps:$4 sm:$0xff]  }
 0x225   :  { %v14057_v54 = vpack.c.bf16 %v3086_v52, %v3078_v51  ;;  %4664 = vmatpush1.bf16.msra.mxu0 %v12356_v43  ;;  %v2723_v43 = vadd.f32 %v14032_v56, %v610_v30  ;;  %v2770_v45 = vadd.f32 %v14053_v34, %v2727_v39  ;;  %v12433_v52 = vld [vmem:[#allocation6 + $0x304] ss:$16 sps:$4 sm:$0xff]   ;;  %v12428_v56 = vld [vmem:[#allocation6 + $0x100] ss:$16 sps:$4 sm:$0xff]  }
 0x226   :  { %4707 = vmatpush1.bf16.msra.mxu1 %v12359_v46  ;;  %4665 = vmatprep.subr.bf16.mxu0 %v12364_v47  ;;  %v12427_v46 = vld [vmem:[#allocation6 + $0x324] ss:$16 sps:$4 sm:$0xff]   ;;  %v12431_v34 = vld [vmem:[#allocation6 + $0x300] ss:$16 sps:$4 sm:$0xff]  }
 0x227   :  { %4732 = vmatprep.mubr.bf16.mxu1 %v14057_v54  ;;  %4708 = vmatprep.subr.bf16.mxu1 %v12367_v49  ;;  %v2766_v47 = vadd.f32 %v14046_v17, %v2723_v43  ;;  %v12425_v49 = vld [vmem:[#allocation6 + $0x320] ss:$16 sps:$4 sm:$0xff]   ;;  %v2813_v51 = vadd.f32 %v14055_v37, %v2770_v45  ;;  %v12487_v17 = vld [vmem:[#allocation6 + $0x6e4] ss:$16 sps:$4 sm:$0xff]  }
 0x228   :  { %v12485_v37 = vld [vmem:[#allocation6 + $0x6e0] ss:$16 sps:$4 sm:$0xff]   ;;  %v12460_v30 = vld [vmem:[#allocation6 + $0x5e4] ss:$16 sps:$4 sm:$0xff]  }
 0x229   :  { %4666 = vmatpush1.bf16.msra.mxu0 %v12362_v53  ;;  %v2809_v53 = vadd.f32 %v14049_v26, %v2766_v47  ;;  %v12493_v26 = vld [vmem:[#allocation6 + $0x6c4] ss:$16 sps:$4 sm:$0xff]   ;;  %v12533_v39 = vld [vmem:[#allocation6 + $0x7e0] ss:$16 sps:$4 sm:$0xff]  }
 0x22a   :  { %4709 = vmatpush1.bf16.msra.mxu1 %v12365_v55  ;;  %4667 = vmatprep.subr.bf16.mxu0 %v12370_v59  ;;  %v12436_v55 = vld [vmem:[#allocation6 + $0x4e4] ss:$16 sps:$4 sm:$0xff]   ;;  %v3085_v59 = vmax.f32 %v2813_v51, 0.0  ;;  %v12539_v43 = vld [vmem:[#allocation6 + $0x7c0] ss:$16 sps:$4 sm:$0xff]  }
 0x22b   :  { %4710 = vmatprep.subr.bf16.mxu1 %v12373_v62  ;;  %v12434_v62 = vld [vmem:[#allocation6 + $0x4e0] ss:$16 sps:$4 sm:$0xff]   ;;  %v12547_v45 = vld [vmem:[#allocation6 + $0x7a4] ss:$16 sps:$4 sm:$0xff]  }
 0x22c   :  { %v12469_v47 = vld [vmem:[#allocation6 + $0x584] ss:$16 sps:$4 sm:$0xff]  }
 0x22d   :  { %4668 = vmatpush1.bf16.msra.mxu0 %v12368_v60  ;;  %v3077_v60 = vmax.f32 %v2809_v53, 0.0  ;;  %v12472_v51 = vld [vmem:[#allocation6 + $0x564] ss:$16 sps:$4 sm:$0xff]  }
 0x22e   :  { %4711 = vmatpush1.bf16.msra.mxu1 %v12371_v0  ;;  %4669 = vmatprep.subr.bf16.mxu0 %v12376_v1  ;;  %v12439_v0 = vld [vmem:[#allocation6 + $0x4c4] ss:$16 sps:$4 sm:$0xff]  }
 0x22f   :  { %4712 = vmatprep.subr.bf16.mxu1 %v12379_v58  ;;  %v14071_v1 = vpack.c.bf16 %v3085_v59, %v3077_v60  ;;  %v12442_v58 = vld [vmem:[#allocation6 + $0x4a4] ss:$16 sps:$4 sm:$0xff]  }
 0x230   :  { %v12559_v53 = vld [vmem:[#allocation6 + $0x764] ss:$16 sps:$4 sm:$0xff]  }
 0x231   :  { %4670 = vmatpush1.bf16.msra.mxu0 %v12374_v2  ;;  %v12437_v2 = vld [vmem:[#allocation6 + $0x4c0] ss:$16 sps:$4 sm:$0xff]   ;;  %v12565_v59 = vld [vmem:[#allocation6 + $0x744] ss:$16 sps:$4 sm:$0xff]  }
 0x232   :  { %4713 = vmatpush1.bf16.msra.mxu1 %v12377_v21  ;;  %4671 = vmatprep.subr.bf16.mxu0 %v12382_v23  ;;  %v12491_v21 = vld [vmem:[#allocation6 + $0x6c0] ss:$16 sps:$4 sm:$0xff]   ;;  %v12499_v23 = vld [vmem:[#allocation6 + $0x6a4] ss:$16 sps:$4 sm:$0xff]  }
 0x233   :  { %4714 = vmatprep.subr.bf16.mxu1 %v12385_v4  ;;  %v12445_v4 = vld [vmem:[#allocation6 + $0x484] ss:$16 sps:$4 sm:$0xff]  }
 0x235   :  { %4672 = vmatpush1.bf16.msra.mxu0 %v12380_v3  ;;  %v12440_v3 = vld [vmem:[#allocation6 + $0x4a0] ss:$16 sps:$4 sm:$0xff]  }
 0x236   :  { %4715 = vmatpush1.bf16.msra.mxu1 %v12383_v5  ;;  %4673 = vmatprep.subr.bf16.mxu0 %v12388_v19  ;;  %v12497_v5 = vld [vmem:[#allocation6 + $0x6a0] ss:$16 sps:$4 sm:$0xff]   ;;  %v12505_v19 = vld [vmem:[#allocation6 + $0x684] ss:$16 sps:$4 sm:$0xff]  }
 0x237   :  { %4716 = vmatprep.subr.bf16.mxu1 %v12391_v8  ;;  %v12448_v8 = vld [vmem:[#allocation6 + $0x464] ss:$16 sps:$4 sm:$0xff]  }
 0x239   :  { %4674 = vmatpush2.bf16.msra.mxu0 %v12386_v7  ;;  %v12443_v7 = vld [vmem:[#allocation6 + $0x480] ss:$16 sps:$4 sm:$0xff]  }
 0x23a   :  { %4717 = vmatpush2.bf16.msra.mxu1 %v12389_v9  ;;  %4675 = vmatprep.subr.bf16.mxu0 %v12394_v11  ;;  %v12503_v9 = vld [vmem:[#allocation6 + $0x680] ss:$16 sps:$4 sm:$0xff]   ;;  %v12511_v11 = vld [vmem:[#allocation6 + $0x664] ss:$16 sps:$4 sm:$0xff]  }
 0x23b   :  { %4718 = vmatprep.subr.bf16.mxu1 %v12397_v38  ;;  %v12451_v38 = vld [vmem:[#allocation6 + $0x444] ss:$16 sps:$4 sm:$0xff]  }
 0x23d   :  { %4676 = vmatpush2.bf16.msra.mxu0 %v12392_v32  ;;  %v12446_v32 = vld [vmem:[#allocation6 + $0x460] ss:$16 sps:$4 sm:$0xff]  }
 0x23e   :  { %4719 = vmatpush2.bf16.msra.mxu1 %v12395_v24  ;;  %4677 = vmatprep.subr.bf16.mxu0 %v12400_v12  ;;  %v12509_v24 = vld [vmem:[#allocation6 + $0x660] ss:$16 sps:$4 sm:$0xff]   ;;  %v12517_v12 = vld [vmem:[#allocation6 + $0x644] ss:$16 sps:$4 sm:$0xff]  }
 0x23f   :  { %4720 = vmatprep.subr.bf16.mxu1 %v12403_v14  ;;  %v12454_v14 = vld [vmem:[#allocation6 + $0x424] ss:$16 sps:$4 sm:$0xff]  }
 0x241   :  { %4678 = vmatpush2.bf16.msra.mxu0 %v12398_v13  ;;  %v12449_v13 = vld [vmem:[#allocation6 + $0x440] ss:$16 sps:$4 sm:$0xff]  }
 0x242   :  { %4721 = vmatpush2.bf16.msra.mxu1 %v12401_v15  ;;  %4679 = vmatprep.subr.bf16.mxu0 %v12406_v57  ;;  %v12515_v15 = vld [vmem:[#allocation6 + $0x640] ss:$16 sps:$4 sm:$0xff]   ;;  %v12523_v57 = vld [vmem:[#allocation6 + $0x624] ss:$16 sps:$4 sm:$0xff]  }
 0x243   :  { %4722 = vmatprep.subr.bf16.mxu1 %v12409_v20  ;;  %v12457_v20 = vld [vmem:[#allocation6 + $0x404] ss:$16 sps:$4 sm:$0xff]  }
 0x245   :  { %4680 = vmatpush2.bf16.msra.mxu0 %v12404_v18  ;;  %v12452_v18 = vld [vmem:[#allocation6 + $0x420] ss:$16 sps:$4 sm:$0xff]  }
 0x246   :  { %4723 = vmatpush2.bf16.msra.mxu1 %v12407_v22  ;;  %4681 = vmatprep.subr.bf16.mxu0 %v12412_v28  ;;  %v12521_v22 = vld [vmem:[#allocation6 + $0x620] ss:$16 sps:$4 sm:$0xff]   ;;  %v12529_v28 = vld [vmem:[#allocation6 + $0x604] ss:$16 sps:$4 sm:$0xff]  }
 0x247   :  { %4724 = vmatprep.subr.bf16.mxu1 %v12415_v29  ;;  %v12455_v29 = vld [vmem:[#allocation6 + $0x400] ss:$16 sps:$4 sm:$0xff]  }
 0x249   :  { %4682 = vmatpush2.bf16.msra.mxu0 %v12410_v31  ;;  %v12527_v31 = vld [vmem:[#allocation6 + $0x600] ss:$16 sps:$4 sm:$0xff]  }
 0x24a   :  { %4725 = vmatpush2.bf16.msra.mxu1 %v12413_v25  ;;  %4683 = vmatprep.subr.bf16.mxu0 %v12418_v35  ;;  %v12535_v25 = vld [vmem:[#allocation6 + $0x7e4] ss:$16 sps:$4 sm:$0xff]   ;;  %v12458_v35 = vld [vmem:[#allocation6 + $0x5e0] ss:$16 sps:$4 sm:$0xff]  }
 0x24b   :  { %4726 = vmatprep.subr.bf16.mxu1 %v12421_v36  ;;  %v12463_v36 = vld [vmem:[#allocation6 + $0x5c4] ss:$16 sps:$4 sm:$0xff]  }
 0x24d   :  { %4684 = vmatpush2.bf16.msra.mxu0 %v12416_v40  ;;  %v12541_v40 = vld [vmem:[#allocation6 + $0x7c4] ss:$16 sps:$4 sm:$0xff]  }
 0x24e   :  { %4727 = vmatpush2.bf16.msra.mxu1 %v12419_v41  ;;  %4685 = vmatprep.subr.bf16.mxu0 %v12424_v42  ;;  %v12461_v41 = vld [vmem:[#allocation6 + $0x5c0] ss:$16 sps:$4 sm:$0xff]   ;;  %v12466_v42 = vld [vmem:[#allocation6 + $0x5a4] ss:$16 sps:$4 sm:$0xff]  }
 0x24f   :  { %4728 = vmatprep.subr.bf16.mxu1 %v12427_v46  ;;  %v12464_v46 = vld [vmem:[#allocation6 + $0x5a0] ss:$16 sps:$4 sm:$0xff]  }
 0x251   :  { %4686 = vmatpush2.bf16.msra.mxu0 %v12422_v48  ;;  %v12545_v48 = vld [vmem:[#allocation6 + $0x7a0] ss:$16 sps:$4 sm:$0xff]  }
 0x252   :  { %4729 = vmatpush2.bf16.msra.mxu1 %v12425_v49  ;;  %4687 = vmatprep.subr.bf16.mxu0 %v12430_v10  ;;  %v12553_v49 = vld [vmem:[#allocation6 + $0x784] ss:$16 sps:$4 sm:$0xff]   ;;  %v12467_v10 = vld [vmem:[#allocation6 + $0x580] ss:$16 sps:$4 sm:$0xff]  }
 0x253   :  { %4730 = vmatprep.subr.bf16.mxu1 %v12433_v52  ;;  %v12551_v52 = vld [vmem:[#allocation6 + $0x780] ss:$16 sps:$4 sm:$0xff]  }
 0x255   :  { %4688 = vmatpush2.bf16.msra.mxu0 %v12428_v56  ;;  %v12470_v56 = vld [vmem:[#allocation6 + $0x560] ss:$16 sps:$4 sm:$0xff]  }
 0x256   :  { %4731 = vmatpush2.bf16.msra.mxu1 %v12431_v34  ;;  %4743 = vmatprep.subr.bf16.mxu0 %v12436_v55  ;;  %v12475_v34 = vld [vmem:[#allocation6 + $0x544] ss:$16 sps:$4 sm:$0xff]   ;;  %v12557_v55 = vld [vmem:[#allocation6 + $0x760] ss:$16 sps:$4 sm:$0xff]  }
 0x257   :  { %4786 = vmatprep.subr.bf16.mxu1 %v12487_v17  ;;  %v12473_v17 = vld [vmem:[#allocation6 + $0x540] ss:$16 sps:$4 sm:$0xff]  }
 0x258   :  { %4690 = vmatmul.mubr.bf16.vlgmr.msra.gmra.mxu0 %v14022_v63  ;;  %v2851_v60 = vpop.f32.mrf.mxu0 }
 0x259   :  { %4733 = vmatmul.mubr.bf16.vlgmr.msra.gmra.mxu1 %v14071_v1  ;;  %4744 = vmatpush1.bf16.msra.mxu0 %v12434_v62  ;;  %v12478_v62 = vld [vmem:[#allocation6 + $0x524] ss:$16 sps:$4 sm:$0xff]  }
 0x25a   :  { %4745 = vmatprep.subr.bf16.mxu0 %v12439_v0  ;;  %4787 = vmatpush1.bf16.msra.mxu1 %v12485_v37  ;;  %v12563_v0 = vld [vmem:[#allocation6 + $0x740] ss:$16 sps:$4 sm:$0xff]   ;;  %v12571_v37 = vld [vmem:[#allocation6 + $0x724] ss:$16 sps:$4 sm:$0xff]  }
 0x25b   :  { %4788 = vmatprep.subr.bf16.mxu1 %v12493_v26  ;;  %v12476_v26 = vld [vmem:[#allocation6 + $0x520] ss:$16 sps:$4 sm:$0xff]  }
 0x25d   :  { %4746 = vmatpush1.bf16.msra.mxu0 %v12437_v2  ;;  %v2853_v2 = vpop.f32.mrf.mxu0 }
 0x25e   :  { %4747 = vmatprep.subr.bf16.mxu0 %v12442_v58  ;;  %4789 = vmatpush1.bf16.msra.mxu1 %v12491_v21  ;;  %v12481_v58 = vld [vmem:[#allocation6 + $0x504] ss:$16 sps:$4 sm:$0xff]   ;;  %v12569_v21 = vld [vmem:[#allocation6 + $0x720] ss:$16 sps:$4 sm:$0xff]  }
 0x25f   :  { %4790 = vmatprep.subr.bf16.mxu1 %v12499_v23  ;;  %v14076_v23 = vsub.s32 5, %v13994_v50 }
 0x261   :  { %4748 = vmatpush1.bf16.msra.mxu0 %v12440_v3  ;;  %v12577_v3 = vld [vmem:[#allocation6 + $0x704] ss:$16 sps:$4 sm:$0xff]  }
 0x262   :  { %4749 = vmatprep.subr.bf16.mxu0 %v12445_v4  ;;  %4791 = vmatpush1.bf16.msra.mxu1 %v12497_v5  ;;  %v14079_v4 = vsub.s32 4, %v13994_v50  ;;  %v2894_v5 = vpop.f32.mrf.mxu1 }
 0x263   :  { %4792 = vmatprep.subr.bf16.mxu1 %v12505_v19  ;;  %v12479_v19 = vld [vmem:[#allocation6 + $0x500] ss:$16 sps:$4 sm:$0xff]  }
 0x265   :  { %4750 = vmatpush1.bf16.msra.mxu0 %v12443_v7  ;;  %v2855_v7 = vpop.f32.mrf.mxu0 }
 0x266   :  { %4751 = vmatprep.subr.bf16.mxu0 %v12448_v8  ;;  %4793 = vmatpush1.bf16.msra.mxu1 %v12503_v9  ;;  %v12484_v8 = vld [vmem:[#allocation6 + $0xec] ss:$16 sps:$4 sm:$0xff]   ;;  %v12575_v9 = vld [vmem:[#allocation6 + $0x700] ss:$16 sps:$4 sm:$0xff]  }
 0x267   :  { %4794 = vmatprep.subr.bf16.mxu1 %v12511_v11  ;;  %v622_v11 = vrot.slane %v14027_v44, %v14076_v23 }
 0x269   :  { %4752 = vmatpush1.bf16.msra.mxu0 %v12446_v32  ;;  %v12583_v32 = vld [vmem:[#allocation6 + $0x2ec] ss:$16 sps:$4 sm:$0xff]  }
 0x26a   :  { %4753 = vmatprep.subr.bf16.mxu0 %v12451_v38  ;;  %4795 = vmatpush1.bf16.msra.mxu1 %v12509_v24  ;;  %v618_v38 = vrot.slane %v14027_v44, %v14079_v4  ;;  %v2896_v24 = vpop.f32.mrf.mxu1 }
 0x26b   :  { %4796 = vmatprep.subr.bf16.mxu1 %v12517_v12  ;;  %v2857_v12 = vpop.f32.mrf.mxu0 }
 0x26d   :  { %4754 = vmatpush1.bf16.msra.mxu0 %v12449_v13  ;;  %v2854_v13 = vadd.f32 %v2853_v2, %v622_v11  ;;  %v12530_v2 = vld [vmem:[#allocation6 + $0x1e8] ss:$16 sps:$4 sm:$0xff]  }
 0x26e   :  { %4755 = vmatprep.subr.bf16.mxu0 %v12454_v14  ;;  %4797 = vmatpush1.bf16.msra.mxu1 %v12515_v15  ;;  %v2856_v14 = vadd.f32 %v2855_v7, %v618_v38  ;;  %v2852_v15 = vadd.f32 %v2851_v60, %v618_v38  ;;  %v12512_v60 = vld [vmem:[#allocation6 + $0x48] ss:$16 sps:$4 sm:$0xff]   ;;  %v12550_v7 = vld [vmem:[#allocation6 + $0x18c] ss:$16 sps:$4 sm:$0xff]   ;;  %v625_v38 = vsub.s32 6, %v13994_v50 }
 0x26f   :  { %4798 = vmatprep.subr.bf16.mxu1 %v12523_v57  ;;  %v2898_v57 = vpop.f32.mrf.mxu1 }
 0x271   :  { %4756 = vmatpush1.bf16.msra.mxu0 %v12452_v18 }
 0x272   :  { %4757 = vmatprep.subr.bf16.mxu0 %v12457_v20  ;;  %4799 = vmatpush1.bf16.msra.mxu1 %v12521_v22  ;;  %v2858_v20 = vadd.f32 %v2857_v12, %v622_v11  ;;  %v12556_v11 = vld [vmem:[#allocation6 + $0x16c] ss:$16 sps:$4 sm:$0xff]   ;;  %v12554_v12 = vld [vmem:[#allocation6 + $0x168] ss:$16 sps:$4 sm:$0xff]  }
 0x273   :  { %4800 = vmatprep.subr.bf16.mxu1 %v12529_v28  ;;  %v2897_v28 = vadd.f32 %v2896_v24, %v2854_v13  ;;  %v12562_v13 = vld [vmem:[#allocation6 + $0x14c] ss:$16 sps:$4 sm:$0xff]  }
 0x275   :  { %4758 = vmatpush1.bf16.msra.mxu0 %v12455_v29  ;;  %v2899_v29 = vadd.f32 %v2898_v57, %v2856_v14  ;;  %v13539_v14 = vld [vmem:[#allocation4] sm:$0xff] }
 0x276   :  { %4759 = vmatprep.subr.bf16.mxu0 %v12460_v30  ;;  %4801 = vmatpush1.bf16.msra.mxu1 %v12527_v31  ;;  %v2895_v30 = vadd.f32 %v2894_v5, %v2852_v15  ;;  %v2900_v31 = vpop.f32.mrf.mxu1  ;;  %v626_v57 = vrot.slane %v13539_v14, %v625_v38 }
 0x277   :  { %4802 = vmatprep.subr.bf16.mxu1 %v12535_v25 }
 0x279   :  { %4760 = vmatpush2.bf16.msra.mxu0 %v12458_v35  ;;  %v2901_v35 = vadd.f32 %v2900_v31, %v2858_v20  ;;  %v12560_v20 = vld [vmem:[#allocation6 + $0x148] ss:$16 sps:$4 sm:$0xff]  }
 0x27a   :  { %4761 = vmatprep.subr.bf16.mxu0 %v12463_v36  ;;  %4803 = vmatpush2.bf16.msra.mxu1 %v12533_v39 }
 0x27b   :  { %4804 = vmatprep.subr.bf16.mxu1 %v12541_v40 }
 0x27d   :  { %4762 = vmatpush2.bf16.msra.mxu0 %v12461_v41 }
 0x27e   :  { %4763 = vmatprep.subr.bf16.mxu0 %v12466_v42  ;;  %4805 = vmatpush2.bf16.msra.mxu1 %v12539_v43 }
 0x27f   :  { %4806 = vmatprep.subr.bf16.mxu1 %v12547_v45 }
 0x281   :  { %4764 = vmatpush2.bf16.msra.mxu0 %v12464_v46 }
 0x282   :  { %4765 = vmatprep.subr.bf16.mxu0 %v12469_v47  ;;  %4807 = vmatpush2.bf16.msra.mxu1 %v12545_v48  ;;  %v12482_v48 = vld [vmem:[#allocation6 + $0xe8] ss:$16 sps:$4 sm:$0xff]  }
 0x283   :  { %4808 = vmatprep.subr.bf16.mxu1 %v12553_v49 }
 0x285   :  { %4766 = vmatpush2.bf16.msra.mxu0 %v12467_v10  ;;  %v12490_v10 = vld [vmem:[#allocation6 + $0xcc] ss:$16 sps:$4 sm:$0xff]  }
 0x286   :  { %4767 = vmatprep.subr.bf16.mxu0 %v12472_v51  ;;  %4809 = vmatpush2.bf16.msra.mxu1 %v12551_v52  ;;  %v12488_v51 = vld [vmem:[#allocation6 + $0xc8] ss:$16 sps:$4 sm:$0xff]   ;;  %v12496_v52 = vld [vmem:[#allocation6 + $0xac] ss:$16 sps:$4 sm:$0xff]  }
 0x287   :  { %4810 = vmatprep.subr.bf16.mxu1 %v12559_v53  ;;  %v12494_v53 = vld [vmem:[#allocation6 + $0xa8] ss:$16 sps:$4 sm:$0xff]  }
 0x289   :  { %4768 = vmatpush2.bf16.msra.mxu0 %v12470_v56  ;;  %v12502_v56 = vld [vmem:[#allocation6 + $0x8c] ss:$16 sps:$4 sm:$0xff]  }
 0x28a   :  { %4769 = vmatprep.subr.bf16.mxu0 %v12475_v34  ;;  %4811 = vmatpush2.bf16.msra.mxu1 %v12557_v55  ;;  %v12500_v34 = vld [vmem:[#allocation6 + $0x88] ss:$16 sps:$4 sm:$0xff]   ;;  %v12508_v55 = vld [vmem:[#allocation6 + $0x6c] ss:$16 sps:$4 sm:$0xff]  }
 0x28b   :  { %4812 = vmatprep.subr.bf16.mxu1 %v12565_v59  ;;  %v12506_v59 = vld [vmem:[#allocation6 + $0x68] ss:$16 sps:$4 sm:$0xff]  }
 0x28d   :  { %4770 = vmatpush2.bf16.msra.mxu0 %v12473_v17  ;;  %v12514_v17 = vld [vmem:[#allocation6 + $0x4c] ss:$16 sps:$4 sm:$0xff]  }
 0x28e   :  { %4771 = vmatprep.subr.bf16.mxu0 %v12478_v62  ;;  %4813 = vmatpush2.bf16.msra.mxu1 %v12563_v0  ;;  %v12520_v62 = vld [vmem:[#allocation6 + $0x2c] ss:$16 sps:$4 sm:$0xff]  }
 0x28f   :  { %4814 = vmatprep.subr.bf16.mxu1 %v12571_v37  ;;  %v12526_v0 = vld [vmem:[#allocation6 + $0xc] ss:$16 sps:$4 sm:$0xff]   ;;  %v12524_v37 = vld [vmem:[#allocation6 + $0x8] ss:$16 sps:$4 sm:$0xff]  }
 0x291   :  { %4772 = vmatpush2.bf16.msra.mxu0 %v12476_v26  ;;  %v12532_v26 = vld [vmem:[#allocation6 + $0x1ec] ss:$16 sps:$4 sm:$0xff]  }
 0x292   :  { %4773 = vmatprep.subr.bf16.mxu0 %v12481_v58  ;;  %4815 = vmatpush2.bf16.msra.mxu1 %v12569_v21  ;;  %v12538_v58 = vld [vmem:[#allocation6 + $0x1cc] ss:$16 sps:$4 sm:$0xff]   ;;  %v12536_v21 = vld [vmem:[#allocation6 + $0x1c8] ss:$16 sps:$4 sm:$0xff]  }
 0x293   :  { %4816 = vmatprep.subr.bf16.mxu1 %v12577_v3  ;;  %v12544_v3 = vld [vmem:[#allocation6 + $0x1ac] ss:$16 sps:$4 sm:$0xff]  }
 0x295   :  { %4774 = vmatpush2.bf16.msra.mxu0 %v12479_v19  ;;  %v12542_v19 = vld [vmem:[#allocation6 + $0x1a8] ss:$16 sps:$4 sm:$0xff]  }
 0x296   :  { %4829 = vmatprep.subr.bf16.mxu0 %v12484_v8  ;;  %4817 = vmatpush2.bf16.msra.mxu1 %v12575_v9  ;;  %v12548_v9 = vld [vmem:[#allocation6 + $0x188] ss:$16 sps:$4 sm:$0xff]  }
 0x297   :  { %4872 = vmatprep.subr.bf16.mxu1 %v12583_v32  ;;  %v629_v32 = vsub.s32 7, %v13994_v50  ;;  %v13153_v50 = vld [vmem:[#allocation18 + $0x18c] ss:$24 sps:$4 sm:$0xff]  }
 0x298   :  { %v2937_v18 = vpop.f32.mrf.mxu0 }
 0x299   :  { %v2938_v39 = vadd.f32 %v2937_v18, %v2895_v30  ;;  %v2980_v5 = vpop.f32.mrf.mxu1  ;;  %v630_v15 = vrot.slane %v13539_v14, %v629_v32  ;;  %v12610_v14 = vld [vmem:[#allocation6 + $0x44c] ss:$16 sps:$4 sm:$0xff]  }
 0x29a   :  { %v2939_v22 = vpop.f32.mrf.mxu0 }
 0x29b   :  { %v2940_v44 = vadd.f32 %v2939_v22, %v2897_v28  ;;  %v3079_v46 = vmax.f32 %v2938_v39, 0.0  ;;  %v2982_v8 = vpop.f32.mrf.mxu1  ;;  %v12568_v28 = vld [vmem:[#allocation6 + $0x12c] ss:$16 sps:$4 sm:$0xff]   ;;  %v12566_v39 = vld [vmem:[#allocation6 + $0x128] ss:$16 sps:$4 sm:$0xff]  }
 0x29c   :  { %v2941_v25 = vpop.f32.mrf.mxu0 }
 0x29d   :  { %v2942_v36 = vadd.f32 %v2941_v25, %v2899_v29  ;;  %v3080_v43 = vmax.f32 %v2940_v44, 0.0  ;;  %v2984_v24 = vpop.f32.mrf.mxu1  ;;  %v2983_v29 = vadd.f32 %v2982_v8, %v630_v15  ;;  %v2981_v25 = vadd.f32 %v2980_v5, %v626_v57  ;;  %v12592_v5 = vld [vmem:[#allocation6 + $0x4ac] ss:$16 sps:$4 sm:$0xff]  }
 0x29e   :  { %v2943_v40 = vpop.f32.mrf.mxu0  ;;  %v12598_v8 = vld [vmem:[#allocation6 + $0x48c] ss:$16 sps:$4 sm:$0xff]  }
 0x29f   :  { %v2944_v41 = vadd.f32 %v2943_v40, %v2901_v35  ;;  %v3087_v42 = vmax.f32 %v2942_v36, 0.0  ;;  %v2986_v18 = vpop.f32.mrf.mxu1  ;;  %v2985_v35 = vadd.f32 %v2984_v24, %v626_v57  ;;  %v12604_v24 = vld [vmem:[#allocation6 + $0x46c] ss:$16 sps:$4 sm:$0xff]   ;;  %v12608_v57 = vld [vmem:[#allocation6 + $0x448] ss:$16 sps:$4 sm:$0xff]  }
 0x2a1   :  { %v3088_v45 = vmax.f32 %v2944_v41, 0.0  ;;  %v14087_v49 = vpack.c.bf16 %v3087_v42, %v3079_v46  ;;  %v12574_v41 = vld [vmem:[#allocation6 + $0x10c] ss:$16 sps:$4 sm:$0xff]   ;;  %v2987_v42 = vadd.f32 %v2986_v18, %v630_v15  ;;  %v12605_v15 = vld [vmem:[#allocation6 + $0x268] ss:$16 sps:$4 sm:$0xff]  }
 0x2a2   :  { %v12613_v18 = vld [vmem:[#allocation6 + $0x24c] ss:$16 sps:$4 sm:$0xff]  }
 0x2a3   :  { %v14085_v47 = vpack.c.bf16 %v3088_v45, %v3080_v43 }
 0x2a5   :  { %4775 = vmatprep.mubr.bf16.mxu0 %v14085_v47 }
 0x2a6   :  { %4776 = vmatmul.mubr.bf16.vlgmr.msra.gmra.mxu0 %v14087_v49 }
 0x2a7   :  { %4830 = vmatpush1.bf16.msra.mxu0 %v12482_v48  ;;  %4861 = vmatprep.mubr.bf16.mxu0 %v14044_v16  ;;  %v12518_v16 = vld [vmem:[#allocation6 + $0x28] ss:$16 sps:$4 sm:$0xff]  }
 0x2a8   :  { %4831 = vmatprep.subr.bf16.mxu0 %v12490_v10 }
 0x2ab   :  { %4832 = vmatpush1.bf16.msra.mxu0 %v12488_v51 }
 0x2ac   :  { %4833 = vmatprep.subr.bf16.mxu0 %v12496_v52 }
 0x2af   :  { %4834 = vmatpush1.bf16.msra.mxu0 %v12494_v53  ;;  %v12572_v53 = vld [vmem:[#allocation6 + $0x108] ss:$16 sps:$4 sm:$0xff]  }
 0x2b0   :  { %4835 = vmatprep.subr.bf16.mxu0 %v12502_v56 }
 0x2b3   :  { %4836 = vmatpush1.bf16.msra.mxu0 %v12500_v34  ;;  %v12580_v34 = vld [vmem:[#allocation6 + $0x4ec] ss:$16 sps:$4 sm:$0xff]  }
 0x2b4   :  { %4837 = vmatprep.subr.bf16.mxu0 %v12508_v55 }
 0x2b7   :  { %4838 = vmatpush1.bf16.msra.mxu0 %v12506_v59 }
 0x2b8   :  { %4839 = vmatprep.subr.bf16.mxu0 %v12514_v17 }
 0x2bb   :  { %4840 = vmatpush1.bf16.msra.mxu0 %v12512_v60 }
 0x2bc   :  { %4841 = vmatprep.subr.bf16.mxu0 %v12520_v62 }
 0x2bf   :  { %4842 = vmatpush1.bf16.msra.mxu0 %v12518_v16  ;;  %v12578_v16 = vld [vmem:[#allocation6 + $0x4e8] ss:$16 sps:$4 sm:$0xff]  }
 0x2c0   :  { %4843 = vmatprep.subr.bf16.mxu0 %v12526_v0  ;;  %v12586_v0 = vld [vmem:[#allocation6 + $0x4cc] ss:$16 sps:$4 sm:$0xff]  }
 0x2c3   :  { %4844 = vmatpush1.bf16.msra.mxu0 %v12524_v37 }
 0x2c4   :  { %4845 = vmatprep.subr.bf16.mxu0 %v12532_v26 }
 0x2c7   :  { %4846 = vmatpush2.bf16.msra.mxu0 %v12530_v2  ;;  %v12581_v2 = vld [vmem:[#allocation6 + $0x2e8] ss:$16 sps:$4 sm:$0xff]  }
 0x2c8   :  { %4847 = vmatprep.subr.bf16.mxu0 %v12538_v58 }
 0x2cb   :  { %4848 = vmatpush2.bf16.msra.mxu0 %v12536_v21  ;;  %v12584_v21 = vld [vmem:[#allocation6 + $0x4c8] ss:$16 sps:$4 sm:$0xff]  }
 0x2cc   :  { %4849 = vmatprep.subr.bf16.mxu0 %v12544_v3  ;;  %v12589_v3 = vld [vmem:[#allocation6 + $0x2cc] ss:$16 sps:$4 sm:$0xff]  }
 0x2cf   :  { %4850 = vmatpush2.bf16.msra.mxu0 %v12542_v19  ;;  %v12587_v19 = vld [vmem:[#allocation6 + $0x2c8] ss:$16 sps:$4 sm:$0xff]  }
 0x2d0   :  { %4851 = vmatprep.subr.bf16.mxu0 %v12550_v7  ;;  %v12595_v7 = vld [vmem:[#allocation6 + $0x2ac] ss:$16 sps:$4 sm:$0xff]  }
 0x2d3   :  { %4852 = vmatpush2.bf16.msra.mxu0 %v12548_v9  ;;  %v12596_v9 = vld [vmem:[#allocation6 + $0x488] ss:$16 sps:$4 sm:$0xff]  }
 0x2d4   :  { %4853 = vmatprep.subr.bf16.mxu0 %v12556_v11  ;;  %v12601_v11 = vld [vmem:[#allocation6 + $0x28c] ss:$16 sps:$4 sm:$0xff]  }
 0x2d7   :  { %4854 = vmatpush2.bf16.msra.mxu0 %v12554_v12  ;;  %v12599_v12 = vld [vmem:[#allocation6 + $0x288] ss:$16 sps:$4 sm:$0xff]  }
 0x2d8   :  { %v3023_v22 = vpop.f32.mrf.mxu0  ;;  %4855 = vmatprep.subr.bf16.mxu0 %v12562_v13  ;;  %v12607_v13 = vld [vmem:[#allocation6 + $0x26c] ss:$16 sps:$4 sm:$0xff]  }
 0x2d9   :  { %v3066_v30 = vpop.f32.mrf.mxu1  ;;  %v3024_v43 = vadd.f32 %v3023_v22, %v2981_v25  ;;  %v12611_v22 = vld [vmem:[#allocation6 + $0x248] ss:$16 sps:$4 sm:$0xff]  }
 0x2da   :  { %v3025_v31 = vpop.f32.mrf.mxu0  ;;  %v12620_v25 = vld [vmem:[#allocation6 + $0x408] ss:$16 sps:$4 sm:$0xff]  }
 0x2db   :  { %v3026_v44 = vadd.f32 %v3025_v31, %v2983_v29  ;;  %v3068_v36 = vpop.f32.mrf.mxu1  ;;  %4856 = vmatpush2.bf16.msra.mxu0 %v12560_v20  ;;  %v3067_v55 = vadd.f32 %v3066_v30, %v3024_v43  ;;  %v12616_v20 = vld [vmem:[#allocation6 + $0x42c] ss:$16 sps:$4 sm:$0xff]   ;;  %v12617_v31 = vld [vmem:[#allocation6 + $0x228] ss:$16 sps:$4 sm:$0xff]  }
 0x2dc   :  { %v3027_v40 = vpop.f32.mrf.mxu0  ;;  %4857 = vmatprep.subr.bf16.mxu0 %v12568_v28  ;;  %v12614_v28 = vld [vmem:[#allocation6 + $0x428] ss:$16 sps:$4 sm:$0xff]   ;;  %v12619_v29 = vld [vmem:[#allocation6 + $0x22c] ss:$16 sps:$4 sm:$0xff]  }
 0x2dd   :  { %v3028_v45 = vadd.f32 %v3027_v40, %v2985_v35  ;;  %v3070_v46 = vpop.f32.mrf.mxu1  ;;  %v3069_v10 = vadd.f32 %v3068_v36, %v3026_v44  ;;  %v3081_v37 = vmax.f32 %v3067_v55, 0.0  ;;  %v12622_v30 = vld [vmem:[#allocation6 + $0x40c] ss:$16 sps:$4 sm:$0xff]   ;;  %v12623_v36 = vld [vmem:[#allocation6 + $0x208] ss:$16 sps:$4 sm:$0xff]  }
 0x2de   :  { %v3029_v48 = vpop.f32.mrf.mxu0  ;;  %v12625_v35 = vld [vmem:[#allocation6 + $0x20c] ss:$16 sps:$4 sm:$0xff]   ;;  %v12632_v43 = vld [vmem:[#allocation6 + $0x5c8] ss:$16 sps:$4 sm:$0xff]  }
 0x2df   :  { %v3071_v51 = vadd.f32 %v3070_v46, %v3028_v45  ;;  %v3030_v52 = vadd.f32 %v3029_v48, %v2987_v42  ;;  %4858 = vmatpush2.bf16.msra.mxu0 %v12566_v39  ;;  %v3072_v56 = vpop.f32.mrf.mxu1  ;;  %v3082_v17 = vmax.f32 %v3069_v10, 0.0  ;;  %v12628_v44 = vld [vmem:[#allocation6 + $0x5ec] ss:$16 sps:$4 sm:$0xff]   ;;  %v12626_v39 = vld [vmem:[#allocation6 + $0x5e8] ss:$16 sps:$4 sm:$0xff]  }
 0x2e0   :  { %4859 = vmatprep.subr.bf16.mxu0 %v12574_v41  ;;  %v12631_v40 = vld [vmem:[#allocation6 + $0x3ec] ss:$16 sps:$4 sm:$0xff]   ;;  %v12629_v42 = vld [vmem:[#allocation6 + $0x3e8] ss:$16 sps:$4 sm:$0xff]  }
 0x2e1   :  { %v3073_v59 = vadd.f32 %v3072_v56, %v3030_v52  ;;  %v3089_v60 = vmax.f32 %v3071_v51, 0.0  ;;  %v12634_v41 = vld [vmem:[#allocation6 + $0x5cc] ss:$16 sps:$4 sm:$0xff]   ;;  %v12635_v48 = vld [vmem:[#allocation6 + $0x3c8] ss:$16 sps:$4 sm:$0xff]  }
 0x2e2   :  { %v12637_v45 = vld [vmem:[#allocation6 + $0x3cc] ss:$16 sps:$4 sm:$0xff]   ;;  %v12638_v10 = vld [vmem:[#allocation6 + $0x5a8] ss:$16 sps:$4 sm:$0xff]  }
 0x2e3   :  { %v3090_v62 = vmax.f32 %v3073_v59, 0.0  ;;  %4860 = vmatpush2.bf16.msra.mxu0 %v12572_v53  ;;  %v14101_v58 = vpack.c.bf16 %v3089_v60, %v3081_v37  ;;  %v12640_v46 = vld [vmem:[#allocation6 + $0x5ac] ss:$16 sps:$4 sm:$0xff]   ;;  %v12641_v53 = vld [vmem:[#allocation6 + $0x3a8] ss:$16 sps:$4 sm:$0xff]  }
 0x2e4   :  { %4915 = vmatprep.subr.bf16.mxu0 %v12580_v34  ;;  %v12643_v51 = vld [vmem:[#allocation6 + $0x3ac] ss:$16 sps:$4 sm:$0xff]   ;;  %v12644_v56 = vld [vmem:[#allocation6 + $0x588] ss:$16 sps:$4 sm:$0xff]  }
 0x2e5   :  { %v14098_v26 = vpack.c.bf16 %v3090_v62, %v3082_v17  ;;  %v12646_v52 = vld [vmem:[#allocation6 + $0x58c] ss:$16 sps:$4 sm:$0xff]   ;;  %v12647_v59 = vld [vmem:[#allocation6 + $0x388] ss:$16 sps:$4 sm:$0xff]  }
 0x2e6   :  { %4862 = vmatmul.mubr.bf16.vlgmr.msra.gmra.mxu0 %v14022_v63  ;;  %v12590_v63 = vld [vmem:[#allocation6 + $0x4a8] ss:$16 sps:$4 sm:$0xff]   ;;  %v12649_v34 = vld [vmem:[#allocation6 + $0x38c] ss:$16 sps:$4 sm:$0xff]  }
 0x2e7   :  { %4916 = vmatpush1.bf16.msra.mxu0 %v12578_v16  ;;  %4947 = vmatprep.mubr.bf16.mxu0 %v14085_v47  ;;  %v12593_v47 = vld [vmem:[#allocation6 + $0x2a8] ss:$16 sps:$4 sm:$0xff]   ;;  %v12652_v55 = vld [vmem:[#allocation6 + $0x56c] ss:$16 sps:$4 sm:$0xff]  }
 0x2e8   :  { %4818 = vmatprep.mubr.bf16.mxu1 %v14098_v26  ;;  %4917 = vmatprep.subr.bf16.mxu0 %v12586_v0  ;;  %v12650_v17 = vld [vmem:[#allocation6 + $0x568] ss:$16 sps:$4 sm:$0xff]   ;;  %v12655_v60 = vld [vmem:[#allocation6 + $0x36c] ss:$16 sps:$4 sm:$0xff]  }
 0x2e9   :  { %4819 = vmatmul.mubr.bf16.vlgmr.msra.gmra.mxu1 %v14101_v58  ;;  %v12658_v62 = vld [vmem:[#allocation6 + $0x54c] ss:$16 sps:$4 sm:$0xff]   ;;  %v12653_v16 = vld [vmem:[#allocation6 + $0x368] ss:$16 sps:$4 sm:$0xff]  }
 0x2ea   :  { %4873 = vmatpush1.bf16.msra.mxu1 %v12581_v2  ;;  %4904 = vmatprep.mubr.bf16.mxu1 %v14057_v54  ;;  %v12602_v54 = vld [vmem:[#allocation6 + $0x468] ss:$16 sps:$4 sm:$0xff]   ;;  %v12661_v37 = vld [vmem:[#allocation6 + $0x34c] ss:$16 sps:$4 sm:$0xff]  }
 0x2eb   :  { %4918 = vmatpush1.bf16.msra.mxu0 %v12584_v21  ;;  %4874 = vmatprep.subr.bf16.mxu1 %v12589_v3  ;;  %v12656_v0 = vld [vmem:[#allocation6 + $0x548] ss:$16 sps:$4 sm:$0xff]   ;;  %v12664_v2 = vld [vmem:[#allocation6 + $0x52c] ss:$16 sps:$4 sm:$0xff]  }
 0x2ec   :  { %4919 = vmatprep.subr.bf16.mxu0 %v12592_v5  ;;  %v12659_v21 = vld [vmem:[#allocation6 + $0x348] ss:$16 sps:$4 sm:$0xff]   ;;  %v12667_v5 = vld [vmem:[#allocation6 + $0x32c] ss:$16 sps:$4 sm:$0xff]  }
 0x2ed   :  { %v12662_v3 = vld [vmem:[#allocation6 + $0x528] ss:$16 sps:$4 sm:$0xff]  }
 0x2ee   :  { %4875 = vmatpush1.bf16.msra.mxu1 %v12587_v19  ;;  %v12670_v19 = vld [vmem:[#allocation6 + $0x50c] ss:$16 sps:$4 sm:$0xff]  }
 0x2ef   :  { %4920 = vmatpush1.bf16.msra.mxu0 %v12590_v63  ;;  %4876 = vmatprep.subr.bf16.mxu1 %v12595_v7  ;;  %v12665_v63 = vld [vmem:[#allocation6 + $0x328] ss:$16 sps:$4 sm:$0xff]  }
 0x2f0   :  { %4921 = vmatprep.subr.bf16.mxu0 %v12598_v8  ;;  %v12668_v7 = vld [vmem:[#allocation6 + $0x508] ss:$16 sps:$4 sm:$0xff]   ;;  %v12673_v8 = vld [vmem:[#allocation6 + $0x30c] ss:$16 sps:$4 sm:$0xff]  }
 0x2f2   :  { %4877 = vmatpush1.bf16.msra.mxu1 %v12593_v47  ;;  %v12724_v47 = vld [vmem:[#allocation9 + $0x74] ss:$8 sps:$4 sm:$0xff]  }
 0x2f3   :  { %4922 = vmatpush1.bf16.msra.mxu0 %v12596_v9  ;;  %4878 = vmatprep.subr.bf16.mxu1 %v12601_v11  ;;  %v12671_v9 = vld [vmem:[#allocation6 + $0x308] ss:$16 sps:$4 sm:$0xff]   ;;  %v12676_v11 = vld [vmem:[#allocation6 + $0x6ec] ss:$16 sps:$4 sm:$0xff]  }
 0x2f4   :  { %4923 = vmatprep.subr.bf16.mxu0 %v12604_v24  ;;  %v12722_v24 = vld [vmem:[#allocation9 + $0x70] ss:$8 sps:$4 sm:$0xff]  }
 0x2f6   :  { %4879 = vmatpush1.bf16.msra.mxu1 %v12599_v12  ;;  %v12727_v12 = vld [vmem:[#allocation9 + $0x64] ss:$8 sps:$4 sm:$0xff]  }
 0x2f7   :  { %4924 = vmatpush1.bf16.msra.mxu0 %v12602_v54  ;;  %4880 = vmatprep.subr.bf16.mxu1 %v12607_v13  ;;  %v12674_v54 = vld [vmem:[#allocation6 + $0x6e8] ss:$16 sps:$4 sm:$0xff]   ;;  %v12679_v13 = vld [vmem:[#allocation6 + $0x6cc] ss:$16 sps:$4 sm:$0xff]  }
 0x2f8   :  { %4925 = vmatprep.subr.bf16.mxu0 %v12610_v14  ;;  %v12725_v14 = vld [vmem:[#allocation9 + $0x60] ss:$8 sps:$4 sm:$0xff]  }
 0x2fa   :  { %4881 = vmatpush1.bf16.msra.mxu1 %v12605_v15  ;;  %v12730_v15 = vld [vmem:[#allocation9 + $0x54] ss:$8 sps:$4 sm:$0xff]  }
 0x2fb   :  { %4926 = vmatpush1.bf16.msra.mxu0 %v12608_v57  ;;  %4882 = vmatprep.subr.bf16.mxu1 %v12613_v18  ;;  %v12677_v57 = vld [vmem:[#allocation6 + $0x6c8] ss:$16 sps:$4 sm:$0xff]   ;;  %v12682_v18 = vld [vmem:[#allocation6 + $0x6ac] ss:$16 sps:$4 sm:$0xff]  }
 0x2fc   :  { %4927 = vmatprep.subr.bf16.mxu0 %v12616_v20  ;;  %v12728_v20 = vld [vmem:[#allocation9 + $0x50] ss:$8 sps:$4 sm:$0xff]  }
 0x2fe   :  { %4883 = vmatpush1.bf16.msra.mxu1 %v12611_v22  ;;  %v12733_v22 = vld [vmem:[#allocation9 + $0x44] ss:$8 sps:$4 sm:$0xff]  }
 0x2ff   :  { %4928 = vmatpush1.bf16.msra.mxu0 %v12614_v28  ;;  %4884 = vmatprep.subr.bf16.mxu1 %v12619_v29  ;;  %v12685_v28 = vld [vmem:[#allocation6 + $0x68c] ss:$16 sps:$4 sm:$0xff]  }
 0x300   :  { %4929 = vmatprep.subr.bf16.mxu0 %v12622_v30  ;;  %v12731_v29 = vld [vmem:[#allocation9 + $0x40] ss:$8 sps:$4 sm:$0xff]   ;;  %v12736_v30 = vld [vmem:[#allocation9 + $0x34] ss:$8 sps:$4 sm:$0xff]  }
 0x302   :  { %4885 = vmatpush1.bf16.msra.mxu1 %v12617_v31  ;;  %v12688_v31 = vld [vmem:[#allocation6 + $0x66c] ss:$16 sps:$4 sm:$0xff]  }
 0x303   :  { %4930 = vmatpush1.bf16.msra.mxu0 %v12620_v25  ;;  %4886 = vmatprep.subr.bf16.mxu1 %v12625_v35  ;;  %v12739_v25 = vld [vmem:[#allocation9 + $0x24] ss:$8 sps:$4 sm:$0xff]  }
 0x304   :  { %4931 = vmatprep.subr.bf16.mxu0 %v12628_v44  ;;  %v12686_v35 = vld [vmem:[#allocation6 + $0x668] ss:$16 sps:$4 sm:$0xff]   ;;  %v12691_v44 = vld [vmem:[#allocation6 + $0x64c] ss:$16 sps:$4 sm:$0xff]  }
 0x306   :  { %4887 = vmatpush1.bf16.msra.mxu1 %v12623_v36  ;;  %v12737_v36 = vld [vmem:[#allocation9 + $0x20] ss:$8 sps:$4 sm:$0xff]  }
 0x307   :  { %4932 = vmatpush2.bf16.msra.mxu0 %v12626_v39  ;;  %4888 = vmatprep.subr.bf16.mxu1 %v12631_v40  ;;  %v12742_v39 = vld [vmem:[#allocation9 + $0x14] ss:$8 sps:$4 sm:$0xff]  }
 0x308   :  { %4933 = vmatprep.subr.bf16.mxu0 %v12634_v41  ;;  %v12689_v40 = vld [vmem:[#allocation6 + $0x648] ss:$16 sps:$4 sm:$0xff]   ;;  %v12694_v41 = vld [vmem:[#allocation6 + $0x62c] ss:$16 sps:$4 sm:$0xff]  }
 0x30a   :  { %4889 = vmatpush2.bf16.msra.mxu1 %v12629_v42  ;;  %v12740_v42 = vld [vmem:[#allocation9 + $0x10] ss:$8 sps:$4 sm:$0xff]  }
 0x30b   :  { %4934 = vmatpush2.bf16.msra.mxu0 %v12632_v43  ;;  %4890 = vmatprep.subr.bf16.mxu1 %v12637_v45  ;;  %v12745_v43 = vld [vmem:[#allocation9 + $0x4] ss:$8 sps:$4 sm:$0xff]  }
 0x30c   :  { %4935 = vmatprep.subr.bf16.mxu0 %v12640_v46  ;;  %v12692_v45 = vld [vmem:[#allocation6 + $0x628] ss:$16 sps:$4 sm:$0xff]   ;;  %v12697_v46 = vld [vmem:[#allocation6 + $0x60c] ss:$16 sps:$4 sm:$0xff]  }
 0x30e   :  { %4891 = vmatpush2.bf16.msra.mxu1 %v12635_v48  ;;  %v12743_v48 = vld [vmem:[#allocation9] ss:$8 sps:$4 sm:$0xff]  }
 0x30f   :  { %4936 = vmatpush2.bf16.msra.mxu0 %v12638_v10  ;;  %4892 = vmatprep.subr.bf16.mxu1 %v12643_v51  ;;  %v12748_v10 = vld [vmem:[#allocation9 + $0xf4] ss:$8 sps:$4 sm:$0xff]  }
 0x310   :  { %4937 = vmatprep.subr.bf16.mxu0 %v12646_v52  ;;  %v12695_v51 = vld [vmem:[#allocation6 + $0x608] ss:$16 sps:$4 sm:$0xff]   ;;  %v12700_v52 = vld [vmem:[#allocation6 + $0x7ec] ss:$16 sps:$4 sm:$0xff]  }
 0x312   :  { %4893 = vmatpush2.bf16.msra.mxu1 %v12641_v53  ;;  %v12746_v53 = vld [vmem:[#allocation9 + $0xf0] ss:$8 sps:$4 sm:$0xff]  }
 0x313   :  { %4938 = vmatpush2.bf16.msra.mxu0 %v12644_v56  ;;  %4894 = vmatprep.subr.bf16.mxu1 %v12649_v34  ;;  %v12751_v56 = vld [vmem:[#allocation9 + $0xe4] ss:$8 sps:$4 sm:$0xff]  }
 0x314   :  { %4939 = vmatprep.subr.bf16.mxu0 %v12652_v55  ;;  %v12698_v34 = vld [vmem:[#allocation6 + $0x7e8] ss:$16 sps:$4 sm:$0xff]   ;;  %v12703_v55 = vld [vmem:[#allocation6 + $0x7cc] ss:$16 sps:$4 sm:$0xff]  }
 0x316   :  { %4895 = vmatpush2.bf16.msra.mxu1 %v12647_v59  ;;  %v12749_v59 = vld [vmem:[#allocation9 + $0xe0] ss:$8 sps:$4 sm:$0xff]  }
 0x317   :  { %4940 = vmatpush2.bf16.msra.mxu0 %v12650_v17  ;;  %4896 = vmatprep.subr.bf16.mxu1 %v12655_v60  ;;  %v12754_v17 = vld [vmem:[#allocation9 + $0xd4] ss:$8 sps:$4 sm:$0xff]  }
 0x318   :  { %4941 = vmatprep.subr.bf16.mxu0 %v12658_v62  ;;  %v12701_v60 = vld [vmem:[#allocation6 + $0x7c8] ss:$16 sps:$4 sm:$0xff]   ;;  %v12706_v62 = vld [vmem:[#allocation6 + $0x7ac] ss:$16 sps:$4 sm:$0xff]  }
 0x31a   :  { %4897 = vmatpush2.bf16.msra.mxu1 %v12653_v16  ;;  %v12752_v16 = vld [vmem:[#allocation9 + $0xd0] ss:$8 sps:$4 sm:$0xff]  }
 0x31b   :  { %4942 = vmatpush2.bf16.msra.mxu0 %v12656_v0  ;;  %4898 = vmatprep.subr.bf16.mxu1 %v12661_v37  ;;  %v12757_v0 = vld [vmem:[#allocation9 + $0xc4] ss:$8 sps:$4 sm:$0xff]  }
 0x31c   :  { %4943 = vmatprep.subr.bf16.mxu0 %v12664_v2  ;;  %v12704_v37 = vld [vmem:[#allocation6 + $0x7a8] ss:$16 sps:$4 sm:$0xff]   ;;  %v12709_v2 = vld [vmem:[#allocation6 + $0x78c] ss:$16 sps:$4 sm:$0xff]  }
 0x31e   :  { %4899 = vmatpush2.bf16.msra.mxu1 %v12659_v21  ;;  %v12755_v21 = vld [vmem:[#allocation9 + $0xc0] ss:$8 sps:$4 sm:$0xff]  }
 0x31f   :  { %4944 = vmatpush2.bf16.msra.mxu0 %v12662_v3  ;;  %4900 = vmatprep.subr.bf16.mxu1 %v12667_v5  ;;  %v12760_v3 = vld [vmem:[#allocation9 + $0xb4] ss:$8 sps:$4 sm:$0xff]  }
 0x320   :  { %4945 = vmatprep.subr.bf16.mxu0 %v12670_v19  ;;  %v12707_v5 = vld [vmem:[#allocation6 + $0x788] ss:$16 sps:$4 sm:$0xff]   ;;  %v12712_v19 = vld [vmem:[#allocation6 + $0x76c] ss:$16 sps:$4 sm:$0xff]  }
 0x322   :  { %4901 = vmatpush2.bf16.msra.mxu1 %v12665_v63  ;;  %v12758_v63 = vld [vmem:[#allocation9 + $0xb0] ss:$8 sps:$4 sm:$0xff]  }
 0x323   :  { %4946 = vmatpush2.bf16.msra.mxu0 %v12668_v7  ;;  %4902 = vmatprep.subr.bf16.mxu1 %v12673_v8  ;;  %v12763_v7 = vld [vmem:[#allocation9 + $0xa4] ss:$8 sps:$4 sm:$0xff]  }
 0x324   :  { %5409 = vmatprep.subr.bf16.mxu0 %v12724_v47  ;;  %v12710_v8 = vld [vmem:[#allocation6 + $0x768] ss:$16 sps:$4 sm:$0xff]   ;;  %v12715_v47 = vld [vmem:[#allocation6 + $0x74c] ss:$16 sps:$4 sm:$0xff]  }
 0x326   :  { %4903 = vmatpush2.bf16.msra.mxu1 %v12671_v9  ;;  %4948 = vmatmul.mubr.bf16.vlgmr.msra.gmra.mxu0 %v14087_v49  ;;  %v12680_v49 = vld [vmem:[#allocation6 + $0x6a8] ss:$16 sps:$4 sm:$0xff]   ;;  %v12761_v9 = vld [vmem:[#allocation9 + $0xa0] ss:$8 sps:$4 sm:$0xff]  }
 0x327   :  { %4958 = vmatprep.subr.bf16.mxu1 %v12676_v11  ;;  %5410 = vmatpush1.bf16.msra.mxu0 %v12722_v24  ;;  %v12766_v11 = vld [vmem:[#allocation9 + $0x94] ss:$8 sps:$4 sm:$0xff]  }
 0x328   :  { %5411 = vmatprep.subr.bf16.mxu0 %v12727_v12  ;;  %v12713_v24 = vld [vmem:[#allocation6 + $0x748] ss:$16 sps:$4 sm:$0xff]   ;;  %v12718_v12 = vld [vmem:[#allocation6 + $0x72c] ss:$16 sps:$4 sm:$0xff]  }
 0x329   :  { %4905 = vmatmul.mubr.bf16.vlgmr.msra.gmra.mxu1 %v14071_v1  ;;  %v12683_v1 = vld [vmem:[#allocation6 + $0x688] ss:$16 sps:$4 sm:$0xff]  }
 0x32a   :  { %4959 = vmatpush1.bf16.msra.mxu1 %v12674_v54  ;;  %4990 = vmatprep.mubr.bf16.mxu1 %v14098_v26  ;;  %v12734_v26 = vld [vmem:[#allocation9 + $0x30] ss:$8 sps:$4 sm:$0xff]  }
 0x32b   :  { %4960 = vmatprep.subr.bf16.mxu1 %v12679_v13  ;;  %5412 = vmatpush1.bf16.msra.mxu0 %v12725_v14  ;;  %v12764_v54 = vld [vmem:[#allocation9 + $0x90] ss:$8 sps:$4 sm:$0xff]   ;;  %v12769_v13 = vld [vmem:[#allocation9 + $0x84] ss:$8 sps:$4 sm:$0xff]  }
 0x32c   :  { %5413 = vmatprep.subr.bf16.mxu0 %v12730_v15  ;;  %v12716_v14 = vld [vmem:[#allocation6 + $0x728] ss:$16 sps:$4 sm:$0xff]   ;;  %v12721_v15 = vld [vmem:[#allocation6 + $0x70c] ss:$16 sps:$4 sm:$0xff]  }
 0x32e   :  { %4961 = vmatpush1.bf16.msra.mxu1 %v12677_v57  ;;  %v12767_v57 = vld [vmem:[#allocation9 + $0x80] ss:$8 sps:$4 sm:$0xff]  }
 0x32f   :  { %4962 = vmatprep.subr.bf16.mxu1 %v12682_v18  ;;  %5414 = vmatpush1.bf16.msra.mxu0 %v12728_v20  ;;  %v12719_v18 = vld [vmem:[#allocation6 + $0x708] ss:$16 sps:$4 sm:$0xff]   ;;  %v12770_v20 = vld [vmem:[#allocation9 + $0x170] ss:$8 sps:$4 sm:$0xff]  }
 0x330   :  { %5415 = vmatprep.subr.bf16.mxu0 %v12733_v22  ;;  %v12772_v22 = vld [vmem:[#allocation9 + $0x174] ss:$8 sps:$4 sm:$0xff]  }
 0x332   :  { %4963 = vmatpush1.bf16.msra.mxu1 %v12680_v49  ;;  %v12775_v49 = vld [vmem:[#allocation9 + $0x164] ss:$8 sps:$4 sm:$0xff]  }
 0x333   :  { %4964 = vmatprep.subr.bf16.mxu1 %v12685_v28  ;;  %5416 = vmatpush1.bf16.msra.mxu0 %v12731_v29  ;;  %v12773_v28 = vld [vmem:[#allocation9 + $0x160] ss:$8 sps:$4 sm:$0xff]   ;;  %v12778_v29 = vld [vmem:[#allocation9 + $0x154] ss:$8 sps:$4 sm:$0xff]  }
 0x334   :  { %5417 = vmatprep.subr.bf16.mxu0 %v12736_v30  ;;  %v12776_v30 = vld [vmem:[#allocation9 + $0x150] ss:$8 sps:$4 sm:$0xff]  }
 0x336   :  { %4965 = vmatpush1.bf16.msra.mxu1 %v12683_v1  ;;  %v12781_v1 = vld [vmem:[#allocation9 + $0x144] ss:$8 sps:$4 sm:$0xff]  }
 0x337   :  { %4966 = vmatprep.subr.bf16.mxu1 %v12688_v31  ;;  %5418 = vmatpush1.bf16.msra.mxu0 %v12734_v26  ;;  %v12779_v31 = vld [vmem:[#allocation9 + $0x140] ss:$8 sps:$4 sm:$0xff]   ;;  %v12784_v26 = vld [vmem:[#allocation9 + $0x134] ss:$8 sps:$4 sm:$0xff]  }
 0x338   :  { %5419 = vmatprep.subr.bf16.mxu0 %v12739_v25  ;;  %v12782_v25 = vld [vmem:[#allocation9 + $0x130] ss:$8 sps:$4 sm:$0xff]  }
 0x33a   :  { %4967 = vmatpush1.bf16.msra.mxu1 %v12686_v35  ;;  %v12785_v35 = vld [vmem:[#allocation9 + $0x120] ss:$8 sps:$4 sm:$0xff]  }
 0x33b   :  { %4968 = vmatprep.subr.bf16.mxu1 %v12691_v44  ;;  %5420 = vmatpush1.bf16.msra.mxu0 %v12737_v36  ;;  %v12790_v44 = vld [vmem:[#allocation9 + $0x114] ss:$8 sps:$4 sm:$0xff]   ;;  %v12788_v36 = vld [vmem:[#allocation9 + $0x110] ss:$8 sps:$4 sm:$0xff]  }
 0x33c   :  { %5421 = vmatprep.subr.bf16.mxu0 %v12742_v39  ;;  %v12793_v39 = vld [vmem:[#allocation9 + $0x104] ss:$8 sps:$4 sm:$0xff]  }
 0x33e   :  { %4969 = vmatpush1.bf16.msra.mxu1 %v12689_v40  ;;  %v12791_v40 = vld [vmem:[#allocation9 + $0x100] ss:$8 sps:$4 sm:$0xff]  }
 0x33f   :  { %4970 = vmatprep.subr.bf16.mxu1 %v12694_v41  ;;  %5422 = vmatpush1.bf16.msra.mxu0 %v12740_v42  ;;  %v12796_v41 = vld [vmem:[#allocation9 + $0x1f4] ss:$8 sps:$4 sm:$0xff]   ;;  %v12794_v42 = vld [vmem:[#allocation9 + $0x1f0] ss:$8 sps:$4 sm:$0xff]  }
 0x340   :  { %5423 = vmatprep.subr.bf16.mxu0 %v12745_v43  ;;  %v12799_v43 = vld [vmem:[#allocation9 + $0x1e4] ss:$8 sps:$4 sm:$0xff]  }
 0x342   :  { %4971 = vmatpush1.bf16.msra.mxu1 %v12692_v45  ;;  %v4691_v45 = vpop.f32.mrf.mxu0 }
 0x343   :  { %4972 = vmatprep.subr.bf16.mxu1 %v12697_v46  ;;  %5424 = vmatpush1.bf16.msra.mxu0 %v12743_v48  ;;  %v12797_v46 = vld [vmem:[#allocation9 + $0x1e0] ss:$8 sps:$4 sm:$0xff]   ;;  %v12802_v48 = vld [vmem:[#allocation9 + $0x1d4] ss:$8 sps:$4 sm:$0xff]  }
 0x344   :  { %5425 = vmatprep.subr.bf16.mxu0 %v12748_v10  ;;  %v4693_v10 = vpop.f32.mrf.mxu0 }
 0x346   :  { %4973 = vmatpush1.bf16.msra.mxu1 %v12695_v51  ;;  %v12800_v51 = vld [vmem:[#allocation9 + $0x1d0] ss:$8 sps:$4 sm:$0xff]  }
 0x347   :  { %4974 = vmatprep.subr.bf16.mxu1 %v12700_v52  ;;  %5426 = vmatpush2.bf16.msra.mxu0 %v12746_v53  ;;  %v12805_v52 = vld [vmem:[#allocation9 + $0x1c4] ss:$8 sps:$4 sm:$0xff]   ;;  %v4695_v53 = vpop.f32.mrf.mxu0 }
 0x348   :  { %5427 = vmatprep.subr.bf16.mxu0 %v12751_v56  ;;  %v4734_v56 = vpop.f32.mrf.mxu1 }
 0x34a   :  { %4975 = vmatpush2.bf16.msra.mxu1 %v12698_v34  ;;  %v12803_v34 = vld [vmem:[#allocation9 + $0x1c0] ss:$8 sps:$4 sm:$0xff]  }
 0x34b   :  { %4976 = vmatprep.subr.bf16.mxu1 %v12703_v55  ;;  %5428 = vmatpush2.bf16.msra.mxu0 %v12749_v59  ;;  %v12808_v55 = vld [vmem:[#allocation9 + $0x1b4] ss:$8 sps:$4 sm:$0xff]   ;;  %v4697_v59 = vpop.f32.mrf.mxu0 }
 0x34c   :  { %5429 = vmatprep.subr.bf16.mxu0 %v12754_v17  ;;  %v4736_v17 = vpop.f32.mrf.mxu1 }
 0x34e   :  { %4977 = vmatpush2.bf16.msra.mxu1 %v12701_v60 }
 0x34f   :  { %4978 = vmatprep.subr.bf16.mxu1 %v12706_v62  ;;  %5430 = vmatpush2.bf16.msra.mxu0 %v12752_v16  ;;  %v12806_v62 = vld [vmem:[#allocation9 + $0x1b0] ss:$8 sps:$4 sm:$0xff]   ;;  %v14111_v16 = vld [vmem:[#allocation7] sm:$0xf] }
 0x350   :  { %5431 = vmatprep.subr.bf16.mxu0 %v12757_v0  ;;  %v3364_v0 = vrot.slane %v14111_v16, %v14025_v33 }
 0x352   :  { %4979 = vmatpush2.bf16.msra.mxu1 %v12704_v37  ;;  %v3360_v37 = vrot.slane %v14111_v16, %v13997_v61 }
 0x353   :  { %4980 = vmatprep.subr.bf16.mxu1 %v12709_v2  ;;  %5432 = vmatpush2.bf16.msra.mxu0 %v12755_v21  ;;  %v4738_v2 = vpop.f32.mrf.mxu1 }
 0x354   :  { %5433 = vmatprep.subr.bf16.mxu0 %v12760_v3  ;;  %v4694_v3 = vadd.f32 %v4693_v10, %v3364_v0  ;;  %v12824_v10 = vld [vmem:[#allocation12 + $0xc0] ss:$16 sps:$4 sm:$0xff]  }
 0x356   :  { %4981 = vmatpush2.bf16.msra.mxu1 %v12707_v5  ;;  %v4696_v5 = vadd.f32 %v4695_v53, %v3360_v37  ;;  %v12838_v53 = vld [vmem:[#allocation12 + $0x84] ss:$16 sps:$4 sm:$0xff]  }
 0x357   :  { %4982 = vmatprep.subr.bf16.mxu1 %v12712_v19  ;;  %5434 = vmatpush2.bf16.msra.mxu0 %v12758_v63  ;;  %v4692_v19 = vadd.f32 %v4691_v45, %v3360_v37  ;;  %v4740_v63 = vpop.f32.mrf.mxu1  ;;  %v12820_v45 = vld [vmem:[#allocation12 + $0xe4] ss:$16 sps:$4 sm:$0xff]  }
 0x358   :  { %5435 = vmatprep.subr.bf16.mxu0 %v12763_v7  ;;  %v12862_v37 = vld [vmem:[#allocation12 + $0x4] ss:$16 sps:$4 sm:$0xff]  }
 0x35a   :  { %4983 = vmatpush2.bf16.msra.mxu1 %v12710_v8  ;;  %v4698_v8 = vadd.f32 %v4697_v59, %v3364_v0  ;;  %v12850_v59 = vld [vmem:[#allocation12 + $0x44] ss:$16 sps:$4 sm:$0xff]   ;;  %v12854_v0 = vld [vmem:[#allocation12 + $0x20] ss:$16 sps:$4 sm:$0xff]  }
 0x35b   :  { %4984 = vmatprep.subr.bf16.mxu1 %v12715_v47  ;;  %5436 = vmatpush2.bf16.msra.mxu0 %v12761_v9  ;;  %v12811_v9 = vld [vmem:[#allocation9 + $0x1a4] ss:$8 sps:$4 sm:$0xff]  }
 0x35c   :  { %5437 = vmatprep.subr.bf16.mxu0 %v12766_v11  ;;  %v4737_v11 = vadd.f32 %v4736_v17, %v4694_v3  ;;  %v12848_v17 = vld [vmem:[#allocation12 + $0x40] ss:$16 sps:$4 sm:$0xff]   ;;  %v12868_v3 = vld [vmem:[#allocation12 + $0x1e4] ss:$16 sps:$4 sm:$0xff]  }
 0x35e   :  { %4985 = vmatpush2.bf16.msra.mxu1 %v12713_v24  ;;  %v4739_v24 = vadd.f32 %v4738_v2, %v4696_v5 }
 0x35f   :  { %4986 = vmatprep.subr.bf16.mxu1 %v12718_v12  ;;  %5438 = vmatpush2.bf16.msra.mxu0 %v12764_v54  ;;  %v12809_v12 = vld [vmem:[#allocation9 + $0x1a0] ss:$8 sps:$4 sm:$0xff]   ;;  %v4735_v54 = vadd.f32 %v4734_v56, %v4692_v19 }
 0x360   :  { %5439 = vmatprep.subr.bf16.mxu0 %v12769_v13  ;;  %v12836_v56 = vld [vmem:[#allocation12 + $0x80] ss:$16 sps:$4 sm:$0xff]  }
 0x362   :  { %4987 = vmatpush2.bf16.msra.mxu1 %v12716_v14 }
 0x363   :  { %4988 = vmatprep.subr.bf16.mxu1 %v12721_v15  ;;  %5440 = vmatpush2.bf16.msra.mxu0 %v12767_v57  ;;  %v4741_v15 = vadd.f32 %v4740_v63, %v4698_v8  ;;  %v12866_v63 = vld [vmem:[#allocation12 + $0x1e0] ss:$16 sps:$4 sm:$0xff]  }
 0x364   :  { %5907 = vmatprep.subr.bf16.mxu0 %v12820_v45 }
 0x366   :  { %4989 = vmatpush2.bf16.msra.mxu1 %v12719_v18  ;;  %v4777_v60 = vpop.f32.mrf.mxu0 }
 0x367   :  { %5452 = vmatprep.subr.bf16.mxu1 %v12772_v22 }
 0x368   :  { %v4779_v21 = vpop.f32.mrf.mxu0 }
 0x369   :  { %4991 = vmatmul.mubr.bf16.vlgmr.msra.gmra.mxu1 %v14101_v58  ;;  %v12787_v58 = vld [vmem:[#allocation9 + $0x124] ss:$8 sps:$4 sm:$0xff]   ;;  %v4780_v57 = vadd.f32 %v4779_v21, %v4737_v11 }
 0x36a   :  { %5453 = vmatpush1.bf16.msra.mxu1 %v12770_v20  ;;  %v4781_v7 = vpop.f32.mrf.mxu0  ;;  %v4778_v20 = vadd.f32 %v4777_v60, %v4735_v54  ;;  %v12856_v60 = vld [vmem:[#allocation12 + $0x24] ss:$16 sps:$4 sm:$0xff]   ;;  %v12860_v21 = vld [vmem:[#allocation12] ss:$16 sps:$4 sm:$0xff]   ;;  %v3368_v54 = vrot.slane %v14111_v16, %v14061_v27 }
 0x36b   :  { %5454 = vmatprep.subr.bf16.mxu1 %v12775_v49  ;;  %v4782_v18 = vadd.f32 %v4781_v7, %v4739_v24  ;;  %v12814_v49 = vld [vmem:[#allocation9 + $0x194] ss:$8 sps:$4 sm:$0xff]   ;;  %v3372_v24 = vrot.slane %v14111_v16, %v14037_v6 }
 0x36c   :  { %v4783_v13 = vpop.f32.mrf.mxu0  ;;  %v12874_v7 = vld [vmem:[#allocation12 + $0x1c4] ss:$16 sps:$4 sm:$0xff]   ;;  %v12872_v11 = vld [vmem:[#allocation12 + $0x1c0] ss:$16 sps:$4 sm:$0xff]  }
 0x36d   :  { %v12892_v16 = vld [vmem:[#allocation12 + $0x164] ss:$16 sps:$4 sm:$0xff]  }
 0x36e   :  { %5455 = vmatpush1.bf16.msra.mxu1 %v12773_v28  ;;  %v4784_v28 = vadd.f32 %v4783_v13, %v4741_v15  ;;  %v12878_v15 = vld [vmem:[#allocation12 + $0x1a0] ss:$16 sps:$4 sm:$0xff]  }
 0x36f   :  { %5456 = vmatprep.subr.bf16.mxu1 %v12778_v29 }
 0x372   :  { %5457 = vmatpush1.bf16.msra.mxu1 %v12776_v30 }
 0x373   :  { %5458 = vmatprep.subr.bf16.mxu1 %v12781_v1  ;;  %v12812_v1 = vld [vmem:[#allocation9 + $0x190] ss:$8 sps:$4 sm:$0xff]  }
 0x376   :  { %5459 = vmatpush1.bf16.msra.mxu1 %v12779_v31 }
 0x377   :  { %5460 = vmatprep.subr.bf16.mxu1 %v12784_v26 }
 0x37a   :  { %5461 = vmatpush1.bf16.msra.mxu1 %v12782_v25 }
 0x37b   :  { %5462 = vmatprep.subr.bf16.mxu1 %v12787_v58 }
 0x37e   :  { %5463 = vmatpush1.bf16.msra.mxu1 %v12785_v35  ;;  %v12817_v35 = vld [vmem:[#allocation9 + $0x184] ss:$8 sps:$4 sm:$0xff]  }
 0x37f   :  { %5464 = vmatprep.subr.bf16.mxu1 %v12790_v44 }
 0x382   :  { %5465 = vmatpush1.bf16.msra.mxu1 %v12788_v36 }
 0x383   :  { %5466 = vmatprep.subr.bf16.mxu1 %v12793_v39  ;;  %v12815_v39 = vld [vmem:[#allocation9 + $0x180] ss:$8 sps:$4 sm:$0xff]  }
 0x386   :  { %5467 = vmatpush1.bf16.msra.mxu1 %v12791_v40 }
 0x387   :  { %5468 = vmatprep.subr.bf16.mxu1 %v12796_v41 }
 0x38a   :  { %5469 = vmatpush2.bf16.msra.mxu1 %v12794_v42 }
 0x38b   :  { %5470 = vmatprep.subr.bf16.mxu1 %v12799_v43  ;;  %v12818_v43 = vld [vmem:[#allocation12 + $0xe0] ss:$16 sps:$4 sm:$0xff]  }
 0x38e   :  { %5471 = vmatpush2.bf16.msra.mxu1 %v12797_v46  ;;  %v12823_v46 = vld [vmem:[#allocation12 + $0xec] ss:$16 sps:$4 sm:$0xff]  }
 0x38f   :  { %5472 = vmatprep.subr.bf16.mxu1 %v12802_v48  ;;  %v12826_v48 = vld [vmem:[#allocation12 + $0xc4] ss:$16 sps:$4 sm:$0xff]  }
 0x392   :  { %5473 = vmatpush2.bf16.msra.mxu1 %v12800_v51  ;;  %v12832_v51 = vld [vmem:[#allocation12 + $0xa4] ss:$16 sps:$4 sm:$0xff]  }
 0x393   :  { %5474 = vmatprep.subr.bf16.mxu1 %v12805_v52  ;;  %v12830_v52 = vld [vmem:[#allocation12 + $0xa0] ss:$16 sps:$4 sm:$0xff]  }
 0x396   :  { %5475 = vmatpush2.bf16.msra.mxu1 %v12803_v34  ;;  %v12844_v34 = vld [vmem:[#allocation12 + $0x64] ss:$16 sps:$4 sm:$0xff]  }
 0x397   :  { %5476 = vmatprep.subr.bf16.mxu1 %v12808_v55  ;;  %v12842_v55 = vld [vmem:[#allocation12 + $0x60] ss:$16 sps:$4 sm:$0xff]  }
 0x39a   :  { %5477 = vmatpush2.bf16.msra.mxu1 %v12806_v62 }
 0x39b   :  { %5478 = vmatprep.subr.bf16.mxu1 %v12811_v9 }
 0x39e   :  { %5479 = vmatpush2.bf16.msra.mxu1 %v12809_v12  ;;  %v12880_v12 = vld [vmem:[#allocation12 + $0x1a4] ss:$16 sps:$4 sm:$0xff]  }
 0x39f   :  { %5480 = vmatprep.subr.bf16.mxu1 %v12814_v49 }
 0x3a2   :  { %5481 = vmatpush2.bf16.msra.mxu1 %v12812_v1 }
 0x3a3   :  { %5482 = vmatprep.subr.bf16.mxu1 %v12817_v35 }
 0x3a6   :  { %5483 = vmatpush2.bf16.msra.mxu1 %v12815_v39  ;;  %v4863_v62 = vpop.f32.mrf.mxu0 }
 0x3a7   :  { %5950 = vmatprep.subr.bf16.mxu1 %v12823_v46 }
 0x3a8   :  { %v4865_v2 = vpop.f32.mrf.mxu0 }
 0x3a9   :  { %v4820_v47 = vpop.f32.mrf.mxu1 }
 0x3aa   :  { %v4821_v31 = vadd.f32 %v4820_v47, %v4778_v20  ;;  %v4867_v5 = vpop.f32.mrf.mxu0  ;;  %v12886_v20 = vld [vmem:[#allocation12 + $0x184] ss:$16 sps:$4 sm:$0xff]  }
 0x3ab   :  { %v4822_v14 = vpop.f32.mrf.mxu1 }
 0x3ac   :  { %v4823_v29 = vadd.f32 %v4822_v14, %v4780_v57  ;;  %v5001_v40 = vmax.f32 %v4821_v31, 0.0  ;;  %v4869_v8 = vpop.f32.mrf.mxu0  ;;  %v4866_v57 = vadd.f32 %v4865_v2, %v3372_v24  ;;  %v12841_v2 = vld [vmem:[#allocation12 + $0x8c] ss:$16 sps:$4 sm:$0xff]  }
 0x3ad   :  { %v4824_v22 = vpop.f32.mrf.mxu1 }
 0x3ae   :  { %v4825_v30 = vadd.f32 %v4824_v22, %v4782_v18  ;;  %v5002_v44 = vmax.f32 %v4823_v29, 0.0  ;;  %v4868_v18 = vadd.f32 %v4867_v5, %v3368_v54  ;;  %v4864_v22 = vadd.f32 %v4863_v62, %v3368_v54  ;;  %v12827_v62 = vld [vmem:[#allocation12 + $0xc8] ss:$16 sps:$4 sm:$0xff]  }
 0x3af   :  { %v4826_v26 = vpop.f32.mrf.mxu1  ;;  %v12845_v5 = vld [vmem:[#allocation12 + $0x68] ss:$16 sps:$4 sm:$0xff]  }
 0x3b0   :  { %v4827_v25 = vadd.f32 %v4826_v26, %v4784_v28  ;;  %v5005_v58 = vmax.f32 %v4825_v30, 0.0  ;;  %v4870_v28 = vadd.f32 %v4869_v8, %v3372_v24  ;;  %v12857_v8 = vld [vmem:[#allocation12 + $0x28] ss:$16 sps:$4 sm:$0xff]  }
 0x3b1   :  { %v12869_v24 = vld [vmem:[#allocation12 + $0x1e8] ss:$16 sps:$4 sm:$0xff]  }
 0x3b2   :  { %v5006_v36 = vmax.f32 %v4827_v25, 0.0  ;;  %v5009_v42 = vpack.c.bf16 %v5005_v58, %v5001_v40  ;;  %v12884_v25 = vld [vmem:[#allocation12 + $0x180] ss:$16 sps:$4 sm:$0xff]   ;;  %v12875_v54 = vld [vmem:[#allocation12 + $0x1c8] ss:$16 sps:$4 sm:$0xff]  }
 0x3b4   :  { %v5010_v41 = vpack.c.bf16 %v5006_v36, %v5002_v44 }
 0x3b6   :  { %5441 = vmatprep.mubr.bf16.mxu0 %v5010_v41 }
 0x3b7   :  { %5442 = vmatmul.mubr.bf16.vlgmr.msra.gmra.mxu0 %v5009_v42  ;;  %v12890_v42 = vld [vmem:[#allocation12 + $0x160] ss:$16 sps:$4 sm:$0xff]  }
 0x3b8   :  { %5908 = vmatpush1.bf16.msra.mxu0 %v12818_v43 }
 0x3b9   :  { %5909 = vmatprep.subr.bf16.mxu0 %v12826_v48 }
 0x3bc   :  { %5910 = vmatpush1.bf16.msra.mxu0 %v12824_v10 }
 0x3bd   :  { %5911 = vmatprep.subr.bf16.mxu0 %v12832_v51 }
 0x3c0   :  { %5912 = vmatpush1.bf16.msra.mxu0 %v12830_v52 }
 0x3c1   :  { %5913 = vmatprep.subr.bf16.mxu0 %v12838_v53 }
 0x3c4   :  { %5914 = vmatpush1.bf16.msra.mxu0 %v12836_v56 }
 0x3c5   :  { %5915 = vmatprep.subr.bf16.mxu0 %v12844_v34 }
 0x3c8   :  { %5916 = vmatpush1.bf16.msra.mxu0 %v12842_v55 }
 0x3c9   :  { %5917 = vmatprep.subr.bf16.mxu0 %v12850_v59  ;;  %v12821_v59 = vld [vmem:[#allocation12 + $0xe8] ss:$16 sps:$4 sm:$0xff]  }
 0x3cc   :  { %5918 = vmatpush1.bf16.msra.mxu0 %v12848_v17 }
 0x3cd   :  { %5919 = vmatprep.subr.bf16.mxu0 %v12856_v60  ;;  %v12829_v60 = vld [vmem:[#allocation12 + $0xcc] ss:$16 sps:$4 sm:$0xff]  }
 0x3d0   :  { %5920 = vmatpush1.bf16.msra.mxu0 %v12854_v0  ;;  %v12835_v0 = vld [vmem:[#allocation12 + $0xac] ss:$16 sps:$4 sm:$0xff]  }
 0x3d1   :  { %5921 = vmatprep.subr.bf16.mxu0 %v12862_v37  ;;  %v12833_v37 = vld [vmem:[#allocation12 + $0xa8] ss:$16 sps:$4 sm:$0xff]  }
 0x3d4   :  { %5922 = vmatpush1.bf16.msra.mxu0 %v12860_v21  ;;  %v12839_v21 = vld [vmem:[#allocation12 + $0x88] ss:$16 sps:$4 sm:$0xff]  }
 0x3d5   :  { %5923 = vmatprep.subr.bf16.mxu0 %v12868_v3  ;;  %v12847_v3 = vld [vmem:[#allocation12 + $0x6c] ss:$16 sps:$4 sm:$0xff]  }
 0x3d8   :  { %5924 = vmatpush2.bf16.msra.mxu0 %v12866_v63  ;;  %v12851_v63 = vld [vmem:[#allocation12 + $0x48] ss:$16 sps:$4 sm:$0xff]  }
 0x3d9   :  { %5925 = vmatprep.subr.bf16.mxu0 %v12874_v7  ;;  %v12859_v7 = vld [vmem:[#allocation12 + $0x2c] ss:$16 sps:$4 sm:$0xff]  }
 0x3dc   :  { %5926 = vmatpush2.bf16.msra.mxu0 %v12872_v11  ;;  %v12871_v11 = vld [vmem:[#allocation12 + $0x1ec] ss:$16 sps:$4 sm:$0xff]  }
 0x3dd   :  { %5927 = vmatprep.subr.bf16.mxu0 %v12880_v12  ;;  %v12877_v12 = vld [vmem:[#allocation12 + $0x1cc] ss:$16 sps:$4 sm:$0xff]  }
 0x3e0   :  { %5928 = vmatpush2.bf16.msra.mxu0 %v12878_v15  ;;  %v12889_v15 = vld [vmem:[#allocation12 + $0x18c] ss:$16 sps:$4 sm:$0xff]  }
 0x3e1   :  { %5929 = vmatprep.subr.bf16.mxu0 %v12886_v20  ;;  %v12893_v20 = vld [vmem:[#allocation12 + $0x168] ss:$16 sps:$4 sm:$0xff]  }
 0x3e4   :  { %5930 = vmatpush2.bf16.msra.mxu0 %v12884_v25  ;;  %v12910_v25 = vld [vmem:[#allocation12 + $0x104] ss:$16 sps:$4 sm:$0xff]  }
 0x3e5   :  { %5931 = vmatprep.subr.bf16.mxu0 %v12892_v16  ;;  %v12908_v16 = vld [vmem:[#allocation12 + $0x100] ss:$16 sps:$4 sm:$0xff]  }
 0x3e6   :  { %v4949_v9 = vpop.f32.mrf.mxu0 }
 0x3e8   :  { %v4951_v14 = vpop.f32.mrf.mxu0  ;;  %5932 = vmatpush2.bf16.msra.mxu0 %v12890_v42  ;;  %v6193_v42 = vld [vmem:[#allocation15 + $0x5e0] sm:$0xff] }
 0x3e9   :  { %v4906_v19 = vpop.f32.mrf.mxu1 }
 0x3ea   :  { %v4907_v1 = vadd.f32 %v4906_v19, %v4864_v22  ;;  %v4953_v31 = vpop.f32.mrf.mxu0  ;;  %v12853_v19 = vld [vmem:[#allocation12 + $0x4c] ss:$16 sps:$4 sm:$0xff]   ;;  %v12898_v22 = vld [vmem:[#allocation12 + $0x144] ss:$16 sps:$4 sm:$0xff]  }
 0x3eb   :  { %v4908_v47 = vpop.f32.mrf.mxu1  ;;  %5933 = vmatprep.subr.bf16.mxu0 %v12898_v22 }
 0x3ec   :  { %v4909_v29 = vadd.f32 %v4908_v47, %v4866_v57  ;;  %v4955_v39 = vpop.f32.mrf.mxu0  ;;  %v4950_v40 = vadd.f32 %v4949_v9, %v4907_v1  ;;  %v12865_v47 = vld [vmem:[#allocation12 + $0xc] ss:$16 sps:$4 sm:$0xff]   ;;  %v12863_v9 = vld [vmem:[#allocation12 + $0x8] ss:$16 sps:$4 sm:$0xff]  }
 0x3ed   :  { %v4910_v13 = vpop.f32.mrf.mxu1  ;;  %v12887_v57 = vld [vmem:[#allocation12 + $0x188] ss:$16 sps:$4 sm:$0xff]   ;;  %v12907_v1 = vld [vmem:[#allocation12 + $0x12c] ss:$16 sps:$4 sm:$0xff]  }
 0x3ee   :  { %v4911_v30 = vadd.f32 %v4910_v13, %v4868_v18  ;;  %v4952_v44 = vadd.f32 %v4951_v14, %v4909_v29  ;;  %v12883_v13 = vld [vmem:[#allocation12 + $0x1ac] ss:$16 sps:$4 sm:$0xff]   ;;  %v12881_v14 = vld [vmem:[#allocation12 + $0x1a8] ss:$16 sps:$4 sm:$0xff]  }
 0x3ef   :  { %v4912_v49 = vpop.f32.mrf.mxu1  ;;  %v12895_v18 = vld [vmem:[#allocation12 + $0x16c] ss:$16 sps:$4 sm:$0xff]   ;;  %v12899_v29 = vld [vmem:[#allocation12 + $0x148] ss:$16 sps:$4 sm:$0xff]  }
 0x3f0   :  { %v4913_v58 = vadd.f32 %v4912_v49, %v4870_v28  ;;  %v4954_v36 = vadd.f32 %v4953_v31, %v4911_v30  ;;  %v12901_v49 = vld [vmem:[#allocation12 + $0x14c] ss:$16 sps:$4 sm:$0xff]   ;;  %v12896_v28 = vld [vmem:[#allocation12 + $0x140] ss:$16 sps:$4 sm:$0xff]   ;;  %v12904_v30 = vld [vmem:[#allocation12 + $0x124] ss:$16 sps:$4 sm:$0xff]  }
 0x3f1   :  { %5934 = vmatpush2.bf16.msra.mxu0 %v12896_v28  ;;  %v12902_v31 = vld [vmem:[#allocation12 + $0x120] ss:$16 sps:$4 sm:$0xff]  }
 0x3f2   :  { %v4956_v46 = vadd.f32 %v4955_v39, %v4913_v58  ;;  %5935 = vmatprep.subr.bf16.mxu0 %v12904_v30  ;;  %v12913_v58 = vld [vmem:[#allocation12 + $0x10c] ss:$16 sps:$4 sm:$0xff]   ;;  %v6189_v39 = vld [vmem:[#allocation15 + $0x5c0] sm:$0xff] }
 0x3f3   :  { %v6037_v30 = vld [vmem:[#allocation15 + $0x100] sm:$0xff] }
 0x3f5   :  { %5936 = vmatpush2.bf16.msra.mxu0 %v12902_v31  ;;  %v6165_v31 = vld [vmem:[#allocation15 + $0x500] sm:$0xff] }
 0x3f6   :  { %5937 = vmatprep.subr.bf16.mxu0 %v12910_v25 }
 0x3f9   :  { %5938 = vmatpush2.bf16.msra.mxu0 %v12908_v16 }
 0x429   :  { %v4992_v26 = vpop.f32.mrf.mxu1 }
 0x42a   :  { %v4993_v48 = vadd.f32 %v4992_v26, %v4950_v40  ;;  %v12905_v26 = vld [vmem:[#allocation12 + $0x128] ss:$16 sps:$4 sm:$0xff]  }
 0x42b   :  { %v4994_v35 = vpop.f32.mrf.mxu1 }
 0x42c   :  { %v4995_v43 = vadd.f32 %v4994_v35, %v4952_v44  ;;  %v5003_v34 = vmax.f32 %v4993_v48, 0.0  ;;  %v12911_v35 = vld [vmem:[#allocation12 + $0x108] ss:$16 sps:$4 sm:$0xff]  }
 0x42d   :  { %v4996_v41 = vpop.f32.mrf.mxu1  ;;  %v6061_v44 = vld [vmem:[#allocation15 + $0x1c0] sm:$0xff] }
 0x42e   :  { %v4997_v45 = vadd.f32 %v4996_v41, %v4954_v36  ;;  %v5004_v53 = vmax.f32 %v4995_v43, 0.0  ;;  %v6065_v36 = vld [vmem:[#allocation15 + $0x1e0] sm:$0xff]  ;;  %v11850_v43 = vcombine.low %v6189_v39, %v6193_v42 }
 0x42f   :  { %v4998_v10 = vpop.f32.mrf.mxu1  ;;  %v11722_v40 = vcombine.low %v6061_v44, %v6065_v36  ;;  %v11723_v41 = vcombine.high %v6061_v44, %v6065_v36  ;;  %v6029_v44 = vld [vmem:[#allocation15 + $0xc0] sm:$0xff] }
 0x430   :  { %v4999_v51 = vadd.f32 %v4998_v10, %v4956_v46  ;;  %v5007_v52 = vmax.f32 %v4997_v45, 0.0  ;;  %v11851_v45 = vcombine.high %v6189_v39, %v6193_v42  ;;  %v5077_v10 = vld [vmem:[#allocation10] sm:$0x3]  ;;  %v6033_v36 = vld [vmem:[#allocation15 + $0xe0] sm:$0xff] }
 0x431   :  { %7583 = vmatprep.subr.bf16.mxu0 %v11723_v41  ;;  %v6157_v39 = vld [vmem:[#allocation15 + $0x4c0] sm:$0xff] }
 0x432   :  { %v5008_v56 = vmax.f32 %v4999_v51, 0.0  ;;  %v5011_v17 = vpack.c.bf16 %v5007_v52, %v5003_v34  ;;  %v5086_v52 = vrot.slane %v5077_v10, %v14025_v33 }
 0x434   :  { %v5012_v55 = vpack.c.bf16 %v5008_v56, %v5004_v53  ;;  %v5082_v53 = vrot.slane %v5077_v10, %v13997_v61  ;;  %v6149_v10 = vld [vmem:[#allocation15 + $0x480] sm:$0xff] }
 0x436   :  { %5484 = vmatprep.mubr.bf16.mxu1 %v5012_v55 }
 0x437   :  { %5485 = vmatmul.mubr.bf16.vlgmr.msra.gmra.mxu1 %v5011_v17 }
 0x438   :  { %5951 = vmatpush1.bf16.msra.mxu1 %v12821_v59 }
 0x439   :  { %5952 = vmatprep.subr.bf16.mxu1 %v12829_v60 }
 0x43c   :  { %5953 = vmatpush1.bf16.msra.mxu1 %v12827_v62 }
 0x43d   :  { %5954 = vmatprep.subr.bf16.mxu1 %v12835_v0 }
 0x440   :  { %5955 = vmatpush1.bf16.msra.mxu1 %v12833_v37 }
 0x441   :  { %5956 = vmatprep.subr.bf16.mxu1 %v12841_v2 }
 0x444   :  { %5957 = vmatpush1.bf16.msra.mxu1 %v12839_v21 }
 0x445   :  { %5958 = vmatprep.subr.bf16.mxu1 %v12847_v3 }
 0x448   :  { %5959 = vmatpush1.bf16.msra.mxu1 %v12845_v5 }
 0x449   :  { %5960 = vmatprep.subr.bf16.mxu1 %v12853_v19 }
 0x44c   :  { %5961 = vmatpush1.bf16.msra.mxu1 %v12851_v63  ;;  %v6053_v63 = vld [vmem:[#allocation15 + $0x180] sm:$0xff] }
 0x44d   :  { %5962 = vmatprep.subr.bf16.mxu1 %v12859_v7 }
 0x450   :  { %5963 = vmatpush1.bf16.msra.mxu1 %v12857_v8 }
 0x451   :  { %5964 = vmatprep.subr.bf16.mxu1 %v12865_v47  ;;  %v6057_v47 = vld [vmem:[#allocation15 + $0x1a0] sm:$0xff] }
 0x452   :  { %v11714_v22 = vcombine.low %v6053_v63, %v6057_v47 }
 0x454   :  { %5965 = vmatpush1.bf16.msra.mxu1 %v12863_v9  ;;  %v6181_v9 = vld [vmem:[#allocation15 + $0x580] sm:$0xff] }
 0x455   :  { %5966 = vmatprep.subr.bf16.mxu1 %v12871_v11  ;;  %v6185_v11 = vld [vmem:[#allocation15 + $0x5a0] sm:$0xff] }
 0x458   :  { %5967 = vmatpush2.bf16.msra.mxu1 %v12869_v24 }
 0x459   :  { %5968 = vmatprep.subr.bf16.mxu1 %v12877_v12 }
 0x45c   :  { %5969 = vmatpush2.bf16.msra.mxu1 %v12875_v54 }
 0x45d   :  { %5970 = vmatprep.subr.bf16.mxu1 %v12883_v13  ;;  %v11715_v13 = vcombine.high %v6053_v63, %v6057_v47 }
 0x460   :  { %5971 = vmatpush2.bf16.msra.mxu1 %v12881_v14  ;;  %v11843_v14 = vcombine.high %v6181_v9, %v6185_v11 }
 0x461   :  { %5972 = vmatprep.subr.bf16.mxu1 %v12889_v15  ;;  %v6045_v15 = vld [vmem:[#allocation15 + $0x140] sm:$0xff] }
 0x464   :  { %5973 = vmatpush2.bf16.msra.mxu1 %v12887_v57  ;;  %v6049_v57 = vld [vmem:[#allocation15 + $0x160] sm:$0xff] }
 0x465   :  { %5974 = vmatprep.subr.bf16.mxu1 %v12895_v18  ;;  %v6173_v18 = vld [vmem:[#allocation15 + $0x540] sm:$0xff]  ;;  %v11707_v28 = vcombine.high %v6045_v15, %v6049_v57  ;;  %v11706_v25 = vcombine.low %v6045_v15, %v6049_v57 }
 0x466   :  { %v6117_v57 = vld [vmem:[#allocation15 + $0x380] sm:$0xff] }
 0x468   :  { %5975 = vmatpush2.bf16.msra.mxu1 %v12893_v20  ;;  %v6177_v20 = vld [vmem:[#allocation15 + $0x560] sm:$0xff] }
 0x469   :  { %5976 = vmatprep.subr.bf16.mxu1 %v12901_v49  ;;  %v11842_v49 = vcombine.low %v6181_v9, %v6185_v11  ;;  %v6125_v9 = vld [vmem:[#allocation15 + $0x3c0] sm:$0xff] }
 0x46a   :  { %v6129_v11 = vld [vmem:[#allocation15 + $0x3e0] sm:$0xff] }
 0x46c   :  { %5977 = vmatpush2.bf16.msra.mxu1 %v12899_v29  ;;  %v11835_v29 = vcombine.high %v6173_v18, %v6177_v20 }
 0x46d   :  { %5978 = vmatprep.subr.bf16.mxu1 %v12907_v1  ;;  %v6041_v1 = vld [vmem:[#allocation15 + $0x120] sm:$0xff] }
 0x46e   :  { %v11699_v16 = vcombine.high %v6037_v30, %v6041_v1  ;;  %v11698_v41 = vcombine.low %v6037_v30, %v6041_v1  ;;  %v6109_v1 = vld [vmem:[#allocation15 + $0x340] sm:$0xff] }
 0x470   :  { %5979 = vmatpush2.bf16.msra.mxu1 %v12905_v26  ;;  %v6169_v26 = vld [vmem:[#allocation15 + $0x520] sm:$0xff] }
 0x471   :  { %5980 = vmatprep.subr.bf16.mxu1 %v12913_v58  ;;  %v11834_v58 = vcombine.low %v6173_v18, %v6177_v20  ;;  %v11826_v42 = vcombine.low %v6165_v31, %v6169_v26  ;;  %v6121_v18 = vld [vmem:[#allocation15 + $0x3a0] sm:$0xff] }
 0x472   :  { %v6245_v20 = vld [vmem:[#allocation15 + $0x780] sm:$0xff] }
 0x474   :  { %5981 = vmatpush2.bf16.msra.mxu1 %v12911_v35  ;;  %v11827_v35 = vcombine.high %v6165_v31, %v6169_v26  ;;  %v6113_v31 = vld [vmem:[#allocation15 + $0x360] sm:$0xff] }
 0x475   :  { %7626 = vmatprep.subr.bf16.mxu1 %v11851_v45  ;;  %v6237_v26 = vld [vmem:[#allocation15 + $0x740] sm:$0xff] }
 0x477   :  { %v5443_v46 = vpop.f32.mrf.mxu0 }
 0x478   :  { %v5444_v60 = vadd.f32 %v5443_v46, %v5082_v53  ;;  %v6021_v46 = vld [vmem:[#allocation15 + $0x80] sm:$0xff] }
 0x479   :  { %v5445_v48 = vpop.f32.mrf.mxu0 }
 0x47a   :  { %v5446_v59 = vadd.f32 %v5445_v48, %v5086_v52  ;;  %v6025_v48 = vld [vmem:[#allocation15 + $0xa0] sm:$0xff] }
 0x47b   :  { %v5447_v51 = vpop.f32.mrf.mxu0 }
 0x47c   :  { %v5448_v17 = vadd.f32 %v5447_v51, %v5082_v53  ;;  %v6153_v51 = vld [vmem:[#allocation15 + $0x4a0] sm:$0xff] }
 0x47d   :  { %v5449_v34 = vpop.f32.mrf.mxu0 }
 0x47e   :  { %v5450_v0 = vadd.f32 %v5449_v34, %v5086_v52  ;;  %v11690_v52 = vcombine.low %v6029_v44, %v6033_v36  ;;  %v11811_v34 = vcombine.high %v6149_v10, %v6153_v51 }
 0x4f7   :  { %v5486_v56 = vpop.f32.mrf.mxu1 }
 0x4f8   :  { %v5487_v21 = vadd.f32 %v5486_v56, %v5444_v60  ;;  %v11683_v56 = vcombine.high %v6021_v46, %v6025_v48  ;;  %v6145_v60 = vld [vmem:[#allocation15 + $0x460] sm:$0xff] }
 0x4f9   :  { %v5488_v55 = vpop.f32.mrf.mxu1 }
 0x4fa   :  { %v5489_v37 = vadd.f32 %v5488_v55, %v5446_v59  ;;  %v5495_v24 = vmax.f32 %v5487_v21, 0.0  ;;  %v6013_v55 = vld [vmem:[#allocation15 + $0x40] sm:$0xff] }
 0x4fb   :  { %v5490_v62 = vpop.f32.mrf.mxu1  ;;  %v6017_v59 = vld [vmem:[#allocation15 + $0x60] sm:$0xff] }
 0x4fc   :  { %v5491_v2 = vadd.f32 %v5490_v62, %v5448_v17  ;;  %v5496_v7 = vmax.f32 %v5489_v37, 0.0  ;;  %v6141_v17 = vld [vmem:[#allocation15 + $0x440] sm:$0xff]  ;;  %v11682_v62 = vcombine.low %v6021_v46, %v6025_v48  ;;  %v11675_v37 = vcombine.high %v6013_v55, %v6017_v59 }
 0x4fd   :  { %v5492_v3 = vpop.f32.mrf.mxu1  ;;  %v6005_v21 = vld [vmem:[#allocation15] sm:$0xff]  ;;  %v11674_v63 = vcombine.low %v6013_v55, %v6017_v59 }
 0x4fe   :  { %v5493_v5 = vadd.f32 %v5492_v3, %v5450_v0  ;;  %v5497_v19 = vmax.f32 %v5491_v2, 0.0  ;;  %v11810_v0 = vcombine.low %v6149_v10, %v6153_v51  ;;  %v11803_v2 = vcombine.high %v6141_v17, %v6145_v60  ;;  %v6009_v3 = vld [vmem:[#allocation15 + $0x20] sm:$0xff] }
 0x4ff   :  { %v6093_v48 = vld [vmem:[#allocation15 + $0x2c0] sm:$0xff] }
 0x500   :  { %v5498_v8 = vmax.f32 %v5493_v5, 0.0  ;;  %v5499_v54 = vpack.c.bf16 %v5497_v19, %v5495_v24  ;;  %v6133_v5 = vld [vmem:[#allocation15 + $0x400] sm:$0xff] }
 0x501   :  { %v6137_v19 = vld [vmem:[#allocation15 + $0x420] sm:$0xff] }
 0x502   :  { %v5500_v12 = vpack.c.bf16 %v5498_v8, %v5496_v7  ;;  %v11802_v7 = vcombine.low %v6141_v17, %v6145_v60  ;;  %v11667_v8 = vcombine.high %v6005_v21, %v6009_v3  ;;  %v11795_v47 = vcombine.high %v6133_v5, %v6137_v19  ;;  %v6253_v24 = vld [vmem:[#allocation15 + $0x7c0] sm:$0xff] }
 0x503   :  { %v6097_v10 = vld [vmem:[#allocation15 + $0x2e0] sm:$0xff] }
 0x504   :  { %5939 = vmatprep.mubr.bf16.mxu0 %v5500_v12  ;;  %5982 = vmatprep.mubr.bf16.mxu1 %v5500_v12  ;;  %v6257_v12 = vld [vmem:[#allocation15 + $0x7e0] sm:$0xff]  ;;  %v11754_v59 = vcombine.low %v6093_v48, %v6097_v10 }
 0x505   :  { %5940 = vmatmul.mubr.bf16.vlgmr.msra.gmra.mxu0 %v5499_v54  ;;  %5983 = vmatmul.mubr.bf16.vlgmr.msra.gmra.mxu1 %v5499_v54  ;;  %v11666_v54 = vcombine.low %v6005_v21, %v6009_v3  ;;  %v11915_v15 = vcombine.high %v6253_v24, %v6257_v12  ;;  %v6221_v51 = vld [vmem:[#allocation15 + $0x6c0] sm:$0xff] }
 0x506   :  { %7584 = vmatpush1.bf16.msra.mxu0 %v11722_v40  ;;  %7627 = vmatpush1.bf16.msra.mxu1 %v11850_v43  ;;  %v6161_v40 = vld [vmem:[#allocation15 + $0x4e0] sm:$0xff]  ;;  %v11691_v43 = vcombine.high %v6029_v44, %v6033_v36 }
 0x507   :  { %7585 = vmatprep.subr.bf16.mxu0 %v11715_v13  ;;  %7628 = vmatprep.subr.bf16.mxu1 %v11843_v14  ;;  %v11819_v45 = vcombine.high %v6157_v39, %v6161_v40  ;;  %v11818_v53 = vcombine.low %v6157_v39, %v6161_v40  ;;  %v11794_v13 = vcombine.low %v6133_v5, %v6137_v19  ;;  %v6101_v36 = vld [vmem:[#allocation15 + $0x300] sm:$0xff] }
 0x508   :  { %v11787_v14 = vcombine.high %v6125_v9, %v6129_v11  ;;  %v6105_v39 = vld [vmem:[#allocation15 + $0x320] sm:$0xff] }
 0x509   :  { %v6229_v40 = vld [vmem:[#allocation15 + $0x700] sm:$0xff] }
 0x50a   :  { %7586 = vmatpush1.bf16.msra.mxu0 %v11714_v22  ;;  %7629 = vmatpush1.bf16.msra.mxu1 %v11842_v49  ;;  %v6249_v22 = vld [vmem:[#allocation15 + $0x7a0] sm:$0xff]  ;;  %v11786_v49 = vcombine.low %v6125_v9, %v6129_v11 }
 0x50b   :  { %7587 = vmatprep.subr.bf16.mxu0 %v11707_v28  ;;  %7630 = vmatprep.subr.bf16.mxu1 %v11835_v29  ;;  %v11914_v28 = vcombine.low %v6253_v24, %v6257_v12  ;;  %v11779_v29 = vcombine.high %v6117_v57, %v6121_v18  ;;  %v11907_v30 = vcombine.high %v6245_v20, %v6249_v22  ;;  %v6085_v60 = vld [vmem:[#allocation15 + $0x280] sm:$0xff] }
 0x50c   :  { %v6077_v19 = vld [vmem:[#allocation15 + $0x240] sm:$0xff] }
 0x50d   :  { %v6069_v12 = vld [vmem:[#allocation15 + $0x200] sm:$0xff] }
 0x50e   :  { %7588 = vmatpush1.bf16.msra.mxu0 %v11706_v25  ;;  %7631 = vmatpush1.bf16.msra.mxu1 %v11834_v58  ;;  %v6241_v25 = vld [vmem:[#allocation15 + $0x760] sm:$0xff]  ;;  %v11778_v58 = vcombine.low %v6117_v57, %v6121_v18 }
 0x50f   :  { %7589 = vmatprep.subr.bf16.mxu0 %v11699_v16  ;;  %7632 = vmatprep.subr.bf16.mxu1 %v11827_v35  ;;  %v11906_v16 = vcombine.low %v6245_v20, %v6249_v22  ;;  %v11771_v35 = vcombine.high %v6109_v1, %v6113_v31  ;;  %v11899_v44 = vcombine.high %v6237_v26, %v6241_v25  ;;  %v6062_v22 = vld [vmem:[#allocation15 + $0x1c8] sm:$0xff] }
 0x512   :  { %7590 = vmatpush1.bf16.msra.mxu0 %v11698_v41  ;;  %7633 = vmatpush1.bf16.msra.mxu1 %v11826_v42  ;;  %v6233_v41 = vld [vmem:[#allocation15 + $0x720] sm:$0xff]  ;;  %v11770_v42 = vcombine.low %v6109_v1, %v6113_v31 }
 0x513   :  { %7591 = vmatprep.subr.bf16.mxu0 %v11691_v43  ;;  %7634 = vmatprep.subr.bf16.mxu1 %v11819_v45  ;;  %v11898_v43 = vcombine.low %v6237_v26, %v6241_v25  ;;  %v11763_v45 = vcombine.high %v6101_v36, %v6105_v39  ;;  %v11891_v46 = vcombine.high %v6229_v40, %v6233_v41  ;;  %v5565_v25 = vld [vmem:[#allocation13] sm:$0xf] }
 0x516   :  { %7592 = vmatpush1.bf16.msra.mxu0 %v11690_v52  ;;  %7635 = vmatpush1.bf16.msra.mxu1 %v11818_v53  ;;  %v6225_v52 = vld [vmem:[#allocation15 + $0x6e0] sm:$0xff]  ;;  %v11762_v53 = vcombine.low %v6101_v36, %v6105_v39  ;;  %v5570_v36 = vrot.slane %v5565_v25, %v13997_v61  ;;  %v5578_v39 = vrot.slane %v5565_v25, %v14061_v27 }
 0x517   :  { %7593 = vmatprep.subr.bf16.mxu0 %v11683_v56  ;;  %7636 = vmatprep.subr.bf16.mxu1 %v11811_v34  ;;  %v11890_v56 = vcombine.low %v6229_v40, %v6233_v41  ;;  %v11755_v34 = vcombine.high %v6093_v48, %v6097_v10  ;;  %v11883_v55 = vcombine.high %v6221_v51, %v6225_v52 }
 0x518   :  { %v11882_v17 = vcombine.low %v6221_v51, %v6225_v52 }
 0x51a   :  { %7594 = vmatpush1.bf16.msra.mxu0 %v11682_v62  ;;  %7637 = vmatpush1.bf16.msra.mxu1 %v11810_v0  ;;  %v6089_v62 = vld [vmem:[#allocation15 + $0x2a0] sm:$0xff] }
 0x51b   :  { %7595 = vmatprep.subr.bf16.mxu0 %v11675_v37  ;;  %7638 = vmatprep.subr.bf16.mxu1 %v11803_v2  ;;  %v6213_v0 = vld [vmem:[#allocation15 + $0x680] sm:$0xff]  ;;  %v11747_v37 = vcombine.high %v6085_v60, %v6089_v62  ;;  %v11746_v21 = vcombine.low %v6085_v60, %v6089_v62 }
 0x51c   :  { %v6217_v2 = vld [vmem:[#allocation15 + $0x6a0] sm:$0xff] }
 0x51d   :  { %v11874_v3 = vcombine.low %v6213_v0, %v6217_v2  ;;  %v11875_v5 = vcombine.high %v6213_v0, %v6217_v2  ;;  %v6054_v2 = vld [vmem:[#allocation15 + $0x188] sm:$0xff] }
 0x51e   :  { %7596 = vmatpush1.bf16.msra.mxu0 %v11674_v63  ;;  %7639 = vmatpush1.bf16.msra.mxu1 %v11802_v7  ;;  %v6081_v63 = vld [vmem:[#allocation15 + $0x260] sm:$0xff] }
 0x51f   :  { %7597 = vmatprep.subr.bf16.mxu0 %v11667_v8  ;;  %7640 = vmatprep.subr.bf16.mxu1 %v11795_v47  ;;  %v6205_v7 = vld [vmem:[#allocation15 + $0x640] sm:$0xff]  ;;  %v11739_v8 = vcombine.high %v6077_v19, %v6081_v63  ;;  %v11738_v9 = vcombine.low %v6077_v19, %v6081_v63  ;;  %v6182_v19 = vld [vmem:[#allocation15 + $0x588] sm:$0xff] }
 0x520   :  { %v6209_v47 = vld [vmem:[#allocation15 + $0x660] sm:$0xff]  ;;  %v6186_v63 = vld [vmem:[#allocation15 + $0x5a8] sm:$0xff] }
 0x521   :  { %v11866_v11 = vcombine.low %v6205_v7, %v6209_v47  ;;  %v11867_v24 = vcombine.high %v6205_v7, %v6209_v47 }
 0x522   :  { %7598 = vmatpush1.bf16.msra.mxu0 %v11666_v54  ;;  %7641 = vmatpush1.bf16.msra.mxu1 %v11794_v13  ;;  %v6073_v54 = vld [vmem:[#allocation15 + $0x220] sm:$0xff] }
 0x523   :  { %7599 = vmatprep.subr.bf16.mxu0 %v11787_v14  ;;  %7642 = vmatprep.subr.bf16.mxu1 %v11915_v15  ;;  %v6197_v13 = vld [vmem:[#allocation15 + $0x600] sm:$0xff]  ;;  %v11731_v14 = vcombine.high %v6069_v12, %v6073_v54  ;;  %v11730_v57 = vcombine.low %v6069_v12, %v6073_v54  ;;  %v11845_v12 = vcombine.high %v6182_v19, %v6186_v63  ;;  %v6050_v54 = vld [vmem:[#allocation15 + $0x168] sm:$0xff] }
 0x524   :  { %v6201_v15 = vld [vmem:[#allocation15 + $0x620] sm:$0xff] }
 0x525   :  { %v11858_v18 = vcombine.low %v6197_v13, %v6201_v15  ;;  %v11859_v20 = vcombine.high %v6197_v13, %v6201_v15  ;;  %v6174_v13 = vld [vmem:[#allocation15 + $0x548] sm:$0xff] }
 0x526   :  { %7600 = vmatpush2.bf16.msra.mxu0 %v11786_v49  ;;  %7643 = vmatpush2.bf16.msra.mxu1 %v11914_v28  ;;  %v6066_v49 = vld [vmem:[#allocation15 + $0x1e8] sm:$0xff] }
 0x527   :  { %7601 = vmatprep.subr.bf16.mxu0 %v11779_v29  ;;  %7644 = vmatprep.subr.bf16.mxu1 %v11907_v30  ;;  %v6190_v28 = vld [vmem:[#allocation15 + $0x5c8] sm:$0xff]  ;;  %v11725_v29 = vcombine.high %v6062_v22, %v6066_v49  ;;  %v11724_v1 = vcombine.low %v6062_v22, %v6066_v49 }
 0x528   :  { %v6194_v30 = vld [vmem:[#allocation15 + $0x5e8] sm:$0xff] }
 0x529   :  { %v11852_v31 = vcombine.low %v6190_v28, %v6194_v30  ;;  %v11853_v26 = vcombine.high %v6190_v28, %v6194_v30  ;;  %v6038_v22 = vld [vmem:[#allocation15 + $0x108] sm:$0xff] }
 0x52a   :  { %7602 = vmatpush2.bf16.msra.mxu0 %v11778_v58  ;;  %7645 = vmatpush2.bf16.msra.mxu1 %v11906_v16  ;;  %v6042_v49 = vld [vmem:[#allocation15 + $0x128] sm:$0xff] }
 0x52b   :  { %7603 = vmatprep.subr.bf16.mxu0 %v11771_v35  ;;  %7646 = vmatprep.subr.bf16.mxu1 %v11899_v44  ;;  %v5574_v35 = vrot.slane %v5565_v25, %v14025_v33  ;;  %v5582_v44 = vrot.slane %v5565_v25, %v14037_v6  ;;  %v6166_v28 = vld [vmem:[#allocation15 + $0x508] sm:$0xff] }
 0x52c   :  { %v6030_v25 = vld [vmem:[#allocation15 + $0xc8] sm:$0xff] }
 0x52e   :  { %7604 = vmatpush2.bf16.msra.mxu0 %v11770_v42  ;;  %7647 = vmatpush2.bf16.msra.mxu1 %v11898_v43 }
 0x52f   :  { %7605 = vmatprep.subr.bf16.mxu0 %v11763_v45  ;;  %7648 = vmatprep.subr.bf16.mxu1 %v11891_v46 }
 0x532   :  { %7606 = vmatpush2.bf16.msra.mxu0 %v11762_v53  ;;  %7649 = vmatpush2.bf16.msra.mxu1 %v11890_v56 }
 0x533   :  { %7607 = vmatprep.subr.bf16.mxu0 %v11755_v34  ;;  %7650 = vmatprep.subr.bf16.mxu1 %v11883_v55 }
 0x536   :  { %7608 = vmatpush2.bf16.msra.mxu0 %v11754_v59  ;;  %7651 = vmatpush2.bf16.msra.mxu1 %v11882_v17 }
 0x537   :  { %7609 = vmatprep.subr.bf16.mxu0 %v11747_v37  ;;  %7652 = vmatprep.subr.bf16.mxu1 %v11875_v5  ;;  %v6058_v5 = vld [vmem:[#allocation15 + $0x1a8] sm:$0xff] }
 0x538   :  { %v11716_v15 = vcombine.low %v6054_v2, %v6058_v5 }
 0x53a   :  { %7610 = vmatpush2.bf16.msra.mxu0 %v11746_v21  ;;  %7653 = vmatpush2.bf16.msra.mxu1 %v11874_v3 }
 0x53b   :  { %7611 = vmatprep.subr.bf16.mxu0 %v11739_v8  ;;  %7654 = vmatprep.subr.bf16.mxu1 %v11867_v24  ;;  %v11717_v24 = vcombine.high %v6054_v2, %v6058_v5  ;;  %v6138_v2 = vld [vmem:[#allocation15 + $0x428] sm:$0xff] }
 0x53e   :  { %7612 = vmatpush2.bf16.msra.mxu0 %v11738_v9  ;;  %7655 = vmatpush2.bf16.msra.mxu1 %v11866_v11  ;;  %v6046_v11 = vld [vmem:[#allocation15 + $0x148] sm:$0xff] }
 0x53f   :  { %7613 = vmatprep.subr.bf16.mxu0 %v11731_v14  ;;  %7656 = vmatprep.subr.bf16.mxu1 %v11859_v20  ;;  %v6178_v14 = vld [vmem:[#allocation15 + $0x568] sm:$0xff]  ;;  %v11708_v30 = vcombine.low %v6046_v11, %v6050_v54 }
 0x540   :  { %v11837_v20 = vcombine.high %v6174_v13, %v6178_v14 }
 0x542   :  { %7614 = vmatpush2.bf16.msra.mxu0 %v11730_v57  ;;  %7657 = vmatpush2.bf16.msra.mxu1 %v11858_v18  ;;  %v11844_v57 = vcombine.low %v6182_v19, %v6186_v63  ;;  %v11709_v18 = vcombine.high %v6046_v11, %v6050_v54  ;;  %v6126_v63 = vld [vmem:[#allocation15 + $0x3c8] sm:$0xff] }
 0x543   :  { %7669 = vmatprep.subr.bf16.mxu0 %v11725_v29  ;;  %7712 = vmatprep.subr.bf16.mxu1 %v11853_v26  ;;  %v6170_v29 = vld [vmem:[#allocation15 + $0x528] sm:$0xff]  ;;  %v11836_v26 = vcombine.low %v6174_v13, %v6178_v14 }
 0x544   :  { %v6130_v11 = vld [vmem:[#allocation15 + $0x3e8] sm:$0xff] }
 0x545   :  { %v11789_v14 = vcombine.high %v6126_v63, %v6130_v11 }
 0x5c5   :  { %v5941_v58 = vpop.f32.mrf.mxu0  ;;  %v5984_v16 = vpop.f32.mrf.mxu1 }
 0x5c6   :  { %v5942_v51 = vadd.f32 %v5941_v58, %v5570_v36  ;;  %v5985_v52 = vadd.f32 %v5984_v16, %v5578_v39  ;;  %v6034_v58 = vld [vmem:[#allocation15 + $0xe8] sm:$0xff] }
 0x5c7   :  { %v5943_v40 = vpop.f32.mrf.mxu0  ;;  %v5986_v41 = vpop.f32.mrf.mxu1  ;;  %v6158_v16 = vld [vmem:[#allocation15 + $0x4c8] sm:$0xff] }
 0x5c8   :  { %v5944_v45 = vadd.f32 %v5943_v40, %v5574_v35  ;;  %v5987_v46 = vadd.f32 %v5986_v41, %v5582_v44  ;;  %v5993_v21 = vmax.f32 %v5942_v51, 0.0  ;;  %v5995_v3 = vmax.f32 %v5985_v52, 0.0  ;;  %v6022_v41 = vld [vmem:[#allocation15 + $0x88] sm:$0xff] }
 0x5c9   :  { %v5945_v42 = vpop.f32.mrf.mxu0  ;;  %v5988_v43 = vpop.f32.mrf.mxu1  ;;  %v6014_v52 = vld [vmem:[#allocation15 + $0x48] sm:$0xff] }
 0x5ca   :  { %v5946_v48 = vadd.f32 %v5945_v42, %v5570_v36  ;;  %v5989_v10 = vadd.f32 %v5988_v43, %v5578_v39  ;;  %v5994_v60 = vmax.f32 %v5944_v45, 0.0  ;;  %v5996_v62 = vmax.f32 %v5987_v46, 0.0  ;;  %v6026_v42 = vld [vmem:[#allocation15 + $0xa8] sm:$0xff] }
 0x5cb   :  { %v5947_v53 = vpop.f32.mrf.mxu0  ;;  %v5990_v56 = vpop.f32.mrf.mxu1  ;;  %v11828_v36 = vcombine.low %v6166_v28, %v6170_v29  ;;  %v11693_v39 = vcombine.high %v6030_v25, %v6034_v58  ;;  %v6150_v43 = vld [vmem:[#allocation15 + $0x488] sm:$0xff]  ;;  %v11692_v46 = vcombine.low %v6030_v25, %v6034_v58 }
 0x5cc   :  { %v5948_v34 = vadd.f32 %v5947_v53, %v5574_v35  ;;  %v5991_v55 = vadd.f32 %v5990_v56, %v5582_v44  ;;  %v5997_v59 = vmax.f32 %v5946_v48, 0.0  ;;  %v5999_v17 = vmax.f32 %v5989_v10, 0.0  ;;  %v6162_v35 = vld [vmem:[#allocation15 + $0x4e8] sm:$0xff] }
 0x5cd   :  { %v11700_v44 = vcombine.low %v6038_v22, %v6042_v49  ;;  %v11821_v40 = vcombine.high %v6158_v16, %v6162_v35  ;;  %v6154_v45 = vld [vmem:[#allocation15 + $0x4a8] sm:$0xff]  ;;  %v11820_v48 = vcombine.low %v6158_v16, %v6162_v35  ;;  %v11685_v10 = vcombine.high %v6022_v41, %v6026_v42 }
 0x5ce   :  { %v5998_v0 = vmax.f32 %v5948_v34, 0.0  ;;  %v6000_v37 = vmax.f32 %v5991_v55, 0.0  ;;  %v14131_v47 = vpack.c.bf16 %v5997_v59, %v5993_v21  ;;  %v14133_v9 = vpack.c.bf16 %v5999_v17, %v5995_v3  ;;  %v6018_v53 = vld [vmem:[#allocation15 + $0x68] sm:$0xff] }
 0x5cf   :  { %v11813_v51 = vcombine.high %v6150_v43, %v6154_v45  ;;  %v6142_v56 = vld [vmem:[#allocation15 + $0x448] sm:$0xff]  ;;  %v11684_v55 = vcombine.low %v6022_v41, %v6026_v42  ;;  %v11812_v59 = vcombine.low %v6150_v43, %v6154_v45  ;;  %v11677_v17 = vcombine.high %v6014_v52, %v6018_v53 }
 0x5d0   :  { %v14127_v7 = vpack.c.bf16 %v5998_v0, %v5994_v60  ;;  %v14129_v8 = vpack.c.bf16 %v6000_v37, %v5996_v62  ;;  %v6146_v34 = vld [vmem:[#allocation15 + $0x468] sm:$0xff]  ;;  %v11676_v21 = vcombine.low %v6014_v52, %v6018_v53 }
 0x5d1   :  { %v11805_v60 = vcombine.high %v6142_v56, %v6146_v34  ;;  %v6006_v62 = vld [vmem:[#allocation15 + $0x8] sm:$0xff]  ;;  %v11804_v3 = vcombine.low %v6142_v56, %v6146_v34 }
 0x5d2   :  { %7615 = vmatprep.mubr.bf16.mxu0 %v14127_v7  ;;  %7658 = vmatprep.mubr.bf16.mxu1 %v14129_v8  ;;  %v6010_v0 = vld [vmem:[#allocation15 + $0x28] sm:$0xff] }
 0x5d3   :  { %7616 = vmatmul.mubr.bf16.vlgmr.msra.gmra.mxu0 %v14131_v47  ;;  %7659 = vmatmul.mubr.bf16.vlgmr.msra.gmra.mxu1 %v14133_v9  ;;  %v6134_v37 = vld [vmem:[#allocation15 + $0x408] sm:$0xff]  ;;  %v11669_v5 = vcombine.high %v6006_v62, %v6010_v0  ;;  %v11668_v54 = vcombine.low %v6006_v62, %v6010_v0 }
 0x5d4   :  { %7670 = vmatpush1.bf16.msra.mxu0 %v11724_v1  ;;  %7713 = vmatpush1.bf16.msra.mxu1 %v11852_v31  ;;  %v11701_v1 = vcombine.high %v6038_v22, %v6042_v49  ;;  %v11829_v31 = vcombine.high %v6166_v28, %v6170_v29  ;;  %v11797_v19 = vcombine.high %v6134_v37, %v6138_v2  ;;  %v6250_v22 = vld [vmem:[#allocation15 + $0x7a8] sm:$0xff] }
 0x5d5   :  { %7701 = vmatprep.mubr.bf16.mxu0 %v14127_v7  ;;  %7744 = vmatprep.mubr.bf16.mxu1 %v14129_v8  ;;  %v11796_v13 = vcombine.low %v6134_v37, %v6138_v2  ;;  %v11788_v49 = vcombine.low %v6126_v63, %v6130_v11  ;;  %v6242_v25 = vld [vmem:[#allocation15 + $0x768] sm:$0xff] }
 0x5d6   :  { %7671 = vmatprep.subr.bf16.mxu0 %v11717_v24  ;;  %7714 = vmatprep.subr.bf16.mxu1 %v11845_v12  ;;  %v6254_v24 = vld [vmem:[#allocation15 + $0x7c8] sm:$0xff] }
 0x5d7   :  { %v6258_v12 = vld [vmem:[#allocation15 + $0x7e8] sm:$0xff] }
 0x5d8   :  { %7672 = vmatpush1.bf16.msra.mxu0 %v11716_v15  ;;  %7715 = vmatpush1.bf16.msra.mxu1 %v11844_v57  ;;  %v11917_v15 = vcombine.high %v6254_v24, %v6258_v12  ;;  %v6118_v57 = vld [vmem:[#allocation15 + $0x388] sm:$0xff]  ;;  %v11916_v28 = vcombine.low %v6254_v24, %v6258_v12 }
 0x5d9   :  { %7673 = vmatprep.subr.bf16.mxu0 %v11709_v18  ;;  %7716 = vmatprep.subr.bf16.mxu1 %v11837_v20  ;;  %v6122_v18 = vld [vmem:[#allocation15 + $0x3a8] sm:$0xff] }
 0x5da   :  { %v6246_v20 = vld [vmem:[#allocation15 + $0x788] sm:$0xff]  ;;  %v11781_v29 = vcombine.high %v6118_v57, %v6122_v18  ;;  %v11780_v58 = vcombine.low %v6118_v57, %v6122_v18 }
 0x5db   :  { %v11908_v16 = vcombine.low %v6246_v20, %v6250_v22  ;;  %v6234_v41 = vld [vmem:[#allocation15 + $0x728] sm:$0xff] }
 0x5dc   :  { %7674 = vmatpush1.bf16.msra.mxu0 %v11708_v30  ;;  %7717 = vmatpush1.bf16.msra.mxu1 %v11836_v26  ;;  %v11909_v30 = vcombine.high %v6246_v20, %v6250_v22  ;;  %v6110_v26 = vld [vmem:[#allocation15 + $0x348] sm:$0xff] }
 0x5dd   :  { %7675 = vmatprep.subr.bf16.mxu0 %v11701_v1  ;;  %7718 = vmatprep.subr.bf16.mxu1 %v11829_v31  ;;  %v6114_v1 = vld [vmem:[#allocation15 + $0x368] sm:$0xff] }
 0x5de   :  { %v6238_v31 = vld [vmem:[#allocation15 + $0x748] sm:$0xff]  ;;  %v11773_v35 = vcombine.high %v6110_v26, %v6114_v1  ;;  %v11772_v42 = vcombine.low %v6110_v26, %v6114_v1  ;;  %v6195_v26 = vld [vmem:[#allocation15 + $0x5f0] sm:$0xff] }
 0x5df   :  { %v11900_v43 = vcombine.low %v6238_v31, %v6242_v25  ;;  %v6226_v52 = vld [vmem:[#allocation15 + $0x6e8] sm:$0xff] }
 0x5e0   :  { %7676 = vmatpush1.bf16.msra.mxu0 %v11700_v44  ;;  %7719 = vmatpush1.bf16.msra.mxu1 %v11828_v36  ;;  %v11901_v44 = vcombine.high %v6238_v31, %v6242_v25  ;;  %v6102_v36 = vld [vmem:[#allocation15 + $0x308] sm:$0xff] }
 0x5e1   :  { %7677 = vmatprep.subr.bf16.mxu0 %v11693_v39  ;;  %7720 = vmatprep.subr.bf16.mxu1 %v11821_v40  ;;  %v6106_v39 = vld [vmem:[#allocation15 + $0x328] sm:$0xff] }
 0x5e2   :  { %v6230_v40 = vld [vmem:[#allocation15 + $0x708] sm:$0xff]  ;;  %v11765_v45 = vcombine.high %v6102_v36, %v6106_v39  ;;  %v11764_v53 = vcombine.low %v6102_v36, %v6106_v39  ;;  %v6187_v36 = vld [vmem:[#allocation15 + $0x5b0] sm:$0xff] }
 0x5e3   :  { %v11892_v56 = vcombine.low %v6230_v40, %v6234_v41  ;;  %v6218_v62 = vld [vmem:[#allocation15 + $0x6a8] sm:$0xff] }
 0x5e4   :  { %7678 = vmatpush1.bf16.msra.mxu0 %v11692_v46  ;;  %7721 = vmatpush1.bf16.msra.mxu1 %v11820_v48  ;;  %v11893_v46 = vcombine.high %v6230_v40, %v6234_v41  ;;  %v6094_v48 = vld [vmem:[#allocation15 + $0x2c8] sm:$0xff] }
 0x5e5   :  { %7679 = vmatprep.subr.bf16.mxu0 %v11685_v10  ;;  %7722 = vmatprep.subr.bf16.mxu1 %v11813_v51  ;;  %v6098_v10 = vld [vmem:[#allocation15 + $0x2e8] sm:$0xff] }
 0x5e6   :  { %v6222_v51 = vld [vmem:[#allocation15 + $0x6c8] sm:$0xff]  ;;  %v11757_v34 = vcombine.high %v6094_v48, %v6098_v10  ;;  %v11756_v0 = vcombine.low %v6094_v48, %v6098_v10  ;;  %v6179_v48 = vld [vmem:[#allocation15 + $0x570] sm:$0xff] }
 0x5e7   :  { %v11884_v37 = vcombine.low %v6222_v51, %v6226_v52  ;;  %v6210_v63 = vld [vmem:[#allocation15 + $0x668] sm:$0xff] }
 0x5e8   :  { %7680 = vmatpush1.bf16.msra.mxu0 %v11684_v55  ;;  %7723 = vmatpush1.bf16.msra.mxu1 %v11812_v59  ;;  %v11885_v55 = vcombine.high %v6222_v51, %v6226_v52  ;;  %v6086_v59 = vld [vmem:[#allocation15 + $0x288] sm:$0xff] }
 0x5e9   :  { %7681 = vmatprep.subr.bf16.mxu0 %v11677_v17  ;;  %7724 = vmatprep.subr.bf16.mxu1 %v11805_v60  ;;  %v6090_v17 = vld [vmem:[#allocation15 + $0x2a8] sm:$0xff] }
 0x5ea   :  { %v6214_v60 = vld [vmem:[#allocation15 + $0x688] sm:$0xff]  ;;  %v11749_v2 = vcombine.high %v6086_v59, %v6090_v17  ;;  %v11748_v11 = vcombine.low %v6086_v59, %v6090_v17  ;;  %v6171_v59 = vld [vmem:[#allocation15 + $0x530] sm:$0xff] }
 0x5eb   :  { %v11876_v24 = vcombine.low %v6214_v60, %v6218_v62  ;;  %v6202_v57 = vld [vmem:[#allocation15 + $0x628] sm:$0xff] }
 0x5ec   :  { %7682 = vmatpush1.bf16.msra.mxu0 %v11676_v21  ;;  %7725 = vmatpush1.bf16.msra.mxu1 %v11804_v3  ;;  %v11877_v21 = vcombine.high %v6214_v60, %v6218_v62  ;;  %v6078_v3 = vld [vmem:[#allocation15 + $0x248] sm:$0xff] }
 0x5ed   :  { %7683 = vmatprep.subr.bf16.mxu0 %v11669_v5  ;;  %7726 = vmatprep.subr.bf16.mxu1 %v11797_v19  ;;  %v6082_v5 = vld [vmem:[#allocation15 + $0x268] sm:$0xff] }
 0x5ee   :  { %v6206_v19 = vld [vmem:[#allocation15 + $0x648] sm:$0xff]  ;;  %v11741_v12 = vcombine.high %v6078_v3, %v6082_v5  ;;  %v11740_v18 = vcombine.low %v6078_v3, %v6082_v5  ;;  %v6163_v3 = vld [vmem:[#allocation15 + $0x4f0] sm:$0xff] }
 0x5ef   :  { %v11868_v20 = vcombine.low %v6206_v19, %v6210_v63 }
 0x5f0   :  { %7684 = vmatpush1.bf16.msra.mxu0 %v11668_v54  ;;  %7727 = vmatpush1.bf16.msra.mxu1 %v11796_v13  ;;  %v11869_v54 = vcombine.high %v6206_v19, %v6210_v63  ;;  %v6070_v13 = vld [vmem:[#allocation15 + $0x208] sm:$0xff] }
 0x5f1   :  { %7685 = vmatprep.subr.bf16.mxu0 %v11789_v14  ;;  %7728 = vmatprep.subr.bf16.mxu1 %v11917_v15  ;;  %v6074_v14 = vld [vmem:[#allocation15 + $0x228] sm:$0xff] }
 0x5f2   :  { %v6198_v15 = vld [vmem:[#allocation15 + $0x608] sm:$0xff]  ;;  %v11733_v22 = vcombine.high %v6070_v13, %v6074_v14  ;;  %v11732_v1 = vcombine.low %v6070_v13, %v6074_v14  ;;  %v6155_v13 = vld [vmem:[#allocation15 + $0x4b0] sm:$0xff] }
 0x5f3   :  { %v11860_v31 = vcombine.low %v6198_v15, %v6202_v57 }
 0x5f4   :  { %7686 = vmatpush2.bf16.msra.mxu0 %v11788_v49  ;;  %7729 = vmatpush2.bf16.msra.mxu1 %v11916_v28  ;;  %v11861_v49 = vcombine.high %v6198_v15, %v6202_v57  ;;  %v6063_v28 = vld [vmem:[#allocation15 + $0x1d0] sm:$0xff] }
 0x5f5   :  { %7687 = vmatprep.subr.bf16.mxu0 %v11781_v29  ;;  %7730 = vmatprep.subr.bf16.mxu1 %v11909_v30  ;;  %v6067_v29 = vld [vmem:[#allocation15 + $0x1f0] sm:$0xff] }
 0x5f6   :  { %v6191_v30 = vld [vmem:[#allocation15 + $0x5d0] sm:$0xff]  ;;  %v11727_v25 = vcombine.high %v6063_v28, %v6067_v29  ;;  %v11726_v39 = vcombine.low %v6063_v28, %v6067_v29 }
 0x5f7   :  { %v11854_v40 = vcombine.low %v6191_v30, %v6195_v26  ;;  %v6147_v28 = vld [vmem:[#allocation15 + $0x470] sm:$0xff] }
 0x5f8   :  { %7688 = vmatpush2.bf16.msra.mxu0 %v11780_v58  ;;  %7731 = vmatpush2.bf16.msra.mxu1 %v11908_v16  ;;  %v11855_v58 = vcombine.high %v6191_v30, %v6195_v26  ;;  %v6055_v16 = vld [vmem:[#allocation15 + $0x190] sm:$0xff] }
 0x5f9   :  { %7689 = vmatprep.subr.bf16.mxu0 %v11773_v35  ;;  %7732 = vmatprep.subr.bf16.mxu1 %v11901_v44  ;;  %v6059_v35 = vld [vmem:[#allocation15 + $0x1b0] sm:$0xff] }
 0x5fa   :  { %v6183_v44 = vld [vmem:[#allocation15 + $0x590] sm:$0xff]  ;;  %v11719_v41 = vcombine.high %v6055_v16, %v6059_v35  ;;  %v11718_v10 = vcombine.low %v6055_v16, %v6059_v35 }
 0x5fb   :  { %v11846_v51 = vcombine.low %v6183_v44, %v6187_v36  ;;  %v6139_v16 = vld [vmem:[#allocation15 + $0x430] sm:$0xff] }
 0x5fc   :  { %7690 = vmatpush2.bf16.msra.mxu0 %v11772_v42  ;;  %7733 = vmatpush2.bf16.msra.mxu1 %v11900_v43  ;;  %v11847_v42 = vcombine.high %v6183_v44, %v6187_v36  ;;  %v6047_v43 = vld [vmem:[#allocation15 + $0x150] sm:$0xff] }
 0x5fd   :  { %7691 = vmatprep.subr.bf16.mxu0 %v11765_v45  ;;  %7734 = vmatprep.subr.bf16.mxu1 %v11893_v46  ;;  %v6051_v45 = vld [vmem:[#allocation15 + $0x170] sm:$0xff] }
 0x5fe   :  { %v6175_v46 = vld [vmem:[#allocation15 + $0x550] sm:$0xff]  ;;  %v11711_v52 = vcombine.high %v6047_v43, %v6051_v45  ;;  %v11710_v17 = vcombine.low %v6047_v43, %v6051_v45 }
 0x5ff   :  { %v11838_v60 = vcombine.low %v6175_v46, %v6179_v48  ;;  %v6259_v43 = vld [vmem:[#allocation15 + $0x7f0] sm:$0xff] }
 0x600   :  { %7692 = vmatpush2.bf16.msra.mxu0 %v11764_v53  ;;  %7735 = vmatpush2.bf16.msra.mxu1 %v11892_v56  ;;  %v11839_v53 = vcombine.high %v6175_v46, %v6179_v48  ;;  %v6039_v56 = vld [vmem:[#allocation15 + $0x110] sm:$0xff] }
 0x601   :  { %7693 = vmatprep.subr.bf16.mxu0 %v11757_v34  ;;  %7736 = vmatprep.subr.bf16.mxu1 %v11885_v55  ;;  %v6043_v34 = vld [vmem:[#allocation15 + $0x130] sm:$0xff] }
 0x602   :  { %v6167_v55 = vld [vmem:[#allocation15 + $0x510] sm:$0xff]  ;;  %v11703_v62 = vcombine.high %v6039_v56, %v6043_v34  ;;  %v11702_v5 = vcombine.low %v6039_v56, %v6043_v34 }
 0x603   :  { %v11830_v19 = vcombine.low %v6167_v55, %v6171_v59  ;;  %v6251_v56 = vld [vmem:[#allocation15 + $0x7b0] sm:$0xff] }
 0x604   :  { %7694 = vmatpush2.bf16.msra.mxu0 %v11756_v0  ;;  %7737 = vmatpush2.bf16.msra.mxu1 %v11884_v37  ;;  %v11831_v0 = vcombine.high %v6167_v55, %v6171_v59  ;;  %v6031_v37 = vld [vmem:[#allocation15 + $0xd0] sm:$0xff] }
 0x605   :  { %7695 = vmatprep.subr.bf16.mxu0 %v11749_v2  ;;  %7738 = vmatprep.subr.bf16.mxu1 %v11877_v21  ;;  %v6035_v2 = vld [vmem:[#allocation15 + $0xf0] sm:$0xff] }
 0x606   :  { %v6159_v21 = vld [vmem:[#allocation15 + $0x4d0] sm:$0xff]  ;;  %v11695_v63 = vcombine.high %v6031_v37, %v6035_v2  ;;  %v11694_v14 = vcombine.low %v6031_v37, %v6035_v2 }
 0x607   :  { %v11822_v15 = vcombine.low %v6159_v21, %v6163_v3  ;;  %v6243_v37 = vld [vmem:[#allocation15 + $0x770] sm:$0xff] }
 0x608   :  { %7696 = vmatpush2.bf16.msra.mxu0 %v11748_v11  ;;  %7739 = vmatpush2.bf16.msra.mxu1 %v11876_v24  ;;  %v11823_v11 = vcombine.high %v6159_v21, %v6163_v3  ;;  %v6023_v24 = vld [vmem:[#allocation15 + $0x90] sm:$0xff] }
 0x609   :  { %7697 = vmatprep.subr.bf16.mxu0 %v11741_v12  ;;  %7740 = vmatprep.subr.bf16.mxu1 %v11869_v54  ;;  %v6027_v12 = vld [vmem:[#allocation15 + $0xb0] sm:$0xff] }
 0x60a   :  { %v6151_v54 = vld [vmem:[#allocation15 + $0x490] sm:$0xff]  ;;  %v11687_v57 = vcombine.high %v6023_v24, %v6027_v12  ;;  %v11686_v29 = vcombine.low %v6023_v24, %v6027_v12 }
 0x60b   :  { %v11814_v30 = vcombine.low %v6151_v54, %v6155_v13  ;;  %v6235_v24 = vld [vmem:[#allocation15 + $0x730] sm:$0xff] }
 0x60c   :  { %7698 = vmatpush2.bf16.msra.mxu0 %v11740_v18  ;;  %7741 = vmatpush2.bf16.msra.mxu1 %v11868_v20  ;;  %v11815_v18 = vcombine.high %v6151_v54, %v6155_v13  ;;  %v6015_v20 = vld [vmem:[#allocation15 + $0x50] sm:$0xff] }
 0x60d   :  { %7699 = vmatprep.subr.bf16.mxu0 %v11733_v22  ;;  %7742 = vmatprep.subr.bf16.mxu1 %v11861_v49  ;;  %v6019_v22 = vld [vmem:[#allocation15 + $0x70] sm:$0xff] }
 0x60e   :  { %v6143_v49 = vld [vmem:[#allocation15 + $0x450] sm:$0xff]  ;;  %v11679_v26 = vcombine.high %v6015_v20, %v6019_v22  ;;  %v11678_v35 = vcombine.low %v6015_v20, %v6019_v22 }
 0x60f   :  { %v11806_v44 = vcombine.low %v6143_v49, %v6147_v28  ;;  %v6227_v20 = vld [vmem:[#allocation15 + $0x6f0] sm:$0xff] }
 0x610   :  { %7700 = vmatpush2.bf16.msra.mxu0 %v11732_v1  ;;  %7743 = vmatpush2.bf16.msra.mxu1 %v11860_v31  ;;  %v11807_v1 = vcombine.high %v6143_v49, %v6147_v28  ;;  %v6007_v31 = vld [vmem:[#allocation15 + $0x10] sm:$0xff] }
 0x611   :  { %7755 = vmatprep.subr.bf16.mxu0 %v11727_v25  ;;  %7798 = vmatprep.subr.bf16.mxu1 %v11855_v58  ;;  %v6011_v25 = vld [vmem:[#allocation15 + $0x30] sm:$0xff] }
 0x612   :  { %v6135_v58 = vld [vmem:[#allocation15 + $0x410] sm:$0xff]  ;;  %v11671_v36 = vcombine.high %v6007_v31, %v6011_v25  ;;  %v11670_v45 = vcombine.low %v6007_v31, %v6011_v25 }
 0x613   :  { %7702 = vmatmul.mubr.bf16.vlgmr.msra.gmra.mxu0 %v14131_v47  ;;  %7745 = vmatmul.mubr.bf16.vlgmr.msra.gmra.mxu1 %v14133_v9  ;;  %v11798_v46 = vcombine.low %v6135_v58, %v6139_v16  ;;  %v6219_v31 = vld [vmem:[#allocation15 + $0x6b0] sm:$0xff] }
 0x614   :  { %7756 = vmatpush1.bf16.msra.mxu0 %v11726_v39  ;;  %7787 = vmatprep.mubr.bf16.mxu0 %v14127_v7  ;;  %v11799_v39 = vcombine.high %v6135_v58, %v6139_v16 }
 0x615   :  { %7799 = vmatpush1.bf16.msra.mxu1 %v11854_v40  ;;  %7830 = vmatprep.mubr.bf16.mxu1 %v14129_v8  ;;  %v6127_v40 = vld [vmem:[#allocation15 + $0x3d0] sm:$0xff] }
 0x616   :  { %7757 = vmatprep.subr.bf16.mxu0 %v11719_v41  ;;  %7800 = vmatprep.subr.bf16.mxu1 %v11847_v42  ;;  %v6131_v41 = vld [vmem:[#allocation15 + $0x3f0] sm:$0xff] }
 0x617   :  { %v6255_v42 = vld [vmem:[#allocation15 + $0x7d0] sm:$0xff]  ;;  %v11791_v48 = vcombine.high %v6127_v40, %v6131_v41  ;;  %v11790_v34 = vcombine.low %v6127_v40, %v6131_v41 }
 0x618   :  { %7758 = vmatpush1.bf16.msra.mxu0 %v11718_v10  ;;  %v11919_v10 = vcombine.high %v6255_v42, %v6259_v43  ;;  %v11918_v55 = vcombine.low %v6255_v42, %v6259_v43  ;;  %v6211_v40 = vld [vmem:[#allocation15 + $0x670] sm:$0xff] }
 0x619   :  { %7801 = vmatpush1.bf16.msra.mxu1 %v11846_v51  ;;  %7759 = vmatprep.subr.bf16.mxu0 %v11711_v52  ;;  %v6119_v51 = vld [vmem:[#allocation15 + $0x390] sm:$0xff] }
 0x61a   :  { %7802 = vmatprep.subr.bf16.mxu1 %v11839_v53  ;;  %v6123_v52 = vld [vmem:[#allocation15 + $0x3b0] sm:$0xff] }
 0x61b   :  { %v6247_v53 = vld [vmem:[#allocation15 + $0x790] sm:$0xff]  ;;  %v11783_v59 = vcombine.high %v6119_v51, %v6123_v52  ;;  %v11782_v2 = vcombine.low %v6119_v51, %v6123_v52 }
 0x61c   :  { %7760 = vmatpush1.bf16.msra.mxu0 %v11710_v17  ;;  %v11911_v17 = vcombine.high %v6247_v53, %v6251_v56  ;;  %v11910_v21 = vcombine.low %v6247_v53, %v6251_v56  ;;  %v6203_v51 = vld [vmem:[#allocation15 + $0x630] sm:$0xff] }
 0x61d   :  { %7803 = vmatpush1.bf16.msra.mxu1 %v11838_v60  ;;  %7761 = vmatprep.subr.bf16.mxu0 %v11703_v62  ;;  %v6111_v60 = vld [vmem:[#allocation15 + $0x350] sm:$0xff] }
 0x61e   :  { %7804 = vmatprep.subr.bf16.mxu1 %v11831_v0  ;;  %v6115_v62 = vld [vmem:[#allocation15 + $0x370] sm:$0xff] }
 0x61f   :  { %v6239_v0 = vld [vmem:[#allocation15 + $0x750] sm:$0xff]  ;;  %v11775_v3 = vcombine.high %v6111_v60, %v6115_v62  ;;  %v11774_v12 = vcombine.low %v6111_v60, %v6115_v62  ;;  %v6196_v60 = vld [vmem:[#allocation15 + $0x5f8] sm:$0xff] }
 0x620   :  { %7762 = vmatpush1.bf16.msra.mxu0 %v11702_v5  ;;  %v11903_v5 = vcombine.high %v6239_v0, %v6243_v37  ;;  %v11902_v54 = vcombine.low %v6239_v0, %v6243_v37 }
 0x621   :  { %7805 = vmatpush1.bf16.msra.mxu1 %v11830_v19  ;;  %7763 = vmatprep.subr.bf16.mxu0 %v11695_v63  ;;  %v6103_v19 = vld [vmem:[#allocation15 + $0x310] sm:$0xff] }
 0x622   :  { %7806 = vmatprep.subr.bf16.mxu1 %v11823_v11  ;;  %v6107_v63 = vld [vmem:[#allocation15 + $0x330] sm:$0xff] }
 0x623   :  { %v6231_v11 = vld [vmem:[#allocation15 + $0x710] sm:$0xff]  ;;  %v11767_v13 = vcombine.high %v6103_v19, %v6107_v63  ;;  %v11766_v22 = vcombine.low %v6103_v19, %v6107_v63  ;;  %v6184_v19 = vld [vmem:[#allocation15 + $0x598] sm:$0xff] }
 0x624   :  { %7764 = vmatpush1.bf16.msra.mxu0 %v11694_v14  ;;  %v11895_v14 = vcombine.high %v6231_v11, %v6235_v24  ;;  %v11894_v49 = vcombine.low %v6231_v11, %v6235_v24  ;;  %v6188_v63 = vld [vmem:[#allocation15 + $0x5b8] sm:$0xff] }
 0x625   :  { %7807 = vmatpush1.bf16.msra.mxu1 %v11822_v15  ;;  %7765 = vmatprep.subr.bf16.mxu0 %v11687_v57  ;;  %v6095_v15 = vld [vmem:[#allocation15 + $0x2d0] sm:$0xff] }
 0x626   :  { %7808 = vmatprep.subr.bf16.mxu1 %v11815_v18  ;;  %v6099_v57 = vld [vmem:[#allocation15 + $0x2f0] sm:$0xff] }
 0x627   :  { %v6223_v18 = vld [vmem:[#allocation15 + $0x6d0] sm:$0xff]  ;;  %v11759_v28 = vcombine.high %v6095_v15, %v6099_v57  ;;  %v11758_v25 = vcombine.low %v6095_v15, %v6099_v57  ;;  %v6180_v15 = vld [vmem:[#allocation15 + $0x578] sm:$0xff] }
 0x628   :  { %7766 = vmatpush1.bf16.msra.mxu0 %v11686_v29  ;;  %v11887_v29 = vcombine.high %v6223_v18, %v6227_v20  ;;  %v11886_v58 = vcombine.low %v6223_v18, %v6227_v20  ;;  %v11848_v18 = vcombine.low %v6184_v19, %v6188_v63 }
 0x629   :  { %7809 = vmatpush1.bf16.msra.mxu1 %v11814_v30  ;;  %7767 = vmatprep.subr.bf16.mxu0 %v11679_v26  ;;  %v6087_v30 = vld [vmem:[#allocation15 + $0x290] sm:$0xff] }
 0x62a   :  { %7810 = vmatprep.subr.bf16.mxu1 %v11807_v1  ;;  %v6091_v26 = vld [vmem:[#allocation15 + $0x2b0] sm:$0xff] }
 0x62b   :  { %v6215_v1 = vld [vmem:[#allocation15 + $0x690] sm:$0xff]  ;;  %v11751_v16 = vcombine.high %v6087_v30, %v6091_v26  ;;  %v11750_v41 = vcombine.low %v6087_v30, %v6091_v26  ;;  %v6172_v30 = vld [vmem:[#allocation15 + $0x538] sm:$0xff] }
 0x62c   :  { %7768 = vmatpush1.bf16.msra.mxu0 %v11678_v35  ;;  %v11879_v35 = vcombine.high %v6215_v1, %v6219_v31  ;;  %v11878_v42 = vcombine.low %v6215_v1, %v6219_v31 }
 0x62d   :  { %7811 = vmatpush1.bf16.msra.mxu1 %v11806_v44  ;;  %7769 = vmatprep.subr.bf16.mxu0 %v11671_v36  ;;  %v6079_v44 = vld [vmem:[#allocation15 + $0x250] sm:$0xff] }
 0x62e   :  { %7812 = vmatprep.subr.bf16.mxu1 %v11799_v39  ;;  %v6083_v36 = vld [vmem:[#allocation15 + $0x270] sm:$0xff] }
 0x62f   :  { %v6207_v39 = vld [vmem:[#allocation15 + $0x650] sm:$0xff]  ;;  %v11743_v43 = vcombine.high %v6079_v44, %v6083_v36  ;;  %v11742_v52 = vcombine.low %v6079_v44, %v6083_v36 }
 0x630   :  { %7770 = vmatpush1.bf16.msra.mxu0 %v11670_v45  ;;  %v11871_v45 = vcombine.high %v6207_v39, %v6211_v40  ;;  %v11870_v53 = vcombine.low %v6207_v39, %v6211_v40  ;;  %v6024_v40 = vld [vmem:[#allocation15 + $0x98] sm:$0xff] }
 0x631   :  { %7813 = vmatpush1.bf16.msra.mxu1 %v11798_v46  ;;  %7771 = vmatprep.subr.bf16.mxu0 %v11791_v48  ;;  %v6071_v46 = vld [vmem:[#allocation15 + $0x210] sm:$0xff] }
 0x632   :  { %7814 = vmatprep.subr.bf16.mxu1 %v11919_v10  ;;  %v6075_v48 = vld [vmem:[#allocation15 + $0x230] sm:$0xff] }
 0x633   :  { %v6199_v10 = vld [vmem:[#allocation15 + $0x610] sm:$0xff]  ;;  %v11735_v56 = vcombine.high %v6071_v46, %v6075_v48  ;;  %v11734_v62 = vcombine.low %v6071_v46, %v6075_v48 }
 0x634   :  { %7772 = vmatpush2.bf16.msra.mxu0 %v11790_v34  ;;  %v11863_v34 = vcombine.high %v6199_v10, %v6203_v51  ;;  %v11862_v0 = vcombine.low %v6199_v10, %v6203_v51  ;;  %v6016_v51 = vld [vmem:[#allocation15 + $0x58] sm:$0xff] }
 0x635   :  { %7815 = vmatpush2.bf16.msra.mxu1 %v11918_v55  ;;  %7773 = vmatprep.subr.bf16.mxu0 %v11783_v59  ;;  %v6064_v55 = vld [vmem:[#allocation15 + $0x1d8] sm:$0xff] }
 0x636   :  { %7816 = vmatprep.subr.bf16.mxu1 %v11911_v17  ;;  %v6068_v59 = vld [vmem:[#allocation15 + $0x1f8] sm:$0xff] }
 0x637   :  { %v6192_v17 = vld [vmem:[#allocation15 + $0x5d8] sm:$0xff]  ;;  %v11729_v37 = vcombine.high %v6064_v55, %v6068_v59 }
 0x638   :  { %7774 = vmatpush2.bf16.msra.mxu0 %v11782_v2  ;;  %v11857_v2 = vcombine.high %v6192_v17, %v6196_v60  ;;  %v11856_v11 = vcombine.low %v6192_v17, %v6196_v60  ;;  %v6008_v60 = vld [vmem:[#allocation15 + $0x18] sm:$0xff] }
 0x639   :  { %7817 = vmatpush2.bf16.msra.mxu1 %v11910_v21  ;;  %7775 = vmatprep.subr.bf16.mxu0 %v11775_v3  ;;  %v6056_v21 = vld [vmem:[#allocation15 + $0x198] sm:$0xff] }
 0x63a   :  { %7818 = vmatprep.subr.bf16.mxu1 %v11903_v5  ;;  %v6060_v3 = vld [vmem:[#allocation15 + $0x1b8] sm:$0xff]  ;;  %v11728_v5 = vcombine.low %v6064_v55, %v6068_v59 }
 0x63b   :  { %v11721_v24 = vcombine.high %v6056_v21, %v6060_v3  ;;  %v11720_v57 = vcombine.low %v6056_v21, %v6060_v3 }
 0x63c   :  { %7776 = vmatpush2.bf16.msra.mxu0 %v11774_v12  ;;  %v6048_v12 = vld [vmem:[#allocation15 + $0x158] sm:$0xff] }
 0x63d   :  { %7819 = vmatpush2.bf16.msra.mxu1 %v11902_v54  ;;  %7777 = vmatprep.subr.bf16.mxu0 %v11767_v13  ;;  %v6052_v54 = vld [vmem:[#allocation15 + $0x178] sm:$0xff]  ;;  %v11849_v13 = vcombine.high %v6184_v19, %v6188_v63 }
 0x63e   :  { %7820 = vmatprep.subr.bf16.mxu1 %v11895_v14  ;;  %v6176_v14 = vld [vmem:[#allocation15 + $0x558] sm:$0xff]  ;;  %v11713_v20 = vcombine.high %v6048_v12, %v6052_v54  ;;  %v11712_v26 = vcombine.low %v6048_v12, %v6052_v54 }
 0x63f   :  { %v11840_v1 = vcombine.low %v6176_v14, %v6180_v15  ;;  %v6128_v19 = vld [vmem:[#allocation15 + $0x3d8] sm:$0xff] }
 0x640   :  { %7778 = vmatpush2.bf16.msra.mxu0 %v11766_v22  ;;  %v11841_v22 = vcombine.high %v6176_v14, %v6180_v15  ;;  %v6132_v63 = vld [vmem:[#allocation15 + $0x3f8] sm:$0xff] }
 0x641   :  { %7821 = vmatpush2.bf16.msra.mxu1 %v11894_v49  ;;  %7779 = vmatprep.subr.bf16.mxu0 %v11759_v28  ;;  %v6040_v49 = vld [vmem:[#allocation15 + $0x118] sm:$0xff] }
 0x642   :  { %7822 = vmatprep.subr.bf16.mxu1 %v11887_v29  ;;  %v6044_v28 = vld [vmem:[#allocation15 + $0x138] sm:$0xff] }
 0x643   :  { %v6168_v29 = vld [vmem:[#allocation15 + $0x518] sm:$0xff]  ;;  %v11705_v31 = vcombine.high %v6040_v49, %v6044_v28 }
 0x644   :  { %7780 = vmatpush2.bf16.msra.mxu0 %v11758_v25  ;;  %v6032_v25 = vld [vmem:[#allocation15 + $0xd8] sm:$0xff]  ;;  %v11832_v44 = vcombine.low %v6168_v29, %v6172_v30 }
 0x645   :  { %7823 = vmatpush2.bf16.msra.mxu1 %v11886_v58  ;;  %7781 = vmatprep.subr.bf16.mxu0 %v11751_v16  ;;  %v6036_v58 = vld [vmem:[#allocation15 + $0xf8] sm:$0xff] }
 0x646   :  { %7824 = vmatprep.subr.bf16.mxu1 %v11879_v35  ;;  %v6160_v16 = vld [vmem:[#allocation15 + $0x4d8] sm:$0xff]  ;;  %v11697_v36 = vcombine.high %v6032_v25, %v6036_v58 }
 0x647   :  { %v6164_v35 = vld [vmem:[#allocation15 + $0x4f8] sm:$0xff] }
 0x648   :  { %7782 = vmatpush2.bf16.msra.mxu0 %v11750_v41  ;;  %v11825_v39 = vcombine.high %v6160_v16, %v6164_v35  ;;  %v6028_v41 = vld [vmem:[#allocation15 + $0xb8] sm:$0xff]  ;;  %v11824_v46 = vcombine.low %v6160_v16, %v6164_v35 }
 0x649   :  { %7825 = vmatpush2.bf16.msra.mxu1 %v11878_v42  ;;  %7783 = vmatprep.subr.bf16.mxu0 %v11743_v43  ;;  %v6152_v42 = vld [vmem:[#allocation15 + $0x498] sm:$0xff]  ;;  %v11689_v48 = vcombine.high %v6024_v40, %v6028_v41 }
 0x64a   :  { %7826 = vmatprep.subr.bf16.mxu1 %v11871_v45  ;;  %v6156_v43 = vld [vmem:[#allocation15 + $0x4b8] sm:$0xff]  ;;  %v11696_v45 = vcombine.low %v6032_v25, %v6036_v58 }
 0x64b   :  { %v11817_v10 = vcombine.high %v6152_v42, %v6156_v43  ;;  %v11816_v55 = vcombine.low %v6152_v42, %v6156_v43  ;;  %v6120_v15 = vld [vmem:[#allocation15 + $0x398] sm:$0xff] }
 0x64c   :  { %7784 = vmatpush2.bf16.msra.mxu0 %v11742_v52  ;;  %v6020_v52 = vld [vmem:[#allocation15 + $0x78] sm:$0xff] }
 0x64d   :  { %7827 = vmatpush2.bf16.msra.mxu1 %v11870_v53  ;;  %7785 = vmatprep.subr.bf16.mxu0 %v11735_v56  ;;  %v6144_v53 = vld [vmem:[#allocation15 + $0x458] sm:$0xff]  ;;  %v11681_v59 = vcombine.high %v6016_v51, %v6020_v52 }
 0x64e   :  { %7828 = vmatprep.subr.bf16.mxu1 %v11863_v34  ;;  %v6148_v56 = vld [vmem:[#allocation15 + $0x478] sm:$0xff]  ;;  %v11688_v34 = vcombine.low %v6024_v40, %v6028_v41 }
 0x64f   :  { %v11809_v17 = vcombine.high %v6144_v53, %v6148_v56  ;;  %v11808_v21 = vcombine.low %v6144_v53, %v6148_v56  ;;  %v6104_v35 = vld [vmem:[#allocation15 + $0x318] sm:$0xff] }
 0x650   :  { %7786 = vmatpush2.bf16.msra.mxu0 %v11734_v62  ;;  %v6012_v62 = vld [vmem:[#allocation15 + $0x38] sm:$0xff] }
 0x651   :  { %7829 = vmatpush2.bf16.msra.mxu1 %v11862_v0  ;;  %7841 = vmatprep.subr.bf16.mxu0 %v11729_v37  ;;  %v6136_v0 = vld [vmem:[#allocation15 + $0x418] sm:$0xff]  ;;  %v11673_v3 = vcombine.high %v6008_v60, %v6012_v62  ;;  %v11672_v12 = vcombine.low %v6008_v60, %v6012_v62 }
 0x652   :  { %7884 = vmatprep.subr.bf16.mxu1 %v11857_v2  ;;  %v6140_v37 = vld [vmem:[#allocation15 + $0x438] sm:$0xff]  ;;  %v11680_v2 = vcombine.low %v6016_v51, %v6020_v52 }
 0x653   :  { %7788 = vmatmul.mubr.bf16.vlgmr.msra.gmra.mxu0 %v14131_v47  ;;  %v11800_v54 = vcombine.low %v6136_v0, %v6140_v37  ;;  %v6096_v43 = vld [vmem:[#allocation15 + $0x2d8] sm:$0xff] }
 0x654   :  { %7831 = vmatmul.mubr.bf16.vlgmr.msra.gmra.mxu1 %v14133_v9  ;;  %7842 = vmatpush1.bf16.msra.mxu0 %v11728_v5  ;;  %v11801_v5 = vcombine.high %v6136_v0, %v6140_v37  ;;  %v6088_v56 = vld [vmem:[#allocation15 + $0x298] sm:$0xff] }
 0x655   :  { %7873 = vmatprep.mubr.bf16.mxu0 %v14127_v7  ;;  %7885 = vmatpush1.bf16.msra.mxu1 %v11856_v11  ;;  %v11833_v7 = vcombine.high %v6168_v29, %v6172_v30  ;;  %v6256_v11 = vld [vmem:[#allocation15 + $0x7d8] sm:$0xff] }
 0x656   :  { %7916 = vmatprep.mubr.bf16.mxu1 %v14129_v8  ;;  %7843 = vmatprep.subr.bf16.mxu0 %v11721_v24  ;;  %v11704_v8 = vcombine.low %v6040_v49, %v6044_v28  ;;  %v6260_v24 = vld [vmem:[#allocation15 + $0x7f8] sm:$0xff] }
 0x657   :  { %7886 = vmatprep.subr.bf16.mxu1 %v11849_v13  ;;  %v11793_v13 = vcombine.high %v6128_v19, %v6132_v63  ;;  %v11921_v14 = vcombine.high %v6256_v11, %v6260_v24  ;;  %v11920_v49 = vcombine.low %v6256_v11, %v6260_v24  ;;  %v6112_v30 = vld [vmem:[#allocation15 + $0x358] sm:$0xff] }
 0x658   :  { %7844 = vmatpush1.bf16.msra.mxu0 %v11720_v57  ;;  %v6124_v57 = vld [vmem:[#allocation15 + $0x3b8] sm:$0xff] }
 0x659   :  { %7887 = vmatpush1.bf16.msra.mxu1 %v11848_v18  ;;  %7845 = vmatprep.subr.bf16.mxu0 %v11713_v20  ;;  %v6248_v18 = vld [vmem:[#allocation15 + $0x798] sm:$0xff]  ;;  %v11785_v28 = vcombine.high %v6120_v15, %v6124_v57 }
 0x65a   :  { %7888 = vmatprep.subr.bf16.mxu1 %v11841_v22  ;;  %v6252_v20 = vld [vmem:[#allocation15 + $0x7b8] sm:$0xff]  ;;  %v11792_v22 = vcombine.low %v6128_v19, %v6132_v63 }
 0x65b   :  { %v11913_v29 = vcombine.high %v6248_v18, %v6252_v20  ;;  %v11912_v25 = vcombine.low %v6248_v18, %v6252_v20  ;;  %v6080_v37 = vld [vmem:[#allocation15 + $0x258] sm:$0xff] }
 0x65c   :  { %7846 = vmatpush1.bf16.msra.mxu0 %v11712_v26  ;;  %v6116_v26 = vld [vmem:[#allocation15 + $0x378] sm:$0xff] }
 0x65d   :  { %7889 = vmatpush1.bf16.msra.mxu1 %v11840_v1  ;;  %7847 = vmatprep.subr.bf16.mxu0 %v11705_v31  ;;  %v6240_v1 = vld [vmem:[#allocation15 + $0x758] sm:$0xff]  ;;  %v11777_v58 = vcombine.high %v6112_v30, %v6116_v26 }
 0x65e   :  { %7890 = vmatprep.subr.bf16.mxu1 %v11833_v7  ;;  %v6244_v31 = vld [vmem:[#allocation15 + $0x778] sm:$0xff]  ;;  %v11784_v7 = vcombine.low %v6120_v15, %v6124_v57 }
 0x65f   :  { %v11905_v16 = vcombine.high %v6240_v1, %v6244_v31  ;;  %v11904_v40 = vcombine.low %v6240_v1, %v6244_v31  ;;  %v6072_v24 = vld [vmem:[#allocation15 + $0x218] sm:$0xff] }
 0x660   :  { %7848 = vmatpush1.bf16.msra.mxu0 %v11704_v8  ;;  %v6108_v8 = vld [vmem:[#allocation15 + $0x338] sm:$0xff] }
 0x661   :  { %7891 = vmatpush1.bf16.msra.mxu1 %v11832_v44  ;;  %7849 = vmatprep.subr.bf16.mxu0 %v11697_v36  ;;  %v6232_v44 = vld [vmem:[#allocation15 + $0x718] sm:$0xff]  ;;  %v11769_v41 = vcombine.high %v6104_v35, %v6108_v8 }
 0x662   :  { %7892 = vmatprep.subr.bf16.mxu1 %v11825_v39  ;;  %v6236_v36 = vld [vmem:[#allocation15 + $0x738] sm:$0xff]  ;;  %v11776_v39 = vcombine.low %v6112_v30, %v6116_v26  ;;  %v14149_v30 = vld [vmem:[#allocation16] sm:$0xff] }
 0x663   :  { %v11897_v42 = vcombine.high %v6232_v44, %v6236_v36  ;;  %v11896_v51 = vcombine.low %v6232_v44, %v6236_v36  ;;  %v12919_v26 = vld [vmem:[#allocation18 + $0x124] ss:$24 sps:$4 sm:$0xff]   ;;  %v12929_v1 = vld [vmem:[#allocation18 + $0x450] ss:$24 sps:$4 sm:$0xff]   ;;  %v6270_v31 = vrot.slane %v14149_v30, %v14025_v33  ;;  %v12922_v44 = vld [vmem:[#allocation18 + $0xf4] ss:$24 sps:$4 sm:$0xff]  }
 0x664   :  { %7850 = vmatpush1.bf16.msra.mxu0 %v11696_v45  ;;  %v6100_v45 = vld [vmem:[#allocation15 + $0x2f8] sm:$0xff]  ;;  %v12935_v36 = vld [vmem:[#allocation18 + $0x420] ss:$24 sps:$4 sm:$0xff]  }
 0x665   :  { %7893 = vmatpush1.bf16.msra.mxu1 %v11824_v46  ;;  %7851 = vmatprep.subr.bf16.mxu0 %v11689_v48  ;;  %v6224_v46 = vld [vmem:[#allocation15 + $0x6d8] sm:$0xff]  ;;  %v11761_v52 = vcombine.high %v6096_v43, %v6100_v45 }
 0x666   :  { %7894 = vmatprep.subr.bf16.mxu1 %v11817_v10  ;;  %v6228_v48 = vld [vmem:[#allocation15 + $0x6f8] sm:$0xff]  ;;  %v11768_v10 = vcombine.low %v6104_v35, %v6108_v8 }
 0x667   :  { %v11889_v53 = vcombine.high %v6224_v46, %v6228_v48  ;;  %v11888_v60 = vcombine.low %v6224_v46, %v6228_v48 }
 0x668   :  { %7852 = vmatpush1.bf16.msra.mxu0 %v11688_v34  ;;  %v6092_v34 = vld [vmem:[#allocation15 + $0x2b8] sm:$0xff] }
 0x669   :  { %7895 = vmatpush1.bf16.msra.mxu1 %v11816_v55  ;;  %7853 = vmatprep.subr.bf16.mxu0 %v11681_v59  ;;  %v6216_v55 = vld [vmem:[#allocation15 + $0x698] sm:$0xff]  ;;  %v11753_v62 = vcombine.high %v6088_v56, %v6092_v34 }
 0x66a   :  { %7896 = vmatprep.subr.bf16.mxu1 %v11809_v17  ;;  %v6220_v59 = vld [vmem:[#allocation15 + $0x6b8] sm:$0xff]  ;;  %v11760_v17 = vcombine.low %v6096_v43, %v6100_v45 }
 0x66b   :  { %v11881_v0 = vcombine.high %v6216_v55, %v6220_v59  ;;  %v11880_v19 = vcombine.low %v6216_v55, %v6220_v59  ;;  %v12941_v45 = vld [vmem:[#allocation18 + $0x3f0] ss:$24 sps:$4 sm:$0xff]  }
 0x66c   :  { %7854 = vmatpush1.bf16.msra.mxu0 %v11680_v2  ;;  %v6084_v2 = vld [vmem:[#allocation15 + $0x278] sm:$0xff] }
 0x66d   :  { %7897 = vmatpush1.bf16.msra.mxu1 %v11808_v21  ;;  %7855 = vmatprep.subr.bf16.mxu0 %v11673_v3  ;;  %v6208_v21 = vld [vmem:[#allocation15 + $0x658] sm:$0xff]  ;;  %v11745_v63 = vcombine.high %v6080_v37, %v6084_v2 }
 0x66e   :  { %7898 = vmatprep.subr.bf16.mxu1 %v11801_v5  ;;  %v6212_v3 = vld [vmem:[#allocation15 + $0x678] sm:$0xff]  ;;  %v11752_v5 = vcombine.low %v6088_v56, %v6092_v34  ;;  %v12947_v34 = vld [vmem:[#allocation18 + $0x3c0] ss:$24 sps:$4 sm:$0xff]  }
 0x66f   :  { %v11873_v11 = vcombine.high %v6208_v21, %v6212_v3  ;;  %v11872_v15 = vcombine.low %v6208_v21, %v6212_v3  ;;  %v12928_v56 = vld [vmem:[#allocation18 + $0x94] ss:$24 sps:$4 sm:$0xff]   ;;  %v12932_v21 = vld [vmem:[#allocation18 + $0x60] ss:$24 sps:$4 sm:$0xff]  }
 0x670   :  { %7856 = vmatpush1.bf16.msra.mxu0 %v11672_v12  ;;  %v6076_v12 = vld [vmem:[#allocation15 + $0x238] sm:$0xff] }
 0x671   :  { %7899 = vmatpush1.bf16.msra.mxu1 %v11800_v54  ;;  %7857 = vmatprep.subr.bf16.mxu0 %v11793_v13  ;;  %v6200_v54 = vld [vmem:[#allocation15 + $0x618] sm:$0xff]  ;;  %v11737_v57 = vcombine.high %v6072_v24, %v6076_v12  ;;  %v11736_v20 = vcombine.low %v6072_v24, %v6076_v12  ;;  %v12973_v12 = vld [vmem:[#allocation18 + $0x304] ss:$24 sps:$4 sm:$0xff]  }
 0x672   :  { %7900 = vmatprep.subr.bf16.mxu1 %v11921_v14  ;;  %v6204_v13 = vld [vmem:[#allocation15 + $0x638] sm:$0xff]  ;;  %v11744_v14 = vcombine.low %v6080_v37, %v6084_v2  ;;  %v12961_v2 = vld [vmem:[#allocation18 + $0x364] ss:$24 sps:$4 sm:$0xff]  }
 0x673   :  { %v11865_v18 = vcombine.high %v6200_v54, %v6204_v13  ;;  %v12953_v37 = vld [vmem:[#allocation18 + $0x390] ss:$24 sps:$4 sm:$0xff]   ;;  %v12940_v3 = vld [vmem:[#allocation18 + $0x34] ss:$24 sps:$4 sm:$0xff]  }
 0x674   :  { %7858 = vmatpush2.bf16.msra.mxu0 %v11792_v22  ;;  %v11864_v22 = vcombine.low %v6200_v54, %v6204_v13  ;;  %v12965_v24 = vld [vmem:[#allocation18 + $0x330] ss:$24 sps:$4 sm:$0xff]   ;;  %v12944_v54 = vld [vmem:[#allocation18] ss:$24 sps:$4 sm:$0xff]   ;;  %v12952_v13 = vld [vmem:[#allocation18 + $0x2d4] ss:$24 sps:$4 sm:$0xff]  }
 0x675   :  { %7901 = vmatpush2.bf16.msra.mxu1 %v11920_v49  ;;  %7859 = vmatprep.subr.bf16.mxu0 %v11785_v28  ;;  %v12916_v49 = vld [vmem:[#allocation18 + $0x154] ss:$24 sps:$4 sm:$0xff]  }
 0x676   :  { %7902 = vmatprep.subr.bf16.mxu1 %v11913_v29  ;;  %v12931_v28 = vld [vmem:[#allocation18 + $0x454] ss:$24 sps:$4 sm:$0xff]   ;;  %v12914_v29 = vld [vmem:[#allocation18 + $0x150] ss:$24 sps:$4 sm:$0xff]  }
 0x678   :  { %7860 = vmatpush2.bf16.msra.mxu0 %v11784_v7  ;;  %v12937_v7 = vld [vmem:[#allocation18 + $0x424] ss:$24 sps:$4 sm:$0xff]  }
 0x679   :  { %7903 = vmatpush2.bf16.msra.mxu1 %v11912_v25  ;;  %7861 = vmatprep.subr.bf16.mxu0 %v11777_v58 }
 0x67a   :  { %7904 = vmatprep.subr.bf16.mxu1 %v11905_v16  ;;  %v12917_v16 = vld [vmem:[#allocation18 + $0x120] ss:$24 sps:$4 sm:$0xff]  }
 0x67c   :  { %7862 = vmatpush2.bf16.msra.mxu0 %v11776_v39 }
 0x67d   :  { %7905 = vmatpush2.bf16.msra.mxu1 %v11904_v40  ;;  %7863 = vmatprep.subr.bf16.mxu0 %v11769_v41  ;;  %v12943_v40 = vld [vmem:[#allocation18 + $0x3f4] ss:$24 sps:$4 sm:$0xff]  }
 0x67e   :  { %7906 = vmatprep.subr.bf16.mxu1 %v11897_v42  ;;  %v12920_v42 = vld [vmem:[#allocation18 + $0xf0] ss:$24 sps:$4 sm:$0xff]  }
 0x680   :  { %7864 = vmatpush2.bf16.msra.mxu0 %v11768_v10  ;;  %v12949_v10 = vld [vmem:[#allocation18 + $0x3c4] ss:$24 sps:$4 sm:$0xff]  }
 0x681   :  { %7907 = vmatpush2.bf16.msra.mxu1 %v11896_v51  ;;  %7865 = vmatprep.subr.bf16.mxu0 %v11761_v52 }
 0x682   :  { %7908 = vmatprep.subr.bf16.mxu1 %v11889_v53  ;;  %v12923_v53 = vld [vmem:[#allocation18 + $0xc0] ss:$24 sps:$4 sm:$0xff]  }
 0x684   :  { %7866 = vmatpush2.bf16.msra.mxu0 %v11760_v17  ;;  %v12955_v17 = vld [vmem:[#allocation18 + $0x394] ss:$24 sps:$4 sm:$0xff]  }
 0x685   :  { %7909 = vmatpush2.bf16.msra.mxu1 %v11888_v60  ;;  %7867 = vmatprep.subr.bf16.mxu0 %v11753_v62  ;;  %v12926_v62 = vld [vmem:[#allocation18 + $0x90] ss:$24 sps:$4 sm:$0xff]  }
 0x686   :  { %7910 = vmatprep.subr.bf16.mxu1 %v11881_v0  ;;  %v12934_v0 = vld [vmem:[#allocation18 + $0x64] ss:$24 sps:$4 sm:$0xff]  }
 0x688   :  { %7868 = vmatpush2.bf16.msra.mxu0 %v11752_v5  ;;  %v12959_v5 = vld [vmem:[#allocation18 + $0x360] ss:$24 sps:$4 sm:$0xff]  }
 0x689   :  { %7911 = vmatpush2.bf16.msra.mxu1 %v11880_v19  ;;  %7869 = vmatprep.subr.bf16.mxu0 %v11745_v63  ;;  %v12967_v19 = vld [vmem:[#allocation18 + $0x334] ss:$24 sps:$4 sm:$0xff]   ;;  %v12938_v63 = vld [vmem:[#allocation18 + $0x30] ss:$24 sps:$4 sm:$0xff]  }
 0x68a   :  { %7912 = vmatprep.subr.bf16.mxu1 %v11873_v11  ;;  %v12946_v11 = vld [vmem:[#allocation18 + $0x4] ss:$24 sps:$4 sm:$0xff]  }
 0x68c   :  { %7870 = vmatpush2.bf16.msra.mxu0 %v11744_v14  ;;  %v12971_v14 = vld [vmem:[#allocation18 + $0x300] ss:$24 sps:$4 sm:$0xff]  }
 0x68d   :  { %7913 = vmatpush2.bf16.msra.mxu1 %v11872_v15  ;;  %7871 = vmatprep.subr.bf16.mxu0 %v11737_v57  ;;  %v12979_v15 = vld [vmem:[#allocation18 + $0x5d4] ss:$24 sps:$4 sm:$0xff]   ;;  %v12950_v57 = vld [vmem:[#allocation18 + $0x2d0] ss:$24 sps:$4 sm:$0xff]  }
 0x68e   :  { %7914 = vmatprep.subr.bf16.mxu1 %v11865_v18  ;;  %v12958_v18 = vld [vmem:[#allocation18 + $0x2a4] ss:$24 sps:$4 sm:$0xff]  }
 0x690   :  { %7872 = vmatpush2.bf16.msra.mxu0 %v11736_v20  ;;  %v12977_v20 = vld [vmem:[#allocation18 + $0x5d0] ss:$24 sps:$4 sm:$0xff]  }
 0x691   :  { %7915 = vmatpush2.bf16.msra.mxu1 %v11864_v22  ;;  %10287 = vmatprep.subr.bf16.mxu0 %v12916_v49  ;;  %v12985_v22 = vld [vmem:[#allocation18 + $0x5a4] ss:$24 sps:$4 sm:$0xff]   ;;  %v12956_v49 = vld [vmem:[#allocation18 + $0x2a0] ss:$24 sps:$4 sm:$0xff]  }
 0x692   :  { %10330 = vmatprep.subr.bf16.mxu1 %v12931_v28  ;;  %v12964_v28 = vld [vmem:[#allocation18 + $0x274] ss:$24 sps:$4 sm:$0xff]  }
 0x693   :  { %7874 = vmatmul.mubr.bf16.vlgmr.msra.gmra.mxu0 %v14131_v47  ;;  %v14154_v25 = vpop.f32.mrf.mxu0  ;;  %v14156_v58 = vpop.f32.mrf.mxu1 }
 0x694   :  { %7917 = vmatmul.mubr.bf16.vlgmr.msra.gmra.mxu1 %v14133_v9  ;;  %10288 = vmatpush1.bf16.msra.mxu0 %v12914_v29  ;;  %v12925_v9 = vld [vmem:[#allocation18 + $0xc4] ss:$24 sps:$4 sm:$0xff]   ;;  %v12983_v29 = vld [vmem:[#allocation18 + $0x5a0] ss:$24 sps:$4 sm:$0xff]  }
 0x695   :  { %v7619_v35 = vpop.f32.mrf.mxu0  ;;  %v7662_v8 = vpop.f32.mrf.mxu1  ;;  %10289 = vmatprep.subr.bf16.mxu0 %v12919_v26  ;;  %10331 = vmatpush1.bf16.msra.mxu1 %v12929_v1  ;;  %v12991_v26 = vld [vmem:[#allocation18 + $0x574] ss:$24 sps:$4 sm:$0xff]   ;;  %v12962_v1 = vld [vmem:[#allocation18 + $0x270] ss:$24 sps:$4 sm:$0xff]  }
 0x696   :  { %v7620_v39 = vadd.f32 %v7619_v35, %v6270_v31  ;;  %10332 = vmatprep.subr.bf16.mxu1 %v12937_v7  ;;  %v12989_v7 = vld [vmem:[#allocation18 + $0x570] ss:$24 sps:$4 sm:$0xff]   ;;  %v12968_v35 = vld [vmem:[#allocation18 + $0x240] ss:$24 sps:$4 sm:$0xff]  }
 0x697   :  { %v14159_v41 = vpop.f32.mrf.mxu0  ;;  %v14161_v47 = vpop.f32.mrf.mxu1 }
 0x698   :  { %10290 = vmatpush1.bf16.msra.mxu0 %v12917_v16  ;;  %v7663_v46 = vadd.f32 %v7662_v8, %v7620_v39  ;;  %v12997_v16 = vld [vmem:[#allocation18 + $0x544] ss:$24 sps:$4 sm:$0xff]   ;;  %v12976_v8 = vld [vmem:[#allocation18 + $0x214] ss:$24 sps:$4 sm:$0xff]   ;;  %v12974_v39 = vld [vmem:[#allocation18 + $0x210] ss:$24 sps:$4 sm:$0xff]  }
 0x699   :  { %v7623_v43 = vpop.f32.mrf.mxu0  ;;  %10291 = vmatprep.subr.bf16.mxu0 %v12922_v44  ;;  %10333 = vmatpush1.bf16.msra.mxu1 %v12935_v36  ;;  %v7666_v51 = vpop.f32.mrf.mxu1  ;;  %v12995_v44 = vld [vmem:[#allocation18 + $0x540] ss:$24 sps:$4 sm:$0xff]   ;;  %v13000_v36 = vld [vmem:[#allocation18 + $0x514] ss:$24 sps:$4 sm:$0xff]  }
 0x69a   :  { %v7624_v48 = vadd.f32 %v7623_v43, %v6270_v31  ;;  %10334 = vmatprep.subr.bf16.mxu1 %v12943_v40  ;;  %v7928_v55 = vmax.f32 %v7663_v46, 0.0  ;;  %v12970_v31 = vld [vmem:[#allocation18 + $0x244] ss:$24 sps:$4 sm:$0xff]  }
 0x69b   :  { %v12982_v40 = vld [vmem:[#allocation18 + $0x1e4] ss:$24 sps:$4 sm:$0xff]  }
 0x69c   :  { %v7667_v52 = vadd.f32 %v7666_v51, %v7624_v48  ;;  %10292 = vmatpush1.bf16.msra.mxu0 %v12920_v42  ;;  %v12998_v42 = vld [vmem:[#allocation18 + $0x510] ss:$24 sps:$4 sm:$0xff]   ;;  %v13003_v43 = vld [vmem:[#allocation18 + $0x4e4] ss:$24 sps:$4 sm:$0xff]   ;;  %v12988_v48 = vld [vmem:[#allocation18 + $0x1b4] ss:$24 sps:$4 sm:$0xff]  }
 0x69d   :  { %10293 = vmatprep.subr.bf16.mxu0 %v12925_v9  ;;  %10335 = vmatpush1.bf16.msra.mxu1 %v12941_v45  ;;  %v6266_v9 = vrot.slane %v14149_v30, %v13997_v61  ;;  %v12980_v45 = vld [vmem:[#allocation18 + $0x1e0] ss:$24 sps:$4 sm:$0xff]   ;;  %v13006_v51 = vld [vmem:[#allocation18 + $0x4b4] ss:$24 sps:$4 sm:$0xff]  }
 0x69e   :  { %v7936_v59 = vmax.f32 %v7667_v52, 0.0  ;;  %10336 = vmatprep.subr.bf16.mxu1 %v12949_v10  ;;  %v13001_v10 = vld [vmem:[#allocation18 + $0x4e0] ss:$24 sps:$4 sm:$0xff]  }
 0x69f   :  { %v7622_v46 = vadd.f32 %v14159_v41, %v6266_v9  ;;  %v7618_v52 = vadd.f32 %v14154_v25, %v6266_v9  ;;  %v13060_v25 = vld [vmem:[#allocation18 + $0xa54] ss:$24 sps:$4 sm:$0xff]  }
 0x6a0   :  { %v14163_v60 = vpack.c.bf16 %v7936_v59, %v7928_v55  ;;  %10294 = vmatpush1.bf16.msra.mxu0 %v12923_v53  ;;  %v12986_v53 = vld [vmem:[#allocation18 + $0x1b0] ss:$24 sps:$4 sm:$0xff]   ;;  %v13009_v59 = vld [vmem:[#allocation18 + $0x484] ss:$24 sps:$4 sm:$0xff]  }
 0x6a1   :  { %10295 = vmatprep.subr.bf16.mxu0 %v12928_v56  ;;  %10337 = vmatpush1.bf16.msra.mxu1 %v12947_v34  ;;  %v7665_v56 = vadd.f32 %v14161_v47, %v7622_v46  ;;  %v12994_v34 = vld [vmem:[#allocation18 + $0x184] ss:$24 sps:$4 sm:$0xff]   ;;  %v13004_v55 = vld [vmem:[#allocation18 + $0x4b0] ss:$24 sps:$4 sm:$0xff]   ;;  %v7661_v41 = vadd.f32 %v14156_v58, %v7618_v52  ;;  %v6278_v58 = vrot.slane %v14149_v30, %v14037_v6  ;;  %v13072_v52 = vld [vmem:[#allocation18 + $0x9f4] ss:$24 sps:$4 sm:$0xff]  }
 0x6a2   :  { %10319 = vmatprep.mubr.bf16.mxu0 %v14163_v60  ;;  %10338 = vmatprep.subr.bf16.mxu1 %v12955_v17  ;;  %v12992_v17 = vld [vmem:[#allocation18 + $0x180] ss:$24 sps:$4 sm:$0xff]   ;;  %v13010_v47 = vld [vmem:[#allocation18 + $0x750] ss:$24 sps:$4 sm:$0xff]   ;;  %v13066_v46 = vld [vmem:[#allocation18 + $0xa24] ss:$24 sps:$4 sm:$0xff]  }
 0x6a4   :  { %10296 = vmatpush1.bf16.msra.mxu0 %v12926_v62  ;;  %v7935_v62 = vmax.f32 %v7665_v56, 0.0  ;;  %v13070_v56 = vld [vmem:[#allocation18 + $0x9f0] ss:$24 sps:$4 sm:$0xff]  }
 0x6a5   :  { %10297 = vmatprep.subr.bf16.mxu0 %v12934_v0  ;;  %10339 = vmatpush1.bf16.msra.mxu1 %v12953_v37  ;;  %v13007_v0 = vld [vmem:[#allocation18 + $0x480] ss:$24 sps:$4 sm:$0xff]   ;;  %v13012_v37 = vld [vmem:[#allocation18 + $0x754] ss:$24 sps:$4 sm:$0xff]  }
 0x6a6   :  { %10340 = vmatprep.subr.bf16.mxu1 %v12961_v2  ;;  %v7927_v2 = vmax.f32 %v7661_v41, 0.0  ;;  %v13076_v41 = vld [vmem:[#allocation18 + $0x9c0] ss:$24 sps:$4 sm:$0xff]  }
 0x6a8   :  { %10298 = vmatpush1.bf16.msra.mxu0 %v12932_v21  ;;  %v14172_v21 = vpack.c.bf16 %v7935_v62, %v7927_v2  ;;  %v13084_v62 = vld [vmem:[#allocation18 + $0x994] ss:$24 sps:$4 sm:$0xff]   ;;  %v13090_v2 = vld [vmem:[#allocation18 + $0x964] ss:$24 sps:$4 sm:$0xff]  }
 0x6a9   :  { %10299 = vmatprep.subr.bf16.mxu0 %v12940_v3  ;;  %10341 = vmatpush1.bf16.msra.mxu1 %v12959_v5  ;;  %v13015_v3 = vld [vmem:[#allocation18 + $0x724] ss:$24 sps:$4 sm:$0xff]   ;;  %v6274_v5 = vrot.slane %v14149_v30, %v14061_v27 }
 0x6aa   :  { %10342 = vmatprep.subr.bf16.mxu1 %v12967_v19 }
 0x6ac   :  { %10300 = vmatpush1.bf16.msra.mxu0 %v12938_v63 }
 0x6ad   :  { %10301 = vmatprep.subr.bf16.mxu0 %v12946_v11  ;;  %10343 = vmatpush1.bf16.msra.mxu1 %v12965_v24  ;;  %v13013_v11 = vld [vmem:[#allocation18 + $0x720] ss:$24 sps:$4 sm:$0xff]  }
 0x6ae   :  { %10344 = vmatprep.subr.bf16.mxu1 %v12973_v12 }
 0x6b0   :  { %10302 = vmatpush1.bf16.msra.mxu0 %v12944_v54  ;;  %v13018_v54 = vld [vmem:[#allocation18 + $0x6f4] ss:$24 sps:$4 sm:$0xff]  }
 0x6b1   :  { %10303 = vmatprep.subr.bf16.mxu0 %v12952_v13  ;;  %10345 = vmatpush1.bf16.msra.mxu1 %v12971_v14 }
 0x6b2   :  { %10346 = vmatprep.subr.bf16.mxu1 %v12979_v15 }
 0x6b4   :  { %10304 = vmatpush2.bf16.msra.mxu0 %v12950_v57 }
 0x6b5   :  { %10305 = vmatprep.subr.bf16.mxu0 %v12958_v18  ;;  %10347 = vmatpush2.bf16.msra.mxu1 %v12977_v20  ;;  %v13016_v20 = vld [vmem:[#allocation18 + $0x6f0] ss:$24 sps:$4 sm:$0xff]  }
 0x6b6   :  { %10348 = vmatprep.subr.bf16.mxu1 %v12985_v22 }
 0x6b8   :  { %10306 = vmatpush2.bf16.msra.mxu0 %v12956_v49  ;;  %v13021_v49 = vld [vmem:[#allocation18 + $0x6c4] ss:$24 sps:$4 sm:$0xff]  }
 0x6b9   :  { %10307 = vmatprep.subr.bf16.mxu0 %v12964_v28  ;;  %10349 = vmatpush2.bf16.msra.mxu1 %v12983_v29 }
 0x6ba   :  { %10350 = vmatprep.subr.bf16.mxu1 %v12991_v26 }
 0x6bc   :  { %10308 = vmatpush2.bf16.msra.mxu0 %v12962_v1 }
 0x6bd   :  { %10309 = vmatprep.subr.bf16.mxu0 %v12970_v31  ;;  %10351 = vmatpush2.bf16.msra.mxu1 %v12989_v7 }
 0x6be   :  { %10352 = vmatprep.subr.bf16.mxu1 %v12997_v16  ;;  %v13019_v16 = vld [vmem:[#allocation18 + $0x6c0] ss:$24 sps:$4 sm:$0xff]  }
 0x6c0   :  { %10310 = vmatpush2.bf16.msra.mxu0 %v12968_v35 }
 0x6c1   :  { %10311 = vmatprep.subr.bf16.mxu0 %v12976_v8  ;;  %10353 = vmatpush2.bf16.msra.mxu1 %v12995_v44  ;;  %v13024_v8 = vld [vmem:[#allocation18 + $0x694] ss:$24 sps:$4 sm:$0xff]  }
 0x6c2   :  { %10354 = vmatprep.subr.bf16.mxu1 %v13000_v36 }
 0x6c4   :  { %10312 = vmatpush2.bf16.msra.mxu0 %v12974_v39 }
 0x6c5   :  { %10313 = vmatprep.subr.bf16.mxu0 %v12982_v40  ;;  %10355 = vmatpush2.bf16.msra.mxu1 %v12998_v42  ;;  %v13022_v42 = vld [vmem:[#allocation18 + $0x690] ss:$24 sps:$4 sm:$0xff]  }
 0x6c6   :  { %10356 = vmatprep.subr.bf16.mxu1 %v13003_v43  ;;  %v13058_v43 = vld [vmem:[#allocation18 + $0xa50] ss:$24 sps:$4 sm:$0xff]  }
 0x6c8   :  { %10314 = vmatpush2.bf16.msra.mxu0 %v12980_v45  ;;  %v13027_v45 = vld [vmem:[#allocation18 + $0x664] ss:$24 sps:$4 sm:$0xff]  }
 0x6c9   :  { %10315 = vmatprep.subr.bf16.mxu0 %v12988_v48  ;;  %10357 = vmatpush2.bf16.msra.mxu1 %v13001_v10  ;;  %v13025_v48 = vld [vmem:[#allocation18 + $0x660] ss:$24 sps:$4 sm:$0xff]  }
 0x6ca   :  { %10358 = vmatprep.subr.bf16.mxu1 %v13006_v51  ;;  %v13064_v10 = vld [vmem:[#allocation18 + $0xa20] ss:$24 sps:$4 sm:$0xff]   ;;  %v13030_v51 = vld [vmem:[#allocation18 + $0x634] ss:$24 sps:$4 sm:$0xff]  }
 0x6cc   :  { %10316 = vmatpush2.bf16.msra.mxu0 %v12986_v53  ;;  %v13028_v53 = vld [vmem:[#allocation18 + $0x630] ss:$24 sps:$4 sm:$0xff]  }
 0x6cd   :  { %10317 = vmatprep.subr.bf16.mxu0 %v12994_v34  ;;  %10359 = vmatpush2.bf16.msra.mxu1 %v13004_v55  ;;  %v13033_v34 = vld [vmem:[#allocation18 + $0x604] ss:$24 sps:$4 sm:$0xff]  }
 0x6ce   :  { %10360 = vmatprep.subr.bf16.mxu1 %v13009_v59  ;;  %v13078_v55 = vld [vmem:[#allocation18 + $0x9c4] ss:$24 sps:$4 sm:$0xff]   ;;  %v13031_v59 = vld [vmem:[#allocation18 + $0x600] ss:$24 sps:$4 sm:$0xff]  }
 0x6d0   :  { %10318 = vmatpush2.bf16.msra.mxu0 %v12992_v17  ;;  %v13036_v17 = vld [vmem:[#allocation18 + $0x8d4] ss:$24 sps:$4 sm:$0xff]  }
 0x6d1   :  { %10361 = vmatpush2.bf16.msra.mxu1 %v13007_v0  ;;  %10373 = vmatprep.subr.bf16.mxu0 %v13012_v37  ;;  %v13034_v0 = vld [vmem:[#allocation18 + $0x8d0] ss:$24 sps:$4 sm:$0xff]  }
 0x6d2   :  { %10416 = vmatprep.subr.bf16.mxu1 %v13060_v25  ;;  %v13082_v37 = vld [vmem:[#allocation18 + $0x990] ss:$24 sps:$4 sm:$0xff]   ;;  %v13039_v25 = vld [vmem:[#allocation18 + $0x8a4] ss:$24 sps:$4 sm:$0xff]  }
 0x6d3   :  { %v7703_v19 = vpop.f32.mrf.mxu0  ;;  %v7746_v63 = vpop.f32.mrf.mxu1  ;;  %10320 = vmatmul.mubr.bf16.vlgmr.msra.gmra.mxu0 %v14172_v21 }
 0x6d4   :  { %10374 = vmatpush1.bf16.msra.mxu0 %v13010_v47  ;;  %v7704_v14 = vadd.f32 %v7703_v19, %v6274_v5  ;;  %v13037_v47 = vld [vmem:[#allocation18 + $0x8a0] ss:$24 sps:$4 sm:$0xff]   ;;  %v13040_v19 = vld [vmem:[#allocation18 + $0x870] ss:$24 sps:$4 sm:$0xff]  }
 0x6d5   :  { %v7705_v24 = vpop.f32.mrf.mxu0  ;;  %v7748_v12 = vpop.f32.mrf.mxu1  ;;  %10375 = vmatprep.subr.bf16.mxu0 %v13015_v3  ;;  %v13088_v3 = vld [vmem:[#allocation18 + $0x960] ss:$24 sps:$4 sm:$0xff]  }
 0x6d6   :  { %v7706_v13 = vadd.f32 %v7705_v24, %v6278_v58  ;;  %v7747_v1 = vadd.f32 %v7746_v63, %v7704_v14  ;;  %v13094_v63 = vld [vmem:[#allocation18 + $0x930] ss:$24 sps:$4 sm:$0xff]   ;;  %v13102_v24 = vld [vmem:[#allocation18 + $0x904] ss:$24 sps:$4 sm:$0xff]   ;;  %v13108_v14 = vld [vmem:[#allocation18 + $0xbd4] ss:$24 sps:$4 sm:$0xff]  }
 0x6d7   :  { %v7707_v15 = vpop.f32.mrf.mxu0  ;;  %v7750_v57 = vpop.f32.mrf.mxu1 }
 0x6d8   :  { %v7708_v18 = vadd.f32 %v7707_v15, %v6274_v5  ;;  %10376 = vmatpush1.bf16.msra.mxu0 %v13013_v11  ;;  %v7749_v28 = vadd.f32 %v7748_v12, %v7706_v13  ;;  %v7929_v39 = vmax.f32 %v7747_v1, 0.0  ;;  %v13096_v5 = vld [vmem:[#allocation18 + $0x934] ss:$24 sps:$4 sm:$0xff]   ;;  %v13045_v11 = vld [vmem:[#allocation18 + $0x844] ss:$24 sps:$4 sm:$0xff]  }
 0x6d9   :  { %v7709_v22 = vpop.f32.mrf.mxu0  ;;  %10377 = vmatprep.subr.bf16.mxu0 %v13018_v54  ;;  %v7752_v31 = vpop.f32.mrf.mxu1  ;;  %v13043_v12 = vld [vmem:[#allocation18 + $0x840] ss:$24 sps:$4 sm:$0xff]   ;;  %v13048_v13 = vld [vmem:[#allocation18 + $0x814] ss:$24 sps:$4 sm:$0xff]   ;;  %v13046_v15 = vld [vmem:[#allocation18 + $0x810] ss:$24 sps:$4 sm:$0xff]  }
 0x6da   :  { %v7751_v29 = vadd.f32 %v7750_v57, %v7708_v18  ;;  %v7710_v26 = vadd.f32 %v7709_v22, %v6278_v58  ;;  %v7930_v44 = vmax.f32 %v7749_v28, 0.0  ;;  %v13042_v58 = vld [vmem:[#allocation18 + $0x874] ss:$24 sps:$4 sm:$0xff]   ;;  %v13100_v54 = vld [vmem:[#allocation18 + $0x900] ss:$24 sps:$4 sm:$0xff]  }
 0x6db   :  { %v13106_v57 = vld [vmem:[#allocation18 + $0xbd0] ss:$24 sps:$4 sm:$0xff]   ;;  %v13051_v18 = vld [vmem:[#allocation18 + $0x7e4] ss:$24 sps:$4 sm:$0xff]   ;;  %v13049_v22 = vld [vmem:[#allocation18 + $0x7e0] ss:$24 sps:$4 sm:$0xff]  }
 0x6dc   :  { %v7753_v7 = vadd.f32 %v7752_v31, %v7710_v26  ;;  %10378 = vmatpush1.bf16.msra.mxu0 %v13016_v20  ;;  %v7937_v35 = vmax.f32 %v7751_v29, 0.0  ;;  %v13114_v20 = vld [vmem:[#allocation18 + $0xba4] ss:$24 sps:$4 sm:$0xff]   ;;  %v13054_v28 = vld [vmem:[#allocation18 + $0x7b4] ss:$24 sps:$4 sm:$0xff]  }
 0x6dd   :  { %10379 = vmatprep.subr.bf16.mxu0 %v13021_v49  ;;  %v13112_v49 = vld [vmem:[#allocation18 + $0xba0] ss:$24 sps:$4 sm:$0xff]   ;;  %v13120_v29 = vld [vmem:[#allocation18 + $0xb74] ss:$24 sps:$4 sm:$0xff]   ;;  %v13052_v26 = vld [vmem:[#allocation18 + $0x7b0] ss:$24 sps:$4 sm:$0xff]  }
 0x6de   :  { %v7938_v36 = vmax.f32 %v7753_v7, 0.0  ;;  %v14181_v9 = vpack.c.bf16 %v7937_v35, %v7929_v39  ;;  %v13118_v1 = vld [vmem:[#allocation18 + $0xb70] ss:$24 sps:$4 sm:$0xff]   ;;  %v13057_v31 = vld [vmem:[#allocation18 + $0x784] ss:$24 sps:$4 sm:$0xff]  }
 0x6df   :  { %v13126_v7 = vld [vmem:[#allocation18 + $0xb44] ss:$24 sps:$4 sm:$0xff]   ;;  %v13124_v35 = vld [vmem:[#allocation18 + $0xb40] ss:$24 sps:$4 sm:$0xff]  }
 0x6e0   :  { %v14179_v40 = vpack.c.bf16 %v7938_v36, %v7930_v44  ;;  %10380 = vmatpush1.bf16.msra.mxu0 %v13019_v16  ;;  %v13055_v16 = vld [vmem:[#allocation18 + $0x780] ss:$24 sps:$4 sm:$0xff]   ;;  %v13132_v44 = vld [vmem:[#allocation18 + $0xb14] ss:$24 sps:$4 sm:$0xff]   ;;  %v13130_v36 = vld [vmem:[#allocation18 + $0xb10] ss:$24 sps:$4 sm:$0xff]  }
 0x6e1   :  { %10381 = vmatprep.subr.bf16.mxu0 %v13024_v8  ;;  %v13063_v8 = vld [vmem:[#allocation18 + $0x15c] ss:$24 sps:$4 sm:$0xff]  }
 0x6e2   :  { %10362 = vmatprep.mubr.bf16.mxu1 %v14179_v40  ;;  %v13138_v39 = vld [vmem:[#allocation18 + $0xae4] ss:$24 sps:$4 sm:$0xff]  }
 0x6e3   :  { %10363 = vmatmul.mubr.bf16.vlgmr.msra.gmra.mxu1 %v14181_v9 }
 0x6e4   :  { %10382 = vmatpush1.bf16.msra.mxu0 %v13022_v42  ;;  %10417 = vmatpush1.bf16.msra.mxu1 %v13058_v43  ;;  %v6286_v42 = vrot.slane %v14149_v30, %v14076_v23  ;;  %v6282_v43 = vrot.slane %v14149_v30, %v14079_v4 }
 0x6e5   :  { %10383 = vmatprep.subr.bf16.mxu0 %v13027_v45  ;;  %10418 = vmatprep.subr.bf16.mxu1 %v13066_v46 }
 0x6e8   :  { %10384 = vmatpush1.bf16.msra.mxu0 %v13025_v48  ;;  %10419 = vmatpush1.bf16.msra.mxu1 %v13064_v10  ;;  %v13136_v48 = vld [vmem:[#allocation18 + $0xae0] ss:$24 sps:$4 sm:$0xff]  }
 0x6e9   :  { %10385 = vmatprep.subr.bf16.mxu0 %v13030_v51  ;;  %10420 = vmatprep.subr.bf16.mxu1 %v13072_v52  ;;  %v13144_v51 = vld [vmem:[#allocation18 + $0xab4] ss:$24 sps:$4 sm:$0xff]  }
 0x6ec   :  { %10386 = vmatpush1.bf16.msra.mxu0 %v13028_v53  ;;  %10421 = vmatpush1.bf16.msra.mxu1 %v13070_v56 }
 0x6ed   :  { %10387 = vmatprep.subr.bf16.mxu0 %v13033_v34  ;;  %10422 = vmatprep.subr.bf16.mxu1 %v13078_v55 }
 0x6f0   :  { %10388 = vmatpush1.bf16.msra.mxu0 %v13031_v59  ;;  %10423 = vmatpush1.bf16.msra.mxu1 %v13076_v41  ;;  %v13142_v41 = vld [vmem:[#allocation18 + $0xab0] ss:$24 sps:$4 sm:$0xff]  }
 0x6f1   :  { %10389 = vmatprep.subr.bf16.mxu0 %v13036_v17  ;;  %10424 = vmatprep.subr.bf16.mxu1 %v13084_v62  ;;  %v13150_v62 = vld [vmem:[#allocation18 + $0xa84] ss:$24 sps:$4 sm:$0xff]  }
 0x6f4   :  { %10390 = vmatpush2.bf16.msra.mxu0 %v13034_v0  ;;  %10425 = vmatpush1.bf16.msra.mxu1 %v13082_v37 }
 0x6f5   :  { %10391 = vmatprep.subr.bf16.mxu0 %v13039_v25  ;;  %10426 = vmatprep.subr.bf16.mxu1 %v13090_v2 }
 0x6f8   :  { %10392 = vmatpush2.bf16.msra.mxu0 %v13037_v47  ;;  %10427 = vmatpush1.bf16.msra.mxu1 %v13088_v3 }
 0x6f9   :  { %10393 = vmatprep.subr.bf16.mxu0 %v13042_v58  ;;  %10428 = vmatprep.subr.bf16.mxu1 %v13096_v5  ;;  %v13148_v58 = vld [vmem:[#allocation18 + $0xa80] ss:$24 sps:$4 sm:$0xff]  }
 0x6fc   :  { %10394 = vmatpush2.bf16.msra.mxu0 %v13040_v19  ;;  %10429 = vmatpush1.bf16.msra.mxu1 %v13094_v63  ;;  %v13156_v19 = vld [vmem:[#allocation18 + $0x45c] ss:$24 sps:$4 sm:$0xff]  }
 0x6fd   :  { %10395 = vmatprep.subr.bf16.mxu0 %v13045_v11  ;;  %10430 = vmatprep.subr.bf16.mxu1 %v13102_v24 }
 0x700   :  { %10396 = vmatpush2.bf16.msra.mxu0 %v13043_v12  ;;  %10431 = vmatpush1.bf16.msra.mxu1 %v13100_v54  ;;  %v13061_v54 = vld [vmem:[#allocation18 + $0x158] ss:$24 sps:$4 sm:$0xff]  }
 0x701   :  { %10397 = vmatprep.subr.bf16.mxu0 %v13048_v13  ;;  %10432 = vmatprep.subr.bf16.mxu1 %v13108_v14  ;;  %v13069_v14 = vld [vmem:[#allocation18 + $0x12c] ss:$24 sps:$4 sm:$0xff]  }
 0x704   :  { %10398 = vmatpush2.bf16.msra.mxu0 %v13046_v15  ;;  %10433 = vmatpush2.bf16.msra.mxu1 %v13106_v57  ;;  %v13067_v15 = vld [vmem:[#allocation18 + $0x128] ss:$24 sps:$4 sm:$0xff]   ;;  %v13075_v57 = vld [vmem:[#allocation18 + $0xfc] ss:$24 sps:$4 sm:$0xff]  }
 0x705   :  { %10399 = vmatprep.subr.bf16.mxu0 %v13051_v18  ;;  %10434 = vmatprep.subr.bf16.mxu1 %v13114_v20  ;;  %v13073_v18 = vld [vmem:[#allocation18 + $0xf8] ss:$24 sps:$4 sm:$0xff]   ;;  %v13081_v20 = vld [vmem:[#allocation18 + $0xcc] ss:$24 sps:$4 sm:$0xff]  }
 0x708   :  { %10400 = vmatpush2.bf16.msra.mxu0 %v13049_v22  ;;  %10435 = vmatpush2.bf16.msra.mxu1 %v13112_v49  ;;  %v13079_v22 = vld [vmem:[#allocation18 + $0xc8] ss:$24 sps:$4 sm:$0xff]   ;;  %v13087_v49 = vld [vmem:[#allocation18 + $0x9c] ss:$24 sps:$4 sm:$0xff]  }
 0x709   :  { %10401 = vmatprep.subr.bf16.mxu0 %v13054_v28  ;;  %10436 = vmatprep.subr.bf16.mxu1 %v13120_v29  ;;  %v13085_v28 = vld [vmem:[#allocation18 + $0x98] ss:$24 sps:$4 sm:$0xff]   ;;  %v13093_v29 = vld [vmem:[#allocation18 + $0x6c] ss:$24 sps:$4 sm:$0xff]  }
 0x70c   :  { %10402 = vmatpush2.bf16.msra.mxu0 %v13052_v26  ;;  %10437 = vmatpush2.bf16.msra.mxu1 %v13118_v1  ;;  %v13091_v26 = vld [vmem:[#allocation18 + $0x68] ss:$24 sps:$4 sm:$0xff]   ;;  %v13099_v1 = vld [vmem:[#allocation18 + $0x3c] ss:$24 sps:$4 sm:$0xff]  }
 0x70d   :  { %10403 = vmatprep.subr.bf16.mxu0 %v13057_v31  ;;  %10438 = vmatprep.subr.bf16.mxu1 %v13126_v7  ;;  %v13097_v31 = vld [vmem:[#allocation18 + $0x38] ss:$24 sps:$4 sm:$0xff]   ;;  %v13105_v7 = vld [vmem:[#allocation18 + $0xc] ss:$24 sps:$4 sm:$0xff]  }
 0x710   :  { %10404 = vmatpush2.bf16.msra.mxu0 %v13055_v16  ;;  %10439 = vmatpush2.bf16.msra.mxu1 %v13124_v35  ;;  %v13103_v16 = vld [vmem:[#allocation18 + $0x8] ss:$24 sps:$4 sm:$0xff]   ;;  %v13111_v35 = vld [vmem:[#allocation18 + $0x2dc] ss:$24 sps:$4 sm:$0xff]  }
 0x711   :  { %10459 = vmatprep.subr.bf16.mxu0 %v13063_v8  ;;  %10440 = vmatprep.subr.bf16.mxu1 %v13132_v44  ;;  %v13109_v8 = vld [vmem:[#allocation18 + $0x2d8] ss:$24 sps:$4 sm:$0xff]   ;;  %v13117_v44 = vld [vmem:[#allocation18 + $0x2ac] ss:$24 sps:$4 sm:$0xff]  }
 0x713   :  { %v7789_v45 = vpop.f32.mrf.mxu0 }
 0x714   :  { %v7832_v46 = vpop.f32.mrf.mxu1  ;;  %10441 = vmatpush2.bf16.msra.mxu1 %v13130_v36  ;;  %v7790_v56 = vadd.f32 %v7789_v45, %v6282_v43  ;;  %v13115_v36 = vld [vmem:[#allocation18 + $0x2a8] ss:$24 sps:$4 sm:$0xff]  }
 0x715   :  { %v7791_v10 = vpop.f32.mrf.mxu0  ;;  %10442 = vmatprep.subr.bf16.mxu1 %v13138_v39  ;;  %v13123_v39 = vld [vmem:[#allocation18 + $0x27c] ss:$24 sps:$4 sm:$0xff]   ;;  %v13127_v45 = vld [vmem:[#allocation18 + $0x248] ss:$24 sps:$4 sm:$0xff]  }
 0x716   :  { %v7792_v52 = vadd.f32 %v7791_v10, %v6286_v42  ;;  %v7834_v53 = vpop.f32.mrf.mxu1  ;;  %v7833_v2 = vadd.f32 %v7832_v46, %v7790_v56  ;;  %v13135_v46 = vld [vmem:[#allocation18 + $0x21c] ss:$24 sps:$4 sm:$0xff]   ;;  %v13141_v10 = vld [vmem:[#allocation18 + $0x1ec] ss:$24 sps:$4 sm:$0xff]  }
 0x717   :  { %v7793_v34 = vpop.f32.mrf.mxu0 }
 0x718   :  { %v7794_v55 = vadd.f32 %v7793_v34, %v6282_v43  ;;  %v7836_v59 = vpop.f32.mrf.mxu1  ;;  %10443 = vmatpush2.bf16.msra.mxu1 %v13136_v48  ;;  %v7835_v0 = vadd.f32 %v7834_v53, %v7792_v52  ;;  %v7931_v24 = vmax.f32 %v7833_v2, 0.0  ;;  %v13129_v43 = vld [vmem:[#allocation18 + $0x24c] ss:$24 sps:$4 sm:$0xff]   ;;  %v13133_v48 = vld [vmem:[#allocation18 + $0x218] ss:$24 sps:$4 sm:$0xff]   ;;  %v6290_v52 = vrot.slane %v14149_v30, %v625_v38 }
 0x719   :  { %v7795_v17 = vpop.f32.mrf.mxu0  ;;  %10444 = vmatprep.subr.bf16.mxu1 %v13144_v51  ;;  %v6294_v51 = vrot.slane %v14149_v30, %v629_v32  ;;  %v13139_v34 = vld [vmem:[#allocation18 + $0x1e8] ss:$24 sps:$4 sm:$0xff]   ;;  %v13145_v2 = vld [vmem:[#allocation18 + $0x1b8] ss:$24 sps:$4 sm:$0xff]  }
 0x71a   :  { %v7837_v37 = vadd.f32 %v7836_v59, %v7794_v55  ;;  %v7796_v25 = vadd.f32 %v7795_v17, %v6286_v42  ;;  %v7838_v47 = vpop.f32.mrf.mxu1  ;;  %v7932_v63 = vmax.f32 %v7835_v0, 0.0  ;;  %v13121_v42 = vld [vmem:[#allocation18 + $0x278] ss:$24 sps:$4 sm:$0xff]   ;;  %v13147_v59 = vld [vmem:[#allocation18 + $0x1bc] ss:$24 sps:$4 sm:$0xff]  }
 0x71c   :  { %v7839_v3 = vadd.f32 %v7838_v47, %v7796_v25  ;;  %10445 = vmatpush2.bf16.msra.mxu1 %v13142_v41  ;;  %v7939_v5 = vmax.f32 %v7837_v37, 0.0 }
 0x71d   :  { %10446 = vmatprep.subr.bf16.mxu1 %v13150_v62 }
 0x71e   :  { %v7940_v11 = vmax.f32 %v7839_v3, 0.0  ;;  %v14191_v13 = vpack.c.bf16 %v7939_v5, %v7931_v24 }
 0x720   :  { %v14189_v12 = vpack.c.bf16 %v7940_v11, %v7932_v63  ;;  %10447 = vmatpush2.bf16.msra.mxu1 %v13148_v58  ;;  %v13159_v11 = vld [vmem:[#allocation18 + $0x75c] ss:$24 sps:$4 sm:$0xff]  }
 0x721   :  { %10502 = vmatprep.subr.bf16.mxu1 %v13156_v19  ;;  %v13151_v19 = vld [vmem:[#allocation18 + $0x188] ss:$24 sps:$4 sm:$0xff]  }
 0x722   :  { %10405 = vmatprep.mubr.bf16.mxu0 %v14189_v12 }
 0x723   :  { %10406 = vmatmul.mubr.bf16.vlgmr.msra.gmra.mxu0 %v14191_v13 }
 0x724   :  { %10460 = vmatpush1.bf16.msra.mxu0 %v13061_v54  ;;  %10491 = vmatprep.mubr.bf16.mxu0 %v14163_v60 }
 0x725   :  { %10461 = vmatprep.subr.bf16.mxu0 %v13069_v14 }
 0x728   :  { %10462 = vmatpush1.bf16.msra.mxu0 %v13067_v15 }
 0x729   :  { %10463 = vmatprep.subr.bf16.mxu0 %v13075_v57  ;;  %v13154_v57 = vld [vmem:[#allocation18 + $0x458] ss:$24 sps:$4 sm:$0xff]  }
 0x72c   :  { %10464 = vmatpush1.bf16.msra.mxu0 %v13073_v18  ;;  %v13157_v18 = vld [vmem:[#allocation18 + $0x758] ss:$24 sps:$4 sm:$0xff]  }
 0x72d   :  { %10465 = vmatprep.subr.bf16.mxu0 %v13081_v20 }
 0x730   :  { %10466 = vmatpush1.bf16.msra.mxu0 %v13079_v22  ;;  %v13162_v22 = vld [vmem:[#allocation18 + $0x42c] ss:$24 sps:$4 sm:$0xff]  }
 0x731   :  { %10467 = vmatprep.subr.bf16.mxu0 %v13087_v49  ;;  %v13165_v49 = vld [vmem:[#allocation18 + $0x72c] ss:$24 sps:$4 sm:$0xff]  }
 0x734   :  { %10468 = vmatpush1.bf16.msra.mxu0 %v13085_v28  ;;  %v13160_v28 = vld [vmem:[#allocation18 + $0x428] ss:$24 sps:$4 sm:$0xff]  }
 0x735   :  { %10469 = vmatprep.subr.bf16.mxu0 %v13093_v29  ;;  %v13163_v29 = vld [vmem:[#allocation18 + $0x728] ss:$24 sps:$4 sm:$0xff]  }
 0x738   :  { %10470 = vmatpush1.bf16.msra.mxu0 %v13091_v26  ;;  %v13168_v26 = vld [vmem:[#allocation18 + $0x3fc] ss:$24 sps:$4 sm:$0xff]  }
 0x739   :  { %10471 = vmatprep.subr.bf16.mxu0 %v13099_v1  ;;  %v13171_v1 = vld [vmem:[#allocation18 + $0x6fc] ss:$24 sps:$4 sm:$0xff]  }
 0x73c   :  { %10472 = vmatpush1.bf16.msra.mxu0 %v13097_v31  ;;  %v13166_v31 = vld [vmem:[#allocation18 + $0x3f8] ss:$24 sps:$4 sm:$0xff]  }
 0x73d   :  { %10473 = vmatprep.subr.bf16.mxu0 %v13105_v7  ;;  %v13169_v7 = vld [vmem:[#allocation18 + $0x6f8] ss:$24 sps:$4 sm:$0xff]  }
 0x740   :  { %10474 = vmatpush1.bf16.msra.mxu0 %v13103_v16  ;;  %v13174_v16 = vld [vmem:[#allocation18 + $0x3cc] ss:$24 sps:$4 sm:$0xff]  }
 0x741   :  { %10475 = vmatprep.subr.bf16.mxu0 %v13111_v35  ;;  %v13177_v35 = vld [vmem:[#allocation18 + $0x6cc] ss:$24 sps:$4 sm:$0xff]  }
 0x744   :  { %10476 = vmatpush2.bf16.msra.mxu0 %v13109_v8  ;;  %v13172_v8 = vld [vmem:[#allocation18 + $0x3c8] ss:$24 sps:$4 sm:$0xff]  }
 0x745   :  { %10477 = vmatprep.subr.bf16.mxu0 %v13117_v44  ;;  %v13175_v44 = vld [vmem:[#allocation18 + $0x6c8] ss:$24 sps:$4 sm:$0xff]  }
 0x748   :  { %10478 = vmatpush2.bf16.msra.mxu0 %v13115_v36  ;;  %v13180_v36 = vld [vmem:[#allocation18 + $0x39c] ss:$24 sps:$4 sm:$0xff]  }
 0x749   :  { %10479 = vmatprep.subr.bf16.mxu0 %v13123_v39  ;;  %v13183_v39 = vld [vmem:[#allocation18 + $0x69c] ss:$24 sps:$4 sm:$0xff]  }
 0x74c   :  { %10480 = vmatpush2.bf16.msra.mxu0 %v13121_v42  ;;  %v13178_v42 = vld [vmem:[#allocation18 + $0x398] ss:$24 sps:$4 sm:$0xff]  }
 0x74d   :  { %10481 = vmatprep.subr.bf16.mxu0 %v13129_v43  ;;  %v13181_v43 = vld [vmem:[#allocation18 + $0x698] ss:$24 sps:$4 sm:$0xff]  }
 0x750   :  { %10482 = vmatpush2.bf16.msra.mxu0 %v13127_v45  ;;  %v13186_v45 = vld [vmem:[#allocation18 + $0x36c] ss:$24 sps:$4 sm:$0xff]  }
 0x751   :  { %10483 = vmatprep.subr.bf16.mxu0 %v13135_v46  ;;  %v13189_v46 = vld [vmem:[#allocation18 + $0x66c] ss:$24 sps:$4 sm:$0xff]  }
 0x753   :  { %v7875_v53 = vpop.f32.mrf.mxu0 }
 0x754   :  { %v7918_v56 = vpop.f32.mrf.mxu1  ;;  %10484 = vmatpush2.bf16.msra.mxu0 %v13133_v48  ;;  %v7876_v62 = vadd.f32 %v7875_v53, %v6290_v52  ;;  %v13184_v48 = vld [vmem:[#allocation18 + $0x368] ss:$24 sps:$4 sm:$0xff]   ;;  %v13190_v53 = vld [vmem:[#allocation18 + $0x338] ss:$24 sps:$4 sm:$0xff]  }
 0x755   :  { %v7877_v55 = vpop.f32.mrf.mxu0  ;;  %10485 = vmatprep.subr.bf16.mxu0 %v13141_v10  ;;  %v13187_v10 = vld [vmem:[#allocation18 + $0x668] ss:$24 sps:$4 sm:$0xff]  }
 0x756   :  { %v7878_v41 = vadd.f32 %v7877_v55, %v6294_v51  ;;  %v7920_v17 = vpop.f32.mrf.mxu1  ;;  %v7919_v3 = vadd.f32 %v7918_v56, %v7876_v62  ;;  %v13193_v56 = vld [vmem:[#allocation18 + $0x638] ss:$24 sps:$4 sm:$0xff]   ;;  %v13201_v55 = vld [vmem:[#allocation18 + $0x60c] ss:$24 sps:$4 sm:$0xff]   ;;  %v13207_v62 = vld [vmem:[#allocation18 + $0x8dc] ss:$24 sps:$4 sm:$0xff]  }
 0x757   :  { %v7879_v0 = vpop.f32.mrf.mxu0 }
 0x758   :  { %v7880_v37 = vadd.f32 %v7879_v0, %v6290_v52  ;;  %v7922_v25 = vpop.f32.mrf.mxu1  ;;  %10486 = vmatpush2.bf16.msra.mxu0 %v13139_v34  ;;  %v7921_v47 = vadd.f32 %v7920_v17, %v7878_v41  ;;  %v7933_v14 = vmax.f32 %v7919_v3, 0.0  ;;  %v13195_v52 = vld [vmem:[#allocation18 + $0x63c] ss:$24 sps:$4 sm:$0xff]   ;;  %v13198_v34 = vld [vmem:[#allocation18 + $0x30c] ss:$24 sps:$4 sm:$0xff]  }
 0x759   :  { %v7881_v32 = vpop.f32.mrf.mxu0  ;;  %10487 = vmatprep.subr.bf16.mxu0 %v13147_v59  ;;  %v13196_v59 = vld [vmem:[#allocation18 + $0x308] ss:$24 sps:$4 sm:$0xff]   ;;  %v13204_v17 = vld [vmem:[#allocation18 + $0x5dc] ss:$24 sps:$4 sm:$0xff]   ;;  %v13202_v0 = vld [vmem:[#allocation18 + $0x5d8] ss:$24 sps:$4 sm:$0xff]  }
 0x75a   :  { %v7923_v38 = vadd.f32 %v7922_v25, %v7880_v37  ;;  %v7882_v30 = vadd.f32 %v7881_v32, %v6294_v51  ;;  %v7924_v58 = vpop.f32.mrf.mxu1  ;;  %v7934_v24 = vmax.f32 %v7921_v47, 0.0  ;;  %v13192_v51 = vld [vmem:[#allocation18 + $0x33c] ss:$24 sps:$4 sm:$0xff]   ;;  %v13199_v41 = vld [vmem:[#allocation18 + $0x608] ss:$24 sps:$4 sm:$0xff]  }
 0x75b   :  { %v13205_v37 = vld [vmem:[#allocation18 + $0x8d8] ss:$24 sps:$4 sm:$0xff]   ;;  %v13210_v25 = vld [vmem:[#allocation18 + $0x5ac] ss:$24 sps:$4 sm:$0xff]   ;;  %v13208_v32 = vld [vmem:[#allocation18 + $0x5a8] ss:$24 sps:$4 sm:$0xff]  }
 0x75c   :  { %v7925_v5 = vadd.f32 %v7924_v58, %v7882_v30  ;;  %10488 = vmatpush2.bf16.msra.mxu0 %v13145_v2  ;;  %v7941_v63 = vmax.f32 %v7923_v38, 0.0  ;;  %v13213_v2 = vld [vmem:[#allocation18 + $0x8ac] ss:$24 sps:$4 sm:$0xff]   ;;  %v13216_v47 = vld [vmem:[#allocation18 + $0x57c] ss:$24 sps:$4 sm:$0xff]  }
 0x75d   :  { %10489 = vmatprep.subr.bf16.mxu0 %v13153_v50  ;;  %v13211_v50 = vld [vmem:[#allocation18 + $0x8a8] ss:$24 sps:$4 sm:$0xff]   ;;  %v13219_v38 = vld [vmem:[#allocation18 + $0x87c] ss:$24 sps:$4 sm:$0xff]   ;;  %v13214_v30 = vld [vmem:[#allocation18 + $0x578] ss:$24 sps:$4 sm:$0xff]  }
 0x75e   :  { %v7942_v54 = vmax.f32 %v7925_v5, 0.0  ;;  %v14204_v20 = vpack.c.bf16 %v7941_v63, %v7933_v14  ;;  %v13217_v3 = vld [vmem:[#allocation18 + $0x878] ss:$24 sps:$4 sm:$0xff]   ;;  %v13222_v58 = vld [vmem:[#allocation18 + $0x54c] ss:$24 sps:$4 sm:$0xff]  }
 0x75f   :  { %v13225_v5 = vld [vmem:[#allocation18 + $0x84c] ss:$24 sps:$4 sm:$0xff]   ;;  %v13223_v63 = vld [vmem:[#allocation18 + $0x848] ss:$24 sps:$4 sm:$0xff]   ;;  %v13229_v14 = vld [vmem:[#allocation18 + $0x818] ss:$24 sps:$4 sm:$0xff]  }
 0x760   :  { %v14202_v15 = vpack.c.bf16 %v7942_v54, %v7934_v24  ;;  %10490 = vmatpush2.bf16.msra.mxu0 %v13151_v19  ;;  %v13220_v19 = vld [vmem:[#allocation18 + $0x548] ss:$24 sps:$4 sm:$0xff]   ;;  %v13231_v24 = vld [vmem:[#allocation18 + $0x81c] ss:$24 sps:$4 sm:$0xff]   ;;  %v13226_v54 = vld [vmem:[#allocation18 + $0x518] ss:$24 sps:$4 sm:$0xff]  }
 0x761   :  { %10545 = vmatprep.subr.bf16.mxu0 %v13159_v11  ;;  %v13228_v11 = vld [vmem:[#allocation18 + $0x51c] ss:$24 sps:$4 sm:$0xff]  }
 0x762   :  { %10448 = vmatprep.mubr.bf16.mxu1 %v14202_v15 }
 0x763   :  { %10492 = vmatmul.mubr.bf16.vlgmr.msra.gmra.mxu0 %v14172_v21  ;;  %10449 = vmatmul.mubr.bf16.vlgmr.msra.gmra.mxu1 %v14204_v20 }
 0x764   :  { %10503 = vmatpush1.bf16.msra.mxu1 %v13154_v57  ;;  %10546 = vmatpush1.bf16.msra.mxu0 %v13157_v18  ;;  %v13234_v57 = vld [vmem:[#allocation18 + $0x4ec] ss:$24 sps:$4 sm:$0xff]  }
 0x765   :  { %10577 = vmatprep.mubr.bf16.mxu0 %v14189_v12  ;;  %10534 = vmatprep.mubr.bf16.mxu1 %v14179_v40  ;;  %v13237_v18 = vld [vmem:[#allocation18 + $0x7ec] ss:$24 sps:$4 sm:$0xff]  }
 0x766   :  { %10504 = vmatprep.subr.bf16.mxu1 %v13162_v22  ;;  %10547 = vmatprep.subr.bf16.mxu0 %v13165_v49  ;;  %v13232_v22 = vld [vmem:[#allocation18 + $0x4e8] ss:$24 sps:$4 sm:$0xff]  }
 0x767   :  { %v13235_v49 = vld [vmem:[#allocation18 + $0x7e8] ss:$24 sps:$4 sm:$0xff]  }
 0x768   :  { %10505 = vmatpush1.bf16.msra.mxu1 %v13160_v28  ;;  %10548 = vmatpush1.bf16.msra.mxu0 %v13163_v29  ;;  %v13240_v28 = vld [vmem:[#allocation18 + $0x4bc] ss:$24 sps:$4 sm:$0xff]  }
 0x769   :  { %10506 = vmatprep.subr.bf16.mxu1 %v13168_v26  ;;  %10549 = vmatprep.subr.bf16.mxu0 %v13171_v1  ;;  %v13243_v29 = vld [vmem:[#allocation18 + $0x7bc] ss:$24 sps:$4 sm:$0xff]   ;;  %v13238_v26 = vld [vmem:[#allocation18 + $0x4b8] ss:$24 sps:$4 sm:$0xff]  }
 0x76a   :  { %v13241_v1 = vld [vmem:[#allocation18 + $0x7b8] ss:$24 sps:$4 sm:$0xff]  }
 0x76c   :  { %10507 = vmatpush1.bf16.msra.mxu1 %v13166_v31  ;;  %10550 = vmatpush1.bf16.msra.mxu0 %v13169_v7  ;;  %v13246_v31 = vld [vmem:[#allocation18 + $0x48c] ss:$24 sps:$4 sm:$0xff]  }
 0x76d   :  { %10508 = vmatprep.subr.bf16.mxu1 %v13174_v16  ;;  %10551 = vmatprep.subr.bf16.mxu0 %v13177_v35  ;;  %v13249_v7 = vld [vmem:[#allocation18 + $0x78c] ss:$24 sps:$4 sm:$0xff]   ;;  %v13244_v16 = vld [vmem:[#allocation18 + $0x488] ss:$24 sps:$4 sm:$0xff]  }
 0x76e   :  { %v13247_v35 = vld [vmem:[#allocation18 + $0x788] ss:$24 sps:$4 sm:$0xff]  }
 0x770   :  { %10509 = vmatpush1.bf16.msra.mxu1 %v13172_v8  ;;  %10552 = vmatpush1.bf16.msra.mxu0 %v13175_v44  ;;  %v13252_v8 = vld [vmem:[#allocation18 + $0xa5c] ss:$24 sps:$4 sm:$0xff]  }
 0x771   :  { %10510 = vmatprep.subr.bf16.mxu1 %v13180_v36  ;;  %10553 = vmatprep.subr.bf16.mxu0 %v13183_v39  ;;  %v13255_v44 = vld [vmem:[#allocation18 + $0x164] ss:$24 sps:$4 sm:$0xff]   ;;  %v13250_v36 = vld [vmem:[#allocation18 + $0xa58] ss:$24 sps:$4 sm:$0xff]  }
 0x772   :  { %v13253_v39 = vld [vmem:[#allocation18 + $0x160] ss:$24 sps:$4 sm:$0xff]  }
 0x774   :  { %10511 = vmatpush1.bf16.msra.mxu1 %v13178_v42  ;;  %10554 = vmatpush1.bf16.msra.mxu0 %v13181_v43  ;;  %v13258_v42 = vld [vmem:[#allocation18 + $0xa2c] ss:$24 sps:$4 sm:$0xff]  }
 0x775   :  { %10512 = vmatprep.subr.bf16.mxu1 %v13186_v45  ;;  %10555 = vmatprep.subr.bf16.mxu0 %v13189_v46  ;;  %v13261_v43 = vld [vmem:[#allocation18 + $0x134] ss:$24 sps:$4 sm:$0xff]   ;;  %v13256_v45 = vld [vmem:[#allocation18 + $0xa28] ss:$24 sps:$4 sm:$0xff]  }
 0x776   :  { %v13259_v46 = vld [vmem:[#allocation18 + $0x130] ss:$24 sps:$4 sm:$0xff]  }
 0x778   :  { %10513 = vmatpush1.bf16.msra.mxu1 %v13184_v48  ;;  %10556 = vmatpush1.bf16.msra.mxu0 %v13187_v10  ;;  %v13264_v48 = vld [vmem:[#allocation18 + $0x9fc] ss:$24 sps:$4 sm:$0xff]  }
 0x779   :  { %10514 = vmatprep.subr.bf16.mxu1 %v13192_v51  ;;  %10557 = vmatprep.subr.bf16.mxu0 %v13195_v52  ;;  %v13267_v10 = vld [vmem:[#allocation18 + $0x104] ss:$24 sps:$4 sm:$0xff]   ;;  %v13262_v51 = vld [vmem:[#allocation18 + $0x9f8] ss:$24 sps:$4 sm:$0xff]  }
 0x77a   :  { %v13265_v52 = vld [vmem:[#allocation18 + $0x100] ss:$24 sps:$4 sm:$0xff]  }
 0x77c   :  { %10515 = vmatpush1.bf16.msra.mxu1 %v13190_v53  ;;  %10558 = vmatpush1.bf16.msra.mxu0 %v13193_v56  ;;  %v13270_v53 = vld [vmem:[#allocation18 + $0x9cc] ss:$24 sps:$4 sm:$0xff]  }
 0x77d   :  { %10516 = vmatprep.subr.bf16.mxu1 %v13198_v34  ;;  %10559 = vmatprep.subr.bf16.mxu0 %v13201_v55  ;;  %v13273_v56 = vld [vmem:[#allocation18 + $0xd4] ss:$24 sps:$4 sm:$0xff]   ;;  %v13268_v34 = vld [vmem:[#allocation18 + $0x9c8] ss:$24 sps:$4 sm:$0xff]  }
 0x77e   :  { %v13271_v55 = vld [vmem:[#allocation18 + $0xd0] ss:$24 sps:$4 sm:$0xff]  }
 0x780   :  { %10517 = vmatpush1.bf16.msra.mxu1 %v13196_v59  ;;  %10560 = vmatpush1.bf16.msra.mxu0 %v13199_v41  ;;  %v13276_v59 = vld [vmem:[#allocation18 + $0x99c] ss:$24 sps:$4 sm:$0xff]   ;;  %v13274_v41 = vld [vmem:[#allocation18 + $0x998] ss:$24 sps:$4 sm:$0xff]  }
 0x781   :  { %10518 = vmatprep.subr.bf16.mxu1 %v13204_v17  ;;  %10561 = vmatprep.subr.bf16.mxu0 %v13207_v62  ;;  %v13277_v17 = vld [vmem:[#allocation18 + $0xa0] ss:$24 sps:$4 sm:$0xff]   ;;  %v13282_v62 = vld [vmem:[#allocation18 + $0x96c] ss:$24 sps:$4 sm:$0xff]  }
 0x784   :  { %10519 = vmatpush2.bf16.msra.mxu1 %v13202_v0  ;;  %10562 = vmatpush2.bf16.msra.mxu0 %v13205_v37  ;;  %v13285_v0 = vld [vmem:[#allocation18 + $0x74] ss:$24 sps:$4 sm:$0xff]   ;;  %v13280_v37 = vld [vmem:[#allocation18 + $0x968] ss:$24 sps:$4 sm:$0xff]  }
 0x785   :  { %10520 = vmatprep.subr.bf16.mxu1 %v13210_v25  ;;  %10563 = vmatprep.subr.bf16.mxu0 %v13213_v2  ;;  %v13283_v25 = vld [vmem:[#allocation18 + $0x70] ss:$24 sps:$4 sm:$0xff]   ;;  %v13288_v2 = vld [vmem:[#allocation18 + $0x93c] ss:$24 sps:$4 sm:$0xff]  }
 0x788   :  { %10521 = vmatpush2.bf16.msra.mxu1 %v13208_v32  ;;  %10564 = vmatpush2.bf16.msra.mxu0 %v13211_v50  ;;  %v13291_v32 = vld [vmem:[#allocation18 + $0x44] ss:$24 sps:$4 sm:$0xff]   ;;  %v13286_v50 = vld [vmem:[#allocation18 + $0x938] ss:$24 sps:$4 sm:$0xff]  }
 0x789   :  { %10522 = vmatprep.subr.bf16.mxu1 %v13216_v47  ;;  %10565 = vmatprep.subr.bf16.mxu0 %v13219_v38  ;;  %v13289_v47 = vld [vmem:[#allocation18 + $0x40] ss:$24 sps:$4 sm:$0xff]   ;;  %v13294_v38 = vld [vmem:[#allocation18 + $0x90c] ss:$24 sps:$4 sm:$0xff]  }
 0x78c   :  { %10523 = vmatpush2.bf16.msra.mxu1 %v13214_v30  ;;  %10566 = vmatpush2.bf16.msra.mxu0 %v13217_v3  ;;  %v13297_v30 = vld [vmem:[#allocation18 + $0x14] ss:$24 sps:$4 sm:$0xff]   ;;  %v13292_v3 = vld [vmem:[#allocation18 + $0x908] ss:$24 sps:$4 sm:$0xff]  }
 0x78d   :  { %10524 = vmatprep.subr.bf16.mxu1 %v13222_v58  ;;  %10567 = vmatprep.subr.bf16.mxu0 %v13225_v5  ;;  %v13295_v58 = vld [vmem:[#allocation18 + $0x10] ss:$24 sps:$4 sm:$0xff]   ;;  %v13300_v5 = vld [vmem:[#allocation18 + $0xbdc] ss:$24 sps:$4 sm:$0xff]  }
 0x790   :  { %10525 = vmatpush2.bf16.msra.mxu1 %v13220_v19  ;;  %10568 = vmatpush2.bf16.msra.mxu0 %v13223_v63  ;;  %v13303_v19 = vld [vmem:[#allocation18 + $0x2e4] ss:$24 sps:$4 sm:$0xff]   ;;  %v13298_v63 = vld [vmem:[#allocation18 + $0xbd8] ss:$24 sps:$4 sm:$0xff]  }
 0x791   :  { %10526 = vmatprep.subr.bf16.mxu1 %v13228_v11  ;;  %10569 = vmatprep.subr.bf16.mxu0 %v13231_v24  ;;  %v13301_v11 = vld [vmem:[#allocation18 + $0x2e0] ss:$24 sps:$4 sm:$0xff]   ;;  %v13306_v24 = vld [vmem:[#allocation18 + $0xbac] ss:$24 sps:$4 sm:$0xff]  }
 0x794   :  { %10527 = vmatpush2.bf16.msra.mxu1 %v13226_v54  ;;  %10570 = vmatpush2.bf16.msra.mxu0 %v13229_v14  ;;  %v13309_v54 = vld [vmem:[#allocation18 + $0x2b4] ss:$24 sps:$4 sm:$0xff]   ;;  %v13304_v14 = vld [vmem:[#allocation18 + $0xba8] ss:$24 sps:$4 sm:$0xff]  }
 0x795   :  { %10528 = vmatprep.subr.bf16.mxu1 %v13234_v57  ;;  %10571 = vmatprep.subr.bf16.mxu0 %v13237_v18  ;;  %v13307_v57 = vld [vmem:[#allocation18 + $0x2b0] ss:$24 sps:$4 sm:$0xff]   ;;  %v13312_v18 = vld [vmem:[#allocation18 + $0xb7c] ss:$24 sps:$4 sm:$0xff]  }
 0x798   :  { %10529 = vmatpush2.bf16.msra.mxu1 %v13232_v22  ;;  %10572 = vmatpush2.bf16.msra.mxu0 %v13235_v49  ;;  %v13315_v22 = vld [vmem:[#allocation18 + $0x284] ss:$24 sps:$4 sm:$0xff]   ;;  %v13310_v49 = vld [vmem:[#allocation18 + $0xb78] ss:$24 sps:$4 sm:$0xff]  }
 0x799   :  { %10530 = vmatprep.subr.bf16.mxu1 %v13240_v28  ;;  %10573 = vmatprep.subr.bf16.mxu0 %v13243_v29  ;;  %v13313_v28 = vld [vmem:[#allocation18 + $0x280] ss:$24 sps:$4 sm:$0xff]   ;;  %v13318_v29 = vld [vmem:[#allocation18 + $0xb4c] ss:$24 sps:$4 sm:$0xff]  }
 0x79c   :  { %10531 = vmatpush2.bf16.msra.mxu1 %v13238_v26  ;;  %10574 = vmatpush2.bf16.msra.mxu0 %v13241_v1  ;;  %v13321_v26 = vld [vmem:[#allocation18 + $0x254] ss:$24 sps:$4 sm:$0xff]   ;;  %v13316_v1 = vld [vmem:[#allocation18 + $0xb48] ss:$24 sps:$4 sm:$0xff]  }
 0x79d   :  { %10532 = vmatprep.subr.bf16.mxu1 %v13246_v31  ;;  %10575 = vmatprep.subr.bf16.mxu0 %v13249_v7  ;;  %v13319_v31 = vld [vmem:[#allocation18 + $0x250] ss:$24 sps:$4 sm:$0xff]   ;;  %v13324_v7 = vld [vmem:[#allocation18 + $0xb1c] ss:$24 sps:$4 sm:$0xff]  }
 0x7a0   :  { %10533 = vmatpush2.bf16.msra.mxu1 %v13244_v16  ;;  %10576 = vmatpush2.bf16.msra.mxu0 %v13247_v35  ;;  %v13327_v16 = vld [vmem:[#allocation18 + $0x224] ss:$24 sps:$4 sm:$0xff]   ;;  %v13322_v35 = vld [vmem:[#allocation18 + $0xb18] ss:$24 sps:$4 sm:$0xff]  }
 0x7a1   :  { %10588 = vmatprep.subr.bf16.mxu1 %v13252_v8  ;;  %10631 = vmatprep.subr.bf16.mxu0 %v13255_v44  ;;  %v13325_v8 = vld [vmem:[#allocation18 + $0x220] ss:$24 sps:$4 sm:$0xff]   ;;  %v13330_v44 = vld [vmem:[#allocation18 + $0xaec] ss:$24 sps:$4 sm:$0xff]  }
 0x7a3   :  { %10535 = vmatmul.mubr.bf16.vlgmr.msra.gmra.mxu1 %v14181_v9  ;;  %10578 = vmatmul.mubr.bf16.vlgmr.msra.gmra.mxu0 %v14191_v13 }
 0x7a4   :  { %10589 = vmatpush1.bf16.msra.mxu1 %v13250_v36  ;;  %10620 = vmatprep.mubr.bf16.mxu1 %v14202_v15  ;;  %v13333_v36 = vld [vmem:[#allocation18 + $0x1f4] ss:$24 sps:$4 sm:$0xff]  }
 0x7a5   :  { %10632 = vmatpush1.bf16.msra.mxu0 %v13253_v39  ;;  %10663 = vmatprep.mubr.bf16.mxu0 %v14163_v60  ;;  %v13279_v60 = vld [vmem:[#allocation18 + $0xa4] ss:$24 sps:$4 sm:$0xff]   ;;  %v13328_v39 = vld [vmem:[#allocation18 + $0xae8] ss:$24 sps:$4 sm:$0xff]  }
 0x7a6   :  { %10590 = vmatprep.subr.bf16.mxu1 %v13258_v42  ;;  %10633 = vmatprep.subr.bf16.mxu0 %v13261_v43  ;;  %v13331_v42 = vld [vmem:[#allocation18 + $0x1f0] ss:$24 sps:$4 sm:$0xff]   ;;  %v13336_v43 = vld [vmem:[#allocation18 + $0xabc] ss:$24 sps:$4 sm:$0xff]  }
 0x7a8   :  { %10591 = vmatpush1.bf16.msra.mxu1 %v13256_v45  ;;  %v13339_v45 = vld [vmem:[#allocation18 + $0x1c4] ss:$24 sps:$4 sm:$0xff]  }
 0x7a9   :  { %10634 = vmatpush1.bf16.msra.mxu0 %v13259_v46  ;;  %10592 = vmatprep.subr.bf16.mxu1 %v13264_v48  ;;  %v13334_v46 = vld [vmem:[#allocation18 + $0xab8] ss:$24 sps:$4 sm:$0xff]  }
 0x7aa   :  { %10635 = vmatprep.subr.bf16.mxu0 %v13267_v10  ;;  %v13337_v48 = vld [vmem:[#allocation18 + $0x1c0] ss:$24 sps:$4 sm:$0xff]   ;;  %v13342_v10 = vld [vmem:[#allocation18 + $0xa8c] ss:$24 sps:$4 sm:$0xff]  }
 0x7ac   :  { %10593 = vmatpush1.bf16.msra.mxu1 %v13262_v51  ;;  %v13345_v51 = vld [vmem:[#allocation18 + $0x194] ss:$24 sps:$4 sm:$0xff]  }
 0x7ad   :  { %10636 = vmatpush1.bf16.msra.mxu0 %v13265_v52  ;;  %10594 = vmatprep.subr.bf16.mxu1 %v13270_v53  ;;  %v13340_v52 = vld [vmem:[#allocation18 + $0xa88] ss:$24 sps:$4 sm:$0xff]  }
 0x7ae   :  { %10637 = vmatprep.subr.bf16.mxu0 %v13273_v56  ;;  %v13343_v53 = vld [vmem:[#allocation18 + $0x190] ss:$24 sps:$4 sm:$0xff]   ;;  %v13348_v56 = vld [vmem:[#allocation18 + $0x464] ss:$24 sps:$4 sm:$0xff]  }
 0x7b0   :  { %10595 = vmatpush1.bf16.msra.mxu1 %v13268_v34  ;;  %v13351_v34 = vld [vmem:[#allocation18 + $0x764] ss:$24 sps:$4 sm:$0xff]  }
 0x7b1   :  { %10638 = vmatpush1.bf16.msra.mxu0 %v13271_v55  ;;  %10596 = vmatprep.subr.bf16.mxu1 %v13276_v59  ;;  %v13346_v55 = vld [vmem:[#allocation18 + $0x460] ss:$24 sps:$4 sm:$0xff]  }
 0x7b2   :  { %10639 = vmatprep.subr.bf16.mxu0 %v13279_v60  ;;  %v13349_v59 = vld [vmem:[#allocation18 + $0x760] ss:$24 sps:$4 sm:$0xff]   ;;  %v13354_v60 = vld [vmem:[#allocation18 + $0x434] ss:$24 sps:$4 sm:$0xff]  }
 0x7b4   :  { %10597 = vmatpush1.bf16.msra.mxu1 %v13274_v41  ;;  %v13357_v41 = vld [vmem:[#allocation18 + $0x734] ss:$24 sps:$4 sm:$0xff]  }
 0x7b5   :  { %10640 = vmatpush1.bf16.msra.mxu0 %v13277_v17  ;;  %10598 = vmatprep.subr.bf16.mxu1 %v13282_v62  ;;  %v13352_v17 = vld [vmem:[#allocation18 + $0x430] ss:$24 sps:$4 sm:$0xff]  }
 0x7b6   :  { %10641 = vmatprep.subr.bf16.mxu0 %v13285_v0  ;;  %v13355_v62 = vld [vmem:[#allocation18 + $0x730] ss:$24 sps:$4 sm:$0xff]   ;;  %v13360_v0 = vld [vmem:[#allocation18 + $0x404] ss:$24 sps:$4 sm:$0xff]  }
 0x7b8   :  { %10599 = vmatpush1.bf16.msra.mxu1 %v13280_v37  ;;  %v13363_v37 = vld [vmem:[#allocation18 + $0x704] ss:$24 sps:$4 sm:$0xff]  }
 0x7b9   :  { %10642 = vmatpush1.bf16.msra.mxu0 %v13283_v25  ;;  %10600 = vmatprep.subr.bf16.mxu1 %v13288_v2  ;;  %v13358_v25 = vld [vmem:[#allocation18 + $0x400] ss:$24 sps:$4 sm:$0xff]  }
 0x7ba   :  { %10643 = vmatprep.subr.bf16.mxu0 %v13291_v32  ;;  %v13361_v2 = vld [vmem:[#allocation18 + $0x700] ss:$24 sps:$4 sm:$0xff]   ;;  %v13366_v32 = vld [vmem:[#allocation18 + $0x3d4] ss:$24 sps:$4 sm:$0xff]  }
 0x7bc   :  { %10601 = vmatpush1.bf16.msra.mxu1 %v13286_v50  ;;  %v13364_v50 = vld [vmem:[#allocation18 + $0x3d0] ss:$24 sps:$4 sm:$0xff]  }
 0x7bd   :  { %10644 = vmatpush1.bf16.msra.mxu0 %v13289_v47  ;;  %10602 = vmatprep.subr.bf16.mxu1 %v13294_v38  ;;  %v13372_v47 = vld [vmem:[#allocation18 + $0x3a4] ss:$24 sps:$4 sm:$0xff]  }
 0x7be   :  { %10645 = vmatprep.subr.bf16.mxu0 %v13297_v30  ;;  %v13375_v38 = vld [vmem:[#allocation18 + $0x6a4] ss:$24 sps:$4 sm:$0xff]   ;;  %v13373_v30 = vld [vmem:[#allocation18 + $0x6a0] ss:$24 sps:$4 sm:$0xff]  }
 0x7c0   :  { %10603 = vmatpush1.bf16.msra.mxu1 %v13292_v3  ;;  %v13378_v3 = vld [vmem:[#allocation18 + $0x374] ss:$24 sps:$4 sm:$0xff]  }
 0x7c1   :  { %10646 = vmatpush1.bf16.msra.mxu0 %v13295_v58  ;;  %10604 = vmatprep.subr.bf16.mxu1 %v13300_v5  ;;  %v13381_v58 = vld [vmem:[#allocation18 + $0x674] ss:$24 sps:$4 sm:$0xff]   ;;  %v13376_v5 = vld [vmem:[#allocation18 + $0x370] ss:$24 sps:$4 sm:$0xff]  }
 0x7c2   :  { %10647 = vmatprep.subr.bf16.mxu0 %v13303_v19  ;;  %v13379_v19 = vld [vmem:[#allocation18 + $0x670] ss:$24 sps:$4 sm:$0xff]  }
 0x7c4   :  { %10605 = vmatpush2.bf16.msra.mxu1 %v13298_v63  ;;  %v13384_v63 = vld [vmem:[#allocation18 + $0x344] ss:$24 sps:$4 sm:$0xff]  }
 0x7c5   :  { %10648 = vmatpush2.bf16.msra.mxu0 %v13301_v11  ;;  %10606 = vmatprep.subr.bf16.mxu1 %v13306_v24  ;;  %v13387_v11 = vld [vmem:[#allocation18 + $0x644] ss:$24 sps:$4 sm:$0xff]   ;;  %v13382_v24 = vld [vmem:[#allocation18 + $0x340] ss:$24 sps:$4 sm:$0xff]  }
 0x7c6   :  { %10649 = vmatprep.subr.bf16.mxu0 %v13309_v54  ;;  %v13385_v54 = vld [vmem:[#allocation18 + $0x640] ss:$24 sps:$4 sm:$0xff]  }
 0x7c8   :  { %10607 = vmatpush2.bf16.msra.mxu1 %v13304_v14  ;;  %v13390_v14 = vld [vmem:[#allocation18 + $0x314] ss:$24 sps:$4 sm:$0xff]  }
 0x7c9   :  { %10650 = vmatpush2.bf16.msra.mxu0 %v13307_v57  ;;  %10608 = vmatprep.subr.bf16.mxu1 %v13312_v18  ;;  %v13393_v57 = vld [vmem:[#allocation18 + $0x614] ss:$24 sps:$4 sm:$0xff]   ;;  %v13388_v18 = vld [vmem:[#allocation18 + $0x310] ss:$24 sps:$4 sm:$0xff]  }
 0x7ca   :  { %10651 = vmatprep.subr.bf16.mxu0 %v13315_v22  ;;  %v13391_v22 = vld [vmem:[#allocation18 + $0x610] ss:$24 sps:$4 sm:$0xff]  }
 0x7cc   :  { %10609 = vmatpush2.bf16.msra.mxu1 %v13310_v49  ;;  %v13396_v49 = vld [vmem:[#allocation18 + $0x5e4] ss:$24 sps:$4 sm:$0xff]  }
 0x7cd   :  { %10652 = vmatpush2.bf16.msra.mxu0 %v13313_v28  ;;  %10610 = vmatprep.subr.bf16.mxu1 %v13318_v29  ;;  %v13399_v28 = vld [vmem:[#allocation18 + $0x8e4] ss:$24 sps:$4 sm:$0xff]   ;;  %v13394_v29 = vld [vmem:[#allocation18 + $0x5e0] ss:$24 sps:$4 sm:$0xff]  }
 0x7ce   :  { %10653 = vmatprep.subr.bf16.mxu0 %v13321_v26  ;;  %v13397_v26 = vld [vmem:[#allocation18 + $0x8e0] ss:$24 sps:$4 sm:$0xff]  }
 0x7d0   :  { %10611 = vmatpush2.bf16.msra.mxu1 %v13316_v1  ;;  %v13402_v1 = vld [vmem:[#allocation18 + $0x5b4] ss:$24 sps:$4 sm:$0xff]  }
 0x7d1   :  { %10654 = vmatpush2.bf16.msra.mxu0 %v13319_v31  ;;  %10612 = vmatprep.subr.bf16.mxu1 %v13324_v7  ;;  %v13405_v31 = vld [vmem:[#allocation18 + $0x8b4] ss:$24 sps:$4 sm:$0xff]   ;;  %v13400_v7 = vld [vmem:[#allocation18 + $0x5b0] ss:$24 sps:$4 sm:$0xff]  }
 0x7d2   :  { %10655 = vmatprep.subr.bf16.mxu0 %v13327_v16  ;;  %v13403_v16 = vld [vmem:[#allocation18 + $0x8b0] ss:$24 sps:$4 sm:$0xff]  }
 0x7d4   :  { %10613 = vmatpush2.bf16.msra.mxu1 %v13322_v35  ;;  %v13408_v35 = vld [vmem:[#allocation18 + $0x584] ss:$24 sps:$4 sm:$0xff]  }
 0x7d5   :  { %10656 = vmatpush2.bf16.msra.mxu0 %v13325_v8  ;;  %10614 = vmatprep.subr.bf16.mxu1 %v13330_v44  ;;  %v13411_v8 = vld [vmem:[#allocation18 + $0x884] ss:$24 sps:$4 sm:$0xff]   ;;  %v13406_v44 = vld [vmem:[#allocation18 + $0x580] ss:$24 sps:$4 sm:$0xff]  }
 0x7d6   :  { %10657 = vmatprep.subr.bf16.mxu0 %v13333_v36  ;;  %v13409_v36 = vld [vmem:[#allocation18 + $0x880] ss:$24 sps:$4 sm:$0xff]  }
 0x7d8   :  { %10615 = vmatpush2.bf16.msra.mxu1 %v13328_v39  ;;  %v13414_v39 = vld [vmem:[#allocation18 + $0x554] ss:$24 sps:$4 sm:$0xff]  }
 0x7d9   :  { %10658 = vmatpush2.bf16.msra.mxu0 %v13331_v42  ;;  %10616 = vmatprep.subr.bf16.mxu1 %v13336_v43  ;;  %v13417_v42 = vld [vmem:[#allocation18 + $0x854] ss:$24 sps:$4 sm:$0xff]   ;;  %v10321_v43 = vpop.f32.mrf.mxu0 }
 0x7da   :  { %10659 = vmatprep.subr.bf16.mxu0 %v13339_v45  ;;  %v13412_v45 = vld [vmem:[#allocation18 + $0x550] ss:$24 sps:$4 sm:$0xff]  }
 0x7dc   :  { %10617 = vmatpush2.bf16.msra.mxu1 %v13334_v46  ;;  %v13415_v46 = vld [vmem:[#allocation18 + $0x850] ss:$24 sps:$4 sm:$0xff]  }
 0x7dd   :  { %10660 = vmatpush2.bf16.msra.mxu0 %v13337_v48  ;;  %10618 = vmatprep.subr.bf16.mxu1 %v13342_v10  ;;  %v13420_v48 = vld [vmem:[#allocation18 + $0x524] ss:$24 sps:$4 sm:$0xff]  }
 0x7de   :  { %10661 = vmatprep.subr.bf16.mxu0 %v13345_v51  ;;  %v13423_v10 = vld [vmem:[#allocation18 + $0x824] ss:$24 sps:$4 sm:$0xff]   ;;  %v10323_v51 = vpop.f32.mrf.mxu0 }
 0x7e0   :  { %10619 = vmatpush2.bf16.msra.mxu1 %v13340_v52  ;;  %v13418_v52 = vld [vmem:[#allocation18 + $0x520] ss:$24 sps:$4 sm:$0xff]  }
 0x7e1   :  { %10662 = vmatpush2.bf16.msra.mxu0 %v13343_v53  ;;  %10674 = vmatprep.subr.bf16.mxu1 %v13348_v56  ;;  %v13421_v53 = vld [vmem:[#allocation18 + $0x820] ss:$24 sps:$4 sm:$0xff]   ;;  %v13426_v56 = vld [vmem:[#allocation18 + $0x4f4] ss:$24 sps:$4 sm:$0xff]  }
 0x7e2   :  { %10717 = vmatprep.subr.bf16.mxu0 %v13351_v34  ;;  %v13429_v34 = vld [vmem:[#allocation18 + $0x7f4] ss:$24 sps:$4 sm:$0xff]  }
 0x7e3   :  { %10621 = vmatmul.mubr.bf16.vlgmr.msra.gmra.mxu1 %v14204_v20 }
 0x7e4   :  { %10664 = vmatmul.mubr.bf16.vlgmr.msra.gmra.mxu0 %v14172_v21  ;;  %10675 = vmatpush1.bf16.msra.mxu1 %v13346_v55  ;;  %v13369_v21 = vld [vmem:[#allocation18 + $0x6d4] ss:$24 sps:$4 sm:$0xff]   ;;  %v10325_v55 = vpop.f32.mrf.mxu0 }
 0x7e5   :  { %10706 = vmatprep.mubr.bf16.mxu1 %v14179_v40  ;;  %10718 = vmatpush1.bf16.msra.mxu0 %v13349_v59  ;;  %v13367_v40 = vld [vmem:[#allocation18 + $0x6d0] ss:$24 sps:$4 sm:$0xff]  }
 0x7e6   :  { %10749 = vmatprep.mubr.bf16.mxu0 %v14189_v12  ;;  %10676 = vmatprep.subr.bf16.mxu1 %v13354_v60  ;;  %v13370_v12 = vld [vmem:[#allocation18 + $0x3a0] ss:$24 sps:$4 sm:$0xff]   ;;  %v13424_v59 = vld [vmem:[#allocation18 + $0x4f0] ss:$24 sps:$4 sm:$0xff]   ;;  %v10364_v60 = vpop.f32.mrf.mxu1 }
 0x7e7   :  { %10719 = vmatprep.subr.bf16.mxu0 %v13357_v41  ;;  %v13427_v41 = vld [vmem:[#allocation18 + $0x7f0] ss:$24 sps:$4 sm:$0xff]  }
 0x7e8   :  { %10677 = vmatpush1.bf16.msra.mxu1 %v13352_v17  ;;  %v13432_v17 = vld [vmem:[#allocation18 + $0x4c4] ss:$24 sps:$4 sm:$0xff]  }
 0x7e9   :  { %10720 = vmatpush1.bf16.msra.mxu0 %v13355_v62  ;;  %10678 = vmatprep.subr.bf16.mxu1 %v13360_v0  ;;  %v13435_v62 = vld [vmem:[#allocation18 + $0x7c4] ss:$24 sps:$4 sm:$0xff]  }
 0x7ea   :  { %10721 = vmatprep.subr.bf16.mxu0 %v13363_v37  ;;  %v14219_v0 = vld [vmem:[#allocation19] sm:$0x3f]  ;;  %v10327_v37 = vpop.f32.mrf.mxu0 }
 0x7ec   :  { %10679 = vmatpush1.bf16.msra.mxu1 %v13358_v25  ;;  %v13430_v25 = vld [vmem:[#allocation18 + $0x4c0] ss:$24 sps:$4 sm:$0xff]  }
 0x7ed   :  { %10722 = vmatpush1.bf16.msra.mxu0 %v13361_v2  ;;  %10680 = vmatprep.subr.bf16.mxu1 %v13366_v32  ;;  %v10366_v2 = vpop.f32.mrf.mxu1  ;;  %v10407_v32 = vpop.f32.mrf.mxu0 }
 0x7ee   :  { %10723 = vmatprep.subr.bf16.mxu0 %v13369_v21  ;;  %v13433_v21 = vld [vmem:[#allocation18 + $0x7c0] ss:$24 sps:$4 sm:$0xff]  }
 0x7f0   :  { %10681 = vmatpush1.bf16.msra.mxu1 %v13364_v50  ;;  %v13438_v50 = vld [vmem:[#allocation18 + $0x494] ss:$24 sps:$4 sm:$0xff]  }
 0x7f1   :  { %10724 = vmatpush1.bf16.msra.mxu0 %v13367_v40  ;;  %10682 = vmatprep.subr.bf16.mxu1 %v13372_v47  ;;  %v8340_v40 = vrot.slane %v14219_v0, %v13997_v61  ;;  %v13441_v47 = vld [vmem:[#allocation18 + $0x794] ss:$24 sps:$4 sm:$0xff]  }
 0x7f2   :  { %10725 = vmatprep.subr.bf16.mxu0 %v13375_v38  ;;  %v8344_v38 = vrot.slane %v14219_v0, %v14025_v33 }
 0x7f3   :  { %v10326_v33 = vadd.f32 %v10325_v55, %v8340_v40 }
 0x7f4   :  { %10683 = vmatpush1.bf16.msra.mxu1 %v13370_v12  ;;  %v13436_v12 = vld [vmem:[#allocation18 + $0x490] ss:$24 sps:$4 sm:$0xff]  }
 0x7f5   :  { %10726 = vmatpush1.bf16.msra.mxu0 %v13373_v30  ;;  %10684 = vmatprep.subr.bf16.mxu1 %v13378_v3  ;;  %v10368_v30 = vpop.f32.mrf.mxu1  ;;  %v10409_v3 = vpop.f32.mrf.mxu0 }
 0x7f6   :  { %10727 = vmatprep.subr.bf16.mxu0 %v13381_v58  ;;  %v13439_v58 = vld [vmem:[#allocation18 + $0x790] ss:$24 sps:$4 sm:$0xff]  }
 0x7f7   :  { %v10370_v61 = vpop.f32.mrf.mxu1 }
 0x7f8   :  { %10685 = vmatpush1.bf16.msra.mxu1 %v13376_v5  ;;  %v13444_v5 = vld [vmem:[#allocation18 + $0xa64] ss:$24 sps:$4 sm:$0xff]  }
 0x7f9   :  { %10728 = vmatpush1.bf16.msra.mxu0 %v13379_v19  ;;  %10686 = vmatprep.subr.bf16.mxu1 %v13384_v63  ;;  %v10322_v19 = vadd.f32 %v10321_v43, %v8340_v40  ;;  %v10324_v63 = vadd.f32 %v10323_v51, %v8344_v38  ;;  %v13451_v51 = vld [vmem:[#allocation18 + $0x9d0] ss:$24 sps:$4 sm:$0xff]   ;;  %v13468_v40 = vld [vmem:[#allocation18 + $0xbe4] ss:$24 sps:$4 sm:$0xff]  }
 0x7fa   :  { %10729 = vmatprep.subr.bf16.mxu0 %v13387_v11 }
 0x7fb   :  { %v10365_v11 = vadd.f32 %v10364_v60, %v10322_v19 }
 0x7fc   :  { %10687 = vmatpush1.bf16.msra.mxu1 %v13382_v24  ;;  %v13442_v24 = vld [vmem:[#allocation18 + $0xa60] ss:$24 sps:$4 sm:$0xff]  }
 0x7fd   :  { %10730 = vmatpush1.bf16.msra.mxu0 %v13385_v54  ;;  %10688 = vmatprep.subr.bf16.mxu1 %v13390_v14  ;;  %v10411_v54 = vpop.f32.mrf.mxu0  ;;  %v13447_v14 = vld [vmem:[#allocation18 + $0xa34] ss:$24 sps:$4 sm:$0xff]  }
 0x7fe   :  { %10731 = vmatprep.subr.bf16.mxu0 %v13393_v57  ;;  %v10367_v57 = vadd.f32 %v10366_v2, %v10324_v63  ;;  %v13477_v63 = vld [vmem:[#allocation18 + $0xb54] ss:$24 sps:$4 sm:$0xff]  }
 0x800   :  { %10689 = vmatpush1.bf16.msra.mxu1 %v13388_v18  ;;  %v10408_v18 = vadd.f32 %v10407_v32, %v10365_v11 }
 0x801   :  { %10732 = vmatpush1.bf16.msra.mxu0 %v13391_v22  ;;  %10690 = vmatprep.subr.bf16.mxu1 %v13396_v49  ;;  %v10328_v22 = vadd.f32 %v10327_v37, %v8344_v38  ;;  %v13471_v38 = vld [vmem:[#allocation18 + $0xbb4] ss:$24 sps:$4 sm:$0xff]  }
 0x802   :  { %10733 = vmatprep.subr.bf16.mxu0 %v13399_v28  ;;  %v10369_v28 = vadd.f32 %v10368_v30, %v10326_v33  ;;  %v13481_v33 = vld [vmem:[#allocation18 + $0xaf0] ss:$24 sps:$4 sm:$0xff]  }
 0x804   :  { %10691 = vmatpush2.bf16.msra.mxu1 %v13394_v29  ;;  %v10410_v29 = vadd.f32 %v10409_v3, %v10367_v57  ;;  %v13474_v3 = vld [vmem:[#allocation18 + $0xb84] ss:$24 sps:$4 sm:$0xff]  }
 0x805   :  { %10734 = vmatpush2.bf16.msra.mxu0 %v13397_v26  ;;  %10692 = vmatprep.subr.bf16.mxu1 %v13402_v1  ;;  %v13445_v1 = vld [vmem:[#allocation18 + $0xa30] ss:$24 sps:$4 sm:$0xff]   ;;  %v13486_v57 = vld [vmem:[#allocation18 + $0xac4] ss:$24 sps:$4 sm:$0xff]  }
 0x806   :  { %10735 = vmatprep.subr.bf16.mxu0 %v13405_v31  ;;  %v10413_v31 = vpop.f32.mrf.mxu0 }
 0x808   :  { %10693 = vmatpush2.bf16.msra.mxu1 %v13400_v7 }
 0x809   :  { %10736 = vmatpush2.bf16.msra.mxu0 %v13403_v16  ;;  %10694 = vmatprep.subr.bf16.mxu1 %v13408_v35  ;;  %v13450_v16 = vld [vmem:[#allocation18 + $0xa04] ss:$24 sps:$4 sm:$0xff]   ;;  %v10371_v35 = vadd.f32 %v10370_v61, %v10328_v22  ;;  %v13489_v22 = vld [vmem:[#allocation18 + $0xa94] ss:$24 sps:$4 sm:$0xff]  }
 0x80a   :  { %10737 = vmatprep.subr.bf16.mxu0 %v13411_v8  ;;  %v10412_v8 = vadd.f32 %v10411_v54, %v10369_v28  ;;  %v13480_v61 = vld [vmem:[#allocation18 + $0xb24] ss:$24 sps:$4 sm:$0xff]   ;;  %v13478_v54 = vld [vmem:[#allocation18 + $0xb20] ss:$24 sps:$4 sm:$0xff]  }
 0x80c   :  { %10695 = vmatpush2.bf16.msra.mxu1 %v13406_v44 }
 0x80d   :  { %10738 = vmatpush2.bf16.msra.mxu0 %v13409_v36  ;;  %10696 = vmatprep.subr.bf16.mxu1 %v13414_v39 }
 0x80e   :  { %10739 = vmatprep.subr.bf16.mxu0 %v13417_v42 }
 0x810   :  { %10697 = vmatpush2.bf16.msra.mxu1 %v13412_v45 }
 0x811   :  { %10740 = vmatpush2.bf16.msra.mxu0 %v13415_v46  ;;  %10698 = vmatprep.subr.bf16.mxu1 %v13420_v48  ;;  %v13453_v46 = vld [vmem:[#allocation18 + $0x9d4] ss:$24 sps:$4 sm:$0xff]  }
 0x812   :  { %10741 = vmatprep.subr.bf16.mxu0 %v13423_v10 }
 0x814   :  { %10699 = vmatpush2.bf16.msra.mxu1 %v13418_v52  ;;  %v13456_v52 = vld [vmem:[#allocation18 + $0x9a4] ss:$24 sps:$4 sm:$0xff]  }
 0x815   :  { %10742 = vmatpush2.bf16.msra.mxu0 %v13421_v53  ;;  %10700 = vmatprep.subr.bf16.mxu1 %v13426_v56  ;;  %v13454_v53 = vld [vmem:[#allocation18 + $0x9a0] ss:$24 sps:$4 sm:$0xff]   ;;  %v13459_v56 = vld [vmem:[#allocation18 + $0x974] ss:$24 sps:$4 sm:$0xff]  }
 0x816   :  { %10743 = vmatprep.subr.bf16.mxu0 %v13429_v34  ;;  %v13457_v34 = vld [vmem:[#allocation18 + $0x970] ss:$24 sps:$4 sm:$0xff]  }
 0x818   :  { %10701 = vmatpush2.bf16.msra.mxu1 %v13424_v59  ;;  %v13462_v59 = vld [vmem:[#allocation18 + $0x944] ss:$24 sps:$4 sm:$0xff]  }
 0x819   :  { %10744 = vmatpush2.bf16.msra.mxu0 %v13427_v41  ;;  %10702 = vmatprep.subr.bf16.mxu1 %v13432_v17 }
 0x81a   :  { %10745 = vmatprep.subr.bf16.mxu0 %v13435_v62  ;;  %v13460_v62 = vld [vmem:[#allocation18 + $0x940] ss:$24 sps:$4 sm:$0xff]  }
 0x81c   :  { %10703 = vmatpush2.bf16.msra.mxu1 %v13430_v25  ;;  %v13465_v25 = vld [vmem:[#allocation18 + $0x914] ss:$24 sps:$4 sm:$0xff]  }
 0x81d   :  { %10746 = vmatpush2.bf16.msra.mxu0 %v13433_v21  ;;  %10704 = vmatprep.subr.bf16.mxu1 %v13438_v50  ;;  %v13463_v50 = vld [vmem:[#allocation18 + $0x910] ss:$24 sps:$4 sm:$0xff]  }
 0x81e   :  { %10747 = vmatprep.subr.bf16.mxu0 %v13441_v47  ;;  %v13466_v47 = vld [vmem:[#allocation18 + $0xbe0] ss:$24 sps:$4 sm:$0xff]  }
 0x820   :  { %10705 = vmatpush2.bf16.msra.mxu1 %v13436_v12  ;;  %v13469_v12 = vld [vmem:[#allocation18 + $0xbb0] ss:$24 sps:$4 sm:$0xff]  }
 0x821   :  { %10748 = vmatpush2.bf16.msra.mxu0 %v13439_v58  ;;  %10760 = vmatprep.subr.bf16.mxu1 %v13444_v5  ;;  %v13472_v5 = vld [vmem:[#allocation18 + $0xb80] ss:$24 sps:$4 sm:$0xff]  }
 0x823   :  { %10707 = vmatmul.mubr.bf16.vlgmr.msra.gmra.mxu1 %v14181_v9  ;;  %v10450_v49 = vpop.f32.mrf.mxu1  ;;  %v10414_v9 = vadd.f32 %v10413_v31, %v10371_v35  ;;  %v10493_v28 = vpop.f32.mrf.mxu0  ;;  %v8348_v31 = vrot.slane %v14219_v0, %v14061_v27  ;;  %v8352_v35 = vrot.slane %v14219_v0, %v14037_v6 }
 0x824   :  { %10750 = vmatmul.mubr.bf16.vlgmr.msra.gmra.mxu0 %v14191_v13  ;;  %v10451_v26 = vadd.f32 %v10450_v49, %v10408_v18  ;;  %10761 = vmatpush1.bf16.msra.mxu1 %v13442_v24  ;;  %v13448_v13 = vld [vmem:[#allocation18 + $0xa00] ss:$24 sps:$4 sm:$0xff]   ;;  %v13475_v24 = vld [vmem:[#allocation18 + $0xb50] ss:$24 sps:$4 sm:$0xff]  }
 0x825   :  { %10792 = vmatprep.mubr.bf16.mxu1 %v14202_v15  ;;  %v10452_v7 = vpop.f32.mrf.mxu1  ;;  %10762 = vmatprep.subr.bf16.mxu1 %v13447_v14  ;;  %v13483_v14 = vld [vmem:[#allocation18 + $0xaf4] ss:$24 sps:$4 sm:$0xff]   ;;  %v13484_v18 = vld [vmem:[#allocation18 + $0xac0] ss:$24 sps:$4 sm:$0xff]   ;;  %v13487_v49 = vld [vmem:[#allocation18 + $0xa90] ss:$24 sps:$4 sm:$0xff]  }
 0x826   :  { %v12306_v44 = vmul.f32 -1.442695, %v10451_v26  ;;  %v10453_v36 = vadd.f32 %v10452_v7, %v10410_v29  ;;  %v10495_v29 = vpop.f32.mrf.mxu0 }
 0x827   :  { %v10454_v39 = vpop.f32.mrf.mxu1 }
 0x828   :  { %13490 = vpow2.f32 %v12306_v44  ;;  %v12307_v42 = vmul.f32 -1.442695, %v10453_v36  ;;  %v10455_v43 = vadd.f32 %v10454_v39, %v10412_v8  ;;  %10763 = vmatpush1.bf16.msra.mxu1 %v13445_v1  ;;  %v10497_v26 = vpop.f32.mrf.mxu0  ;;  %v10494_v44 = vadd.f32 %v10493_v28, %v8348_v31 }
 0x829   :  { %v10456_v45 = vpop.f32.mrf.mxu1  ;;  %10764 = vmatprep.subr.bf16.mxu1 %v13450_v16  ;;  %v10496_v39 = vadd.f32 %v10495_v29, %v8352_v35 }
 0x82a   :  { %13492 = vpow2.f32 %v12307_v42  ;;  %v12312_v48 = vmul.f32 -1.442695, %v10455_v43  ;;  %v10457_v15 = vadd.f32 %v10456_v45, %v10414_v9  ;;  %v10499_v7 = vpop.f32.mrf.mxu0  ;;  %v10498_v43 = vadd.f32 %v10497_v26, %v8348_v31 }
 0x82b   :  { %v10500_v45 = vadd.f32 %v10499_v7, %v8352_v35 }
 0x82c   :  { %13494 = vpow2.f32 %v12312_v48  ;;  %v12313_v10 = vmul.f32 -1.442695, %v10457_v15  ;;  %10765 = vmatpush1.bf16.msra.mxu1 %v13448_v13 }
 0x82d   :  { %10766 = vmatprep.subr.bf16.mxu1 %v13453_v46 }
 0x82e   :  { %13496 = vpow2.f32 %v12313_v10 }
 0x830   :  { %10767 = vmatpush1.bf16.msra.mxu1 %v13451_v51 }
 0x831   :  { %10768 = vmatprep.subr.bf16.mxu1 %v13456_v52 }
 0x834   :  { %10769 = vmatpush1.bf16.msra.mxu1 %v13454_v53 }
 0x835   :  { %v13491_v55 = vpop.eup %13490  ;;  %10770 = vmatprep.subr.bf16.mxu1 %v13459_v56 }
 0x836   :  { %v10839_v60 = vadd.f32 1.0, %v13491_v55 }
 0x837   :  { %v13493_v41 = vpop.eup %13492 }
 0x838   :  { %13498 = vrcp.f32 %v10839_v60  ;;  %v10840_v17 = vadd.f32 1.0, %v13493_v41  ;;  %10771 = vmatpush1.bf16.msra.mxu1 %v13457_v34 }
 0x839   :  { %v13495_v37 = vpop.eup %13494  ;;  %10772 = vmatprep.subr.bf16.mxu1 %v13462_v59 }
 0x83a   :  { %13500 = vrcp.f32 %v10840_v17  ;;  %v10845_v2 = vadd.f32 1.0, %v13495_v37 }
 0x83b   :  { %v13497_v32 = vpop.eup %13496 }
 0x83c   :  { %13502 = vrcp.f32 %v10845_v2  ;;  %v10846_v21 = vadd.f32 1.0, %v13497_v32  ;;  %10773 = vmatpush1.bf16.msra.mxu1 %v13460_v62 }
 0x83d   :  { %10774 = vmatprep.subr.bf16.mxu1 %v13465_v25 }
 0x83e   :  { %13504 = vrcp.f32 %v10846_v21 }
 0x840   :  { %10775 = vmatpush1.bf16.msra.mxu1 %v13463_v50 }
 0x841   :  { %10776 = vmatprep.subr.bf16.mxu1 %v13468_v40 }
 0x844   :  { %10777 = vmatpush2.bf16.msra.mxu1 %v13466_v47 }
 0x845   :  { %v13499_v30 = vpop.eup %13498  ;;  %10778 = vmatprep.subr.bf16.mxu1 %v13471_v38 }
 0x846   :  { %10875 = vst [vmem:[%s14286_s13] sm:$0xff] %v13499_v30 }
 0x847   :  { %v13501_v58 = vpop.eup %13500 }
 0x848   :  { %10876 = vst [vmem:[%s14286_s13 + $0x8] sm:$0xff] %v13501_v58  ;;  %10779 = vmatpush2.bf16.msra.mxu1 %v13469_v12 }
 0x849   :  { %v13503_v19 = vpop.eup %13502  ;;  %10780 = vmatprep.subr.bf16.mxu1 %v13474_v3 }
 0x84a   :  { %10881 = vst [vmem:[%s14286_s13 + $0x30] sm:$0xff] %v13503_v19 }
 0x84b   :  { %v13505_v11 = vpop.eup %13504 }
 0x84c   :  { %10882 = vst [vmem:[%s14286_s13 + $0x38] sm:$0xff] %v13505_v11  ;;  %10781 = vmatpush2.bf16.msra.mxu1 %v13472_v5 }
 0x84d   :  { %10782 = vmatprep.subr.bf16.mxu1 %v13477_v63 }
 0x850   :  { %10783 = vmatpush2.bf16.msra.mxu1 %v13475_v24 }
 0x851   :  { %10784 = vmatprep.subr.bf16.mxu1 %v13480_v61 }
 0x854   :  { %10785 = vmatpush2.bf16.msra.mxu1 %v13478_v54  ;;  %v8356_v54 = vrot.slane %v14219_v0, %v14079_v4 }
 0x855   :  { %10786 = vmatprep.subr.bf16.mxu1 %v13483_v14 }
 0x858   :  { %10787 = vmatpush2.bf16.msra.mxu1 %v13481_v33 }
 0x859   :  { %10788 = vmatprep.subr.bf16.mxu1 %v13486_v57  ;;  %v8360_v57 = vrot.slane %v14219_v0, %v14076_v23 }
 0x85c   :  { %10789 = vmatpush2.bf16.msra.mxu1 %v13484_v18 }
 0x85d   :  { %10790 = vmatprep.subr.bf16.mxu1 %v13489_v22 }
 0x860   :  { %10791 = vmatpush2.bf16.msra.mxu1 %v13487_v49 }
 0x863   :  { %10793 = vmatmul.mubr.bf16.vlgmr.msra.gmra.mxu1 %v14204_v20  ;;  %v10536_v1 = vpop.f32.mrf.mxu1  ;;  %v10579_v8 = vpop.f32.mrf.mxu0 }
 0x864   :  { %v10537_v9 = vadd.f32 %v10536_v1, %v10494_v44 }
 0x865   :  { %v10538_v16 = vpop.f32.mrf.mxu1  ;;  %v10581_v42 = vpop.f32.mrf.mxu0 }
 0x866   :  { %v10539_v20 = vadd.f32 %v10538_v16, %v10496_v39  ;;  %v10580_v46 = vadd.f32 %v10579_v8, %v10537_v9 }
 0x867   :  { %v10540_v36 = vpop.f32.mrf.mxu1  ;;  %v10583_v15 = vpop.f32.mrf.mxu0 }
 0x868   :  { %v10541_v48 = vadd.f32 %v10540_v36, %v10498_v43  ;;  %v10582_v27 = vadd.f32 %v10581_v42, %v10539_v20 }
 0x869   :  { %v10542_v13 = vpop.f32.mrf.mxu1  ;;  %v10585_v55 = vpop.f32.mrf.mxu0 }
 0x86a   :  { %v10543_v51 = vadd.f32 %v10542_v13, %v10500_v45  ;;  %v10584_v56 = vadd.f32 %v10583_v15, %v10541_v48 }
 0x86c   :  { %v10586_v60 = vadd.f32 %v10585_v55, %v10543_v51 }
 0x8a3   :  { %v10622_v10 = vpop.f32.mrf.mxu1 }
 0x8a4   :  { %v10623_v52 = vadd.f32 %v10622_v10, %v10580_v46  ;;  %v10665_v63 = vpop.f32.mrf.mxu0 }
 0x8a5   :  { %v10624_v53 = vpop.f32.mrf.mxu1  ;;  %v10666_v22 = vadd.f32 %v10665_v63, %v8356_v54 }
 0x8a6   :  { %v12308_v6 = vmul.f32 -1.442695, %v10623_v52  ;;  %v10625_v34 = vadd.f32 %v10624_v53, %v10582_v27  ;;  %v10667_v11 = vpop.f32.mrf.mxu0 }
 0x8a7   :  { %v10626_v59 = vpop.f32.mrf.mxu1  ;;  %v10668_v28 = vadd.f32 %v10667_v11, %v8360_v57 }
 0x8a8   :  { %13506 = vpow2.f32 %v12308_v6  ;;  %v12309_v41 = vmul.f32 -1.442695, %v10625_v34  ;;  %v10627_v17 = vadd.f32 %v10626_v59, %v10584_v56  ;;  %v10669_v24 = vpop.f32.mrf.mxu0 }
 0x8a9   :  { %v10628_v62 = vpop.f32.mrf.mxu1  ;;  %v10670_v1 = vadd.f32 %v10669_v24, %v8356_v54 }
 0x8aa   :  { %13508 = vpow2.f32 %v12309_v41  ;;  %v12314_v37 = vmul.f32 -1.442695, %v10627_v17  ;;  %v10629_v25 = vadd.f32 %v10628_v62, %v10586_v60  ;;  %v10671_v14 = vpop.f32.mrf.mxu0 }
 0x8ab   :  { %v10672_v16 = vadd.f32 %v10671_v14, %v8360_v57 }
 0x8ac   :  { %13510 = vpow2.f32 %v12314_v37  ;;  %v12315_v2 = vmul.f32 -1.442695, %v10629_v25 }
 0x8ae   :  { %13512 = vpow2.f32 %v12315_v2 }
 0x8b5   :  { %v13507_v32 = vpop.eup %13506 }
 0x8b6   :  { %v10841_v21 = vadd.f32 1.0, %v13507_v32 }
 0x8b7   :  { %v13509_v50 = vpop.eup %13508 }
 0x8b8   :  { %13514 = vrcp.f32 %v10841_v21  ;;  %v10842_v40 = vadd.f32 1.0, %v13509_v50 }
 0x8b9   :  { %v13511_v47 = vpop.eup %13510 }
 0x8ba   :  { %13516 = vrcp.f32 %v10842_v40  ;;  %v10847_v38 = vadd.f32 1.0, %v13511_v47 }
 0x8bb   :  { %v13513_v12 = vpop.eup %13512 }
 0x8bc   :  { %13518 = vrcp.f32 %v10847_v38  ;;  %v10848_v30 = vadd.f32 1.0, %v13513_v12 }
 0x8be   :  { %13520 = vrcp.f32 %v10848_v30 }
 0x8c5   :  { %v13515_v3 = vpop.eup %13514 }
 0x8c6   :  { %10877 = vst [vmem:[%s14286_s13 + $0x10] sm:$0xff] %v13515_v3 }
 0x8c7   :  { %v13517_v58 = vpop.eup %13516 }
 0x8c8   :  { %10878 = vst [vmem:[%s14286_s13 + $0x18] sm:$0xff] %v13517_v58 }
 0x8c9   :  { %v13519_v5 = vpop.eup %13518 }
 0x8ca   :  { %10883 = vst [vmem:[%s14286_s13 + $0x40] sm:$0xff] %v13519_v5 }
 0x8cb   :  { %v13521_v19 = vpop.eup %13520 }
 0x8cc   :  { %10884 = vst [vmem:[%s14286_s13 + $0x48] sm:$0xff] %v13521_v19 }
 0x8e3   :  { %v10708_v61 = vpop.f32.mrf.mxu1 }
 0x8e4   :  { %v10751_v18 = vpop.f32.mrf.mxu0  ;;  %v10709_v29 = vadd.f32 %v10708_v61, %v10666_v22 }
 0x8e5   :  { %v10710_v33 = vpop.f32.mrf.mxu1 }
 0x8e6   :  { %v10753_v26 = vpop.f32.mrf.mxu0  ;;  %v10711_v31 = vadd.f32 %v10710_v33, %v10668_v28  ;;  %v10752_v35 = vadd.f32 %v10751_v18, %v10709_v29 }
 0x8e7   :  { %v10712_v49 = vpop.f32.mrf.mxu1 }
 0x8e8   :  { %v10713_v8 = vadd.f32 %v10712_v49, %v10670_v1  ;;  %v10755_v44 = vpop.f32.mrf.mxu0  ;;  %v10754_v4 = vadd.f32 %v10753_v26, %v10711_v31 }
 0x8e9   :  { %v10714_v7 = vpop.f32.mrf.mxu1 }
 0x8ea   :  { %v10715_v39 = vadd.f32 %v10714_v7, %v10672_v16  ;;  %v10756_v43 = vadd.f32 %v10755_v44, %v10713_v8  ;;  %v10757_v20 = vpop.f32.mrf.mxu0 }
 0x8ec   :  { %v10758_v45 = vadd.f32 %v10757_v20, %v10715_v39 }
 0x923   :  { %v10794_v36 = vpop.f32.mrf.mxu1 }
 0x924   :  { %v10795_v9 = vadd.f32 %v10794_v36, %v10752_v35 }
 0x925   :  { %v10796_v42 = vpop.f32.mrf.mxu1 }
 0x926   :  { %v12310_v23 = vmul.f32 -1.442695, %v10795_v9  ;;  %v10797_v0 = vadd.f32 %v10796_v42, %v10754_v4 }
 0x927   :  { %v10798_v13 = vpop.f32.mrf.mxu1 }
 0x928   :  { %13522 = vpow2.f32 %v12310_v23  ;;  %v12311_v46 = vmul.f32 -1.442695, %v10797_v0  ;;  %v10799_v48 = vadd.f32 %v10798_v13, %v10756_v43 }
 0x929   :  { %v10800_v15 = vpop.f32.mrf.mxu1 }
 0x92a   :  { %13524 = vpow2.f32 %v12311_v46  ;;  %v12316_v10 = vmul.f32 -1.442695, %v10799_v48  ;;  %v10801_v27 = vadd.f32 %v10800_v15, %v10758_v45 }
 0x92c   :  { %13526 = vpow2.f32 %v12316_v10  ;;  %v12317_v51 = vmul.f32 -1.442695, %v10801_v27 }
 0x92e   :  { %13528 = vpow2.f32 %v12317_v51 }
 0x935   :  { %v13523_v52 = vpop.eup %13522 }
 0x936   :  { %v10843_v53 = vadd.f32 1.0, %v13523_v52 }
 0x937   :  { %v13525_v56 = vpop.eup %13524 }
 0x938   :  { %13530 = vrcp.f32 %v10843_v53  ;;  %v10844_v6 = vadd.f32 1.0, %v13525_v56 }
 0x939   :  { %v13527_v34 = vpop.eup %13526 }
 0x93a   :  { %13532 = vrcp.f32 %v10844_v6  ;;  %v10849_v55 = vadd.f32 1.0, %v13527_v34 }
 0x93b   :  { %v13529_v59 = vpop.eup %13528 }
 0x93c   :  { %13534 = vrcp.f32 %v10849_v55  ;;  %v10850_v60 = vadd.f32 1.0, %v13529_v59 }
 0x93e   :  { %13536 = vrcp.f32 %v10850_v60 }
 0x945   :  { %v13531_v41 = vpop.eup %13530 }
 0x946   :  { %10879 = vst [vmem:[%s14286_s13 + $0x20] sm:$0xff] %v13531_v41 }
 0x947   :  { %v13533_v17 = vpop.eup %13532 }
 0x948   :  { %10880 = vst [vmem:[%s14286_s13 + $0x28] sm:$0xff] %v13533_v17 }
 0x949   :  { %v13535_v62 = vpop.eup %13534 }
 0x94a   :  { %10885 = vst [vmem:[%s14286_s13 + $0x50] sm:$0xff] %v13535_v62 }
 0x94b   :  { %v13537_v37 = vpop.eup %13536 }
 0x94c   :  { %10886 = vst [vmem:[%s14286_s13 + $0x58] sm:$0xff] %v13537_v37 }
 0x94d   :  { %10891 = vsyncpa [#allocation3], 1 }
 0x94e   :  { %10892 = vsyncpa [#allocation5], 1 }
 0x94f   :  { %10893 = vsyncpa [#allocation8], 1 }
 0x950   :  { %10894 = vsyncpa [#allocation11], 1 }
 0x951   :  { %10895 = vsyncpa [#allocation14], 1 }
 0x952   :  { %10896 = vsyncpa [#allocation17], 1 }
 0x953   :  { %10897 = vsyncpa [#allocation20], 1 }

</bundles_post_ra>
